<compile_context>
chip_gen: v7x
topology: tpu7x:2x2x1
jax: 0.10.0
libtpu: 0.0.40
codegen_flags: <defaults>
</compile_context>

<pallas_src>
import math

import jax
import jax.numpy as jnp
from jax.experimental import pallas as pl
from jax.experimental.pallas import tpu as pltpu

BT = 8  # batch rows per tile -> sublane-dense (8, C_pad) accumulator


def _make_kernel(G, L_pad, n_t, C_pad):
    """Kernel closure over static tiling parameters."""

    def kernel(x_s, w_ref, bias_ref, emb_ref, o_ref, gbuf, sem):
        bt = pl.program_id(0)   # batch tile (parallel)
        t = pl.program_id(1)    # L tile (reduction / arbitrary)
        slot = t % 2

        def issue(t_step, s):
            # Gather the BT*G embedding rows referenced by step (bt, t_step) into
            # gbuf[s]; all row copies are issued back-to-back and share sem[s].
            row0 = bt * BT
            col0 = t_step * G
            for i in range(BT):                          # static unroll
                base = (row0 + i) * L_pad + col0
                for j in range(G):
                    idx = x_s[base + j]                  # scalar read from SMEM
                    pltpu.make_async_copy(
                        emb_ref.at[idx],                 # (C_pad,) row in HBM
                        gbuf.at[s, j, i],                # (C_pad,) row in VMEM
                        sem.at[s],
                    ).start()

        def wait_all(s):
            # All BT*G copies of slot s are the same size and share sem[s]; wait
            # for each with a reconstructed same-size descriptor.
            for _ in range(BT * G):
                pltpu.make_async_copy(
                    emb_ref.at[0], gbuf.at[s, 0, 0], sem.at[s]).wait()

        @pl.when(t == 0)
        def _prime_and_init():
            issue(0, 0)                                  # prime slot 0
            # Bias folded into the accumulator init (added exactly once).
            o_ref[...] = jnp.broadcast_to(bias_ref[...], (BT, C_pad))

        wait_all(slot)

        if n_t > 1:
            @pl.when(t + 1 < n_t)
            def _prefetch_next():
                # TODO(synk): prefetch depth 2 only; for very small C_pad rows a
                # depth-3/4 buffer (also prefetching t+2) would hide more latency.
                issue(t + 1, 1 - slot)

        wv = w_ref[0, 0]                                 # (BT, G) f32 weights
        acc = o_ref[...]                                 # (BT, C_pad) f32, VMEM-resident
        for j in range(G):                               # static unroll over slots
            acc = acc + wv[:, j:j + 1] * gbuf[slot, j]   # sublane-dense FMA
        o_ref[...] = acc

    return kernel


def prepare_params(emb, bias=None):
    """One-time preprocessing (call at init, NOT per forward):
    cast to f32 and pad the class dim to a multiple of 128 (lane-dense stores).
    Returns (emb_padded, bias_padded, num_classes)."""
    _, C = emb.shape
    C_pad = ((C + 127) // 128) * 128
    emb_p = emb.astype(jnp.float32)
    if C_pad != C:
        emb_p = jnp.pad(emb_p, ((0, 0), (0, C_pad - C)))
    bias_p = jnp.zeros((1, C_pad), jnp.float32)
    if bias is not None:
        bias_p = bias_p.at[0, :C].set(bias.astype(jnp.float32))
    return emb_p, bias_p, C


def sparse_linear_forward(x, w, emb_p, bias_p, num_classes, *, rows_per_step=8):
    """Pallas TPU forward for fonduer SparseLinear.

    x:       [B, L] integer feature indices (must lie in [0, num_features))
    w:       [B, L] float per-feature weights
    emb_p:   [F, C_pad] padded f32 table from prepare_params()
    bias_p:  [1, C_pad] padded f32 bias from prepare_params() (zeros if no bias)
    """
    B, L = x.shape
    _, C_pad = emb_p.shape
    C = num_classes

    G = max(1, min(rows_per_step, L))
    L_pad = pl.cdiv(L, G) * G
    n_t = L_pad // G
    B_pad = pl.cdiv(B, BT) * BT
    n_bt = B_pad // BT

    # Pad B and L: padded slots index row 0 with weight 0.0 -> contribute nothing.
    x_p = jnp.zeros((B_pad, L_pad), jnp.int32).at[:B, :L].set(x.astype(jnp.int32))
    w_p = jnp.zeros((B_pad, L_pad), jnp.float32).at[:B, :L].set(w.astype(jnp.float32))

    # Indices -> flat SMEM via scalar prefetch; drive the manual gather DMAs.
    # TODO(synk): for very large B*L, block x per batch tile instead of keeping the
    # whole flat index array resident in SMEM.
    x_flat = x_p.reshape(-1)

    # w re-tiled so each grid step streams one sublane-dense (BT, G) VMEM block.
    w_tiled = w_p.reshape(n_bt, BT, n_t, G).transpose(0, 2, 1, 3)

    grid_spec = pltpu.PrefetchScalarGridSpec(
        num_scalar_prefetch=1,                  # x_flat -> SMEM, visible to kernel
        grid=(n_bt, n_t),
        in_specs=[
            pl.BlockSpec((1, 1, BT, G), lambda bt, t, xs: (bt, t, 0, 0)),  # w
            pl.BlockSpec((1, C_pad), lambda bt, t, xs: (0, 0)),            # bias
            pl.BlockSpec(memory_space=pl.ANY),                             # emb (HBM)
        ],
        out_specs=pl.BlockSpec((BT, C_pad), lambda bt, t, xs: (bt, 0)),
        scratch_shapes=[
            pltpu.VMEM((2, G, BT, C_pad), jnp.float32),   # double-buffered gather
            pltpu.SemaphoreType.DMA((2,)),                # one sem per buffer slot
        ],
    )

    out = pl.pallas_call(
        _make_kernel(G, L_pad, n_t, C_pad),
        out_shape=jax.ShapeDtypeStruct((B_pad, C_pad), jnp.float32),
        grid_spec=grid_spec,
        compiler_params=pltpu.CompilerParams(
            dimension_semantics=("parallel", "arbitrary")),
        cost_estimate=pl.CostEstimate(
            flops=2 * B_pad * L_pad * C_pad,
            transcendentals=0,
            bytes_accessed=(B_pad * L_pad * C_pad + 2 * B_pad * C_pad) * 4
                           + B_pad * L_pad * 8),
    )(x_flat, w_tiled, bias_p, emb_p)

    return out[:B, :C]


def init_sparse_linear_params(key, num_features, num_classes, bias=False, padding_idx=0):
    """Deterministic re-implementation of SparseLinear.reset_parameters."""
    stdv = 1.0 / math.sqrt(num_features)
    k_w, k_b = jax.random.split(key)
    emb = jax.random.uniform(
        k_w, (num_features, num_classes), minval=-stdv, maxval=stdv, dtype=jnp.float32)
    if padding_idx is not None:
        emb = emb.at[padding_idx].set(0.0)
    b = None
    if bias:
        b = jax.random.uniform(
            k_b, (num_classes,), minval=-stdv, maxval=stdv, dtype=jnp.float32)
    return emb, b


def _reference(x, w, emb, bias):
    out = jnp.sum(w[:, :, None] * emb[x], axis=1)
    if bias is not None:
        out = out + bias[None, :]
    return out


if __name__ == "__main__":
    key = jax.random.PRNGKey(0)

    # Case 1: B=4, L=8, F=64, C=32, bias=True (single L step, padded batch tile).
    F, C = 64, 32
    k_p, k_x, k_w = jax.random.split(key, 3)
    emb, bias = init_sparse_linear_params(k_p, F, C, bias=True, padding_idx=0)
    emb_p, bias_p, nC = prepare_params(emb, bias)       # one-time padding at init

    B, L = 4, 8
    x = jax.random.randint(k_x, (B, L), 0, F, dtype=jnp.int32)
    w = jax.random.uniform(k_w, (B, L), minval=-1.0, maxval=1.0, dtype=jnp.float32)
    out = jax.block_until_ready(sparse_linear_forward(x, w, emb_p, bias_p, nC))
    ref = _reference(x, w, emb, bias)
    assert out.shape == (B, C)
    assert jnp.allclose(out, ref, atol=1e-5, rtol=1e-5), "case 1 mismatch"

    # Case 2: no bias, B=10 (two batch tiles), L=20 (multi-step reduction, L pad).
    emb_p0, bias_p0, _ = prepare_params(emb, None)
    B2, L2 = 10, 20
    x2 = jax.random.randint(jax.random.PRNGKey(1), (B2, L2), 0, F, dtype=jnp.int32)
    w2 = jax.random.uniform(jax.random.PRNGKey(2), (B2, L2),
                            minval=-1.0, maxval=1.0, dtype=jnp.float32)
    out2 = jax.block_until_ready(sparse_linear_forward(x2, w2, emb_p0, bias_p0, nC))
    ref2 = _reference(x2, w2, emb, None)
    assert jnp.allclose(out2, ref2, atol=1e-5, rtol=1e-5), "case 2 mismatch"

    # Case 3: C not a multiple of 128 (C=200 -> C_pad=256), smaller G, odd B/L.
    F3, C3 = 50, 200
    emb3, bias3 = init_sparse_linear_params(jax.random.PRNGKey(3), F3, C3,
                                            bias=True, padding_idx=0)
    emb3_p, bias3_p, nC3 = prepare_params(emb3, bias3)
    B3, L3 = 5, 11
    x3 = jax.random.randint(jax.random.PRNGKey(4), (B3, L3), 0, F3, dtype=jnp.int32)
    w3 = jax.random.uniform(jax.random.PRNGKey(5), (B3, L3),
                            minval=-1.0, maxval=1.0, dtype=jnp.float32)
    out3 = jax.block_until_ready(
        sparse_linear_forward(x3, w3, emb3_p, bias3_p, nC3, rows_per_step=4))
    ref3 = _reference(x3, w3, emb3, bias3)
    assert jnp.allclose(out3, ref3, atol=1e-5, rtol=1e-5), "case 3 mismatch"

    print("KERNEL_OK")
</pallas_src>

<mosaic_0001>
module attributes {stable_mosaic.version = 11 : i64} {
  func.func @kernel(%arg0: i32, %arg1: i32, %arg2: memref<64xi32, #tpu.memory_space<smem>>, %arg3: memref<1x1x8x8xf32, #tpu.memory_space<vmem>>, %arg4: memref<1x128xf32, #tpu.memory_space<vmem>>, %arg5: memref<64x128xf32, #tpu.memory_space<any>>, %arg6: memref<8x128xf32, #tpu.memory_space<vmem>>, %arg7: memref<2x8x8x128xf32, #tpu.memory_space<vmem>>, %arg8: memref<2x!tpu.dma_semaphore, #tpu.memory_space<semaphore_mem>>) attributes {dimension_semantics = [#tpu.dimension_semantics<parallel>, #tpu.dimension_semantics<arbitrary>], iteration_bounds = array<i64: 1, 1>, scalar_prefetch = 1 : i64, scratch_operands = 2 : i64, tpu.core_type = #tpu.core_type<tc>, window_params = [{transform_indices = @transform_0, window_bounds = array<i64: 1, 1, 8, 8>}, {pipeline_mode = #tpu.pipeline_mode<synchronous>, transform_indices = @transform_1, window_bounds = array<i64: 1, 128>}, {}, {transform_indices = @transform_3, window_bounds = array<i64: 8, 128>}]} {
    %c2_i32 = arith.constant 2 : i32
    %c0_i32 = arith.constant 0 : i32
    %0 = arith.cmpi eq, %c2_i32, %c0_i32 : i32
    %c1_i32 = arith.constant 1 : i32
    %1 = arith.select %0, %c1_i32, %c2_i32 : i32
    %2 = arith.remsi %arg1, %1 : i32
    %c0_i32_0 = arith.constant 0 : i32
    %3 = arith.cmpi ne, %2, %c0_i32_0 : i32
    %c0_i32_1 = arith.constant 0 : i32
    %4 = arith.cmpi slt, %2, %c0_i32_1 : i32
    %c0_i32_2 = arith.constant 0 : i32
    %5 = arith.cmpi slt, %1, %c0_i32_2 : i32
    %6 = arith.xori %4, %5 : i1
    %7 = arith.andi %6, %3 : i1
    %8 = arith.addi %2, %1 : i32
    %9 = arith.select %7, %8, %2 : i32
    %c0_i32_3 = arith.constant 0 : i32
    %10 = arith.cmpi eq, %arg1, %c0_i32_3 : i32
    %11 = arith.extui %10 : i1 to i32
    %c0_i32_4 = arith.constant 0 : i32
    %12 = arith.cmpi ne, %11, %c0_i32_4 : i32
    scf.if %12 {
      %c8_i32 = arith.constant 8 : i32
      %457 = arith.muli %arg0, %c8_i32 : i32
      %c0_i32_349 = arith.constant 0 : i32
      %458 = arith.addi %457, %c0_i32_349 : i32
      %c8_i32_350 = arith.constant 8 : i32
      %459 = arith.muli %458, %c8_i32_350 : i32
      %c0_i32_351 = arith.constant 0 : i32
      %460 = arith.addi %459, %c0_i32_351 : i32
      %c0_i32_352 = arith.constant 0 : i32
      %461 = arith.addi %460, %c0_i32_352 : i32
      %462 = arith.index_cast %461 : i32 to index
      %463 = memref.load %arg2[%462] : memref<64xi32, #tpu.memory_space<smem>>
      %c0_i32_353 = arith.constant 0 : i32
      %c0_i32_354 = arith.constant 0 : i32
      %c0_i32_355 = arith.constant 0 : i32
      %c0_i32_356 = arith.constant 0 : i32
      %c0_i32_357 = arith.constant 0 : i32
      %464 = tpu.memref_slice %arg5[%463, %c0_i32_357] : memref<64x128xf32, #tpu.memory_space<any>> -> memref<1x128xf32, #tpu.memory_space<any>>
      %465 = tpu.memref_squeeze %464 : memref<1x128xf32, #tpu.memory_space<any>> -> memref<128xf32, #tpu.memory_space<any>>
      %c0_i32_358 = arith.constant 0 : i32
      %466 = tpu.memref_slice %arg7[%c0_i32_353, %c0_i32_354, %c0_i32_355, %c0_i32_358] : memref<2x8x8x128xf32, #tpu.memory_space<vmem>> -> memref<1x1x1x128xf32, #tpu.memory_space<vmem>>
      %467 = tpu.memref_squeeze %466 : memref<1x1x1x128xf32, #tpu.memory_space<vmem>> -> memref<128xf32, #tpu.memory_space<vmem>>
      %468 = tpu.memref_slice %arg8[%c0_i32_356] : memref<2x!tpu.dma_semaphore, #tpu.memory_space<semaphore_mem>> -> memref<1x!tpu.dma_semaphore, #tpu.memory_space<semaphore_mem>>
      %469 = tpu.memref_squeeze %468 : memref<1x!tpu.dma_semaphore, #tpu.memory_space<semaphore_mem>> -> memref<!tpu.dma_semaphore, #tpu.memory_space<semaphore_mem>>
      tpu.enqueue_dma source(%465 : memref<128xf32, #tpu.memory_space<any>>) target(%467 : memref<128xf32, #tpu.memory_space<vmem>>) target_semaphore(%469 : memref<!tpu.dma_semaphore, #tpu.memory_space<semaphore_mem>>)
      %c1_i32_359 = arith.constant 1 : i32
      %470 = arith.addi %460, %c1_i32_359 : i32
      %471 = arith.index_cast %470 : i32 to index
      %472 = memref.load %arg2[%471] : memref<64xi32, #tpu.memory_space<smem>>
      %c0_i32_360 = arith.constant 0 : i32
      %c1_i32_361 = arith.constant 1 : i32
      %c0_i32_362 = arith.constant 0 : i32
      %c0_i32_363 = arith.constant 0 : i32
      %c0_i32_364 = arith.constant 0 : i32
      %473 = tpu.memref_slice %arg5[%472, %c0_i32_364] : memref<64x128xf32, #tpu.memory_space<any>> -> memref<1x128xf32, #tpu.memory_space<any>>
      %474 = tpu.memref_squeeze %473 : memref<1x128xf32, #tpu.memory_space<any>> -> memref<128xf32, #tpu.memory_space<any>>
      %c0_i32_365 = arith.constant 0 : i32
      %475 = tpu.memref_slice %arg7[%c0_i32_360, %c1_i32_361, %c0_i32_362, %c0_i32_365] : memref<2x8x8x128xf32, #tpu.memory_space<vmem>> -> memref<1x1x1x128xf32, #tpu.memory_space<vmem>>
      %476 = tpu.memref_squeeze %475 : memref<1x1x1x128xf32, #tpu.memory_space<vmem>> -> memref<128xf32, #tpu.memory_space<vmem>>
      %477 = tpu.memref_slice %arg8[%c0_i32_363] : memref<2x!tpu.dma_semaphore, #tpu.memory_space<semaphore_mem>> -> memref<1x!tpu.dma_semaphore, #tpu.memory_space<semaphore_mem>>
      %478 = tpu.memref_squeeze %477 : memref<1x!tpu.dma_semaphore, #tpu.memory_space<semaphore_mem>> -> memref<!tpu.dma_semaphore, #tpu.memory_space<semaphore_mem>>
      tpu.enqueue_dma source(%474 : memref<128xf32, #tpu.memory_space<any>>) target(%476 : memref<128xf32, #tpu.memory_space<vmem>>) target_semaphore(%478 : memref<!tpu.dma_semaphore, #tpu.memory_space<semaphore_mem>>)
      %c2_i32_366 = arith.constant 2 : i32
      %479 = arith.addi %460, %c2_i32_366 : i32
      %480 = arith.index_cast %479 : i32 to index
      %481 = memref.load %arg2[%480] : memref<64xi32, #tpu.memory_space<smem>>
      %c0_i32_367 = arith.constant 0 : i32
      %c2_i32_368 = arith.constant 2 : i32
      %c0_i32_369 = arith.constant 0 : i32
      %c0_i32_370 = arith.constant 0 : i32
      %c0_i32_371 = arith.constant 0 : i32
      %482 = tpu.memref_slice %arg5[%481, %c0_i32_371] : memref<64x128xf32, #tpu.memory_space<any>> -> memref<1x128xf32, #tpu.memory_space<any>>
      %483 = tpu.memref_squeeze %482 : memref<1x128xf32, #tpu.memory_space<any>> -> memref<128xf32, #tpu.memory_space<any>>
      %c0_i32_372 = arith.constant 0 : i32
      %484 = tpu.memref_slice %arg7[%c0_i32_367, %c2_i32_368, %c0_i32_369, %c0_i32_372] : memref<2x8x8x128xf32, #tpu.memory_space<vmem>> -> memref<1x1x1x128xf32, #tpu.memory_space<vmem>>
      %485 = tpu.memref_squeeze %484 : memref<1x1x1x128xf32, #tpu.memory_space<vmem>> -> memref<128xf32, #tpu.memory_space<vmem>>
      %486 = tpu.memref_slice %arg8[%c0_i32_370] : memref<2x!tpu.dma_semaphore, #tpu.memory_space<semaphore_mem>> -> memref<1x!tpu.dma_semaphore, #tpu.memory_space<semaphore_mem>>
      %487 = tpu.memref_squeeze %486 : memref<1x!tpu.dma_semaphore, #tpu.memory_space<semaphore_mem>> -> memref<!tpu.dma_semaphore, #tpu.memory_space<semaphore_mem>>
      tpu.enqueue_dma source(%483 : memref<128xf32, #tpu.memory_space<any>>) target(%485 : memref<128xf32, #tpu.memory_space<vmem>>) target_semaphore(%487 : memref<!tpu.dma_semaphore, #tpu.memory_space<semaphore_mem>>)
      %c3_i32 = arith.constant 3 : i32
      %488 = arith.addi %460, %c3_i32 : i32
      %489 = arith.index_cast %488 : i32 to index
      %490 = memref.load %arg2[%489] : memref<64xi32, #tpu.memory_space<smem>>
      %c0_i32_373 = arith.constant 0 : i32
      %c3_i32_374 = arith.constant 3 : i32
      %c0_i32_375 = arith.constant 0 : i32
      %c0_i32_376 = arith.constant 0 : i32
      %c0_i32_377 = arith.constant 0 : i32
      %491 = tpu.memref_slice %arg5[%490, %c0_i32_377] : memref<64x128xf32, #tpu.memory_space<any>> -> memref<1x128xf32, #tpu.memory_space<any>>
      %492 = tpu.memref_squeeze %491 : memref<1x128xf32, #tpu.memory_space<any>> -> memref<128xf32, #tpu.memory_space<any>>
      %c0_i32_378 = arith.constant 0 : i32
      %493 = tpu.memref_slice %arg7[%c0_i32_373, %c3_i32_374, %c0_i32_375, %c0_i32_378] : memref<2x8x8x128xf32, #tpu.memory_space<vmem>> -> memref<1x1x1x128xf32, #tpu.memory_space<vmem>>
      %494 = tpu.memref_squeeze %493 : memref<1x1x1x128xf32, #tpu.memory_space<vmem>> -> memref<128xf32, #tpu.memory_space<vmem>>
      %495 = tpu.memref_slice %arg8[%c0_i32_376] : memref<2x!tpu.dma_semaphore, #tpu.memory_space<semaphore_mem>> -> memref<1x!tpu.dma_semaphore, #tpu.memory_space<semaphore_mem>>
      %496 = tpu.memref_squeeze %495 : memref<1x!tpu.dma_semaphore, #tpu.memory_space<semaphore_mem>> -> memref<!tpu.dma_semaphore, #tpu.memory_space<semaphore_mem>>
      tpu.enqueue_dma source(%492 : memref<128xf32, #tpu.memory_space<any>>) target(%494 : memref<128xf32, #tpu.memory_space<vmem>>) target_semaphore(%496 : memref<!tpu.dma_semaphore, #tpu.memory_space<semaphore_mem>>)
      %c4_i32 = arith.constant 4 : i32
      %497 = arith.addi %460, %c4_i32 : i32
      %498 = arith.index_cast %497 : i32 to index
      %499 = memref.load %arg2[%498] : memref<64xi32, #tpu.memory_space<smem>>
      %c0_i32_379 = arith.constant 0 : i32
      %c4_i32_380 = arith.constant 4 : i32
      %c0_i32_381 = arith.constant 0 : i32
      %c0_i32_382 = arith.constant 0 : i32
      %c0_i32_383 = arith.constant 0 : i32
      %500 = tpu.memref_slice %arg5[%499, %c0_i32_383] : memref<64x128xf32, #tpu.memory_space<any>> -> memref<1x128xf32, #tpu.memory_space<any>>
      %501 = tpu.memref_squeeze %500 : memref<1x128xf32, #tpu.memory_space<any>> -> memref<128xf32, #tpu.memory_space<any>>
      %c0_i32_384 = arith.constant 0 : i32
      %502 = tpu.memref_slice %arg7[%c0_i32_379, %c4_i32_380, %c0_i32_381, %c0_i32_384] : memref<2x8x8x128xf32, #tpu.memory_space<vmem>> -> memref<1x1x1x128xf32, #tpu.memory_space<vmem>>
      %503 = tpu.memref_squeeze %502 : memref<1x1x1x128xf32, #tpu.memory_space<vmem>> -> memref<128xf32, #tpu.memory_space<vmem>>
      %504 = tpu.memref_slice %arg8[%c0_i32_382] : memref<2x!tpu.dma_semaphore, #tpu.memory_space<semaphore_mem>> -> memref<1x!tpu.dma_semaphore, #tpu.memory_space<semaphore_mem>>
      %505 = tpu.memref_squeeze %504 : memref<1x!tpu.dma_semaphore, #tpu.memory_space<semaphore_mem>> -> memref<!tpu.dma_semaphore, #tpu.memory_space<semaphore_mem>>
      tpu.enqueue_dma source(%501 : memref<128xf32, #tpu.memory_space<any>>) target(%503 : memref<128xf32, #tpu.memory_space<vmem>>) target_semaphore(%505 : memref<!tpu.dma_semaphore, #tpu.memory_space<semaphore_mem>>)
      %c5_i32 = arith.constant 5 : i32
      %506 = arith.addi %460, %c5_i32 : i32
      %507 = arith.index_cast %506 : i32 to index
      %508 = memref.load %arg2[%507] : memref<64xi32, #tpu.memory_space<smem>>
      %c0_i32_385 = arith.constant 0 : i32
      %c5_i32_386 = arith.constant 5 : i32
      %c0_i32_387 = arith.constant 0 : i32
      %c0_i32_388 = arith.constant 0 : i32
      %c0_i32_389 = arith.constant 0 : i32
      %509 = tpu.memref_slice %arg5[%508, %c0_i32_389] : memref<64x128xf32, #tpu.memory_space<any>> -> memref<1x128xf32, #tpu.memory_space<any>>
      %510 = tpu.memref_squeeze %509 : memref<1x128xf32, #tpu.memory_space<any>> -> memref<128xf32, #tpu.memory_space<any>>
      %c0_i32_390 = arith.constant 0 : i32
      %511 = tpu.memref_slice %arg7[%c0_i32_385, %c5_i32_386, %c0_i32_387, %c0_i32_390] : memref<2x8x8x128xf32, #tpu.memory_space<vmem>> -> memref<1x1x1x128xf32, #tpu.memory_space<vmem>>
      %512 = tpu.memref_squeeze %511 : memref<1x1x1x128xf32, #tpu.memory_space<vmem>> -> memref<128xf32, #tpu.memory_space<vmem>>
      %513 = tpu.memref_slice %arg8[%c0_i32_388] : memref<2x!tpu.dma_semaphore, #tpu.memory_space<semaphore_mem>> -> memref<1x!tpu.dma_semaphore, #tpu.memory_space<semaphore_mem>>
      %514 = tpu.memref_squeeze %513 : memref<1x!tpu.dma_semaphore, #tpu.memory_space<semaphore_mem>> -> memref<!tpu.dma_semaphore, #tpu.memory_space<semaphore_mem>>
      tpu.enqueue_dma source(%510 : memref<128xf32, #tpu.memory_space<any>>) target(%512 : memref<128xf32, #tpu.memory_space<vmem>>) target_semaphore(%514 : memref<!tpu.dma_semaphore, #tpu.memory_space<semaphore_mem>>)
      %c6_i32 = arith.constant 6 : i32
      %515 = arith.addi %460, %c6_i32 : i32
      %516 = arith.index_cast %515 : i32 to index
      %517 = memref.load %arg2[%516] : memref<64xi32, #tpu.memory_space<smem>>
      %c0_i32_391 = arith.constant 0 : i32
      %c6_i32_392 = arith.constant 6 : i32
      %c0_i32_393 = arith.constant 0 : i32
      %c0_i32_394 = arith.constant 0 : i32
      %c0_i32_395 = arith.constant 0 : i32
      %518 = tpu.memref_slice %arg5[%517, %c0_i32_395] : memref<64x128xf32, #tpu.memory_space<any>> -> memref<1x128xf32, #tpu.memory_space<any>>
      %519 = tpu.memref_squeeze %518 : memref<1x128xf32, #tpu.memory_space<any>> -> memref<128xf32, #tpu.memory_space<any>>
      %c0_i32_396 = arith.constant 0 : i32
      %520 = tpu.memref_slice %arg7[%c0_i32_391, %c6_i32_392, %c0_i32_393, %c0_i32_396] : memref<2x8x8x128xf32, #tpu.memory_space<vmem>> -> memref<1x1x1x128xf32, #tpu.memory_space<vmem>>
      %521 = tpu.memref_squeeze %520 : memref<1x1x1x128xf32, #tpu.memory_space<vmem>> -> memref<128xf32, #tpu.memory_space<vmem>>
      %522 = tpu.memref_slice %arg8[%c0_i32_394] : memref<2x!tpu.dma_semaphore, #tpu.memory_space<semaphore_mem>> -> memref<1x!tpu.dma_semaphore, #tpu.memory_space<semaphore_mem>>
      %523 = tpu.memref_squeeze %522 : memref<1x!tpu.dma_semaphore, #tpu.memory_space<semaphore_mem>> -> memref<!tpu.dma_semaphore, #tpu.memory_space<semaphore_mem>>
      tpu.enqueue_dma source(%519 : memref<128xf32, #tpu.memory_space<any>>) target(%521 : memref<128xf32, #tpu.memory_space<vmem>>) target_semaphore(%523 : memref<!tpu.dma_semaphore, #tpu.memory_space<semaphore_mem>>)
      %c7_i32 = arith.constant 7 : i32
      %524 = arith.addi %460, %c7_i32 : i32
      %525 = arith.index_cast %524 : i32 to index
      %526 = memref.load %arg2[%525] : memref<64xi32, #tpu.memory_space<smem>>
      %c0_i32_397 = arith.constant 0 : i32
      %c7_i32_398 = arith.constant 7 : i32
      %c0_i32_399 = arith.constant 0 : i32
      %c0_i32_400 = arith.constant 0 : i32
      %c0_i32_401 = arith.constant 0 : i32
      %527 = tpu.memref_slice %arg5[%526, %c0_i32_401] : memref<64x128xf32, #tpu.memory_space<any>> -> memref<1x128xf32, #tpu.memory_space<any>>
      %528 = tpu.memref_squeeze %527 : memref<1x128xf32, #tpu.memory_space<any>> -> memref<128xf32, #tpu.memory_space<any>>
      %c0_i32_402 = arith.constant 0 : i32
      %529 = tpu.memref_slice %arg7[%c0_i32_397, %c7_i32_398, %c0_i32_399, %c0_i32_402] : memref<2x8x8x128xf32, #tpu.memory_space<vmem>> -> memref<1x1x1x128xf32, #tpu.memory_space<vmem>>
      %530 = tpu.memref_squeeze %529 : memref<1x1x1x128xf32, #tpu.memory_space<vmem>> -> memref<128xf32, #tpu.memory_space<vmem>>
      %531 = tpu.memref_slice %arg8[%c0_i32_400] : memref<2x!tpu.dma_semaphore, #tpu.memory_space<semaphore_mem>> -> memref<1x!tpu.dma_semaphore, #tpu.memory_space<semaphore_mem>>
      %532 = tpu.memref_squeeze %531 : memref<1x!tpu.dma_semaphore, #tpu.memory_space<semaphore_mem>> -> memref<!tpu.dma_semaphore, #tpu.memory_space<semaphore_mem>>
      tpu.enqueue_dma source(%528 : memref<128xf32, #tpu.memory_space<any>>) target(%530 : memref<128xf32, #tpu.memory_space<vmem>>) target_semaphore(%532 : memref<!tpu.dma_semaphore, #tpu.memory_space<semaphore_mem>>)
      %c1_i32_403 = arith.constant 1 : i32
      %533 = arith.addi %457, %c1_i32_403 : i32
      %c8_i32_404 = arith.constant 8 : i32
      %534 = arith.muli %533, %c8_i32_404 : i32
      %c0_i32_405 = arith.constant 0 : i32
      %535 = arith.addi %534, %c0_i32_405 : i32
      %c0_i32_406 = arith.constant 0 : i32
      %536 = arith.addi %535, %c0_i32_406 : i32
      %537 = arith.index_cast %536 : i32 to index
      %538 = memref.load %arg2[%537] : memref<64xi32, #tpu.memory_space<smem>>
      %c0_i32_407 = arith.constant 0 : i32
      %c0_i32_408 = arith.constant 0 : i32
      %c1_i32_409 = arith.constant 1 : i32
      %c0_i32_410 = arith.constant 0 : i32
      %c0_i32_411 = arith.constant 0 : i32
      %539 = tpu.memref_slice %arg5[%538, %c0_i32_411] : memref<64x128xf32, #tpu.memory_space<any>> -> memref<1x128xf32, #tpu.memory_space<any>>
      %540 = tpu.memref_squeeze %539 : memref<1x128xf32, #tpu.memory_space<any>> -> memref<128xf32, #tpu.memory_space<any>>
      %c0_i32_412 = arith.constant 0 : i32
      %541 = tpu.memref_slice %arg7[%c0_i32_407, %c0_i32_408, %c1_i32_409, %c0_i32_412] : memref<2x8x8x128xf32, #tpu.memory_space<vmem>> -> memref<1x1x1x128xf32, #tpu.memory_space<vmem>>
      %542 = tpu.memref_squeeze %541 : memref<1x1x1x128xf32, #tpu.memory_space<vmem>> -> memref<128xf32, #tpu.memory_space<vmem>>
      %543 = tpu.memref_slice %arg8[%c0_i32_410] : memref<2x!tpu.dma_semaphore, #tpu.memory_space<semaphore_mem>> -> memref<1x!tpu.dma_semaphore, #tpu.memory_space<semaphore_mem>>
      %544 = tpu.memref_squeeze %543 : memref<1x!tpu.dma_semaphore, #tpu.memory_space<semaphore_mem>> -> memref<!tpu.dma_semaphore, #tpu.memory_space<semaphore_mem>>
      tpu.enqueue_dma source(%540 : memref<128xf32, #tpu.memory_space<any>>) target(%542 : memref<128xf32, #tpu.memory_space<vmem>>) target_semaphore(%544 : memref<!tpu.dma_semaphore, #tpu.memory_space<semaphore_mem>>)
      %c1_i32_413 = arith.constant 1 : i32
      %545 = arith.addi %535, %c1_i32_413 : i32
      %546 = arith.index_cast %545 : i32 to index
      %547 = memref.load %arg2[%546] : memref<64xi32, #tpu.memory_space<smem>>
      %c0_i32_414 = arith.constant 0 : i32
      %c1_i32_415 = arith.constant 1 : i32
      %c1_i32_416 = arith.constant 1 : i32
      %c0_i32_417 = arith.constant 0 : i32
      %c0_i32_418 = arith.constant 0 : i32
      %548 = tpu.memref_slice %arg5[%547, %c0_i32_418] : memref<64x128xf32, #tpu.memory_space<any>> -> memref<1x128xf32, #tpu.memory_space<any>>
      %549 = tpu.memref_squeeze %548 : memref<1x128xf32, #tpu.memory_space<any>> -> memref<128xf32, #tpu.memory_space<any>>
      %c0_i32_419 = arith.constant 0 : i32
      %550 = tpu.memref_slice %arg7[%c0_i32_414, %c1_i32_415, %c1_i32_416, %c0_i32_419] : memref<2x8x8x128xf32, #tpu.memory_space<vmem>> -> memref<1x1x1x128xf32, #tpu.memory_space<vmem>>
      %551 = tpu.memref_squeeze %550 : memref<1x1x1x128xf32, #tpu.memory_space<vmem>> -> memref<128xf32, #tpu.memory_space<vmem>>
      %552 = tpu.memref_slice %arg8[%c0_i32_417] : memref<2x!tpu.dma_semaphore, #tpu.memory_space<semaphore_mem>> -> memref<1x!tpu.dma_semaphore, #tpu.memory_space<semaphore_mem>>
      %553 = tpu.memref_squeeze %552 : memref<1x!tpu.dma_semaphore, #tpu.memory_space<semaphore_mem>> -> memref<!tpu.dma_semaphore, #tpu.memory_space<semaphore_mem>>
      tpu.enqueue_dma source(%549 : memref<128xf32, #tpu.memory_space<any>>) target(%551 : memref<128xf32, #tpu.memory_space<vmem>>) target_semaphore(%553 : memref<!tpu.dma_semaphore, #tpu.memory_space<semaphore_mem>>)
      %c2_i32_420 = arith.constant 2 : i32
      %554 = arith.addi %535, %c2_i32_420 : i32
      %555 = arith.index_cast %554 : i32 to index
      %556 = memref.load %arg2[%555] : memref<64xi32, #tpu.memory_space<smem>>
      %c0_i32_421 = arith.constant 0 : i32
      %c2_i32_422 = arith.constant 2 : i32
      %c1_i32_423 = arith.constant 1 : i32
      %c0_i32_424 = arith.constant 0 : i32
      %c0_i32_425 = arith.constant 0 : i32
      %557 = tpu.memref_slice %arg5[%556, %c0_i32_425] : memref<64x128xf32, #tpu.memory_space<any>> -> memref<1x128xf32, #tpu.memory_space<any>>
      %558 = tpu.memref_squeeze %557 : memref<1x128xf32, #tpu.memory_space<any>> -> memref<128xf32, #tpu.memory_space<any>>
      %c0_i32_426 = arith.constant 0 : i32
      %559 = tpu.memref_slice %arg7[%c0_i32_421, %c2_i32_422, %c1_i32_423, %c0_i32_426] : memref<2x8x8x128xf32, #tpu.memory_space<vmem>> -> memref<1x1x1x128xf32, #tpu.memory_space<vmem>>
      %560 = tpu.memref_squeeze %559 : memref<1x1x1x128xf32, #tpu.memory_space<vmem>> -> memref<128xf32, #tpu.memory_space<vmem>>
      %561 = tpu.memref_slice %arg8[%c0_i32_424] : memref<2x!tpu.dma_semaphore, #tpu.memory_space<semaphore_mem>> -> memref<1x!tpu.dma_semaphore, #tpu.memory_space<semaphore_mem>>
      %562 = tpu.memref_squeeze %561 : memref<1x!tpu.dma_semaphore, #tpu.memory_space<semaphore_mem>> -> memref<!tpu.dma_semaphore, #tpu.memory_space<semaphore_mem>>
      tpu.enqueue_dma source(%558 : memref<128xf32, #tpu.memory_space<any>>) target(%560 : memref<128xf32, #tpu.memory_space<vmem>>) target_semaphore(%562 : memref<!tpu.dma_semaphore, #tpu.memory_space<semaphore_mem>>)
      %c3_i32_427 = arith.constant 3 : i32
      %563 = arith.addi %535, %c3_i32_427 : i32
      %564 = arith.index_cast %563 : i32 to index
      %565 = memref.load %arg2[%564] : memref<64xi32, #tpu.memory_space<smem>>
      %c0_i32_428 = arith.constant 0 : i32
      %c3_i32_429 = arith.constant 3 : i32
      %c1_i32_430 = arith.constant 1 : i32
      %c0_i32_431 = arith.constant 0 : i32
      %c0_i32_432 = arith.constant 0 : i32
      %566 = tpu.memref_slice %arg5[%565, %c0_i32_432] : memref<64x128xf32, #tpu.memory_space<any>> -> memref<1x128xf32, #tpu.memory_space<any>>
      %567 = tpu.memref_squeeze %566 : memref<1x128xf32, #tpu.memory_space<any>> -> memref<128xf32, #tpu.memory_space<any>>
      %c0_i32_433 = arith.constant 0 : i32
      %568 = tpu.memref_slice %arg7[%c0_i32_428, %c3_i32_429, %c1_i32_430, %c0_i32_433] : memref<2x8x8x128xf32, #tpu.memory_space<vmem>> -> memref<1x1x1x128xf32, #tpu.memory_space<vmem>>
      %569 = tpu.memref_squeeze %568 : memref<1x1x1x128xf32, #tpu.memory_space<vmem>> -> memref<128xf32, #tpu.memory_space<vmem>>
      %570 = tpu.memref_slice %arg8[%c0_i32_431] : memref<2x!tpu.dma_semaphore, #tpu.memory_space<semaphore_mem>> -> memref<1x!tpu.dma_semaphore, #tpu.memory_space<semaphore_mem>>
      %571 = tpu.memref_squeeze %570 : memref<1x!tpu.dma_semaphore, #tpu.memory_space<semaphore_mem>> -> memref<!tpu.dma_semaphore, #tpu.memory_space<semaphore_mem>>
      tpu.enqueue_dma source(%567 : memref<128xf32, #tpu.memory_space<any>>) target(%569 : memref<128xf32, #tpu.memory_space<vmem>>) target_semaphore(%571 : memref<!tpu.dma_semaphore, #tpu.memory_space<semaphore_mem>>)
      %c4_i32_434 = arith.constant 4 : i32
      %572 = arith.addi %535, %c4_i32_434 : i32
      %573 = arith.index_cast %572 : i32 to index
      %574 = memref.load %arg2[%573] : memref<64xi32, #tpu.memory_space<smem>>
      %c0_i32_435 = arith.constant 0 : i32
      %c4_i32_436 = arith.constant 4 : i32
      %c1_i32_437 = arith.constant 1 : i32
      %c0_i32_438 = arith.constant 0 : i32
      %c0_i32_439 = arith.constant 0 : i32
      %575 = tpu.memref_slice %arg5[%574, %c0_i32_439] : memref<64x128xf32, #tpu.memory_space<any>> -> memref<1x128xf32, #tpu.memory_space<any>>
      %576 = tpu.memref_squeeze %575 : memref<1x128xf32, #tpu.memory_space<any>> -> memref<128xf32, #tpu.memory_space<any>>
      %c0_i32_440 = arith.constant 0 : i32
      %577 = tpu.memref_slice %arg7[%c0_i32_435, %c4_i32_436, %c1_i32_437, %c0_i32_440] : memref<2x8x8x128xf32, #tpu.memory_space<vmem>> -> memref<1x1x1x128xf32, #tpu.memory_space<vmem>>
      %578 = tpu.memref_squeeze %577 : memref<1x1x1x128xf32, #tpu.memory_space<vmem>> -> memref<128xf32, #tpu.memory_space<vmem>>
      %579 = tpu.memref_slice %arg8[%c0_i32_438] : memref<2x!tpu.dma_semaphore, #tpu.memory_space<semaphore_mem>> -> memref<1x!tpu.dma_semaphore, #tpu.memory_space<semaphore_mem>>
      %580 = tpu.memref_squeeze %579 : memref<1x!tpu.dma_semaphore, #tpu.memory_space<semaphore_mem>> -> memref<!tpu.dma_semaphore, #tpu.memory_space<semaphore_mem>>
      tpu.enqueue_dma source(%576 : memref<128xf32, #tpu.memory_space<any>>) target(%578 : memref<128xf32, #tpu.memory_space<vmem>>) target_semaphore(%580 : memref<!tpu.dma_semaphore, #tpu.memory_space<semaphore_mem>>)
      %c5_i32_441 = arith.constant 5 : i32
      %581 = arith.addi %535, %c5_i32_441 : i32
      %582 = arith.index_cast %581 : i32 to index
      %583 = memref.load %arg2[%582] : memref<64xi32, #tpu.memory_space<smem>>
      %c0_i32_442 = arith.constant 0 : i32
      %c5_i32_443 = arith.constant 5 : i32
      %c1_i32_444 = arith.constant 1 : i32
      %c0_i32_445 = arith.constant 0 : i32
      %c0_i32_446 = arith.constant 0 : i32
      %584 = tpu.memref_slice %arg5[%583, %c0_i32_446] : memref<64x128xf32, #tpu.memory_space<any>> -> memref<1x128xf32, #tpu.memory_space<any>>
      %585 = tpu.memref_squeeze %584 : memref<1x128xf32, #tpu.memory_space<any>> -> memref<128xf32, #tpu.memory_space<any>>
      %c0_i32_447 = arith.constant 0 : i32
      %586 = tpu.memref_slice %arg7[%c0_i32_442, %c5_i32_443, %c1_i32_444, %c0_i32_447] : memref<2x8x8x128xf32, #tpu.memory_space<vmem>> -> memref<1x1x1x128xf32, #tpu.memory_space<vmem>>
      %587 = tpu.memref_squeeze %586 : memref<1x1x1x128xf32, #tpu.memory_space<vmem>> -> memref<128xf32, #tpu.memory_space<vmem>>
      %588 = tpu.memref_slice %arg8[%c0_i32_445] : memref<2x!tpu.dma_semaphore, #tpu.memory_space<semaphore_mem>> -> memref<1x!tpu.dma_semaphore, #tpu.memory_space<semaphore_mem>>
      %589 = tpu.memref_squeeze %588 : memref<1x!tpu.dma_semaphore, #tpu.memory_space<semaphore_mem>> -> memref<!tpu.dma_semaphore, #tpu.memory_space<semaphore_mem>>
      tpu.enqueue_dma source(%585 : memref<128xf32, #tpu.memory_space<any>>) target(%587 : memref<128xf32, #tpu.memory_space<vmem>>) target_semaphore(%589 : memref<!tpu.dma_semaphore, #tpu.memory_space<semaphore_mem>>)
      %c6_i32_448 = arith.constant 6 : i32
      %590 = arith.addi %535, %c6_i32_448 : i32
      %591 = arith.index_cast %590 : i32 to index
      %592 = memref.load %arg2[%591] : memref<64xi32, #tpu.memory_space<smem>>
      %c0_i32_449 = arith.constant 0 : i32
      %c6_i32_450 = arith.constant 6 : i32
      %c1_i32_451 = arith.constant 1 : i32
      %c0_i32_452 = arith.constant 0 : i32
      %c0_i32_453 = arith.constant 0 : i32
      %593 = tpu.memref_slice %arg5[%592, %c0_i32_453] : memref<64x128xf32, #tpu.memory_space<any>> -> memref<1x128xf32, #tpu.memory_space<any>>
      %594 = tpu.memref_squeeze %593 : memref<1x128xf32, #tpu.memory_space<any>> -> memref<128xf32, #tpu.memory_space<any>>
      %c0_i32_454 = arith.constant 0 : i32
      %595 = tpu.memref_slice %arg7[%c0_i32_449, %c6_i32_450, %c1_i32_451, %c0_i32_454] : memref<2x8x8x128xf32, #tpu.memory_space<vmem>> -> memref<1x1x1x128xf32, #tpu.memory_space<vmem>>
      %596 = tpu.memref_squeeze %595 : memref<1x1x1x128xf32, #tpu.memory_space<vmem>> -> memref<128xf32, #tpu.memory_space<vmem>>
      %597 = tpu.memref_slice %arg8[%c0_i32_452] : memref<2x!tpu.dma_semaphore, #tpu.memory_space<semaphore_mem>> -> memref<1x!tpu.dma_semaphore, #tpu.memory_space<semaphore_mem>>
      %598 = tpu.memref_squeeze %597 : memref<1x!tpu.dma_semaphore, #tpu.memory_space<semaphore_mem>> -> memref<!tpu.dma_semaphore, #tpu.memory_space<semaphore_mem>>
      tpu.enqueue_dma source(%594 : memref<128xf32, #tpu.memory_space<any>>) target(%596 : memref<128xf32, #tpu.memory_space<vmem>>) target_semaphore(%598 : memref<!tpu.dma_semaphore, #tpu.memory_space<semaphore_mem>>)
      %c7_i32_455 = arith.constant 7 : i32
      %599 = arith.addi %535, %c7_i32_455 : i32
      %600 = arith.index_cast %599 : i32 to index
      %601 = memref.load %arg2[%600] : memref<64xi32, #tpu.memory_space<smem>>
      %c0_i32_456 = arith.constant 0 : i32
      %c7_i32_457 = arith.constant 7 : i32
      %c1_i32_458 = arith.constant 1 : i32
      %c0_i32_459 = arith.constant 0 : i32
      %c0_i32_460 = arith.constant 0 : i32
      %602 = tpu.memref_slice %arg5[%601, %c0_i32_460] : memref<64x128xf32, #tpu.memory_space<any>> -> memref<1x128xf32, #tpu.memory_space<any>>
      %603 = tpu.memref_squeeze %602 : memref<1x128xf32, #tpu.memory_space<any>> -> memref<128xf32, #tpu.memory_space<any>>
      %c0_i32_461 = arith.constant 0 : i32
      %604 = tpu.memref_slice %arg7[%c0_i32_456, %c7_i32_457, %c1_i32_458, %c0_i32_461] : memref<2x8x8x128xf32, #tpu.memory_space<vmem>> -> memref<1x1x1x128xf32, #tpu.memory_space<vmem>>
      %605 = tpu.memref_squeeze %604 : memref<1x1x1x128xf32, #tpu.memory_space<vmem>> -> memref<128xf32, #tpu.memory_space<vmem>>
      %606 = tpu.memref_slice %arg8[%c0_i32_459] : memref<2x!tpu.dma_semaphore, #tpu.memory_space<semaphore_mem>> -> memref<1x!tpu.dma_semaphore, #tpu.memory_space<semaphore_mem>>
      %607 = tpu.memref_squeeze %606 : memref<1x!tpu.dma_semaphore, #tpu.memory_space<semaphore_mem>> -> memref<!tpu.dma_semaphore, #tpu.memory_space<semaphore_mem>>
      tpu.enqueue_dma source(%603 : memref<128xf32, #tpu.memory_space<any>>) target(%605 : memref<128xf32, #tpu.memory_space<vmem>>) target_semaphore(%607 : memref<!tpu.dma_semaphore, #tpu.memory_space<semaphore_mem>>)
      %c2_i32_462 = arith.constant 2 : i32
      %608 = arith.addi %457, %c2_i32_462 : i32
      %c8_i32_463 = arith.constant 8 : i32
      %609 = arith.muli %608, %c8_i32_463 : i32
      %c0_i32_464 = arith.constant 0 : i32
      %610 = arith.addi %609, %c0_i32_464 : i32
      %c0_i32_465 = arith.constant 0 : i32
      %611 = arith.addi %610, %c0_i32_465 : i32
      %612 = arith.index_cast %611 : i32 to index
      %613 = memref.load %arg2[%612] : memref<64xi32, #tpu.memory_space<smem>>
      %c0_i32_466 = arith.constant 0 : i32
      %c0_i32_467 = arith.constant 0 : i32
      %c2_i32_468 = arith.constant 2 : i32
      %c0_i32_469 = arith.constant 0 : i32
      %c0_i32_470 = arith.constant 0 : i32
      %614 = tpu.memref_slice %arg5[%613, %c0_i32_470] : memref<64x128xf32, #tpu.memory_space<any>> -> memref<1x128xf32, #tpu.memory_space<any>>
      %615 = tpu.memref_squeeze %614 : memref<1x128xf32, #tpu.memory_space<any>> -> memref<128xf32, #tpu.memory_space<any>>
      %c0_i32_471 = arith.constant 0 : i32
      %616 = tpu.memref_slice %arg7[%c0_i32_466, %c0_i32_467, %c2_i32_468, %c0_i32_471] : memref<2x8x8x128xf32, #tpu.memory_space<vmem>> -> memref<1x1x1x128xf32, #tpu.memory_space<vmem>>
      %617 = tpu.memref_squeeze %616 : memref<1x1x1x128xf32, #tpu.memory_space<vmem>> -> memref<128xf32, #tpu.memory_space<vmem>>
      %618 = tpu.memref_slice %arg8[%c0_i32_469] : memref<2x!tpu.dma_semaphore, #tpu.memory_space<semaphore_mem>> -> memref<1x!tpu.dma_semaphore, #tpu.memory_space<semaphore_mem>>
      %619 = tpu.memref_squeeze %618 : memref<1x!tpu.dma_semaphore, #tpu.memory_space<semaphore_mem>> -> memref<!tpu.dma_semaphore, #tpu.memory_space<semaphore_mem>>
      tpu.enqueue_dma source(%615 : memref<128xf32, #tpu.memory_space<any>>) target(%617 : memref<128xf32, #tpu.memory_space<vmem>>) target_semaphore(%619 : memref<!tpu.dma_semaphore, #tpu.memory_space<semaphore_mem>>)
      %c1_i32_472 = arith.constant 1 : i32
      %620 = arith.addi %610, %c1_i32_472 : i32
      %621 = arith.index_cast %620 : i32 to index
      %622 = memref.load %arg2[%621] : memref<64xi32, #tpu.memory_space<smem>>
      %c0_i32_473 = arith.constant 0 : i32
      %c1_i32_474 = arith.constant 1 : i32
      %c2_i32_475 = arith.constant 2 : i32
      %c0_i32_476 = arith.constant 0 : i32
      %c0_i32_477 = arith.constant 0 : i32
      %623 = tpu.memref_slice %arg5[%622, %c0_i32_477] : memref<64x128xf32, #tpu.memory_space<any>> -> memref<1x128xf32, #tpu.memory_space<any>>
      %624 = tpu.memref_squeeze %623 : memref<1x128xf32, #tpu.memory_space<any>> -> memref<128xf32, #tpu.memory_space<any>>
      %c0_i32_478 = arith.constant 0 : i32
      %625 = tpu.memref_slice %arg7[%c0_i32_473, %c1_i32_474, %c2_i32_475, %c0_i32_478] : memref<2x8x8x128xf32, #tpu.memory_space<vmem>> -> memref<1x1x1x128xf32, #tpu.memory_space<vmem>>
      %626 = tpu.memref_squeeze %625 : memref<1x1x1x128xf32, #tpu.memory_space<vmem>> -> memref<128xf32, #tpu.memory_space<vmem>>
      %627 = tpu.memref_slice %arg8[%c0_i32_476] : memref<2x!tpu.dma_semaphore, #tpu.memory_space<semaphore_mem>> -> memref<1x!tpu.dma_semaphore, #tpu.memory_space<semaphore_mem>>
      %628 = tpu.memref_squeeze %627 : memref<1x!tpu.dma_semaphore, #tpu.memory_space<semaphore_mem>> -> memref<!tpu.dma_semaphore, #tpu.memory_space<semaphore_mem>>
      tpu.enqueue_dma source(%624 : memref<128xf32, #tpu.memory_space<any>>) target(%626 : memref<128xf32, #tpu.memory_space<vmem>>) target_semaphore(%628 : memref<!tpu.dma_semaphore, #tpu.memory_space<semaphore_mem>>)
      %c2_i32_479 = arith.constant 2 : i32
      %629 = arith.addi %610, %c2_i32_479 : i32
      %630 = arith.index_cast %629 : i32 to index
      %631 = memref.load %arg2[%630] : memref<64xi32, #tpu.memory_space<smem>>
      %c0_i32_480 = arith.constant 0 : i32
      %c2_i32_481 = arith.constant 2 : i32
      %c2_i32_482 = arith.constant 2 : i32
      %c0_i32_483 = arith.constant 0 : i32
      %c0_i32_484 = arith.constant 0 : i32
      %632 = tpu.memref_slice %arg5[%631, %c0_i32_484] : memref<64x128xf32, #tpu.memory_space<any>> -> memref<1x128xf32, #tpu.memory_space<any>>
      %633 = tpu.memref_squeeze %632 : memref<1x128xf32, #tpu.memory_space<any>> -> memref<128xf32, #tpu.memory_space<any>>
      %c0_i32_485 = arith.constant 0 : i32
      %634 = tpu.memref_slice %arg7[%c0_i32_480, %c2_i32_481, %c2_i32_482, %c0_i32_485] : memref<2x8x8x128xf32, #tpu.memory_space<vmem>> -> memref<1x1x1x128xf32, #tpu.memory_space<vmem>>
      %635 = tpu.memref_squeeze %634 : memref<1x1x1x128xf32, #tpu.memory_space<vmem>> -> memref<128xf32, #tpu.memory_space<vmem>>
      %636 = tpu.memref_slice %arg8[%c0_i32_483] : memref<2x!tpu.dma_semaphore, #tpu.memory_space<semaphore_mem>> -> memref<1x!tpu.dma_semaphore, #tpu.memory_space<semaphore_mem>>
      %637 = tpu.memref_squeeze %636 : memref<1x!tpu.dma_semaphore, #tpu.memory_space<semaphore_mem>> -> memref<!tpu.dma_semaphore, #tpu.memory_space<semaphore_mem>>
      tpu.enqueue_dma source(%633 : memref<128xf32, #tpu.memory_space<any>>) target(%635 : memref<128xf32, #tpu.memory_space<vmem>>) target_semaphore(%637 : memref<!tpu.dma_semaphore, #tpu.memory_space<semaphore_mem>>)
      %c3_i32_486 = arith.constant 3 : i32
      %638 = arith.addi %610, %c3_i32_486 : i32
      %639 = arith.index_cast %638 : i32 to index
      %640 = memref.load %arg2[%639] : memref<64xi32, #tpu.memory_space<smem>>
      %c0_i32_487 = arith.constant 0 : i32
      %c3_i32_488 = arith.constant 3 : i32
      %c2_i32_489 = arith.constant 2 : i32
      %c0_i32_490 = arith.constant 0 : i32
      %c0_i32_491 = arith.constant 0 : i32
      %641 = tpu.memref_slice %arg5[%640, %c0_i32_491] : memref<64x128xf32, #tpu.memory_space<any>> -> memref<1x128xf32, #tpu.memory_space<any>>
      %642 = tpu.memref_squeeze %641 : memref<1x128xf32, #tpu.memory_space<any>> -> memref<128xf32, #tpu.memory_space<any>>
      %c0_i32_492 = arith.constant 0 : i32
      %643 = tpu.memref_slice %arg7[%c0_i32_487, %c3_i32_488, %c2_i32_489, %c0_i32_492] : memref<2x8x8x128xf32, #tpu.memory_space<vmem>> -> memref<1x1x1x128xf32, #tpu.memory_space<vmem>>
      %644 = tpu.memref_squeeze %643 : memref<1x1x1x128xf32, #tpu.memory_space<vmem>> -> memref<128xf32, #tpu.memory_space<vmem>>
      %645 = tpu.memref_slice %arg8[%c0_i32_490] : memref<2x!tpu.dma_semaphore, #tpu.memory_space<semaphore_mem>> -> memref<1x!tpu.dma_semaphore, #tpu.memory_space<semaphore_mem>>
      %646 = tpu.memref_squeeze %645 : memref<1x!tpu.dma_semaphore, #tpu.memory_space<semaphore_mem>> -> memref<!tpu.dma_semaphore, #tpu.memory_space<semaphore_mem>>
      tpu.enqueue_dma source(%642 : memref<128xf32, #tpu.memory_space<any>>) target(%644 : memref<128xf32, #tpu.memory_space<vmem>>) target_semaphore(%646 : memref<!tpu.dma_semaphore, #tpu.memory_space<semaphore_mem>>)
      %c4_i32_493 = arith.constant 4 : i32
      %647 = arith.addi %610, %c4_i32_493 : i32
      %648 = arith.index_cast %647 : i32 to index
      %649 = memref.load %arg2[%648] : memref<64xi32, #tpu.memory_space<smem>>
      %c0_i32_494 = arith.constant 0 : i32
      %c4_i32_495 = arith.constant 4 : i32
      %c2_i32_496 = arith.constant 2 : i32
      %c0_i32_497 = arith.constant 0 : i32
      %c0_i32_498 = arith.constant 0 : i32
      %650 = tpu.memref_slice %arg5[%649, %c0_i32_498] : memref<64x128xf32, #tpu.memory_space<any>> -> memref<1x128xf32, #tpu.memory_space<any>>
      %651 = tpu.memref_squeeze %650 : memref<1x128xf32, #tpu.memory_space<any>> -> memref<128xf32, #tpu.memory_space<any>>
      %c0_i32_499 = arith.constant 0 : i32
      %652 = tpu.memref_slice %arg7[%c0_i32_494, %c4_i32_495, %c2_i32_496, %c0_i32_499] : memref<2x8x8x128xf32, #tpu.memory_space<vmem>> -> memref<1x1x1x128xf32, #tpu.memory_space<vmem>>
      %653 = tpu.memref_squeeze %652 : memref<1x1x1x128xf32, #tpu.memory_space<vmem>> -> memref<128xf32, #tpu.memory_space<vmem>>
      %654 = tpu.memref_slice %arg8[%c0_i32_497] : memref<2x!tpu.dma_semaphore, #tpu.memory_space<semaphore_mem>> -> memref<1x!tpu.dma_semaphore, #tpu.memory_space<semaphore_mem>>
      %655 = tpu.memref_squeeze %654 : memref<1x!tpu.dma_semaphore, #tpu.memory_space<semaphore_mem>> -> memref<!tpu.dma_semaphore, #tpu.memory_space<semaphore_mem>>
      tpu.enqueue_dma source(%651 : memref<128xf32, #tpu.memory_space<any>>) target(%653 : memref<128xf32, #tpu.memory_space<vmem>>) target_semaphore(%655 : memref<!tpu.dma_semaphore, #tpu.memory_space<semaphore_mem>>)
      %c5_i32_500 = arith.constant 5 : i32
      %656 = arith.addi %610, %c5_i32_500 : i32
      %657 = arith.index_cast %656 : i32 to index
      %658 = memref.load %arg2[%657] : memref<64xi32, #tpu.memory_space<smem>>
      %c0_i32_501 = arith.constant 0 : i32
      %c5_i32_502 = arith.constant 5 : i32
      %c2_i32_503 = arith.constant 2 : i32
      %c0_i32_504 = arith.constant 0 : i32
      %c0_i32_505 = arith.constant 0 : i32
      %659 = tpu.memref_slice %arg5[%658, %c0_i32_505] : memref<64x128xf32, #tpu.memory_space<any>> -> memref<1x128xf32, #tpu.memory_space<any>>
      %660 = tpu.memref_squeeze %659 : memref<1x128xf32, #tpu.memory_space<any>> -> memref<128xf32, #tpu.memory_space<any>>
      %c0_i32_506 = arith.constant 0 : i32
      %661 = tpu.memref_slice %arg7[%c0_i32_501, %c5_i32_502, %c2_i32_503, %c0_i32_506] : memref<2x8x8x128xf32, #tpu.memory_space<vmem>> -> memref<1x1x1x128xf32, #tpu.memory_space<vmem>>
      %662 = tpu.memref_squeeze %661 : memref<1x1x1x128xf32, #tpu.memory_space<vmem>> -> memref<128xf32, #tpu.memory_space<vmem>>
      %663 = tpu.memref_slice %arg8[%c0_i32_504] : memref<2x!tpu.dma_semaphore, #tpu.memory_space<semaphore_mem>> -> memref<1x!tpu.dma_semaphore, #tpu.memory_space<semaphore_mem>>
      %664 = tpu.memref_squeeze %663 : memref<1x!tpu.dma_semaphore, #tpu.memory_space<semaphore_mem>> -> memref<!tpu.dma_semaphore, #tpu.memory_space<semaphore_mem>>
      tpu.enqueue_dma source(%660 : memref<128xf32, #tpu.memory_space<any>>) target(%662 : memref<128xf32, #tpu.memory_space<vmem>>) target_semaphore(%664 : memref<!tpu.dma_semaphore, #tpu.memory_space<semaphore_mem>>)
      %c6_i32_507 = arith.constant 6 : i32
      %665 = arith.addi %610, %c6_i32_507 : i32
      %666 = arith.index_cast %665 : i32 to index
      %667 = memref.load %arg2[%666] : memref<64xi32, #tpu.memory_space<smem>>
      %c0_i32_508 = arith.constant 0 : i32
      %c6_i32_509 = arith.constant 6 : i32
      %c2_i32_510 = arith.constant 2 : i32
      %c0_i32_511 = arith.constant 0 : i32
      %c0_i32_512 = arith.constant 0 : i32
      %668 = tpu.memref_slice %arg5[%667, %c0_i32_512] : memref<64x128xf32, #tpu.memory_space<any>> -> memref<1x128xf32, #tpu.memory_space<any>>
      %669 = tpu.memref_squeeze %668 : memref<1x128xf32, #tpu.memory_space<any>> -> memref<128xf32, #tpu.memory_space<any>>
      %c0_i32_513 = arith.constant 0 : i32
      %670 = tpu.memref_slice %arg7[%c0_i32_508, %c6_i32_509, %c2_i32_510, %c0_i32_513] : memref<2x8x8x128xf32, #tpu.memory_space<vmem>> -> memref<1x1x1x128xf32, #tpu.memory_space<vmem>>
      %671 = tpu.memref_squeeze %670 : memref<1x1x1x128xf32, #tpu.memory_space<vmem>> -> memref<128xf32, #tpu.memory_space<vmem>>
      %672 = tpu.memref_slice %arg8[%c0_i32_511] : memref<2x!tpu.dma_semaphore, #tpu.memory_space<semaphore_mem>> -> memref<1x!tpu.dma_semaphore, #tpu.memory_space<semaphore_mem>>
      %673 = tpu.memref_squeeze %672 : memref<1x!tpu.dma_semaphore, #tpu.memory_space<semaphore_mem>> -> memref<!tpu.dma_semaphore, #tpu.memory_space<semaphore_mem>>
      tpu.enqueue_dma source(%669 : memref<128xf32, #tpu.memory_space<any>>) target(%671 : memref<128xf32, #tpu.memory_space<vmem>>) target_semaphore(%673 : memref<!tpu.dma_semaphore, #tpu.memory_space<semaphore_mem>>)
      %c7_i32_514 = arith.constant 7 : i32
      %674 = arith.addi %610, %c7_i32_514 : i32
      %675 = arith.index_cast %674 : i32 to index
      %676 = memref.load %arg2[%675] : memref<64xi32, #tpu.memory_space<smem>>
      %c0_i32_515 = arith.constant 0 : i32
      %c7_i32_516 = arith.constant 7 : i32
      %c2_i32_517 = arith.constant 2 : i32
      %c0_i32_518 = arith.constant 0 : i32
      %c0_i32_519 = arith.constant 0 : i32
      %677 = tpu.memref_slice %arg5[%676, %c0_i32_519] : memref<64x128xf32, #tpu.memory_space<any>> -> memref<1x128xf32, #tpu.memory_space<any>>
      %678 = tpu.memref_squeeze %677 : memref<1x128xf32, #tpu.memory_space<any>> -> memref<128xf32, #tpu.memory_space<any>>
      %c0_i32_520 = arith.constant 0 : i32
      %679 = tpu.memref_slice %arg7[%c0_i32_515, %c7_i32_516, %c2_i32_517, %c0_i32_520] : memref<2x8x8x128xf32, #tpu.memory_space<vmem>> -> memref<1x1x1x128xf32, #tpu.memory_space<vmem>>
      %680 = tpu.memref_squeeze %679 : memref<1x1x1x128xf32, #tpu.memory_space<vmem>> -> memref<128xf32, #tpu.memory_space<vmem>>
      %681 = tpu.memref_slice %arg8[%c0_i32_518] : memref<2x!tpu.dma_semaphore, #tpu.memory_space<semaphore_mem>> -> memref<1x!tpu.dma_semaphore, #tpu.memory_space<semaphore_mem>>
      %682 = tpu.memref_squeeze %681 : memref<1x!tpu.dma_semaphore, #tpu.memory_space<semaphore_mem>> -> memref<!tpu.dma_semaphore, #tpu.memory_space<semaphore_mem>>
      tpu.enqueue_dma source(%678 : memref<128xf32, #tpu.memory_space<any>>) target(%680 : memref<128xf32, #tpu.memory_space<vmem>>) target_semaphore(%682 : memref<!tpu.dma_semaphore, #tpu.memory_space<semaphore_mem>>)
      %c3_i32_521 = arith.constant 3 : i32
      %683 = arith.addi %457, %c3_i32_521 : i32
      %c8_i32_522 = arith.constant 8 : i32
      %684 = arith.muli %683, %c8_i32_522 : i32
      %c0_i32_523 = arith.constant 0 : i32
      %685 = arith.addi %684, %c0_i32_523 : i32
      %c0_i32_524 = arith.constant 0 : i32
      %686 = arith.addi %685, %c0_i32_524 : i32
      %687 = arith.index_cast %686 : i32 to index
      %688 = memref.load %arg2[%687] : memref<64xi32, #tpu.memory_space<smem>>
      %c0_i32_525 = arith.constant 0 : i32
      %c0_i32_526 = arith.constant 0 : i32
      %c3_i32_527 = arith.constant 3 : i32
      %c0_i32_528 = arith.constant 0 : i32
      %c0_i32_529 = arith.constant 0 : i32
      %689 = tpu.memref_slice %arg5[%688, %c0_i32_529] : memref<64x128xf32, #tpu.memory_space<any>> -> memref<1x128xf32, #tpu.memory_space<any>>
      %690 = tpu.memref_squeeze %689 : memref<1x128xf32, #tpu.memory_space<any>> -> memref<128xf32, #tpu.memory_space<any>>
      %c0_i32_530 = arith.constant 0 : i32
      %691 = tpu.memref_slice %arg7[%c0_i32_525, %c0_i32_526, %c3_i32_527, %c0_i32_530] : memref<2x8x8x128xf32, #tpu.memory_space<vmem>> -> memref<1x1x1x128xf32, #tpu.memory_space<vmem>>
      %692 = tpu.memref_squeeze %691 : memref<1x1x1x128xf32, #tpu.memory_space<vmem>> -> memref<128xf32, #tpu.memory_space<vmem>>
      %693 = tpu.memref_slice %arg8[%c0_i32_528] : memref<2x!tpu.dma_semaphore, #tpu.memory_space<semaphore_mem>> -> memref<1x!tpu.dma_semaphore, #tpu.memory_space<semaphore_mem>>
      %694 = tpu.memref_squeeze %693 : memref<1x!tpu.dma_semaphore, #tpu.memory_space<semaphore_mem>> -> memref<!tpu.dma_semaphore, #tpu.memory_space<semaphore_mem>>
      tpu.enqueue_dma source(%690 : memref<128xf32, #tpu.memory_space<any>>) target(%692 : memref<128xf32, #tpu.memory_space<vmem>>) target_semaphore(%694 : memref<!tpu.dma_semaphore, #tpu.memory_space<semaphore_mem>>)
      %c1_i32_531 = arith.constant 1 : i32
      %695 = arith.addi %685, %c1_i32_531 : i32
      %696 = arith.index_cast %695 : i32 to index
      %697 = memref.load %arg2[%696] : memref<64xi32, #tpu.memory_space<smem>>
      %c0_i32_532 = arith.constant 0 : i32
      %c1_i32_533 = arith.constant 1 : i32
      %c3_i32_534 = arith.constant 3 : i32
      %c0_i32_535 = arith.constant 0 : i32
      %c0_i32_536 = arith.constant 0 : i32
      %698 = tpu.memref_slice %arg5[%697, %c0_i32_536] : memref<64x128xf32, #tpu.memory_space<any>> -> memref<1x128xf32, #tpu.memory_space<any>>
      %699 = tpu.memref_squeeze %698 : memref<1x128xf32, #tpu.memory_space<any>> -> memref<128xf32, #tpu.memory_space<any>>
      %c0_i32_537 = arith.constant 0 : i32
      %700 = tpu.memref_slice %arg7[%c0_i32_532, %c1_i32_533, %c3_i32_534, %c0_i32_537] : memref<2x8x8x128xf32, #tpu.memory_space<vmem>> -> memref<1x1x1x128xf32, #tpu.memory_space<vmem>>
      %701 = tpu.memref_squeeze %700 : memref<1x1x1x128xf32, #tpu.memory_space<vmem>> -> memref<128xf32, #tpu.memory_space<vmem>>
      %702 = tpu.memref_slice %arg8[%c0_i32_535] : memref<2x!tpu.dma_semaphore, #tpu.memory_space<semaphore_mem>> -> memref<1x!tpu.dma_semaphore, #tpu.memory_space<semaphore_mem>>
      %703 = tpu.memref_squeeze %702 : memref<1x!tpu.dma_semaphore, #tpu.memory_space<semaphore_mem>> -> memref<!tpu.dma_semaphore, #tpu.memory_space<semaphore_mem>>
      tpu.enqueue_dma source(%699 : memref<128xf32, #tpu.memory_space<any>>) target(%701 : memref<128xf32, #tpu.memory_space<vmem>>) target_semaphore(%703 : memref<!tpu.dma_semaphore, #tpu.memory_space<semaphore_mem>>)
      %c2_i32_538 = arith.constant 2 : i32
      %704 = arith.addi %685, %c2_i32_538 : i32
      %705 = arith.index_cast %704 : i32 to index
      %706 = memref.load %arg2[%705] : memref<64xi32, #tpu.memory_space<smem>>
      %c0_i32_539 = arith.constant 0 : i32
      %c2_i32_540 = arith.constant 2 : i32
      %c3_i32_541 = arith.constant 3 : i32
      %c0_i32_542 = arith.constant 0 : i32
      %c0_i32_543 = arith.constant 0 : i32
      %707 = tpu.memref_slice %arg5[%706, %c0_i32_543] : memref<64x128xf32, #tpu.memory_space<any>> -> memref<1x128xf32, #tpu.memory_space<any>>
      %708 = tpu.memref_squeeze %707 : memref<1x128xf32, #tpu.memory_space<any>> -> memref<128xf32, #tpu.memory_space<any>>
      %c0_i32_544 = arith.constant 0 : i32
      %709 = tpu.memref_slice %arg7[%c0_i32_539, %c2_i32_540, %c3_i32_541, %c0_i32_544] : memref<2x8x8x128xf32, #tpu.memory_space<vmem>> -> memref<1x1x1x128xf32, #tpu.memory_space<vmem>>
      %710 = tpu.memref_squeeze %709 : memref<1x1x1x128xf32, #tpu.memory_space<vmem>> -> memref<128xf32, #tpu.memory_space<vmem>>
      %711 = tpu.memref_slice %arg8[%c0_i32_542] : memref<2x!tpu.dma_semaphore, #tpu.memory_space<semaphore_mem>> -> memref<1x!tpu.dma_semaphore, #tpu.memory_space<semaphore_mem>>
      %712 = tpu.memref_squeeze %711 : memref<1x!tpu.dma_semaphore, #tpu.memory_space<semaphore_mem>> -> memref<!tpu.dma_semaphore, #tpu.memory_space<semaphore_mem>>
      tpu.enqueue_dma source(%708 : memref<128xf32, #tpu.memory_space<any>>) target(%710 : memref<128xf32, #tpu.memory_space<vmem>>) target_semaphore(%712 : memref<!tpu.dma_semaphore, #tpu.memory_space<semaphore_mem>>)
      %c3_i32_545 = arith.constant 3 : i32
      %713 = arith.addi %685, %c3_i32_545 : i32
      %714 = arith.index_cast %713 : i32 to index
      %715 = memref.load %arg2[%714] : memref<64xi32, #tpu.memory_space<smem>>
      %c0_i32_546 = arith.constant 0 : i32
      %c3_i32_547 = arith.constant 3 : i32
      %c3_i32_548 = arith.constant 3 : i32
      %c0_i32_549 = arith.constant 0 : i32
      %c0_i32_550 = arith.constant 0 : i32
      %716 = tpu.memref_slice %arg5[%715, %c0_i32_550] : memref<64x128xf32, #tpu.memory_space<any>> -> memref<1x128xf32, #tpu.memory_space<any>>
      %717 = tpu.memref_squeeze %716 : memref<1x128xf32, #tpu.memory_space<any>> -> memref<128xf32, #tpu.memory_space<any>>
      %c0_i32_551 = arith.constant 0 : i32
      %718 = tpu.memref_slice %arg7[%c0_i32_546, %c3_i32_547, %c3_i32_548, %c0_i32_551] : memref<2x8x8x128xf32, #tpu.memory_space<vmem>> -> memref<1x1x1x128xf32, #tpu.memory_space<vmem>>
      %719 = tpu.memref_squeeze %718 : memref<1x1x1x128xf32, #tpu.memory_space<vmem>> -> memref<128xf32, #tpu.memory_space<vmem>>
      %720 = tpu.memref_slice %arg8[%c0_i32_549] : memref<2x!tpu.dma_semaphore, #tpu.memory_space<semaphore_mem>> -> memref<1x!tpu.dma_semaphore, #tpu.memory_space<semaphore_mem>>
      %721 = tpu.memref_squeeze %720 : memref<1x!tpu.dma_semaphore, #tpu.memory_space<semaphore_mem>> -> memref<!tpu.dma_semaphore, #tpu.memory_space<semaphore_mem>>
      tpu.enqueue_dma source(%717 : memref<128xf32, #tpu.memory_space<any>>) target(%719 : memref<128xf32, #tpu.memory_space<vmem>>) target_semaphore(%721 : memref<!tpu.dma_semaphore, #tpu.memory_space<semaphore_mem>>)
      %c4_i32_552 = arith.constant 4 : i32
      %722 = arith.addi %685, %c4_i32_552 : i32
      %723 = arith.index_cast %722 : i32 to index
      %724 = memref.load %arg2[%723] : memref<64xi32, #tpu.memory_space<smem>>
      %c0_i32_553 = arith.constant 0 : i32
      %c4_i32_554 = arith.constant 4 : i32
      %c3_i32_555 = arith.constant 3 : i32
      %c0_i32_556 = arith.constant 0 : i32
      %c0_i32_557 = arith.constant 0 : i32
      %725 = tpu.memref_slice %arg5[%724, %c0_i32_557] : memref<64x128xf32, #tpu.memory_space<any>> -> memref<1x128xf32, #tpu.memory_space<any>>
      %726 = tpu.memref_squeeze %725 : memref<1x128xf32, #tpu.memory_space<any>> -> memref<128xf32, #tpu.memory_space<any>>
      %c0_i32_558 = arith.constant 0 : i32
      %727 = tpu.memref_slice %arg7[%c0_i32_553, %c4_i32_554, %c3_i32_555, %c0_i32_558] : memref<2x8x8x128xf32, #tpu.memory_space<vmem>> -> memref<1x1x1x128xf32, #tpu.memory_space<vmem>>
      %728 = tpu.memref_squeeze %727 : memref<1x1x1x128xf32, #tpu.memory_space<vmem>> -> memref<128xf32, #tpu.memory_space<vmem>>
      %729 = tpu.memref_slice %arg8[%c0_i32_556] : memref<2x!tpu.dma_semaphore, #tpu.memory_space<semaphore_mem>> -> memref<1x!tpu.dma_semaphore, #tpu.memory_space<semaphore_mem>>
      %730 = tpu.memref_squeeze %729 : memref<1x!tpu.dma_semaphore, #tpu.memory_space<semaphore_mem>> -> memref<!tpu.dma_semaphore, #tpu.memory_space<semaphore_mem>>
      tpu.enqueue_dma source(%726 : memref<128xf32, #tpu.memory_space<any>>) target(%728 : memref<128xf32, #tpu.memory_space<vmem>>) target_semaphore(%730 : memref<!tpu.dma_semaphore, #tpu.memory_space<semaphore_mem>>)
      %c5_i32_559 = arith.constant 5 : i32
      %731 = arith.addi %685, %c5_i32_559 : i32
      %732 = arith.index_cast %731 : i32 to index
      %733 = memref.load %arg2[%732] : memref<64xi32, #tpu.memory_space<smem>>
      %c0_i32_560 = arith.constant 0 : i32
      %c5_i32_561 = arith.constant 5 : i32
      %c3_i32_562 = arith.constant 3 : i32
      %c0_i32_563 = arith.constant 0 : i32
      %c0_i32_564 = arith.constant 0 : i32
      %734 = tpu.memref_slice %arg5[%733, %c0_i32_564] : memref<64x128xf32, #tpu.memory_space<any>> -> memref<1x128xf32, #tpu.memory_space<any>>
      %735 = tpu.memref_squeeze %734 : memref<1x128xf32, #tpu.memory_space<any>> -> memref<128xf32, #tpu.memory_space<any>>
      %c0_i32_565 = arith.constant 0 : i32
      %736 = tpu.memref_slice %arg7[%c0_i32_560, %c5_i32_561, %c3_i32_562, %c0_i32_565] : memref<2x8x8x128xf32, #tpu.memory_space<vmem>> -> memref<1x1x1x128xf32, #tpu.memory_space<vmem>>
      %737 = tpu.memref_squeeze %736 : memref<1x1x1x128xf32, #tpu.memory_space<vmem>> -> memref<128xf32, #tpu.memory_space<vmem>>
      %738 = tpu.memref_slice %arg8[%c0_i32_563] : memref<2x!tpu.dma_semaphore, #tpu.memory_space<semaphore_mem>> -> memref<1x!tpu.dma_semaphore, #tpu.memory_space<semaphore_mem>>
      %739 = tpu.memref_squeeze %738 : memref<1x!tpu.dma_semaphore, #tpu.memory_space<semaphore_mem>> -> memref<!tpu.dma_semaphore, #tpu.memory_space<semaphore_mem>>
      tpu.enqueue_dma source(%735 : memref<128xf32, #tpu.memory_space<any>>) target(%737 : memref<128xf32, #tpu.memory_space<vmem>>) target_semaphore(%739 : memref<!tpu.dma_semaphore, #tpu.memory_space<semaphore_mem>>)
      %c6_i32_566 = arith.constant 6 : i32
      %740 = arith.addi %685, %c6_i32_566 : i32
      %741 = arith.index_cast %740 : i32 to index
      %742 = memref.load %arg2[%741] : memref<64xi32, #tpu.memory_space<smem>>
      %c0_i32_567 = arith.constant 0 : i32
      %c6_i32_568 = arith.constant 6 : i32
      %c3_i32_569 = arith.constant 3 : i32
      %c0_i32_570 = arith.constant 0 : i32
      %c0_i32_571 = arith.constant 0 : i32
      %743 = tpu.memref_slice %arg5[%742, %c0_i32_571] : memref<64x128xf32, #tpu.memory_space<any>> -> memref<1x128xf32, #tpu.memory_space<any>>
      %744 = tpu.memref_squeeze %743 : memref<1x128xf32, #tpu.memory_space<any>> -> memref<128xf32, #tpu.memory_space<any>>
      %c0_i32_572 = arith.constant 0 : i32
      %745 = tpu.memref_slice %arg7[%c0_i32_567, %c6_i32_568, %c3_i32_569, %c0_i32_572] : memref<2x8x8x128xf32, #tpu.memory_space<vmem>> -> memref<1x1x1x128xf32, #tpu.memory_space<vmem>>
      %746 = tpu.memref_squeeze %745 : memref<1x1x1x128xf32, #tpu.memory_space<vmem>> -> memref<128xf32, #tpu.memory_space<vmem>>
      %747 = tpu.memref_slice %arg8[%c0_i32_570] : memref<2x!tpu.dma_semaphore, #tpu.memory_space<semaphore_mem>> -> memref<1x!tpu.dma_semaphore, #tpu.memory_space<semaphore_mem>>
      %748 = tpu.memref_squeeze %747 : memref<1x!tpu.dma_semaphore, #tpu.memory_space<semaphore_mem>> -> memref<!tpu.dma_semaphore, #tpu.memory_space<semaphore_mem>>
      tpu.enqueue_dma source(%744 : memref<128xf32, #tpu.memory_space<any>>) target(%746 : memref<128xf32, #tpu.memory_space<vmem>>) target_semaphore(%748 : memref<!tpu.dma_semaphore, #tpu.memory_space<semaphore_mem>>)
      %c7_i32_573 = arith.constant 7 : i32
      %749 = arith.addi %685, %c7_i32_573 : i32
      %750 = arith.index_cast %749 : i32 to index
      %751 = memref.load %arg2[%750] : memref<64xi32, #tpu.memory_space<smem>>
      %c0_i32_574 = arith.constant 0 : i32
      %c7_i32_575 = arith.constant 7 : i32
      %c3_i32_576 = arith.constant 3 : i32
      %c0_i32_577 = arith.constant 0 : i32
      %c0_i32_578 = arith.constant 0 : i32
      %752 = tpu.memref_slice %arg5[%751, %c0_i32_578] : memref<64x128xf32, #tpu.memory_space<any>> -> memref<1x128xf32, #tpu.memory_space<any>>
      %753 = tpu.memref_squeeze %752 : memref<1x128xf32, #tpu.memory_space<any>> -> memref<128xf32, #tpu.memory_space<any>>
      %c0_i32_579 = arith.constant 0 : i32
      %754 = tpu.memref_slice %arg7[%c0_i32_574, %c7_i32_575, %c3_i32_576, %c0_i32_579] : memref<2x8x8x128xf32, #tpu.memory_space<vmem>> -> memref<1x1x1x128xf32, #tpu.memory_space<vmem>>
      %755 = tpu.memref_squeeze %754 : memref<1x1x1x128xf32, #tpu.memory_space<vmem>> -> memref<128xf32, #tpu.memory_space<vmem>>
      %756 = tpu.memref_slice %arg8[%c0_i32_577] : memref<2x!tpu.dma_semaphore, #tpu.memory_space<semaphore_mem>> -> memref<1x!tpu.dma_semaphore, #tpu.memory_space<semaphore_mem>>
      %757 = tpu.memref_squeeze %756 : memref<1x!tpu.dma_semaphore, #tpu.memory_space<semaphore_mem>> -> memref<!tpu.dma_semaphore, #tpu.memory_space<semaphore_mem>>
      tpu.enqueue_dma source(%753 : memref<128xf32, #tpu.memory_space<any>>) target(%755 : memref<128xf32, #tpu.memory_space<vmem>>) target_semaphore(%757 : memref<!tpu.dma_semaphore, #tpu.memory_space<semaphore_mem>>)
      %c4_i32_580 = arith.constant 4 : i32
      %758 = arith.addi %457, %c4_i32_580 : i32
      %c8_i32_581 = arith.constant 8 : i32
      %759 = arith.muli %758, %c8_i32_581 : i32
      %c0_i32_582 = arith.constant 0 : i32
      %760 = arith.addi %759, %c0_i32_582 : i32
      %c0_i32_583 = arith.constant 0 : i32
      %761 = arith.addi %760, %c0_i32_583 : i32
      %762 = arith.index_cast %761 : i32 to index
      %763 = memref.load %arg2[%762] : memref<64xi32, #tpu.memory_space<smem>>
      %c0_i32_584 = arith.constant 0 : i32
      %c0_i32_585 = arith.constant 0 : i32
      %c4_i32_586 = arith.constant 4 : i32
      %c0_i32_587 = arith.constant 0 : i32
      %c0_i32_588 = arith.constant 0 : i32
      %764 = tpu.memref_slice %arg5[%763, %c0_i32_588] : memref<64x128xf32, #tpu.memory_space<any>> -> memref<1x128xf32, #tpu.memory_space<any>>
      %765 = tpu.memref_squeeze %764 : memref<1x128xf32, #tpu.memory_space<any>> -> memref<128xf32, #tpu.memory_space<any>>
      %c0_i32_589 = arith.constant 0 : i32
      %766 = tpu.memref_slice %arg7[%c0_i32_584, %c0_i32_585, %c4_i32_586, %c0_i32_589] : memref<2x8x8x128xf32, #tpu.memory_space<vmem>> -> memref<1x1x1x128xf32, #tpu.memory_space<vmem>>
      %767 = tpu.memref_squeeze %766 : memref<1x1x1x128xf32, #tpu.memory_space<vmem>> -> memref<128xf32, #tpu.memory_space<vmem>>
      %768 = tpu.memref_slice %arg8[%c0_i32_587] : memref<2x!tpu.dma_semaphore, #tpu.memory_space<semaphore_mem>> -> memref<1x!tpu.dma_semaphore, #tpu.memory_space<semaphore_mem>>
      %769 = tpu.memref_squeeze %768 : memref<1x!tpu.dma_semaphore, #tpu.memory_space<semaphore_mem>> -> memref<!tpu.dma_semaphore, #tpu.memory_space<semaphore_mem>>
      tpu.enqueue_dma source(%765 : memref<128xf32, #tpu.memory_space<any>>) target(%767 : memref<128xf32, #tpu.memory_space<vmem>>) target_semaphore(%769 : memref<!tpu.dma_semaphore, #tpu.memory_space<semaphore_mem>>)
      %c1_i32_590 = arith.constant 1 : i32
      %770 = arith.addi %760, %c1_i32_590 : i32
      %771 = arith.index_cast %770 : i32 to index
      %772 = memref.load %arg2[%771] : memref<64xi32, #tpu.memory_space<smem>>
      %c0_i32_591 = arith.constant 0 : i32
      %c1_i32_592 = arith.constant 1 : i32
      %c4_i32_593 = arith.constant 4 : i32
      %c0_i32_594 = arith.constant 0 : i32
      %c0_i32_595 = arith.constant 0 : i32
      %773 = tpu.memref_slice %arg5[%772, %c0_i32_595] : memref<64x128xf32, #tpu.memory_space<any>> -> memref<1x128xf32, #tpu.memory_space<any>>
      %774 = tpu.memref_squeeze %773 : memref<1x128xf32, #tpu.memory_space<any>> -> memref<128xf32, #tpu.memory_space<any>>
      %c0_i32_596 = arith.constant 0 : i32
      %775 = tpu.memref_slice %arg7[%c0_i32_591, %c1_i32_592, %c4_i32_593, %c0_i32_596] : memref<2x8x8x128xf32, #tpu.memory_space<vmem>> -> memref<1x1x1x128xf32, #tpu.memory_space<vmem>>
      %776 = tpu.memref_squeeze %775 : memref<1x1x1x128xf32, #tpu.memory_space<vmem>> -> memref<128xf32, #tpu.memory_space<vmem>>
      %777 = tpu.memref_slice %arg8[%c0_i32_594] : memref<2x!tpu.dma_semaphore, #tpu.memory_space<semaphore_mem>> -> memref<1x!tpu.dma_semaphore, #tpu.memory_space<semaphore_mem>>
      %778 = tpu.memref_squeeze %777 : memref<1x!tpu.dma_semaphore, #tpu.memory_space<semaphore_mem>> -> memref<!tpu.dma_semaphore, #tpu.memory_space<semaphore_mem>>
      tpu.enqueue_dma source(%774 : memref<128xf32, #tpu.memory_space<any>>) target(%776 : memref<128xf32, #tpu.memory_space<vmem>>) target_semaphore(%778 : memref<!tpu.dma_semaphore, #tpu.memory_space<semaphore_mem>>)
      %c2_i32_597 = arith.constant 2 : i32
      %779 = arith.addi %760, %c2_i32_597 : i32
      %780 = arith.index_cast %779 : i32 to index
      %781 = memref.load %arg2[%780] : memref<64xi32, #tpu.memory_space<smem>>
      %c0_i32_598 = arith.constant 0 : i32
      %c2_i32_599 = arith.constant 2 : i32
      %c4_i32_600 = arith.constant 4 : i32
      %c0_i32_601 = arith.constant 0 : i32
      %c0_i32_602 = arith.constant 0 : i32
      %782 = tpu.memref_slice %arg5[%781, %c0_i32_602] : memref<64x128xf32, #tpu.memory_space<any>> -> memref<1x128xf32, #tpu.memory_space<any>>
      %783 = tpu.memref_squeeze %782 : memref<1x128xf32, #tpu.memory_space<any>> -> memref<128xf32, #tpu.memory_space<any>>
      %c0_i32_603 = arith.constant 0 : i32
      %784 = tpu.memref_slice %arg7[%c0_i32_598, %c2_i32_599, %c4_i32_600, %c0_i32_603] : memref<2x8x8x128xf32, #tpu.memory_space<vmem>> -> memref<1x1x1x128xf32, #tpu.memory_space<vmem>>
      %785 = tpu.memref_squeeze %784 : memref<1x1x1x128xf32, #tpu.memory_space<vmem>> -> memref<128xf32, #tpu.memory_space<vmem>>
      %786 = tpu.memref_slice %arg8[%c0_i32_601] : memref<2x!tpu.dma_semaphore, #tpu.memory_space<semaphore_mem>> -> memref<1x!tpu.dma_semaphore, #tpu.memory_space<semaphore_mem>>
      %787 = tpu.memref_squeeze %786 : memref<1x!tpu.dma_semaphore, #tpu.memory_space<semaphore_mem>> -> memref<!tpu.dma_semaphore, #tpu.memory_space<semaphore_mem>>
      tpu.enqueue_dma source(%783 : memref<128xf32, #tpu.memory_space<any>>) target(%785 : memref<128xf32, #tpu.memory_space<vmem>>) target_semaphore(%787 : memref<!tpu.dma_semaphore, #tpu.memory_space<semaphore_mem>>)
      %c3_i32_604 = arith.constant 3 : i32
      %788 = arith.addi %760, %c3_i32_604 : i32
      %789 = arith.index_cast %788 : i32 to index
      %790 = memref.load %arg2[%789] : memref<64xi32, #tpu.memory_space<smem>>
      %c0_i32_605 = arith.constant 0 : i32
      %c3_i32_606 = arith.constant 3 : i32
      %c4_i32_607 = arith.constant 4 : i32
      %c0_i32_608 = arith.constant 0 : i32
      %c0_i32_609 = arith.constant 0 : i32
      %791 = tpu.memref_slice %arg5[%790, %c0_i32_609] : memref<64x128xf32, #tpu.memory_space<any>> -> memref<1x128xf32, #tpu.memory_space<any>>
      %792 = tpu.memref_squeeze %791 : memref<1x128xf32, #tpu.memory_space<any>> -> memref<128xf32, #tpu.memory_space<any>>
      %c0_i32_610 = arith.constant 0 : i32
      %793 = tpu.memref_slice %arg7[%c0_i32_605, %c3_i32_606, %c4_i32_607, %c0_i32_610] : memref<2x8x8x128xf32, #tpu.memory_space<vmem>> -> memref<1x1x1x128xf32, #tpu.memory_space<vmem>>
      %794 = tpu.memref_squeeze %793 : memref<1x1x1x128xf32, #tpu.memory_space<vmem>> -> memref<128xf32, #tpu.memory_space<vmem>>
      %795 = tpu.memref_slice %arg8[%c0_i32_608] : memref<2x!tpu.dma_semaphore, #tpu.memory_space<semaphore_mem>> -> memref<1x!tpu.dma_semaphore, #tpu.memory_space<semaphore_mem>>
      %796 = tpu.memref_squeeze %795 : memref<1x!tpu.dma_semaphore, #tpu.memory_space<semaphore_mem>> -> memref<!tpu.dma_semaphore, #tpu.memory_space<semaphore_mem>>
      tpu.enqueue_dma source(%792 : memref<128xf32, #tpu.memory_space<any>>) target(%794 : memref<128xf32, #tpu.memory_space<vmem>>) target_semaphore(%796 : memref<!tpu.dma_semaphore, #tpu.memory_space<semaphore_mem>>)
      %c4_i32_611 = arith.constant 4 : i32
      %797 = arith.addi %760, %c4_i32_611 : i32
      %798 = arith.index_cast %797 : i32 to index
      %799 = memref.load %arg2[%798] : memref<64xi32, #tpu.memory_space<smem>>
      %c0_i32_612 = arith.constant 0 : i32
      %c4_i32_613 = arith.constant 4 : i32
      %c4_i32_614 = arith.constant 4 : i32
      %c0_i32_615 = arith.constant 0 : i32
      %c0_i32_616 = arith.constant 0 : i32
      %800 = tpu.memref_slice %arg5[%799, %c0_i32_616] : memref<64x128xf32, #tpu.memory_space<any>> -> memref<1x128xf32, #tpu.memory_space<any>>
      %801 = tpu.memref_squeeze %800 : memref<1x128xf32, #tpu.memory_space<any>> -> memref<128xf32, #tpu.memory_space<any>>
      %c0_i32_617 = arith.constant 0 : i32
      %802 = tpu.memref_slice %arg7[%c0_i32_612, %c4_i32_613, %c4_i32_614, %c0_i32_617] : memref<2x8x8x128xf32, #tpu.memory_space<vmem>> -> memref<1x1x1x128xf32, #tpu.memory_space<vmem>>
      %803 = tpu.memref_squeeze %802 : memref<1x1x1x128xf32, #tpu.memory_space<vmem>> -> memref<128xf32, #tpu.memory_space<vmem>>
      %804 = tpu.memref_slice %arg8[%c0_i32_615] : memref<2x!tpu.dma_semaphore, #tpu.memory_space<semaphore_mem>> -> memref<1x!tpu.dma_semaphore, #tpu.memory_space<semaphore_mem>>
      %805 = tpu.memref_squeeze %804 : memref<1x!tpu.dma_semaphore, #tpu.memory_space<semaphore_mem>> -> memref<!tpu.dma_semaphore, #tpu.memory_space<semaphore_mem>>
      tpu.enqueue_dma source(%801 : memref<128xf32, #tpu.memory_space<any>>) target(%803 : memref<128xf32, #tpu.memory_space<vmem>>) target_semaphore(%805 : memref<!tpu.dma_semaphore, #tpu.memory_space<semaphore_mem>>)
      %c5_i32_618 = arith.constant 5 : i32
      %806 = arith.addi %760, %c5_i32_618 : i32
      %807 = arith.index_cast %806 : i32 to index
      %808 = memref.load %arg2[%807] : memref<64xi32, #tpu.memory_space<smem>>
      %c0_i32_619 = arith.constant 0 : i32
      %c5_i32_620 = arith.constant 5 : i32
      %c4_i32_621 = arith.constant 4 : i32
      %c0_i32_622 = arith.constant 0 : i32
      %c0_i32_623 = arith.constant 0 : i32
      %809 = tpu.memref_slice %arg5[%808, %c0_i32_623] : memref<64x128xf32, #tpu.memory_space<any>> -> memref<1x128xf32, #tpu.memory_space<any>>
      %810 = tpu.memref_squeeze %809 : memref<1x128xf32, #tpu.memory_space<any>> -> memref<128xf32, #tpu.memory_space<any>>
      %c0_i32_624 = arith.constant 0 : i32
      %811 = tpu.memref_slice %arg7[%c0_i32_619, %c5_i32_620, %c4_i32_621, %c0_i32_624] : memref<2x8x8x128xf32, #tpu.memory_space<vmem>> -> memref<1x1x1x128xf32, #tpu.memory_space<vmem>>
      %812 = tpu.memref_squeeze %811 : memref<1x1x1x128xf32, #tpu.memory_space<vmem>> -> memref<128xf32, #tpu.memory_space<vmem>>
      %813 = tpu.memref_slice %arg8[%c0_i32_622] : memref<2x!tpu.dma_semaphore, #tpu.memory_space<semaphore_mem>> -> memref<1x!tpu.dma_semaphore, #tpu.memory_space<semaphore_mem>>
      %814 = tpu.memref_squeeze %813 : memref<1x!tpu.dma_semaphore, #tpu.memory_space<semaphore_mem>> -> memref<!tpu.dma_semaphore, #tpu.memory_space<semaphore_mem>>
      tpu.enqueue_dma source(%810 : memref<128xf32, #tpu.memory_space<any>>) target(%812 : memref<128xf32, #tpu.memory_space<vmem>>) target_semaphore(%814 : memref<!tpu.dma_semaphore, #tpu.memory_space<semaphore_mem>>)
      %c6_i32_625 = arith.constant 6 : i32
      %815 = arith.addi %760, %c6_i32_625 : i32
      %816 = arith.index_cast %815 : i32 to index
      %817 = memref.load %arg2[%816] : memref<64xi32, #tpu.memory_space<smem>>
      %c0_i32_626 = arith.constant 0 : i32
      %c6_i32_627 = arith.constant 6 : i32
      %c4_i32_628 = arith.constant 4 : i32
      %c0_i32_629 = arith.constant 0 : i32
      %c0_i32_630 = arith.constant 0 : i32
      %818 = tpu.memref_slice %arg5[%817, %c0_i32_630] : memref<64x128xf32, #tpu.memory_space<any>> -> memref<1x128xf32, #tpu.memory_space<any>>
      %819 = tpu.memref_squeeze %818 : memref<1x128xf32, #tpu.memory_space<any>> -> memref<128xf32, #tpu.memory_space<any>>
      %c0_i32_631 = arith.constant 0 : i32
      %820 = tpu.memref_slice %arg7[%c0_i32_626, %c6_i32_627, %c4_i32_628, %c0_i32_631] : memref<2x8x8x128xf32, #tpu.memory_space<vmem>> -> memref<1x1x1x128xf32, #tpu.memory_space<vmem>>
      %821 = tpu.memref_squeeze %820 : memref<1x1x1x128xf32, #tpu.memory_space<vmem>> -> memref<128xf32, #tpu.memory_space<vmem>>
      %822 = tpu.memref_slice %arg8[%c0_i32_629] : memref<2x!tpu.dma_semaphore, #tpu.memory_space<semaphore_mem>> -> memref<1x!tpu.dma_semaphore, #tpu.memory_space<semaphore_mem>>
      %823 = tpu.memref_squeeze %822 : memref<1x!tpu.dma_semaphore, #tpu.memory_space<semaphore_mem>> -> memref<!tpu.dma_semaphore, #tpu.memory_space<semaphore_mem>>
      tpu.enqueue_dma source(%819 : memref<128xf32, #tpu.memory_space<any>>) target(%821 : memref<128xf32, #tpu.memory_space<vmem>>) target_semaphore(%823 : memref<!tpu.dma_semaphore, #tpu.memory_space<semaphore_mem>>)
      %c7_i32_632 = arith.constant 7 : i32
      %824 = arith.addi %760, %c7_i32_632 : i32
      %825 = arith.index_cast %824 : i32 to index
      %826 = memref.load %arg2[%825] : memref<64xi32, #tpu.memory_space<smem>>
      %c0_i32_633 = arith.constant 0 : i32
      %c7_i32_634 = arith.constant 7 : i32
      %c4_i32_635 = arith.constant 4 : i32
      %c0_i32_636 = arith.constant 0 : i32
      %c0_i32_637 = arith.constant 0 : i32
      %827 = tpu.memref_slice %arg5[%826, %c0_i32_637] : memref<64x128xf32, #tpu.memory_space<any>> -> memref<1x128xf32, #tpu.memory_space<any>>
      %828 = tpu.memref_squeeze %827 : memref<1x128xf32, #tpu.memory_space<any>> -> memref<128xf32, #tpu.memory_space<any>>
      %c0_i32_638 = arith.constant 0 : i32
      %829 = tpu.memref_slice %arg7[%c0_i32_633, %c7_i32_634, %c4_i32_635, %c0_i32_638] : memref<2x8x8x128xf32, #tpu.memory_space<vmem>> -> memref<1x1x1x128xf32, #tpu.memory_space<vmem>>
      %830 = tpu.memref_squeeze %829 : memref<1x1x1x128xf32, #tpu.memory_space<vmem>> -> memref<128xf32, #tpu.memory_space<vmem>>
      %831 = tpu.memref_slice %arg8[%c0_i32_636] : memref<2x!tpu.dma_semaphore, #tpu.memory_space<semaphore_mem>> -> memref<1x!tpu.dma_semaphore, #tpu.memory_space<semaphore_mem>>
      %832 = tpu.memref_squeeze %831 : memref<1x!tpu.dma_semaphore, #tpu.memory_space<semaphore_mem>> -> memref<!tpu.dma_semaphore, #tpu.memory_space<semaphore_mem>>
      tpu.enqueue_dma source(%828 : memref<128xf32, #tpu.memory_space<any>>) target(%830 : memref<128xf32, #tpu.memory_space<vmem>>) target_semaphore(%832 : memref<!tpu.dma_semaphore, #tpu.memory_space<semaphore_mem>>)
      %c5_i32_639 = arith.constant 5 : i32
      %833 = arith.addi %457, %c5_i32_639 : i32
      %c8_i32_640 = arith.constant 8 : i32
      %834 = arith.muli %833, %c8_i32_640 : i32
      %c0_i32_641 = arith.constant 0 : i32
      %835 = arith.addi %834, %c0_i32_641 : i32
      %c0_i32_642 = arith.constant 0 : i32
      %836 = arith.addi %835, %c0_i32_642 : i32
      %837 = arith.index_cast %836 : i32 to index
      %838 = memref.load %arg2[%837] : memref<64xi32, #tpu.memory_space<smem>>
      %c0_i32_643 = arith.constant 0 : i32
      %c0_i32_644 = arith.constant 0 : i32
      %c5_i32_645 = arith.constant 5 : i32
      %c0_i32_646 = arith.constant 0 : i32
      %c0_i32_647 = arith.constant 0 : i32
      %839 = tpu.memref_slice %arg5[%838, %c0_i32_647] : memref<64x128xf32, #tpu.memory_space<any>> -> memref<1x128xf32, #tpu.memory_space<any>>
      %840 = tpu.memref_squeeze %839 : memref<1x128xf32, #tpu.memory_space<any>> -> memref<128xf32, #tpu.memory_space<any>>
      %c0_i32_648 = arith.constant 0 : i32
      %841 = tpu.memref_slice %arg7[%c0_i32_643, %c0_i32_644, %c5_i32_645, %c0_i32_648] : memref<2x8x8x128xf32, #tpu.memory_space<vmem>> -> memref<1x1x1x128xf32, #tpu.memory_space<vmem>>
      %842 = tpu.memref_squeeze %841 : memref<1x1x1x128xf32, #tpu.memory_space<vmem>> -> memref<128xf32, #tpu.memory_space<vmem>>
      %843 = tpu.memref_slice %arg8[%c0_i32_646] : memref<2x!tpu.dma_semaphore, #tpu.memory_space<semaphore_mem>> -> memref<1x!tpu.dma_semaphore, #tpu.memory_space<semaphore_mem>>
      %844 = tpu.memref_squeeze %843 : memref<1x!tpu.dma_semaphore, #tpu.memory_space<semaphore_mem>> -> memref<!tpu.dma_semaphore, #tpu.memory_space<semaphore_mem>>
      tpu.enqueue_dma source(%840 : memref<128xf32, #tpu.memory_space<any>>) target(%842 : memref<128xf32, #tpu.memory_space<vmem>>) target_semaphore(%844 : memref<!tpu.dma_semaphore, #tpu.memory_space<semaphore_mem>>)
      %c1_i32_649 = arith.constant 1 : i32
      %845 = arith.addi %835, %c1_i32_649 : i32
      %846 = arith.index_cast %845 : i32 to index
      %847 = memref.load %arg2[%846] : memref<64xi32, #tpu.memory_space<smem>>
      %c0_i32_650 = arith.constant 0 : i32
      %c1_i32_651 = arith.constant 1 : i32
      %c5_i32_652 = arith.constant 5 : i32
      %c0_i32_653 = arith.constant 0 : i32
      %c0_i32_654 = arith.constant 0 : i32
      %848 = tpu.memref_slice %arg5[%847, %c0_i32_654] : memref<64x128xf32, #tpu.memory_space<any>> -> memref<1x128xf32, #tpu.memory_space<any>>
      %849 = tpu.memref_squeeze %848 : memref<1x128xf32, #tpu.memory_space<any>> -> memref<128xf32, #tpu.memory_space<any>>
      %c0_i32_655 = arith.constant 0 : i32
      %850 = tpu.memref_slice %arg7[%c0_i32_650, %c1_i32_651, %c5_i32_652, %c0_i32_655] : memref<2x8x8x128xf32, #tpu.memory_space<vmem>> -> memref<1x1x1x128xf32, #tpu.memory_space<vmem>>
      %851 = tpu.memref_squeeze %850 : memref<1x1x1x128xf32, #tpu.memory_space<vmem>> -> memref<128xf32, #tpu.memory_space<vmem>>
      %852 = tpu.memref_slice %arg8[%c0_i32_653] : memref<2x!tpu.dma_semaphore, #tpu.memory_space<semaphore_mem>> -> memref<1x!tpu.dma_semaphore, #tpu.memory_space<semaphore_mem>>
      %853 = tpu.memref_squeeze %852 : memref<1x!tpu.dma_semaphore, #tpu.memory_space<semaphore_mem>> -> memref<!tpu.dma_semaphore, #tpu.memory_space<semaphore_mem>>
      tpu.enqueue_dma source(%849 : memref<128xf32, #tpu.memory_space<any>>) target(%851 : memref<128xf32, #tpu.memory_space<vmem>>) target_semaphore(%853 : memref<!tpu.dma_semaphore, #tpu.memory_space<semaphore_mem>>)
      %c2_i32_656 = arith.constant 2 : i32
      %854 = arith.addi %835, %c2_i32_656 : i32
      %855 = arith.index_cast %854 : i32 to index
      %856 = memref.load %arg2[%855] : memref<64xi32, #tpu.memory_space<smem>>
      %c0_i32_657 = arith.constant 0 : i32
      %c2_i32_658 = arith.constant 2 : i32
      %c5_i32_659 = arith.constant 5 : i32
      %c0_i32_660 = arith.constant 0 : i32
      %c0_i32_661 = arith.constant 0 : i32
      %857 = tpu.memref_slice %arg5[%856, %c0_i32_661] : memref<64x128xf32, #tpu.memory_space<any>> -> memref<1x128xf32, #tpu.memory_space<any>>
      %858 = tpu.memref_squeeze %857 : memref<1x128xf32, #tpu.memory_space<any>> -> memref<128xf32, #tpu.memory_space<any>>
      %c0_i32_662 = arith.constant 0 : i32
      %859 = tpu.memref_slice %arg7[%c0_i32_657, %c2_i32_658, %c5_i32_659, %c0_i32_662] : memref<2x8x8x128xf32, #tpu.memory_space<vmem>> -> memref<1x1x1x128xf32, #tpu.memory_space<vmem>>
      %860 = tpu.memref_squeeze %859 : memref<1x1x1x128xf32, #tpu.memory_space<vmem>> -> memref<128xf32, #tpu.memory_space<vmem>>
      %861 = tpu.memref_slice %arg8[%c0_i32_660] : memref<2x!tpu.dma_semaphore, #tpu.memory_space<semaphore_mem>> -> memref<1x!tpu.dma_semaphore, #tpu.memory_space<semaphore_mem>>
      %862 = tpu.memref_squeeze %861 : memref<1x!tpu.dma_semaphore, #tpu.memory_space<semaphore_mem>> -> memref<!tpu.dma_semaphore, #tpu.memory_space<semaphore_mem>>
      tpu.enqueue_dma source(%858 : memref<128xf32, #tpu.memory_space<any>>) target(%860 : memref<128xf32, #tpu.memory_space<vmem>>) target_semaphore(%862 : memref<!tpu.dma_semaphore, #tpu.memory_space<semaphore_mem>>)
      %c3_i32_663 = arith.constant 3 : i32
      %863 = arith.addi %835, %c3_i32_663 : i32
      %864 = arith.index_cast %863 : i32 to index
      %865 = memref.load %arg2[%864] : memref<64xi32, #tpu.memory_space<smem>>
      %c0_i32_664 = arith.constant 0 : i32
      %c3_i32_665 = arith.constant 3 : i32
      %c5_i32_666 = arith.constant 5 : i32
      %c0_i32_667 = arith.constant 0 : i32
      %c0_i32_668 = arith.constant 0 : i32
      %866 = tpu.memref_slice %arg5[%865, %c0_i32_668] : memref<64x128xf32, #tpu.memory_space<any>> -> memref<1x128xf32, #tpu.memory_space<any>>
      %867 = tpu.memref_squeeze %866 : memref<1x128xf32, #tpu.memory_space<any>> -> memref<128xf32, #tpu.memory_space<any>>
      %c0_i32_669 = arith.constant 0 : i32
      %868 = tpu.memref_slice %arg7[%c0_i32_664, %c3_i32_665, %c5_i32_666, %c0_i32_669] : memref<2x8x8x128xf32, #tpu.memory_space<vmem>> -> memref<1x1x1x128xf32, #tpu.memory_space<vmem>>
      %869 = tpu.memref_squeeze %868 : memref<1x1x1x128xf32, #tpu.memory_space<vmem>> -> memref<128xf32, #tpu.memory_space<vmem>>
      %870 = tpu.memref_slice %arg8[%c0_i32_667] : memref<2x!tpu.dma_semaphore, #tpu.memory_space<semaphore_mem>> -> memref<1x!tpu.dma_semaphore, #tpu.memory_space<semaphore_mem>>
      %871 = tpu.memref_squeeze %870 : memref<1x!tpu.dma_semaphore, #tpu.memory_space<semaphore_mem>> -> memref<!tpu.dma_semaphore, #tpu.memory_space<semaphore_mem>>
      tpu.enqueue_dma source(%867 : memref<128xf32, #tpu.memory_space<any>>) target(%869 : memref<128xf32, #tpu.memory_space<vmem>>) target_semaphore(%871 : memref<!tpu.dma_semaphore, #tpu.memory_space<semaphore_mem>>)
      %c4_i32_670 = arith.constant 4 : i32
      %872 = arith.addi %835, %c4_i32_670 : i32
      %873 = arith.index_cast %872 : i32 to index
      %874 = memref.load %arg2[%873] : memref<64xi32, #tpu.memory_space<smem>>
      %c0_i32_671 = arith.constant 0 : i32
      %c4_i32_672 = arith.constant 4 : i32
      %c5_i32_673 = arith.constant 5 : i32
      %c0_i32_674 = arith.constant 0 : i32
      %c0_i32_675 = arith.constant 0 : i32
      %875 = tpu.memref_slice %arg5[%874, %c0_i32_675] : memref<64x128xf32, #tpu.memory_space<any>> -> memref<1x128xf32, #tpu.memory_space<any>>
      %876 = tpu.memref_squeeze %875 : memref<1x128xf32, #tpu.memory_space<any>> -> memref<128xf32, #tpu.memory_space<any>>
      %c0_i32_676 = arith.constant 0 : i32
      %877 = tpu.memref_slice %arg7[%c0_i32_671, %c4_i32_672, %c5_i32_673, %c0_i32_676] : memref<2x8x8x128xf32, #tpu.memory_space<vmem>> -> memref<1x1x1x128xf32, #tpu.memory_space<vmem>>
      %878 = tpu.memref_squeeze %877 : memref<1x1x1x128xf32, #tpu.memory_space<vmem>> -> memref<128xf32, #tpu.memory_space<vmem>>
      %879 = tpu.memref_slice %arg8[%c0_i32_674] : memref<2x!tpu.dma_semaphore, #tpu.memory_space<semaphore_mem>> -> memref<1x!tpu.dma_semaphore, #tpu.memory_space<semaphore_mem>>
      %880 = tpu.memref_squeeze %879 : memref<1x!tpu.dma_semaphore, #tpu.memory_space<semaphore_mem>> -> memref<!tpu.dma_semaphore, #tpu.memory_space<semaphore_mem>>
      tpu.enqueue_dma source(%876 : memref<128xf32, #tpu.memory_space<any>>) target(%878 : memref<128xf32, #tpu.memory_space<vmem>>) target_semaphore(%880 : memref<!tpu.dma_semaphore, #tpu.memory_space<semaphore_mem>>)
      %c5_i32_677 = arith.constant 5 : i32
      %881 = arith.addi %835, %c5_i32_677 : i32
      %882 = arith.index_cast %881 : i32 to index
      %883 = memref.load %arg2[%882] : memref<64xi32, #tpu.memory_space<smem>>
      %c0_i32_678 = arith.constant 0 : i32
      %c5_i32_679 = arith.constant 5 : i32
      %c5_i32_680 = arith.constant 5 : i32
      %c0_i32_681 = arith.constant 0 : i32
      %c0_i32_682 = arith.constant 0 : i32
      %884 = tpu.memref_slice %arg5[%883, %c0_i32_682] : memref<64x128xf32, #tpu.memory_space<any>> -> memref<1x128xf32, #tpu.memory_space<any>>
      %885 = tpu.memref_squeeze %884 : memref<1x128xf32, #tpu.memory_space<any>> -> memref<128xf32, #tpu.memory_space<any>>
      %c0_i32_683 = arith.constant 0 : i32
      %886 = tpu.memref_slice %arg7[%c0_i32_678, %c5_i32_679, %c5_i32_680, %c0_i32_683] : memref<2x8x8x128xf32, #tpu.memory_space<vmem>> -> memref<1x1x1x128xf32, #tpu.memory_space<vmem>>
      %887 = tpu.memref_squeeze %886 : memref<1x1x1x128xf32, #tpu.memory_space<vmem>> -> memref<128xf32, #tpu.memory_space<vmem>>
      %888 = tpu.memref_slice %arg8[%c0_i32_681] : memref<2x!tpu.dma_semaphore, #tpu.memory_space<semaphore_mem>> -> memref<1x!tpu.dma_semaphore, #tpu.memory_space<semaphore_mem>>
      %889 = tpu.memref_squeeze %888 : memref<1x!tpu.dma_semaphore, #tpu.memory_space<semaphore_mem>> -> memref<!tpu.dma_semaphore, #tpu.memory_space<semaphore_mem>>
      tpu.enqueue_dma source(%885 : memref<128xf32, #tpu.memory_space<any>>) target(%887 : memref<128xf32, #tpu.memory_space<vmem>>) target_semaphore(%889 : memref<!tpu.dma_semaphore, #tpu.memory_space<semaphore_mem>>)
      %c6_i32_684 = arith.constant 6 : i32
      %890 = arith.addi %835, %c6_i32_684 : i32
      %891 = arith.index_cast %890 : i32 to index
      %892 = memref.load %arg2[%891] : memref<64xi32, #tpu.memory_space<smem>>
      %c0_i32_685 = arith.constant 0 : i32
      %c6_i32_686 = arith.constant 6 : i32
      %c5_i32_687 = arith.constant 5 : i32
      %c0_i32_688 = arith.constant 0 : i32
      %c0_i32_689 = arith.constant 0 : i32
      %893 = tpu.memref_slice %arg5[%892, %c0_i32_689] : memref<64x128xf32, #tpu.memory_space<any>> -> memref<1x128xf32, #tpu.memory_space<any>>
      %894 = tpu.memref_squeeze %893 : memref<1x128xf32, #tpu.memory_space<any>> -> memref<128xf32, #tpu.memory_space<any>>
      %c0_i32_690 = arith.constant 0 : i32
      %895 = tpu.memref_slice %arg7[%c0_i32_685, %c6_i32_686, %c5_i32_687, %c0_i32_690] : memref<2x8x8x128xf32, #tpu.memory_space<vmem>> -> memref<1x1x1x128xf32, #tpu.memory_space<vmem>>
      %896 = tpu.memref_squeeze %895 : memref<1x1x1x128xf32, #tpu.memory_space<vmem>> -> memref<128xf32, #tpu.memory_space<vmem>>
      %897 = tpu.memref_slice %arg8[%c0_i32_688] : memref<2x!tpu.dma_semaphore, #tpu.memory_space<semaphore_mem>> -> memref<1x!tpu.dma_semaphore, #tpu.memory_space<semaphore_mem>>
      %898 = tpu.memref_squeeze %897 : memref<1x!tpu.dma_semaphore, #tpu.memory_space<semaphore_mem>> -> memref<!tpu.dma_semaphore, #tpu.memory_space<semaphore_mem>>
      tpu.enqueue_dma source(%894 : memref<128xf32, #tpu.memory_space<any>>) target(%896 : memref<128xf32, #tpu.memory_space<vmem>>) target_semaphore(%898 : memref<!tpu.dma_semaphore, #tpu.memory_space<semaphore_mem>>)
      %c7_i32_691 = arith.constant 7 : i32
      %899 = arith.addi %835, %c7_i32_691 : i32
      %900 = arith.index_cast %899 : i32 to index
      %901 = memref.load %arg2[%900] : memref<64xi32, #tpu.memory_space<smem>>
      %c0_i32_692 = arith.constant 0 : i32
      %c7_i32_693 = arith.constant 7 : i32
      %c5_i32_694 = arith.constant 5 : i32
      %c0_i32_695 = arith.constant 0 : i32
      %c0_i32_696 = arith.constant 0 : i32
      %902 = tpu.memref_slice %arg5[%901, %c0_i32_696] : memref<64x128xf32, #tpu.memory_space<any>> -> memref<1x128xf32, #tpu.memory_space<any>>
      %903 = tpu.memref_squeeze %902 : memref<1x128xf32, #tpu.memory_space<any>> -> memref<128xf32, #tpu.memory_space<any>>
      %c0_i32_697 = arith.constant 0 : i32
      %904 = tpu.memref_slice %arg7[%c0_i32_692, %c7_i32_693, %c5_i32_694, %c0_i32_697] : memref<2x8x8x128xf32, #tpu.memory_space<vmem>> -> memref<1x1x1x128xf32, #tpu.memory_space<vmem>>
      %905 = tpu.memref_squeeze %904 : memref<1x1x1x128xf32, #tpu.memory_space<vmem>> -> memref<128xf32, #tpu.memory_space<vmem>>
      %906 = tpu.memref_slice %arg8[%c0_i32_695] : memref<2x!tpu.dma_semaphore, #tpu.memory_space<semaphore_mem>> -> memref<1x!tpu.dma_semaphore, #tpu.memory_space<semaphore_mem>>
      %907 = tpu.memref_squeeze %906 : memref<1x!tpu.dma_semaphore, #tpu.memory_space<semaphore_mem>> -> memref<!tpu.dma_semaphore, #tpu.memory_space<semaphore_mem>>
      tpu.enqueue_dma source(%903 : memref<128xf32, #tpu.memory_space<any>>) target(%905 : memref<128xf32, #tpu.memory_space<vmem>>) target_semaphore(%907 : memref<!tpu.dma_semaphore, #tpu.memory_space<semaphore_mem>>)
      %c6_i32_698 = arith.constant 6 : i32
      %908 = arith.addi %457, %c6_i32_698 : i32
      %c8_i32_699 = arith.constant 8 : i32
      %909 = arith.muli %908, %c8_i32_699 : i32
      %c0_i32_700 = arith.constant 0 : i32
      %910 = arith.addi %909, %c0_i32_700 : i32
      %c0_i32_701 = arith.constant 0 : i32
      %911 = arith.addi %910, %c0_i32_701 : i32
      %912 = arith.index_cast %911 : i32 to index
      %913 = memref.load %arg2[%912] : memref<64xi32, #tpu.memory_space<smem>>
      %c0_i32_702 = arith.constant 0 : i32
      %c0_i32_703 = arith.constant 0 : i32
      %c6_i32_704 = arith.constant 6 : i32
      %c0_i32_705 = arith.constant 0 : i32
      %c0_i32_706 = arith.constant 0 : i32
      %914 = tpu.memref_slice %arg5[%913, %c0_i32_706] : memref<64x128xf32, #tpu.memory_space<any>> -> memref<1x128xf32, #tpu.memory_space<any>>
      %915 = tpu.memref_squeeze %914 : memref<1x128xf32, #tpu.memory_space<any>> -> memref<128xf32, #tpu.memory_space<any>>
      %c0_i32_707 = arith.constant 0 : i32
      %916 = tpu.memref_slice %arg7[%c0_i32_702, %c0_i32_703, %c6_i32_704, %c0_i32_707] : memref<2x8x8x128xf32, #tpu.memory_space<vmem>> -> memref<1x1x1x128xf32, #tpu.memory_space<vmem>>
      %917 = tpu.memref_squeeze %916 : memref<1x1x1x128xf32, #tpu.memory_space<vmem>> -> memref<128xf32, #tpu.memory_space<vmem>>
      %918 = tpu.memref_slice %arg8[%c0_i32_705] : memref<2x!tpu.dma_semaphore, #tpu.memory_space<semaphore_mem>> -> memref<1x!tpu.dma_semaphore, #tpu.memory_space<semaphore_mem>>
      %919 = tpu.memref_squeeze %918 : memref<1x!tpu.dma_semaphore, #tpu.memory_space<semaphore_mem>> -> memref<!tpu.dma_semaphore, #tpu.memory_space<semaphore_mem>>
      tpu.enqueue_dma source(%915 : memref<128xf32, #tpu.memory_space<any>>) target(%917 : memref<128xf32, #tpu.memory_space<vmem>>) target_semaphore(%919 : memref<!tpu.dma_semaphore, #tpu.memory_space<semaphore_mem>>)
      %c1_i32_708 = arith.constant 1 : i32
      %920 = arith.addi %910, %c1_i32_708 : i32
      %921 = arith.index_cast %920 : i32 to index
      %922 = memref.load %arg2[%921] : memref<64xi32, #tpu.memory_space<smem>>
      %c0_i32_709 = arith.constant 0 : i32
      %c1_i32_710 = arith.constant 1 : i32
      %c6_i32_711 = arith.constant 6 : i32
      %c0_i32_712 = arith.constant 0 : i32
      %c0_i32_713 = arith.constant 0 : i32
      %923 = tpu.memref_slice %arg5[%922, %c0_i32_713] : memref<64x128xf32, #tpu.memory_space<any>> -> memref<1x128xf32, #tpu.memory_space<any>>
      %924 = tpu.memref_squeeze %923 : memref<1x128xf32, #tpu.memory_space<any>> -> memref<128xf32, #tpu.memory_space<any>>
      %c0_i32_714 = arith.constant 0 : i32
      %925 = tpu.memref_slice %arg7[%c0_i32_709, %c1_i32_710, %c6_i32_711, %c0_i32_714] : memref<2x8x8x128xf32, #tpu.memory_space<vmem>> -> memref<1x1x1x128xf32, #tpu.memory_space<vmem>>
      %926 = tpu.memref_squeeze %925 : memref<1x1x1x128xf32, #tpu.memory_space<vmem>> -> memref<128xf32, #tpu.memory_space<vmem>>
      %927 = tpu.memref_slice %arg8[%c0_i32_712] : memref<2x!tpu.dma_semaphore, #tpu.memory_space<semaphore_mem>> -> memref<1x!tpu.dma_semaphore, #tpu.memory_space<semaphore_mem>>
      %928 = tpu.memref_squeeze %927 : memref<1x!tpu.dma_semaphore, #tpu.memory_space<semaphore_mem>> -> memref<!tpu.dma_semaphore, #tpu.memory_space<semaphore_mem>>
      tpu.enqueue_dma source(%924 : memref<128xf32, #tpu.memory_space<any>>) target(%926 : memref<128xf32, #tpu.memory_space<vmem>>) target_semaphore(%928 : memref<!tpu.dma_semaphore, #tpu.memory_space<semaphore_mem>>)
      %c2_i32_715 = arith.constant 2 : i32
      %929 = arith.addi %910, %c2_i32_715 : i32
      %930 = arith.index_cast %929 : i32 to index
      %931 = memref.load %arg2[%930] : memref<64xi32, #tpu.memory_space<smem>>
      %c0_i32_716 = arith.constant 0 : i32
      %c2_i32_717 = arith.constant 2 : i32
      %c6_i32_718 = arith.constant 6 : i32
      %c0_i32_719 = arith.constant 0 : i32
      %c0_i32_720 = arith.constant 0 : i32
      %932 = tpu.memref_slice %arg5[%931, %c0_i32_720] : memref<64x128xf32, #tpu.memory_space<any>> -> memref<1x128xf32, #tpu.memory_space<any>>
      %933 = tpu.memref_squeeze %932 : memref<1x128xf32, #tpu.memory_space<any>> -> memref<128xf32, #tpu.memory_space<any>>
      %c0_i32_721 = arith.constant 0 : i32
      %934 = tpu.memref_slice %arg7[%c0_i32_716, %c2_i32_717, %c6_i32_718, %c0_i32_721] : memref<2x8x8x128xf32, #tpu.memory_space<vmem>> -> memref<1x1x1x128xf32, #tpu.memory_space<vmem>>
      %935 = tpu.memref_squeeze %934 : memref<1x1x1x128xf32, #tpu.memory_space<vmem>> -> memref<128xf32, #tpu.memory_space<vmem>>
      %936 = tpu.memref_slice %arg8[%c0_i32_719] : memref<2x!tpu.dma_semaphore, #tpu.memory_space<semaphore_mem>> -> memref<1x!tpu.dma_semaphore, #tpu.memory_space<semaphore_mem>>
      %937 = tpu.memref_squeeze %936 : memref<1x!tpu.dma_semaphore, #tpu.memory_space<semaphore_mem>> -> memref<!tpu.dma_semaphore, #tpu.memory_space<semaphore_mem>>
      tpu.enqueue_dma source(%933 : memref<128xf32, #tpu.memory_space<any>>) target(%935 : memref<128xf32, #tpu.memory_space<vmem>>) target_semaphore(%937 : memref<!tpu.dma_semaphore, #tpu.memory_space<semaphore_mem>>)
      %c3_i32_722 = arith.constant 3 : i32
      %938 = arith.addi %910, %c3_i32_722 : i32
      %939 = arith.index_cast %938 : i32 to index
      %940 = memref.load %arg2[%939] : memref<64xi32, #tpu.memory_space<smem>>
      %c0_i32_723 = arith.constant 0 : i32
      %c3_i32_724 = arith.constant 3 : i32
      %c6_i32_725 = arith.constant 6 : i32
      %c0_i32_726 = arith.constant 0 : i32
      %c0_i32_727 = arith.constant 0 : i32
      %941 = tpu.memref_slice %arg5[%940, %c0_i32_727] : memref<64x128xf32, #tpu.memory_space<any>> -> memref<1x128xf32, #tpu.memory_space<any>>
      %942 = tpu.memref_squeeze %941 : memref<1x128xf32, #tpu.memory_space<any>> -> memref<128xf32, #tpu.memory_space<any>>
      %c0_i32_728 = arith.constant 0 : i32
      %943 = tpu.memref_slice %arg7[%c0_i32_723, %c3_i32_724, %c6_i32_725, %c0_i32_728] : memref<2x8x8x128xf32, #tpu.memory_space<vmem>> -> memref<1x1x1x128xf32, #tpu.memory_space<vmem>>
      %944 = tpu.memref_squeeze %943 : memref<1x1x1x128xf32, #tpu.memory_space<vmem>> -> memref<128xf32, #tpu.memory_space<vmem>>
      %945 = tpu.memref_slice %arg8[%c0_i32_726] : memref<2x!tpu.dma_semaphore, #tpu.memory_space<semaphore_mem>> -> memref<1x!tpu.dma_semaphore, #tpu.memory_space<semaphore_mem>>
      %946 = tpu.memref_squeeze %945 : memref<1x!tpu.dma_semaphore, #tpu.memory_space<semaphore_mem>> -> memref<!tpu.dma_semaphore, #tpu.memory_space<semaphore_mem>>
      tpu.enqueue_dma source(%942 : memref<128xf32, #tpu.memory_space<any>>) target(%944 : memref<128xf32, #tpu.memory_space<vmem>>) target_semaphore(%946 : memref<!tpu.dma_semaphore, #tpu.memory_space<semaphore_mem>>)
      %c4_i32_729 = arith.constant 4 : i32
      %947 = arith.addi %910, %c4_i32_729 : i32
      %948 = arith.index_cast %947 : i32 to index
      %949 = memref.load %arg2[%948] : memref<64xi32, #tpu.memory_space<smem>>
      %c0_i32_730 = arith.constant 0 : i32
      %c4_i32_731 = arith.constant 4 : i32
      %c6_i32_732 = arith.constant 6 : i32
      %c0_i32_733 = arith.constant 0 : i32
      %c0_i32_734 = arith.constant 0 : i32
      %950 = tpu.memref_slice %arg5[%949, %c0_i32_734] : memref<64x128xf32, #tpu.memory_space<any>> -> memref<1x128xf32, #tpu.memory_space<any>>
      %951 = tpu.memref_squeeze %950 : memref<1x128xf32, #tpu.memory_space<any>> -> memref<128xf32, #tpu.memory_space<any>>
      %c0_i32_735 = arith.constant 0 : i32
      %952 = tpu.memref_slice %arg7[%c0_i32_730, %c4_i32_731, %c6_i32_732, %c0_i32_735] : memref<2x8x8x128xf32, #tpu.memory_space<vmem>> -> memref<1x1x1x128xf32, #tpu.memory_space<vmem>>
      %953 = tpu.memref_squeeze %952 : memref<1x1x1x128xf32, #tpu.memory_space<vmem>> -> memref<128xf32, #tpu.memory_space<vmem>>
      %954 = tpu.memref_slice %arg8[%c0_i32_733] : memref<2x!tpu.dma_semaphore, #tpu.memory_space<semaphore_mem>> -> memref<1x!tpu.dma_semaphore, #tpu.memory_space<semaphore_mem>>
      %955 = tpu.memref_squeeze %954 : memref<1x!tpu.dma_semaphore, #tpu.memory_space<semaphore_mem>> -> memref<!tpu.dma_semaphore, #tpu.memory_space<semaphore_mem>>
      tpu.enqueue_dma source(%951 : memref<128xf32, #tpu.memory_space<any>>) target(%953 : memref<128xf32, #tpu.memory_space<vmem>>) target_semaphore(%955 : memref<!tpu.dma_semaphore, #tpu.memory_space<semaphore_mem>>)
      %c5_i32_736 = arith.constant 5 : i32
      %956 = arith.addi %910, %c5_i32_736 : i32
      %957 = arith.index_cast %956 : i32 to index
      %958 = memref.load %arg2[%957] : memref<64xi32, #tpu.memory_space<smem>>
      %c0_i32_737 = arith.constant 0 : i32
      %c5_i32_738 = arith.constant 5 : i32
      %c6_i32_739 = arith.constant 6 : i32
      %c0_i32_740 = arith.constant 0 : i32
      %c0_i32_741 = arith.constant 0 : i32
      %959 = tpu.memref_slice %arg5[%958, %c0_i32_741] : memref<64x128xf32, #tpu.memory_space<any>> -> memref<1x128xf32, #tpu.memory_space<any>>
      %960 = tpu.memref_squeeze %959 : memref<1x128xf32, #tpu.memory_space<any>> -> memref<128xf32, #tpu.memory_space<any>>
      %c0_i32_742 = arith.constant 0 : i32
      %961 = tpu.memref_slice %arg7[%c0_i32_737, %c5_i32_738, %c6_i32_739, %c0_i32_742] : memref<2x8x8x128xf32, #tpu.memory_space<vmem>> -> memref<1x1x1x128xf32, #tpu.memory_space<vmem>>
      %962 = tpu.memref_squeeze %961 : memref<1x1x1x128xf32, #tpu.memory_space<vmem>> -> memref<128xf32, #tpu.memory_space<vmem>>
      %963 = tpu.memref_slice %arg8[%c0_i32_740] : memref<2x!tpu.dma_semaphore, #tpu.memory_space<semaphore_mem>> -> memref<1x!tpu.dma_semaphore, #tpu.memory_space<semaphore_mem>>
      %964 = tpu.memref_squeeze %963 : memref<1x!tpu.dma_semaphore, #tpu.memory_space<semaphore_mem>> -> memref<!tpu.dma_semaphore, #tpu.memory_space<semaphore_mem>>
      tpu.enqueue_dma source(%960 : memref<128xf32, #tpu.memory_space<any>>) target(%962 : memref<128xf32, #tpu.memory_space<vmem>>) target_semaphore(%964 : memref<!tpu.dma_semaphore, #tpu.memory_space<semaphore_mem>>)
      %c6_i32_743 = arith.constant 6 : i32
      %965 = arith.addi %910, %c6_i32_743 : i32
      %966 = arith.index_cast %965 : i32 to index
      %967 = memref.load %arg2[%966] : memref<64xi32, #tpu.memory_space<smem>>
      %c0_i32_744 = arith.constant 0 : i32
      %c6_i32_745 = arith.constant 6 : i32
      %c6_i32_746 = arith.constant 6 : i32
      %c0_i32_747 = arith.constant 0 : i32
      %c0_i32_748 = arith.constant 0 : i32
      %968 = tpu.memref_slice %arg5[%967, %c0_i32_748] : memref<64x128xf32, #tpu.memory_space<any>> -> memref<1x128xf32, #tpu.memory_space<any>>
      %969 = tpu.memref_squeeze %968 : memref<1x128xf32, #tpu.memory_space<any>> -> memref<128xf32, #tpu.memory_space<any>>
      %c0_i32_749 = arith.constant 0 : i32
      %970 = tpu.memref_slice %arg7[%c0_i32_744, %c6_i32_745, %c6_i32_746, %c0_i32_749] : memref<2x8x8x128xf32, #tpu.memory_space<vmem>> -> memref<1x1x1x128xf32, #tpu.memory_space<vmem>>
      %971 = tpu.memref_squeeze %970 : memref<1x1x1x128xf32, #tpu.memory_space<vmem>> -> memref<128xf32, #tpu.memory_space<vmem>>
      %972 = tpu.memref_slice %arg8[%c0_i32_747] : memref<2x!tpu.dma_semaphore, #tpu.memory_space<semaphore_mem>> -> memref<1x!tpu.dma_semaphore, #tpu.memory_space<semaphore_mem>>
      %973 = tpu.memref_squeeze %972 : memref<1x!tpu.dma_semaphore, #tpu.memory_space<semaphore_mem>> -> memref<!tpu.dma_semaphore, #tpu.memory_space<semaphore_mem>>
      tpu.enqueue_dma source(%969 : memref<128xf32, #tpu.memory_space<any>>) target(%971 : memref<128xf32, #tpu.memory_space<vmem>>) target_semaphore(%973 : memref<!tpu.dma_semaphore, #tpu.memory_space<semaphore_mem>>)
      %c7_i32_750 = arith.constant 7 : i32
      %974 = arith.addi %910, %c7_i32_750 : i32
      %975 = arith.index_cast %974 : i32 to index
      %976 = memref.load %arg2[%975] : memref<64xi32, #tpu.memory_space<smem>>
      %c0_i32_751 = arith.constant 0 : i32
      %c7_i32_752 = arith.constant 7 : i32
      %c6_i32_753 = arith.constant 6 : i32
      %c0_i32_754 = arith.constant 0 : i32
      %c0_i32_755 = arith.constant 0 : i32
      %977 = tpu.memref_slice %arg5[%976, %c0_i32_755] : memref<64x128xf32, #tpu.memory_space<any>> -> memref<1x128xf32, #tpu.memory_space<any>>
      %978 = tpu.memref_squeeze %977 : memref<1x128xf32, #tpu.memory_space<any>> -> memref<128xf32, #tpu.memory_space<any>>
      %c0_i32_756 = arith.constant 0 : i32
      %979 = tpu.memref_slice %arg7[%c0_i32_751, %c7_i32_752, %c6_i32_753, %c0_i32_756] : memref<2x8x8x128xf32, #tpu.memory_space<vmem>> -> memref<1x1x1x128xf32, #tpu.memory_space<vmem>>
      %980 = tpu.memref_squeeze %979 : memref<1x1x1x128xf32, #tpu.memory_space<vmem>> -> memref<128xf32, #tpu.memory_space<vmem>>
      %981 = tpu.memref_slice %arg8[%c0_i32_754] : memref<2x!tpu.dma_semaphore, #tpu.memory_space<semaphore_mem>> -> memref<1x!tpu.dma_semaphore, #tpu.memory_space<semaphore_mem>>
      %982 = tpu.memref_squeeze %981 : memref<1x!tpu.dma_semaphore, #tpu.memory_space<semaphore_mem>> -> memref<!tpu.dma_semaphore, #tpu.memory_space<semaphore_mem>>
      tpu.enqueue_dma source(%978 : memref<128xf32, #tpu.memory_space<any>>) target(%980 : memref<128xf32, #tpu.memory_space<vmem>>) target_semaphore(%982 : memref<!tpu.dma_semaphore, #tpu.memory_space<semaphore_mem>>)
      %c7_i32_757 = arith.constant 7 : i32
      %983 = arith.addi %457, %c7_i32_757 : i32
      %c8_i32_758 = arith.constant 8 : i32
      %984 = arith.muli %983, %c8_i32_758 : i32
      %c0_i32_759 = arith.constant 0 : i32
      %985 = arith.addi %984, %c0_i32_759 : i32
      %c0_i32_760 = arith.constant 0 : i32
      %986 = arith.addi %985, %c0_i32_760 : i32
      %987 = arith.index_cast %986 : i32 to index
      %988 = memref.load %arg2[%987] : memref<64xi32, #tpu.memory_space<smem>>
      %c0_i32_761 = arith.constant 0 : i32
      %c0_i32_762 = arith.constant 0 : i32
      %c7_i32_763 = arith.constant 7 : i32
      %c0_i32_764 = arith.constant 0 : i32
      %c0_i32_765 = arith.constant 0 : i32
      %989 = tpu.memref_slice %arg5[%988, %c0_i32_765] : memref<64x128xf32, #tpu.memory_space<any>> -> memref<1x128xf32, #tpu.memory_space<any>>
      %990 = tpu.memref_squeeze %989 : memref<1x128xf32, #tpu.memory_space<any>> -> memref<128xf32, #tpu.memory_space<any>>
      %c0_i32_766 = arith.constant 0 : i32
      %991 = tpu.memref_slice %arg7[%c0_i32_761, %c0_i32_762, %c7_i32_763, %c0_i32_766] : memref<2x8x8x128xf32, #tpu.memory_space<vmem>> -> memref<1x1x1x128xf32, #tpu.memory_space<vmem>>
      %992 = tpu.memref_squeeze %991 : memref<1x1x1x128xf32, #tpu.memory_space<vmem>> -> memref<128xf32, #tpu.memory_space<vmem>>
      %993 = tpu.memref_slice %arg8[%c0_i32_764] : memref<2x!tpu.dma_semaphore, #tpu.memory_space<semaphore_mem>> -> memref<1x!tpu.dma_semaphore, #tpu.memory_space<semaphore_mem>>
      %994 = tpu.memref_squeeze %993 : memref<1x!tpu.dma_semaphore, #tpu.memory_space<semaphore_mem>> -> memref<!tpu.dma_semaphore, #tpu.memory_space<semaphore_mem>>
      tpu.enqueue_dma source(%990 : memref<128xf32, #tpu.memory_space<any>>) target(%992 : memref<128xf32, #tpu.memory_space<vmem>>) target_semaphore(%994 : memref<!tpu.dma_semaphore, #tpu.memory_space<semaphore_mem>>)
      %c1_i32_767 = arith.constant 1 : i32
      %995 = arith.addi %985, %c1_i32_767 : i32
      %996 = arith.index_cast %995 : i32 to index
      %997 = memref.load %arg2[%996] : memref<64xi32, #tpu.memory_space<smem>>
      %c0_i32_768 = arith.constant 0 : i32
      %c1_i32_769 = arith.constant 1 : i32
      %c7_i32_770 = arith.constant 7 : i32
      %c0_i32_771 = arith.constant 0 : i32
      %c0_i32_772 = arith.constant 0 : i32
      %998 = tpu.memref_slice %arg5[%997, %c0_i32_772] : memref<64x128xf32, #tpu.memory_space<any>> -> memref<1x128xf32, #tpu.memory_space<any>>
      %999 = tpu.memref_squeeze %998 : memref<1x128xf32, #tpu.memory_space<any>> -> memref<128xf32, #tpu.memory_space<any>>
      %c0_i32_773 = arith.constant 0 : i32
      %1000 = tpu.memref_slice %arg7[%c0_i32_768, %c1_i32_769, %c7_i32_770, %c0_i32_773] : memref<2x8x8x128xf32, #tpu.memory_space<vmem>> -> memref<1x1x1x128xf32, #tpu.memory_space<vmem>>
      %1001 = tpu.memref_squeeze %1000 : memref<1x1x1x128xf32, #tpu.memory_space<vmem>> -> memref<128xf32, #tpu.memory_space<vmem>>
      %1002 = tpu.memref_slice %arg8[%c0_i32_771] : memref<2x!tpu.dma_semaphore, #tpu.memory_space<semaphore_mem>> -> memref<1x!tpu.dma_semaphore, #tpu.memory_space<semaphore_mem>>
      %1003 = tpu.memref_squeeze %1002 : memref<1x!tpu.dma_semaphore, #tpu.memory_space<semaphore_mem>> -> memref<!tpu.dma_semaphore, #tpu.memory_space<semaphore_mem>>
      tpu.enqueue_dma source(%999 : memref<128xf32, #tpu.memory_space<any>>) target(%1001 : memref<128xf32, #tpu.memory_space<vmem>>) target_semaphore(%1003 : memref<!tpu.dma_semaphore, #tpu.memory_space<semaphore_mem>>)
      %c2_i32_774 = arith.constant 2 : i32
      %1004 = arith.addi %985, %c2_i32_774 : i32
      %1005 = arith.index_cast %1004 : i32 to index
      %1006 = memref.load %arg2[%1005] : memref<64xi32, #tpu.memory_space<smem>>
      %c0_i32_775 = arith.constant 0 : i32
      %c2_i32_776 = arith.constant 2 : i32
      %c7_i32_777 = arith.constant 7 : i32
      %c0_i32_778 = arith.constant 0 : i32
      %c0_i32_779 = arith.constant 0 : i32
      %1007 = tpu.memref_slice %arg5[%1006, %c0_i32_779] : memref<64x128xf32, #tpu.memory_space<any>> -> memref<1x128xf32, #tpu.memory_space<any>>
      %1008 = tpu.memref_squeeze %1007 : memref<1x128xf32, #tpu.memory_space<any>> -> memref<128xf32, #tpu.memory_space<any>>
      %c0_i32_780 = arith.constant 0 : i32
      %1009 = tpu.memref_slice %arg7[%c0_i32_775, %c2_i32_776, %c7_i32_777, %c0_i32_780] : memref<2x8x8x128xf32, #tpu.memory_space<vmem>> -> memref<1x1x1x128xf32, #tpu.memory_space<vmem>>
      %1010 = tpu.memref_squeeze %1009 : memref<1x1x1x128xf32, #tpu.memory_space<vmem>> -> memref<128xf32, #tpu.memory_space<vmem>>
      %1011 = tpu.memref_slice %arg8[%c0_i32_778] : memref<2x!tpu.dma_semaphore, #tpu.memory_space<semaphore_mem>> -> memref<1x!tpu.dma_semaphore, #tpu.memory_space<semaphore_mem>>
      %1012 = tpu.memref_squeeze %1011 : memref<1x!tpu.dma_semaphore, #tpu.memory_space<semaphore_mem>> -> memref<!tpu.dma_semaphore, #tpu.memory_space<semaphore_mem>>
      tpu.enqueue_dma source(%1008 : memref<128xf32, #tpu.memory_space<any>>) target(%1010 : memref<128xf32, #tpu.memory_space<vmem>>) target_semaphore(%1012 : memref<!tpu.dma_semaphore, #tpu.memory_space<semaphore_mem>>)
      %c3_i32_781 = arith.constant 3 : i32
      %1013 = arith.addi %985, %c3_i32_781 : i32
      %1014 = arith.index_cast %1013 : i32 to index
      %1015 = memref.load %arg2[%1014] : memref<64xi32, #tpu.memory_space<smem>>
      %c0_i32_782 = arith.constant 0 : i32
      %c3_i32_783 = arith.constant 3 : i32
      %c7_i32_784 = arith.constant 7 : i32
      %c0_i32_785 = arith.constant 0 : i32
      %c0_i32_786 = arith.constant 0 : i32
      %1016 = tpu.memref_slice %arg5[%1015, %c0_i32_786] : memref<64x128xf32, #tpu.memory_space<any>> -> memref<1x128xf32, #tpu.memory_space<any>>
      %1017 = tpu.memref_squeeze %1016 : memref<1x128xf32, #tpu.memory_space<any>> -> memref<128xf32, #tpu.memory_space<any>>
      %c0_i32_787 = arith.constant 0 : i32
      %1018 = tpu.memref_slice %arg7[%c0_i32_782, %c3_i32_783, %c7_i32_784, %c0_i32_787] : memref<2x8x8x128xf32, #tpu.memory_space<vmem>> -> memref<1x1x1x128xf32, #tpu.memory_space<vmem>>
      %1019 = tpu.memref_squeeze %1018 : memref<1x1x1x128xf32, #tpu.memory_space<vmem>> -> memref<128xf32, #tpu.memory_space<vmem>>
      %1020 = tpu.memref_slice %arg8[%c0_i32_785] : memref<2x!tpu.dma_semaphore, #tpu.memory_space<semaphore_mem>> -> memref<1x!tpu.dma_semaphore, #tpu.memory_space<semaphore_mem>>
      %1021 = tpu.memref_squeeze %1020 : memref<1x!tpu.dma_semaphore, #tpu.memory_space<semaphore_mem>> -> memref<!tpu.dma_semaphore, #tpu.memory_space<semaphore_mem>>
      tpu.enqueue_dma source(%1017 : memref<128xf32, #tpu.memory_space<any>>) target(%1019 : memref<128xf32, #tpu.memory_space<vmem>>) target_semaphore(%1021 : memref<!tpu.dma_semaphore, #tpu.memory_space<semaphore_mem>>)
      %c4_i32_788 = arith.constant 4 : i32
      %1022 = arith.addi %985, %c4_i32_788 : i32
      %1023 = arith.index_cast %1022 : i32 to index
      %1024 = memref.load %arg2[%1023] : memref<64xi32, #tpu.memory_space<smem>>
      %c0_i32_789 = arith.constant 0 : i32
      %c4_i32_790 = arith.constant 4 : i32
      %c7_i32_791 = arith.constant 7 : i32
      %c0_i32_792 = arith.constant 0 : i32
      %c0_i32_793 = arith.constant 0 : i32
      %1025 = tpu.memref_slice %arg5[%1024, %c0_i32_793] : memref<64x128xf32, #tpu.memory_space<any>> -> memref<1x128xf32, #tpu.memory_space<any>>
      %1026 = tpu.memref_squeeze %1025 : memref<1x128xf32, #tpu.memory_space<any>> -> memref<128xf32, #tpu.memory_space<any>>
      %c0_i32_794 = arith.constant 0 : i32
      %1027 = tpu.memref_slice %arg7[%c0_i32_789, %c4_i32_790, %c7_i32_791, %c0_i32_794] : memref<2x8x8x128xf32, #tpu.memory_space<vmem>> -> memref<1x1x1x128xf32, #tpu.memory_space<vmem>>
      %1028 = tpu.memref_squeeze %1027 : memref<1x1x1x128xf32, #tpu.memory_space<vmem>> -> memref<128xf32, #tpu.memory_space<vmem>>
      %1029 = tpu.memref_slice %arg8[%c0_i32_792] : memref<2x!tpu.dma_semaphore, #tpu.memory_space<semaphore_mem>> -> memref<1x!tpu.dma_semaphore, #tpu.memory_space<semaphore_mem>>
      %1030 = tpu.memref_squeeze %1029 : memref<1x!tpu.dma_semaphore, #tpu.memory_space<semaphore_mem>> -> memref<!tpu.dma_semaphore, #tpu.memory_space<semaphore_mem>>
      tpu.enqueue_dma source(%1026 : memref<128xf32, #tpu.memory_space<any>>) target(%1028 : memref<128xf32, #tpu.memory_space<vmem>>) target_semaphore(%1030 : memref<!tpu.dma_semaphore, #tpu.memory_space<semaphore_mem>>)
      %c5_i32_795 = arith.constant 5 : i32
      %1031 = arith.addi %985, %c5_i32_795 : i32
      %1032 = arith.index_cast %1031 : i32 to index
      %1033 = memref.load %arg2[%1032] : memref<64xi32, #tpu.memory_space<smem>>
      %c0_i32_796 = arith.constant 0 : i32
      %c5_i32_797 = arith.constant 5 : i32
      %c7_i32_798 = arith.constant 7 : i32
      %c0_i32_799 = arith.constant 0 : i32
      %c0_i32_800 = arith.constant 0 : i32
      %1034 = tpu.memref_slice %arg5[%1033, %c0_i32_800] : memref<64x128xf32, #tpu.memory_space<any>> -> memref<1x128xf32, #tpu.memory_space<any>>
      %1035 = tpu.memref_squeeze %1034 : memref<1x128xf32, #tpu.memory_space<any>> -> memref<128xf32, #tpu.memory_space<any>>
      %c0_i32_801 = arith.constant 0 : i32
      %1036 = tpu.memref_slice %arg7[%c0_i32_796, %c5_i32_797, %c7_i32_798, %c0_i32_801] : memref<2x8x8x128xf32, #tpu.memory_space<vmem>> -> memref<1x1x1x128xf32, #tpu.memory_space<vmem>>
      %1037 = tpu.memref_squeeze %1036 : memref<1x1x1x128xf32, #tpu.memory_space<vmem>> -> memref<128xf32, #tpu.memory_space<vmem>>
      %1038 = tpu.memref_slice %arg8[%c0_i32_799] : memref<2x!tpu.dma_semaphore, #tpu.memory_space<semaphore_mem>> -> memref<1x!tpu.dma_semaphore, #tpu.memory_space<semaphore_mem>>
      %1039 = tpu.memref_squeeze %1038 : memref<1x!tpu.dma_semaphore, #tpu.memory_space<semaphore_mem>> -> memref<!tpu.dma_semaphore, #tpu.memory_space<semaphore_mem>>
      tpu.enqueue_dma source(%1035 : memref<128xf32, #tpu.memory_space<any>>) target(%1037 : memref<128xf32, #tpu.memory_space<vmem>>) target_semaphore(%1039 : memref<!tpu.dma_semaphore, #tpu.memory_space<semaphore_mem>>)
      %c6_i32_802 = arith.constant 6 : i32
      %1040 = arith.addi %985, %c6_i32_802 : i32
      %1041 = arith.index_cast %1040 : i32 to index
      %1042 = memref.load %arg2[%1041] : memref<64xi32, #tpu.memory_space<smem>>
      %c0_i32_803 = arith.constant 0 : i32
      %c6_i32_804 = arith.constant 6 : i32
      %c7_i32_805 = arith.constant 7 : i32
      %c0_i32_806 = arith.constant 0 : i32
      %c0_i32_807 = arith.constant 0 : i32
      %1043 = tpu.memref_slice %arg5[%1042, %c0_i32_807] : memref<64x128xf32, #tpu.memory_space<any>> -> memref<1x128xf32, #tpu.memory_space<any>>
      %1044 = tpu.memref_squeeze %1043 : memref<1x128xf32, #tpu.memory_space<any>> -> memref<128xf32, #tpu.memory_space<any>>
      %c0_i32_808 = arith.constant 0 : i32
      %1045 = tpu.memref_slice %arg7[%c0_i32_803, %c6_i32_804, %c7_i32_805, %c0_i32_808] : memref<2x8x8x128xf32, #tpu.memory_space<vmem>> -> memref<1x1x1x128xf32, #tpu.memory_space<vmem>>
      %1046 = tpu.memref_squeeze %1045 : memref<1x1x1x128xf32, #tpu.memory_space<vmem>> -> memref<128xf32, #tpu.memory_space<vmem>>
      %1047 = tpu.memref_slice %arg8[%c0_i32_806] : memref<2x!tpu.dma_semaphore, #tpu.memory_space<semaphore_mem>> -> memref<1x!tpu.dma_semaphore, #tpu.memory_space<semaphore_mem>>
      %1048 = tpu.memref_squeeze %1047 : memref<1x!tpu.dma_semaphore, #tpu.memory_space<semaphore_mem>> -> memref<!tpu.dma_semaphore, #tpu.memory_space<semaphore_mem>>
      tpu.enqueue_dma source(%1044 : memref<128xf32, #tpu.memory_space<any>>) target(%1046 : memref<128xf32, #tpu.memory_space<vmem>>) target_semaphore(%1048 : memref<!tpu.dma_semaphore, #tpu.memory_space<semaphore_mem>>)
      %c7_i32_809 = arith.constant 7 : i32
      %1049 = arith.addi %985, %c7_i32_809 : i32
      %1050 = arith.index_cast %1049 : i32 to index
      %1051 = memref.load %arg2[%1050] : memref<64xi32, #tpu.memory_space<smem>>
      %c0_i32_810 = arith.constant 0 : i32
      %c7_i32_811 = arith.constant 7 : i32
      %c7_i32_812 = arith.constant 7 : i32
      %c0_i32_813 = arith.constant 0 : i32
      %c0_i32_814 = arith.constant 0 : i32
      %1052 = tpu.memref_slice %arg5[%1051, %c0_i32_814] : memref<64x128xf32, #tpu.memory_space<any>> -> memref<1x128xf32, #tpu.memory_space<any>>
      %1053 = tpu.memref_squeeze %1052 : memref<1x128xf32, #tpu.memory_space<any>> -> memref<128xf32, #tpu.memory_space<any>>
      %c0_i32_815 = arith.constant 0 : i32
      %1054 = tpu.memref_slice %arg7[%c0_i32_810, %c7_i32_811, %c7_i32_812, %c0_i32_815] : memref<2x8x8x128xf32, #tpu.memory_space<vmem>> -> memref<1x1x1x128xf32, #tpu.memory_space<vmem>>
      %1055 = tpu.memref_squeeze %1054 : memref<1x1x1x128xf32, #tpu.memory_space<vmem>> -> memref<128xf32, #tpu.memory_space<vmem>>
      %1056 = tpu.memref_slice %arg8[%c0_i32_813] : memref<2x!tpu.dma_semaphore, #tpu.memory_space<semaphore_mem>> -> memref<1x!tpu.dma_semaphore, #tpu.memory_space<semaphore_mem>>
      %1057 = tpu.memref_squeeze %1056 : memref<1x!tpu.dma_semaphore, #tpu.memory_space<semaphore_mem>> -> memref<!tpu.dma_semaphore, #tpu.memory_space<semaphore_mem>>
      tpu.enqueue_dma source(%1053 : memref<128xf32, #tpu.memory_space<any>>) target(%1055 : memref<128xf32, #tpu.memory_space<vmem>>) target_semaphore(%1057 : memref<!tpu.dma_semaphore, #tpu.memory_space<semaphore_mem>>)
      %c0_816 = arith.constant 0 : index
      %c0_817 = arith.constant 0 : index
      %1058 = vector.load %arg4[%c0_816, %c0_817] : memref<1x128xf32, #tpu.memory_space<vmem>>, vector<1x128xf32>
      %1059 = vector.shape_cast %1058 : vector<1x128xf32> to vector<1x128xf32>
      %1060 = vector.broadcast %1059 : vector<1x128xf32> to vector<8x128xf32>
      %c0_818 = arith.constant 0 : index
      %c0_819 = arith.constant 0 : index
      %1061 = vector.load %arg6[%c0_818, %c0_819] : memref<8x128xf32, #tpu.memory_space<vmem>>, vector<8x128xf32>
      tpu.vector_store %arg6[%c0_818, %c0_819], %1060 {strides = array<i32>} : memref<8x128xf32, #tpu.memory_space<vmem>>, vector<8x128xf32>,
    } else {
    }
    %c0_i32_5 = arith.constant 0 : i32
    %c0_i32_6 = arith.constant 0 : i32
    %c0_i32_7 = arith.constant 0 : i32
    %c0_i32_8 = arith.constant 0 : i32
    %13 = tpu.memref_slice %arg5[%c0_i32_5, %c0_i32_8] : memref<64x128xf32, #tpu.memory_space<any>> -> memref<1x128xf32, #tpu.memory_space<any>>
    %14 = tpu.memref_squeeze %13 : memref<1x128xf32, #tpu.memory_space<any>> -> memref<128xf32, #tpu.memory_space<any>>
    %c0_i32_9 = arith.constant 0 : i32
    %15 = tpu.memref_slice %arg7[%9, %c0_i32_6, %c0_i32_7, %c0_i32_9] : memref<2x8x8x128xf32, #tpu.memory_space<vmem>> -> memref<1x1x1x128xf32, #tpu.memory_space<vmem>>
    %16 = tpu.memref_squeeze %15 : memref<1x1x1x128xf32, #tpu.memory_space<vmem>> -> memref<128xf32, #tpu.memory_space<vmem>>
    %17 = tpu.memref_slice %arg8[%9] : memref<2x!tpu.dma_semaphore, #tpu.memory_space<semaphore_mem>> -> memref<1x!tpu.dma_semaphore, #tpu.memory_space<semaphore_mem>>
    %18 = tpu.memref_squeeze %17 : memref<1x!tpu.dma_semaphore, #tpu.memory_space<semaphore_mem>> -> memref<!tpu.dma_semaphore, #tpu.memory_space<semaphore_mem>>
    tpu.wait_dma2 semaphore(%18 : memref<!tpu.dma_semaphore, #tpu.memory_space<semaphore_mem>>) src(%14 : memref<128xf32, #tpu.memory_space<any>>) dst(%16 : memref<128xf32, #tpu.memory_space<vmem>>)
    %c0_i32_10 = arith.constant 0 : i32
    %c0_i32_11 = arith.constant 0 : i32
    %c0_i32_12 = arith.constant 0 : i32
    %c0_i32_13 = arith.constant 0 : i32
    %19 = tpu.memref_slice %arg5[%c0_i32_10, %c0_i32_13] : memref<64x128xf32, #tpu.memory_space<any>> -> memref<1x128xf32, #tpu.memory_space<any>>
    %20 = tpu.memref_squeeze %19 : memref<1x128xf32, #tpu.memory_space<any>> -> memref<128xf32, #tpu.memory_space<any>>
    %c0_i32_14 = arith.constant 0 : i32
    %21 = tpu.memref_slice %arg7[%9, %c0_i32_11, %c0_i32_12, %c0_i32_14] : memref<2x8x8x128xf32, #tpu.memory_space<vmem>> -> memref<1x1x1x128xf32, #tpu.memory_space<vmem>>
    %22 = tpu.memref_squeeze %21 : memref<1x1x1x128xf32, #tpu.memory_space<vmem>> -> memref<128xf32, #tpu.memory_space<vmem>>
    %23 = tpu.memref_slice %arg8[%9] : memref<2x!tpu.dma_semaphore, #tpu.memory_space<semaphore_mem>> -> memref<1x!tpu.dma_semaphore, #tpu.memory_space<semaphore_mem>>
    %24 = tpu.memref_squeeze %23 : memref<1x!tpu.dma_semaphore, #tpu.memory_space<semaphore_mem>> -> memref<!tpu.dma_semaphore, #tpu.memory_space<semaphore_mem>>
    tpu.wait_dma2 semaphore(%24 : memref<!tpu.dma_semaphore, #tpu.memory_space<semaphore_mem>>) src(%20 : memref<128xf32, #tpu.memory_space<any>>) dst(%22 : memref<128xf32, #tpu.memory_space<vmem>>)
    %c0_i32_15 = arith.constant 0 : i32
    %c0_i32_16 = arith.constant 0 : i32
    %c0_i32_17 = arith.constant 0 : i32
    %c0_i32_18 = arith.constant 0 : i32
    %25 = tpu.memref_slice %arg5[%c0_i32_15, %c0_i32_18] : memref<64x128xf32, #tpu.memory_space<any>> -> memref<1x128xf32, #tpu.memory_space<any>>
    %26 = tpu.memref_squeeze %25 : memref<1x128xf32, #tpu.memory_space<any>> -> memref<128xf32, #tpu.memory_space<any>>
    %c0_i32_19 = arith.constant 0 : i32
    %27 = tpu.memref_slice %arg7[%9, %c0_i32_16, %c0_i32_17, %c0_i32_19] : memref<2x8x8x128xf32, #tpu.memory_space<vmem>> -> memref<1x1x1x128xf32, #tpu.memory_space<vmem>>
    %28 = tpu.memref_squeeze %27 : memref<1x1x1x128xf32, #tpu.memory_space<vmem>> -> memref<128xf32, #tpu.memory_space<vmem>>
    %29 = tpu.memref_slice %arg8[%9] : memref<2x!tpu.dma_semaphore, #tpu.memory_space<semaphore_mem>> -> memref<1x!tpu.dma_semaphore, #tpu.memory_space<semaphore_mem>>
    %30 = tpu.memref_squeeze %29 : memref<1x!tpu.dma_semaphore, #tpu.memory_space<semaphore_mem>> -> memref<!tpu.dma_semaphore, #tpu.memory_space<semaphore_mem>>
    tpu.wait_dma2 semaphore(%30 : memref<!tpu.dma_semaphore, #tpu.memory_space<semaphore_mem>>) src(%26 : memref<128xf32, #tpu.memory_space<any>>) dst(%28 : memref<128xf32, #tpu.memory_space<vmem>>)
    %c0_i32_20 = arith.constant 0 : i32
    %c0_i32_21 = arith.constant 0 : i32
    %c0_i32_22 = arith.constant 0 : i32
    %c0_i32_23 = arith.constant 0 : i32
    %31 = tpu.memref_slice %arg5[%c0_i32_20, %c0_i32_23] : memref<64x128xf32, #tpu.memory_space<any>> -> memref<1x128xf32, #tpu.memory_space<any>>
    %32 = tpu.memref_squeeze %31 : memref<1x128xf32, #tpu.memory_space<any>> -> memref<128xf32, #tpu.memory_space<any>>
    %c0_i32_24 = arith.constant 0 : i32
    %33 = tpu.memref_slice %arg7[%9, %c0_i32_21, %c0_i32_22, %c0_i32_24] : memref<2x8x8x128xf32, #tpu.memory_space<vmem>> -> memref<1x1x1x128xf32, #tpu.memory_space<vmem>>
    %34 = tpu.memref_squeeze %33 : memref<1x1x1x128xf32, #tpu.memory_space<vmem>> -> memref<128xf32, #tpu.memory_space<vmem>>
    %35 = tpu.memref_slice %arg8[%9] : memref<2x!tpu.dma_semaphore, #tpu.memory_space<semaphore_mem>> -> memref<1x!tpu.dma_semaphore, #tpu.memory_space<semaphore_mem>>
    %36 = tpu.memref_squeeze %35 : memref<1x!tpu.dma_semaphore, #tpu.memory_space<semaphore_mem>> -> memref<!tpu.dma_semaphore, #tpu.memory_space<semaphore_mem>>
    tpu.wait_dma2 semaphore(%36 : memref<!tpu.dma_semaphore, #tpu.memory_space<semaphore_mem>>) src(%32 : memref<128xf32, #tpu.memory_space<any>>) dst(%34 : memref<128xf32, #tpu.memory_space<vmem>>)
    %c0_i32_25 = arith.constant 0 : i32
    %c0_i32_26 = arith.constant 0 : i32
    %c0_i32_27 = arith.constant 0 : i32
    %c0_i32_28 = arith.constant 0 : i32
    %37 = tpu.memref_slice %arg5[%c0_i32_25, %c0_i32_28] : memref<64x128xf32, #tpu.memory_space<any>> -> memref<1x128xf32, #tpu.memory_space<any>>
    %38 = tpu.memref_squeeze %37 : memref<1x128xf32, #tpu.memory_space<any>> -> memref<128xf32, #tpu.memory_space<any>>
    %c0_i32_29 = arith.constant 0 : i32
    %39 = tpu.memref_slice %arg7[%9, %c0_i32_26, %c0_i32_27, %c0_i32_29] : memref<2x8x8x128xf32, #tpu.memory_space<vmem>> -> memref<1x1x1x128xf32, #tpu.memory_space<vmem>>
    %40 = tpu.memref_squeeze %39 : memref<1x1x1x128xf32, #tpu.memory_space<vmem>> -> memref<128xf32, #tpu.memory_space<vmem>>
    %41 = tpu.memref_slice %arg8[%9] : memref<2x!tpu.dma_semaphore, #tpu.memory_space<semaphore_mem>> -> memref<1x!tpu.dma_semaphore, #tpu.memory_space<semaphore_mem>>
    %42 = tpu.memref_squeeze %41 : memref<1x!tpu.dma_semaphore, #tpu.memory_space<semaphore_mem>> -> memref<!tpu.dma_semaphore, #tpu.memory_space<semaphore_mem>>
    tpu.wait_dma2 semaphore(%42 : memref<!tpu.dma_semaphore, #tpu.memory_space<semaphore_mem>>) src(%38 : memref<128xf32, #tpu.memory_space<any>>) dst(%40 : memref<128xf32, #tpu.memory_space<vmem>>)
    %c0_i32_30 = arith.constant 0 : i32
    %c0_i32_31 = arith.constant 0 : i32
    %c0_i32_32 = arith.constant 0 : i32
    %c0_i32_33 = arith.constant 0 : i32
    %43 = tpu.memref_slice %arg5[%c0_i32_30, %c0_i32_33] : memref<64x128xf32, #tpu.memory_space<any>> -> memref<1x128xf32, #tpu.memory_space<any>>
    %44 = tpu.memref_squeeze %43 : memref<1x128xf32, #tpu.memory_space<any>> -> memref<128xf32, #tpu.memory_space<any>>
    %c0_i32_34 = arith.constant 0 : i32
    %45 = tpu.memref_slice %arg7[%9, %c0_i32_31, %c0_i32_32, %c0_i32_34] : memref<2x8x8x128xf32, #tpu.memory_space<vmem>> -> memref<1x1x1x128xf32, #tpu.memory_space<vmem>>
    %46 = tpu.memref_squeeze %45 : memref<1x1x1x128xf32, #tpu.memory_space<vmem>> -> memref<128xf32, #tpu.memory_space<vmem>>
    %47 = tpu.memref_slice %arg8[%9] : memref<2x!tpu.dma_semaphore, #tpu.memory_space<semaphore_mem>> -> memref<1x!tpu.dma_semaphore, #tpu.memory_space<semaphore_mem>>
    %48 = tpu.memref_squeeze %47 : memref<1x!tpu.dma_semaphore, #tpu.memory_space<semaphore_mem>> -> memref<!tpu.dma_semaphore, #tpu.memory_space<semaphore_mem>>
    tpu.wait_dma2 semaphore(%48 : memref<!tpu.dma_semaphore, #tpu.memory_space<semaphore_mem>>) src(%44 : memref<128xf32, #tpu.memory_space<any>>) dst(%46 : memref<128xf32, #tpu.memory_space<vmem>>)
    %c0_i32_35 = arith.constant 0 : i32
    %c0_i32_36 = arith.constant 0 : i32
    %c0_i32_37 = arith.constant 0 : i32
    %c0_i32_38 = arith.constant 0 : i32
    %49 = tpu.memref_slice %arg5[%c0_i32_35, %c0_i32_38] : memref<64x128xf32, #tpu.memory_space<any>> -> memref<1x128xf32, #tpu.memory_space<any>>
    %50 = tpu.memref_squeeze %49 : memref<1x128xf32, #tpu.memory_space<any>> -> memref<128xf32, #tpu.memory_space<any>>
    %c0_i32_39 = arith.constant 0 : i32
    %51 = tpu.memref_slice %arg7[%9, %c0_i32_36, %c0_i32_37, %c0_i32_39] : memref<2x8x8x128xf32, #tpu.memory_space<vmem>> -> memref<1x1x1x128xf32, #tpu.memory_space<vmem>>
    %52 = tpu.memref_squeeze %51 : memref<1x1x1x128xf32, #tpu.memory_space<vmem>> -> memref<128xf32, #tpu.memory_space<vmem>>
    %53 = tpu.memref_slice %arg8[%9] : memref<2x!tpu.dma_semaphore, #tpu.memory_space<semaphore_mem>> -> memref<1x!tpu.dma_semaphore, #tpu.memory_space<semaphore_mem>>
    %54 = tpu.memref_squeeze %53 : memref<1x!tpu.dma_semaphore, #tpu.memory_space<semaphore_mem>> -> memref<!tpu.dma_semaphore, #tpu.memory_space<semaphore_mem>>
    tpu.wait_dma2 semaphore(%54 : memref<!tpu.dma_semaphore, #tpu.memory_space<semaphore_mem>>) src(%50 : memref<128xf32, #tpu.memory_space<any>>) dst(%52 : memref<128xf32, #tpu.memory_space<vmem>>)
    %c0_i32_40 = arith.constant 0 : i32
    %c0_i32_41 = arith.constant 0 : i32
    %c0_i32_42 = arith.constant 0 : i32
    %c0_i32_43 = arith.constant 0 : i32
    %55 = tpu.memref_slice %arg5[%c0_i32_40, %c0_i32_43] : memref<64x128xf32, #tpu.memory_space<any>> -> memref<1x128xf32, #tpu.memory_space<any>>
    %56 = tpu.memref_squeeze %55 : memref<1x128xf32, #tpu.memory_space<any>> -> memref<128xf32, #tpu.memory_space<any>>
    %c0_i32_44 = arith.constant 0 : i32
    %57 = tpu.memref_slice %arg7[%9, %c0_i32_41, %c0_i32_42, %c0_i32_44] : memref<2x8x8x128xf32, #tpu.memory_space<vmem>> -> memref<1x1x1x128xf32, #tpu.memory_space<vmem>>
    %58 = tpu.memref_squeeze %57 : memref<1x1x1x128xf32, #tpu.memory_space<vmem>> -> memref<128xf32, #tpu.memory_space<vmem>>
    %59 = tpu.memref_slice %arg8[%9] : memref<2x!tpu.dma_semaphore, #tpu.memory_space<semaphore_mem>> -> memref<1x!tpu.dma_semaphore, #tpu.memory_space<semaphore_mem>>
    %60 = tpu.memref_squeeze %59 : memref<1x!tpu.dma_semaphore, #tpu.memory_space<semaphore_mem>> -> memref<!tpu.dma_semaphore, #tpu.memory_space<semaphore_mem>>
    tpu.wait_dma2 semaphore(%60 : memref<!tpu.dma_semaphore, #tpu.memory_space<semaphore_mem>>) src(%56 : memref<128xf32, #tpu.memory_space<any>>) dst(%58 : memref<128xf32, #tpu.memory_space<vmem>>)
    %c0_i32_45 = arith.constant 0 : i32
    %c0_i32_46 = arith.constant 0 : i32
    %c0_i32_47 = arith.constant 0 : i32
    %c0_i32_48 = arith.constant 0 : i32
    %61 = tpu.memref_slice %arg5[%c0_i32_45, %c0_i32_48] : memref<64x128xf32, #tpu.memory_space<any>> -> memref<1x128xf32, #tpu.memory_space<any>>
    %62 = tpu.memref_squeeze %61 : memref<1x128xf32, #tpu.memory_space<any>> -> memref<128xf32, #tpu.memory_space<any>>
    %c0_i32_49 = arith.constant 0 : i32
    %63 = tpu.memref_slice %arg7[%9, %c0_i32_46, %c0_i32_47, %c0_i32_49] : memref<2x8x8x128xf32, #tpu.memory_space<vmem>> -> memref<1x1x1x128xf32, #tpu.memory_space<vmem>>
    %64 = tpu.memref_squeeze %63 : memref<1x1x1x128xf32, #tpu.memory_space<vmem>> -> memref<128xf32, #tpu.memory_space<vmem>>
    %65 = tpu.memref_slice %arg8[%9] : memref<2x!tpu.dma_semaphore, #tpu.memory_space<semaphore_mem>> -> memref<1x!tpu.dma_semaphore, #tpu.memory_space<semaphore_mem>>
    %66 = tpu.memref_squeeze %65 : memref<1x!tpu.dma_semaphore, #tpu.memory_space<semaphore_mem>> -> memref<!tpu.dma_semaphore, #tpu.memory_space<semaphore_mem>>
    tpu.wait_dma2 semaphore(%66 : memref<!tpu.dma_semaphore, #tpu.memory_space<semaphore_mem>>) src(%62 : memref<128xf32, #tpu.memory_space<any>>) dst(%64 : memref<128xf32, #tpu.memory_space<vmem>>)
    %c0_i32_50 = arith.constant 0 : i32
    %c0_i32_51 = arith.constant 0 : i32
    %c0_i32_52 = arith.constant 0 : i32
    %c0_i32_53 = arith.constant 0 : i32
    %67 = tpu.memref_slice %arg5[%c0_i32_50, %c0_i32_53] : memref<64x128xf32, #tpu.memory_space<any>> -> memref<1x128xf32, #tpu.memory_space<any>>
    %68 = tpu.memref_squeeze %67 : memref<1x128xf32, #tpu.memory_space<any>> -> memref<128xf32, #tpu.memory_space<any>>
    %c0_i32_54 = arith.constant 0 : i32
    %69 = tpu.memref_slice %arg7[%9, %c0_i32_51, %c0_i32_52, %c0_i32_54] : memref<2x8x8x128xf32, #tpu.memory_space<vmem>> -> memref<1x1x1x128xf32, #tpu.memory_space<vmem>>
    %70 = tpu.memref_squeeze %69 : memref<1x1x1x128xf32, #tpu.memory_space<vmem>> -> memref<128xf32, #tpu.memory_space<vmem>>
    %71 = tpu.memref_slice %arg8[%9] : memref<2x!tpu.dma_semaphore, #tpu.memory_space<semaphore_mem>> -> memref<1x!tpu.dma_semaphore, #tpu.memory_space<semaphore_mem>>
    %72 = tpu.memref_squeeze %71 : memref<1x!tpu.dma_semaphore, #tpu.memory_space<semaphore_mem>> -> memref<!tpu.dma_semaphore, #tpu.memory_space<semaphore_mem>>
    tpu.wait_dma2 semaphore(%72 : memref<!tpu.dma_semaphore, #tpu.memory_space<semaphore_mem>>) src(%68 : memref<128xf32, #tpu.memory_space<any>>) dst(%70 : memref<128xf32, #tpu.memory_space<vmem>>)
    %c0_i32_55 = arith.constant 0 : i32
    %c0_i32_56 = arith.constant 0 : i32
    %c0_i32_57 = arith.constant 0 : i32
    %c0_i32_58 = arith.constant 0 : i32
    %73 = tpu.memref_slice %arg5[%c0_i32_55, %c0_i32_58] : memref<64x128xf32, #tpu.memory_space<any>> -> memref<1x128xf32, #tpu.memory_space<any>>
    %74 = tpu.memref_squeeze %73 : memref<1x128xf32, #tpu.memory_space<any>> -> memref<128xf32, #tpu.memory_space<any>>
    %c0_i32_59 = arith.constant 0 : i32
    %75 = tpu.memref_slice %arg7[%9, %c0_i32_56, %c0_i32_57, %c0_i32_59] : memref<2x8x8x128xf32, #tpu.memory_space<vmem>> -> memref<1x1x1x128xf32, #tpu.memory_space<vmem>>
    %76 = tpu.memref_squeeze %75 : memref<1x1x1x128xf32, #tpu.memory_space<vmem>> -> memref<128xf32, #tpu.memory_space<vmem>>
    %77 = tpu.memref_slice %arg8[%9] : memref<2x!tpu.dma_semaphore, #tpu.memory_space<semaphore_mem>> -> memref<1x!tpu.dma_semaphore, #tpu.memory_space<semaphore_mem>>
    %78 = tpu.memref_squeeze %77 : memref<1x!tpu.dma_semaphore, #tpu.memory_space<semaphore_mem>> -> memref<!tpu.dma_semaphore, #tpu.memory_space<semaphore_mem>>
    tpu.wait_dma2 semaphore(%78 : memref<!tpu.dma_semaphore, #tpu.memory_space<semaphore_mem>>) src(%74 : memref<128xf32, #tpu.memory_space<any>>) dst(%76 : memref<128xf32, #tpu.memory_space<vmem>>)
    %c0_i32_60 = arith.constant 0 : i32
    %c0_i32_61 = arith.constant 0 : i32
    %c0_i32_62 = arith.constant 0 : i32
    %c0_i32_63 = arith.constant 0 : i32
    %79 = tpu.memref_slice %arg5[%c0_i32_60, %c0_i32_63] : memref<64x128xf32, #tpu.memory_space<any>> -> memref<1x128xf32, #tpu.memory_space<any>>
    %80 = tpu.memref_squeeze %79 : memref<1x128xf32, #tpu.memory_space<any>> -> memref<128xf32, #tpu.memory_space<any>>
    %c0_i32_64 = arith.constant 0 : i32
    %81 = tpu.memref_slice %arg7[%9, %c0_i32_61, %c0_i32_62, %c0_i32_64] : memref<2x8x8x128xf32, #tpu.memory_space<vmem>> -> memref<1x1x1x128xf32, #tpu.memory_space<vmem>>
    %82 = tpu.memref_squeeze %81 : memref<1x1x1x128xf32, #tpu.memory_space<vmem>> -> memref<128xf32, #tpu.memory_space<vmem>>
    %83 = tpu.memref_slice %arg8[%9] : memref<2x!tpu.dma_semaphore, #tpu.memory_space<semaphore_mem>> -> memref<1x!tpu.dma_semaphore, #tpu.memory_space<semaphore_mem>>
    %84 = tpu.memref_squeeze %83 : memref<1x!tpu.dma_semaphore, #tpu.memory_space<semaphore_mem>> -> memref<!tpu.dma_semaphore, #tpu.memory_space<semaphore_mem>>
    tpu.wait_dma2 semaphore(%84 : memref<!tpu.dma_semaphore, #tpu.memory_space<semaphore_mem>>) src(%80 : memref<128xf32, #tpu.memory_space<any>>) dst(%82 : memref<128xf32, #tpu.memory_space<vmem>>)
    %c0_i32_65 = arith.constant 0 : i32
    %c0_i32_66 = arith.constant 0 : i32
    %c0_i32_67 = arith.constant 0 : i32
    %c0_i32_68 = arith.constant 0 : i32
    %85 = tpu.memref_slice %arg5[%c0_i32_65, %c0_i32_68] : memref<64x128xf32, #tpu.memory_space<any>> -> memref<1x128xf32, #tpu.memory_space<any>>
    %86 = tpu.memref_squeeze %85 : memref<1x128xf32, #tpu.memory_space<any>> -> memref<128xf32, #tpu.memory_space<any>>
    %c0_i32_69 = arith.constant 0 : i32
    %87 = tpu.memref_slice %arg7[%9, %c0_i32_66, %c0_i32_67, %c0_i32_69] : memref<2x8x8x128xf32, #tpu.memory_space<vmem>> -> memref<1x1x1x128xf32, #tpu.memory_space<vmem>>
    %88 = tpu.memref_squeeze %87 : memref<1x1x1x128xf32, #tpu.memory_space<vmem>> -> memref<128xf32, #tpu.memory_space<vmem>>
    %89 = tpu.memref_slice %arg8[%9] : memref<2x!tpu.dma_semaphore, #tpu.memory_space<semaphore_mem>> -> memref<1x!tpu.dma_semaphore, #tpu.memory_space<semaphore_mem>>
    %90 = tpu.memref_squeeze %89 : memref<1x!tpu.dma_semaphore, #tpu.memory_space<semaphore_mem>> -> memref<!tpu.dma_semaphore, #tpu.memory_space<semaphore_mem>>
    tpu.wait_dma2 semaphore(%90 : memref<!tpu.dma_semaphore, #tpu.memory_space<semaphore_mem>>) src(%86 : memref<128xf32, #tpu.memory_space<any>>) dst(%88 : memref<128xf32, #tpu.memory_space<vmem>>)
    %c0_i32_70 = arith.constant 0 : i32
    %c0_i32_71 = arith.constant 0 : i32
    %c0_i32_72 = arith.constant 0 : i32
    %c0_i32_73 = arith.constant 0 : i32
    %91 = tpu.memref_slice %arg5[%c0_i32_70, %c0_i32_73] : memref<64x128xf32, #tpu.memory_space<any>> -> memref<1x128xf32, #tpu.memory_space<any>>
    %92 = tpu.memref_squeeze %91 : memref<1x128xf32, #tpu.memory_space<any>> -> memref<128xf32, #tpu.memory_space<any>>
    %c0_i32_74 = arith.constant 0 : i32
    %93 = tpu.memref_slice %arg7[%9, %c0_i32_71, %c0_i32_72, %c0_i32_74] : memref<2x8x8x128xf32, #tpu.memory_space<vmem>> -> memref<1x1x1x128xf32, #tpu.memory_space<vmem>>
    %94 = tpu.memref_squeeze %93 : memref<1x1x1x128xf32, #tpu.memory_space<vmem>> -> memref<128xf32, #tpu.memory_space<vmem>>
    %95 = tpu.memref_slice %arg8[%9] : memref<2x!tpu.dma_semaphore, #tpu.memory_space<semaphore_mem>> -> memref<1x!tpu.dma_semaphore, #tpu.memory_space<semaphore_mem>>
    %96 = tpu.memref_squeeze %95 : memref<1x!tpu.dma_semaphore, #tpu.memory_space<semaphore_mem>> -> memref<!tpu.dma_semaphore, #tpu.memory_space<semaphore_mem>>
    tpu.wait_dma2 semaphore(%96 : memref<!tpu.dma_semaphore, #tpu.memory_space<semaphore_mem>>) src(%92 : memref<128xf32, #tpu.memory_space<any>>) dst(%94 : memref<128xf32, #tpu.memory_space<vmem>>)
    %c0_i32_75 = arith.constant 0 : i32
    %c0_i32_76 = arith.constant 0 : i32
    %c0_i32_77 = arith.constant 0 : i32
    %c0_i32_78 = arith.constant 0 : i32
    %97 = tpu.memref_slice %arg5[%c0_i32_75, %c0_i32_78] : memref<64x128xf32, #tpu.memory_space<any>> -> memref<1x128xf32, #tpu.memory_space<any>>
    %98 = tpu.memref_squeeze %97 : memref<1x128xf32, #tpu.memory_space<any>> -> memref<128xf32, #tpu.memory_space<any>>
    %c0_i32_79 = arith.constant 0 : i32
    %99 = tpu.memref_slice %arg7[%9, %c0_i32_76, %c0_i32_77, %c0_i32_79] : memref<2x8x8x128xf32, #tpu.memory_space<vmem>> -> memref<1x1x1x128xf32, #tpu.memory_space<vmem>>
    %100 = tpu.memref_squeeze %99 : memref<1x1x1x128xf32, #tpu.memory_space<vmem>> -> memref<128xf32, #tpu.memory_space<vmem>>
    %101 = tpu.memref_slice %arg8[%9] : memref<2x!tpu.dma_semaphore, #tpu.memory_space<semaphore_mem>> -> memref<1x!tpu.dma_semaphore, #tpu.memory_space<semaphore_mem>>
    %102 = tpu.memref_squeeze %101 : memref<1x!tpu.dma_semaphore, #tpu.memory_space<semaphore_mem>> -> memref<!tpu.dma_semaphore, #tpu.memory_space<semaphore_mem>>
    tpu.wait_dma2 semaphore(%102 : memref<!tpu.dma_semaphore, #tpu.memory_space<semaphore_mem>>) src(%98 : memref<128xf32, #tpu.memory_space<any>>) dst(%100 : memref<128xf32, #tpu.memory_space<vmem>>)
    %c0_i32_80 = arith.constant 0 : i32
    %c0_i32_81 = arith.constant 0 : i32
    %c0_i32_82 = arith.constant 0 : i32
    %c0_i32_83 = arith.constant 0 : i32
    %103 = tpu.memref_slice %arg5[%c0_i32_80, %c0_i32_83] : memref<64x128xf32, #tpu.memory_space<any>> -> memref<1x128xf32, #tpu.memory_space<any>>
    %104 = tpu.memref_squeeze %103 : memref<1x128xf32, #tpu.memory_space<any>> -> memref<128xf32, #tpu.memory_space<any>>
    %c0_i32_84 = arith.constant 0 : i32
    %105 = tpu.memref_slice %arg7[%9, %c0_i32_81, %c0_i32_82, %c0_i32_84] : memref<2x8x8x128xf32, #tpu.memory_space<vmem>> -> memref<1x1x1x128xf32, #tpu.memory_space<vmem>>
    %106 = tpu.memref_squeeze %105 : memref<1x1x1x128xf32, #tpu.memory_space<vmem>> -> memref<128xf32, #tpu.memory_space<vmem>>
    %107 = tpu.memref_slice %arg8[%9] : memref<2x!tpu.dma_semaphore, #tpu.memory_space<semaphore_mem>> -> memref<1x!tpu.dma_semaphore, #tpu.memory_space<semaphore_mem>>
    %108 = tpu.memref_squeeze %107 : memref<1x!tpu.dma_semaphore, #tpu.memory_space<semaphore_mem>> -> memref<!tpu.dma_semaphore, #tpu.memory_space<semaphore_mem>>
    tpu.wait_dma2 semaphore(%108 : memref<!tpu.dma_semaphore, #tpu.memory_space<semaphore_mem>>) src(%104 : memref<128xf32, #tpu.memory_space<any>>) dst(%106 : memref<128xf32, #tpu.memory_space<vmem>>)
    %c0_i32_85 = arith.constant 0 : i32
    %c0_i32_86 = arith.constant 0 : i32
    %c0_i32_87 = arith.constant 0 : i32
    %c0_i32_88 = arith.constant 0 : i32
    %109 = tpu.memref_slice %arg5[%c0_i32_85, %c0_i32_88] : memref<64x128xf32, #tpu.memory_space<any>> -> memref<1x128xf32, #tpu.memory_space<any>>
    %110 = tpu.memref_squeeze %109 : memref<1x128xf32, #tpu.memory_space<any>> -> memref<128xf32, #tpu.memory_space<any>>
    %c0_i32_89 = arith.constant 0 : i32
    %111 = tpu.memref_slice %arg7[%9, %c0_i32_86, %c0_i32_87, %c0_i32_89] : memref<2x8x8x128xf32, #tpu.memory_space<vmem>> -> memref<1x1x1x128xf32, #tpu.memory_space<vmem>>
    %112 = tpu.memref_squeeze %111 : memref<1x1x1x128xf32, #tpu.memory_space<vmem>> -> memref<128xf32, #tpu.memory_space<vmem>>
    %113 = tpu.memref_slice %arg8[%9] : memref<2x!tpu.dma_semaphore, #tpu.memory_space<semaphore_mem>> -> memref<1x!tpu.dma_semaphore, #tpu.memory_space<semaphore_mem>>
    %114 = tpu.memref_squeeze %113 : memref<1x!tpu.dma_semaphore, #tpu.memory_space<semaphore_mem>> -> memref<!tpu.dma_semaphore, #tpu.memory_space<semaphore_mem>>
    tpu.wait_dma2 semaphore(%114 : memref<!tpu.dma_semaphore, #tpu.memory_space<semaphore_mem>>) src(%110 : memref<128xf32, #tpu.memory_space<any>>) dst(%112 : memref<128xf32, #tpu.memory_space<vmem>>)
    %c0_i32_90 = arith.constant 0 : i32
    %c0_i32_91 = arith.constant 0 : i32
    %c0_i32_92 = arith.constant 0 : i32
    %c0_i32_93 = arith.constant 0 : i32
    %115 = tpu.memref_slice %arg5[%c0_i32_90, %c0_i32_93] : memref<64x128xf32, #tpu.memory_space<any>> -> memref<1x128xf32, #tpu.memory_space<any>>
    %116 = tpu.memref_squeeze %115 : memref<1x128xf32, #tpu.memory_space<any>> -> memref<128xf32, #tpu.memory_space<any>>
    %c0_i32_94 = arith.constant 0 : i32
    %117 = tpu.memref_slice %arg7[%9, %c0_i32_91, %c0_i32_92, %c0_i32_94] : memref<2x8x8x128xf32, #tpu.memory_space<vmem>> -> memref<1x1x1x128xf32, #tpu.memory_space<vmem>>
    %118 = tpu.memref_squeeze %117 : memref<1x1x1x128xf32, #tpu.memory_space<vmem>> -> memref<128xf32, #tpu.memory_space<vmem>>
    %119 = tpu.memref_slice %arg8[%9] : memref<2x!tpu.dma_semaphore, #tpu.memory_space<semaphore_mem>> -> memref<1x!tpu.dma_semaphore, #tpu.memory_space<semaphore_mem>>
    %120 = tpu.memref_squeeze %119 : memref<1x!tpu.dma_semaphore, #tpu.memory_space<semaphore_mem>> -> memref<!tpu.dma_semaphore, #tpu.memory_space<semaphore_mem>>
    tpu.wait_dma2 semaphore(%120 : memref<!tpu.dma_semaphore, #tpu.memory_space<semaphore_mem>>) src(%116 : memref<128xf32, #tpu.memory_space<any>>) dst(%118 : memref<128xf32, #tpu.memory_space<vmem>>)
    %c0_i32_95 = arith.constant 0 : i32
    %c0_i32_96 = arith.constant 0 : i32
    %c0_i32_97 = arith.constant 0 : i32
    %c0_i32_98 = arith.constant 0 : i32
    %121 = tpu.memref_slice %arg5[%c0_i32_95, %c0_i32_98] : memref<64x128xf32, #tpu.memory_space<any>> -> memref<1x128xf32, #tpu.memory_space<any>>
    %122 = tpu.memref_squeeze %121 : memref<1x128xf32, #tpu.memory_space<any>> -> memref<128xf32, #tpu.memory_space<any>>
    %c0_i32_99 = arith.constant 0 : i32
    %123 = tpu.memref_slice %arg7[%9, %c0_i32_96, %c0_i32_97, %c0_i32_99] : memref<2x8x8x128xf32, #tpu.memory_space<vmem>> -> memref<1x1x1x128xf32, #tpu.memory_space<vmem>>
    %124 = tpu.memref_squeeze %123 : memref<1x1x1x128xf32, #tpu.memory_space<vmem>> -> memref<128xf32, #tpu.memory_space<vmem>>
    %125 = tpu.memref_slice %arg8[%9] : memref<2x!tpu.dma_semaphore, #tpu.memory_space<semaphore_mem>> -> memref<1x!tpu.dma_semaphore, #tpu.memory_space<semaphore_mem>>
    %126 = tpu.memref_squeeze %125 : memref<1x!tpu.dma_semaphore, #tpu.memory_space<semaphore_mem>> -> memref<!tpu.dma_semaphore, #tpu.memory_space<semaphore_mem>>
    tpu.wait_dma2 semaphore(%126 : memref<!tpu.dma_semaphore, #tpu.memory_space<semaphore_mem>>) src(%122 : memref<128xf32, #tpu.memory_space<any>>) dst(%124 : memref<128xf32, #tpu.memory_space<vmem>>)
    %c0_i32_100 = arith.constant 0 : i32
    %c0_i32_101 = arith.constant 0 : i32
    %c0_i32_102 = arith.constant 0 : i32
    %c0_i32_103 = arith.constant 0 : i32
    %127 = tpu.memref_slice %arg5[%c0_i32_100, %c0_i32_103] : memref<64x128xf32, #tpu.memory_space<any>> -> memref<1x128xf32, #tpu.memory_space<any>>
    %128 = tpu.memref_squeeze %127 : memref<1x128xf32, #tpu.memory_space<any>> -> memref<128xf32, #tpu.memory_space<any>>
    %c0_i32_104 = arith.constant 0 : i32
    %129 = tpu.memref_slice %arg7[%9, %c0_i32_101, %c0_i32_102, %c0_i32_104] : memref<2x8x8x128xf32, #tpu.memory_space<vmem>> -> memref<1x1x1x128xf32, #tpu.memory_space<vmem>>
    %130 = tpu.memref_squeeze %129 : memref<1x1x1x128xf32, #tpu.memory_space<vmem>> -> memref<128xf32, #tpu.memory_space<vmem>>
    %131 = tpu.memref_slice %arg8[%9] : memref<2x!tpu.dma_semaphore, #tpu.memory_space<semaphore_mem>> -> memref<1x!tpu.dma_semaphore, #tpu.memory_space<semaphore_mem>>
    %132 = tpu.memref_squeeze %131 : memref<1x!tpu.dma_semaphore, #tpu.memory_space<semaphore_mem>> -> memref<!tpu.dma_semaphore, #tpu.memory_space<semaphore_mem>>
    tpu.wait_dma2 semaphore(%132 : memref<!tpu.dma_semaphore, #tpu.memory_space<semaphore_mem>>) src(%128 : memref<128xf32, #tpu.memory_space<any>>) dst(%130 : memref<128xf32, #tpu.memory_space<vmem>>)
    %c0_i32_105 = arith.constant 0 : i32
    %c0_i32_106 = arith.constant 0 : i32
    %c0_i32_107 = arith.constant 0 : i32
    %c0_i32_108 = arith.constant 0 : i32
    %133 = tpu.memref_slice %arg5[%c0_i32_105, %c0_i32_108] : memref<64x128xf32, #tpu.memory_space<any>> -> memref<1x128xf32, #tpu.memory_space<any>>
    %134 = tpu.memref_squeeze %133 : memref<1x128xf32, #tpu.memory_space<any>> -> memref<128xf32, #tpu.memory_space<any>>
    %c0_i32_109 = arith.constant 0 : i32
    %135 = tpu.memref_slice %arg7[%9, %c0_i32_106, %c0_i32_107, %c0_i32_109] : memref<2x8x8x128xf32, #tpu.memory_space<vmem>> -> memref<1x1x1x128xf32, #tpu.memory_space<vmem>>
    %136 = tpu.memref_squeeze %135 : memref<1x1x1x128xf32, #tpu.memory_space<vmem>> -> memref<128xf32, #tpu.memory_space<vmem>>
    %137 = tpu.memref_slice %arg8[%9] : memref<2x!tpu.dma_semaphore, #tpu.memory_space<semaphore_mem>> -> memref<1x!tpu.dma_semaphore, #tpu.memory_space<semaphore_mem>>
    %138 = tpu.memref_squeeze %137 : memref<1x!tpu.dma_semaphore, #tpu.memory_space<semaphore_mem>> -> memref<!tpu.dma_semaphore, #tpu.memory_space<semaphore_mem>>
    tpu.wait_dma2 semaphore(%138 : memref<!tpu.dma_semaphore, #tpu.memory_space<semaphore_mem>>) src(%134 : memref<128xf32, #tpu.memory_space<any>>) dst(%136 : memref<128xf32, #tpu.memory_space<vmem>>)
    %c0_i32_110 = arith.constant 0 : i32
    %c0_i32_111 = arith.constant 0 : i32
    %c0_i32_112 = arith.constant 0 : i32
    %c0_i32_113 = arith.constant 0 : i32
    %139 = tpu.memref_slice %arg5[%c0_i32_110, %c0_i32_113] : memref<64x128xf32, #tpu.memory_space<any>> -> memref<1x128xf32, #tpu.memory_space<any>>
    %140 = tpu.memref_squeeze %139 : memref<1x128xf32, #tpu.memory_space<any>> -> memref<128xf32, #tpu.memory_space<any>>
    %c0_i32_114 = arith.constant 0 : i32
    %141 = tpu.memref_slice %arg7[%9, %c0_i32_111, %c0_i32_112, %c0_i32_114] : memref<2x8x8x128xf32, #tpu.memory_space<vmem>> -> memref<1x1x1x128xf32, #tpu.memory_space<vmem>>
    %142 = tpu.memref_squeeze %141 : memref<1x1x1x128xf32, #tpu.memory_space<vmem>> -> memref<128xf32, #tpu.memory_space<vmem>>
    %143 = tpu.memref_slice %arg8[%9] : memref<2x!tpu.dma_semaphore, #tpu.memory_space<semaphore_mem>> -> memref<1x!tpu.dma_semaphore, #tpu.memory_space<semaphore_mem>>
    %144 = tpu.memref_squeeze %143 : memref<1x!tpu.dma_semaphore, #tpu.memory_space<semaphore_mem>> -> memref<!tpu.dma_semaphore, #tpu.memory_space<semaphore_mem>>
    tpu.wait_dma2 semaphore(%144 : memref<!tpu.dma_semaphore, #tpu.memory_space<semaphore_mem>>) src(%140 : memref<128xf32, #tpu.memory_space<any>>) dst(%142 : memref<128xf32, #tpu.memory_space<vmem>>)
    %c0_i32_115 = arith.constant 0 : i32
    %c0_i32_116 = arith.constant 0 : i32
    %c0_i32_117 = arith.constant 0 : i32
    %c0_i32_118 = arith.constant 0 : i32
    %145 = tpu.memref_slice %arg5[%c0_i32_115, %c0_i32_118] : memref<64x128xf32, #tpu.memory_space<any>> -> memref<1x128xf32, #tpu.memory_space<any>>
    %146 = tpu.memref_squeeze %145 : memref<1x128xf32, #tpu.memory_space<any>> -> memref<128xf32, #tpu.memory_space<any>>
    %c0_i32_119 = arith.constant 0 : i32
    %147 = tpu.memref_slice %arg7[%9, %c0_i32_116, %c0_i32_117, %c0_i32_119] : memref<2x8x8x128xf32, #tpu.memory_space<vmem>> -> memref<1x1x1x128xf32, #tpu.memory_space<vmem>>
    %148 = tpu.memref_squeeze %147 : memref<1x1x1x128xf32, #tpu.memory_space<vmem>> -> memref<128xf32, #tpu.memory_space<vmem>>
    %149 = tpu.memref_slice %arg8[%9] : memref<2x!tpu.dma_semaphore, #tpu.memory_space<semaphore_mem>> -> memref<1x!tpu.dma_semaphore, #tpu.memory_space<semaphore_mem>>
    %150 = tpu.memref_squeeze %149 : memref<1x!tpu.dma_semaphore, #tpu.memory_space<semaphore_mem>> -> memref<!tpu.dma_semaphore, #tpu.memory_space<semaphore_mem>>
    tpu.wait_dma2 semaphore(%150 : memref<!tpu.dma_semaphore, #tpu.memory_space<semaphore_mem>>) src(%146 : memref<128xf32, #tpu.memory_space<any>>) dst(%148 : memref<128xf32, #tpu.memory_space<vmem>>)
    %c0_i32_120 = arith.constant 0 : i32
    %c0_i32_121 = arith.constant 0 : i32
    %c0_i32_122 = arith.constant 0 : i32
    %c0_i32_123 = arith.constant 0 : i32
    %151 = tpu.memref_slice %arg5[%c0_i32_120, %c0_i32_123] : memref<64x128xf32, #tpu.memory_space<any>> -> memref<1x128xf32, #tpu.memory_space<any>>
    %152 = tpu.memref_squeeze %151 : memref<1x128xf32, #tpu.memory_space<any>> -> memref<128xf32, #tpu.memory_space<any>>
    %c0_i32_124 = arith.constant 0 : i32
    %153 = tpu.memref_slice %arg7[%9, %c0_i32_121, %c0_i32_122, %c0_i32_124] : memref<2x8x8x128xf32, #tpu.memory_space<vmem>> -> memref<1x1x1x128xf32, #tpu.memory_space<vmem>>
    %154 = tpu.memref_squeeze %153 : memref<1x1x1x128xf32, #tpu.memory_space<vmem>> -> memref<128xf32, #tpu.memory_space<vmem>>
    %155 = tpu.memref_slice %arg8[%9] : memref<2x!tpu.dma_semaphore, #tpu.memory_space<semaphore_mem>> -> memref<1x!tpu.dma_semaphore, #tpu.memory_space<semaphore_mem>>
    %156 = tpu.memref_squeeze %155 : memref<1x!tpu.dma_semaphore, #tpu.memory_space<semaphore_mem>> -> memref<!tpu.dma_semaphore, #tpu.memory_space<semaphore_mem>>
    tpu.wait_dma2 semaphore(%156 : memref<!tpu.dma_semaphore, #tpu.memory_space<semaphore_mem>>) src(%152 : memref<128xf32, #tpu.memory_space<any>>) dst(%154 : memref<128xf32, #tpu.memory_space<vmem>>)
    %c0_i32_125 = arith.constant 0 : i32
    %c0_i32_126 = arith.constant 0 : i32
    %c0_i32_127 = arith.constant 0 : i32
    %c0_i32_128 = arith.constant 0 : i32
    %157 = tpu.memref_slice %arg5[%c0_i32_125, %c0_i32_128] : memref<64x128xf32, #tpu.memory_space<any>> -> memref<1x128xf32, #tpu.memory_space<any>>
    %158 = tpu.memref_squeeze %157 : memref<1x128xf32, #tpu.memory_space<any>> -> memref<128xf32, #tpu.memory_space<any>>
    %c0_i32_129 = arith.constant 0 : i32
    %159 = tpu.memref_slice %arg7[%9, %c0_i32_126, %c0_i32_127, %c0_i32_129] : memref<2x8x8x128xf32, #tpu.memory_space<vmem>> -> memref<1x1x1x128xf32, #tpu.memory_space<vmem>>
    %160 = tpu.memref_squeeze %159 : memref<1x1x1x128xf32, #tpu.memory_space<vmem>> -> memref<128xf32, #tpu.memory_space<vmem>>
    %161 = tpu.memref_slice %arg8[%9] : memref<2x!tpu.dma_semaphore, #tpu.memory_space<semaphore_mem>> -> memref<1x!tpu.dma_semaphore, #tpu.memory_space<semaphore_mem>>
    %162 = tpu.memref_squeeze %161 : memref<1x!tpu.dma_semaphore, #tpu.memory_space<semaphore_mem>> -> memref<!tpu.dma_semaphore, #tpu.memory_space<semaphore_mem>>
    tpu.wait_dma2 semaphore(%162 : memref<!tpu.dma_semaphore, #tpu.memory_space<semaphore_mem>>) src(%158 : memref<128xf32, #tpu.memory_space<any>>) dst(%160 : memref<128xf32, #tpu.memory_space<vmem>>)
    %c0_i32_130 = arith.constant 0 : i32
    %c0_i32_131 = arith.constant 0 : i32
    %c0_i32_132 = arith.constant 0 : i32
    %c0_i32_133 = arith.constant 0 : i32
    %163 = tpu.memref_slice %arg5[%c0_i32_130, %c0_i32_133] : memref<64x128xf32, #tpu.memory_space<any>> -> memref<1x128xf32, #tpu.memory_space<any>>
    %164 = tpu.memref_squeeze %163 : memref<1x128xf32, #tpu.memory_space<any>> -> memref<128xf32, #tpu.memory_space<any>>
    %c0_i32_134 = arith.constant 0 : i32
    %165 = tpu.memref_slice %arg7[%9, %c0_i32_131, %c0_i32_132, %c0_i32_134] : memref<2x8x8x128xf32, #tpu.memory_space<vmem>> -> memref<1x1x1x128xf32, #tpu.memory_space<vmem>>
    %166 = tpu.memref_squeeze %165 : memref<1x1x1x128xf32, #tpu.memory_space<vmem>> -> memref<128xf32, #tpu.memory_space<vmem>>
    %167 = tpu.memref_slice %arg8[%9] : memref<2x!tpu.dma_semaphore, #tpu.memory_space<semaphore_mem>> -> memref<1x!tpu.dma_semaphore, #tpu.memory_space<semaphore_mem>>
    %168 = tpu.memref_squeeze %167 : memref<1x!tpu.dma_semaphore, #tpu.memory_space<semaphore_mem>> -> memref<!tpu.dma_semaphore, #tpu.memory_space<semaphore_mem>>
    tpu.wait_dma2 semaphore(%168 : memref<!tpu.dma_semaphore, #tpu.memory_space<semaphore_mem>>) src(%164 : memref<128xf32, #tpu.memory_space<any>>) dst(%166 : memref<128xf32, #tpu.memory_space<vmem>>)
    %c0_i32_135 = arith.constant 0 : i32
    %c0_i32_136 = arith.constant 0 : i32
    %c0_i32_137 = arith.constant 0 : i32
    %c0_i32_138 = arith.constant 0 : i32
    %169 = tpu.memref_slice %arg5[%c0_i32_135, %c0_i32_138] : memref<64x128xf32, #tpu.memory_space<any>> -> memref<1x128xf32, #tpu.memory_space<any>>
    %170 = tpu.memref_squeeze %169 : memref<1x128xf32, #tpu.memory_space<any>> -> memref<128xf32, #tpu.memory_space<any>>
    %c0_i32_139 = arith.constant 0 : i32
    %171 = tpu.memref_slice %arg7[%9, %c0_i32_136, %c0_i32_137, %c0_i32_139] : memref<2x8x8x128xf32, #tpu.memory_space<vmem>> -> memref<1x1x1x128xf32, #tpu.memory_space<vmem>>
    %172 = tpu.memref_squeeze %171 : memref<1x1x1x128xf32, #tpu.memory_space<vmem>> -> memref<128xf32, #tpu.memory_space<vmem>>
    %173 = tpu.memref_slice %arg8[%9] : memref<2x!tpu.dma_semaphore, #tpu.memory_space<semaphore_mem>> -> memref<1x!tpu.dma_semaphore, #tpu.memory_space<semaphore_mem>>
    %174 = tpu.memref_squeeze %173 : memref<1x!tpu.dma_semaphore, #tpu.memory_space<semaphore_mem>> -> memref<!tpu.dma_semaphore, #tpu.memory_space<semaphore_mem>>
    tpu.wait_dma2 semaphore(%174 : memref<!tpu.dma_semaphore, #tpu.memory_space<semaphore_mem>>) src(%170 : memref<128xf32, #tpu.memory_space<any>>) dst(%172 : memref<128xf32, #tpu.memory_space<vmem>>)
    %c0_i32_140 = arith.constant 0 : i32
    %c0_i32_141 = arith.constant 0 : i32
    %c0_i32_142 = arith.constant 0 : i32
    %c0_i32_143 = arith.constant 0 : i32
    %175 = tpu.memref_slice %arg5[%c0_i32_140, %c0_i32_143] : memref<64x128xf32, #tpu.memory_space<any>> -> memref<1x128xf32, #tpu.memory_space<any>>
    %176 = tpu.memref_squeeze %175 : memref<1x128xf32, #tpu.memory_space<any>> -> memref<128xf32, #tpu.memory_space<any>>
    %c0_i32_144 = arith.constant 0 : i32
    %177 = tpu.memref_slice %arg7[%9, %c0_i32_141, %c0_i32_142, %c0_i32_144] : memref<2x8x8x128xf32, #tpu.memory_space<vmem>> -> memref<1x1x1x128xf32, #tpu.memory_space<vmem>>
    %178 = tpu.memref_squeeze %177 : memref<1x1x1x128xf32, #tpu.memory_space<vmem>> -> memref<128xf32, #tpu.memory_space<vmem>>
    %179 = tpu.memref_slice %arg8[%9] : memref<2x!tpu.dma_semaphore, #tpu.memory_space<semaphore_mem>> -> memref<1x!tpu.dma_semaphore, #tpu.memory_space<semaphore_mem>>
    %180 = tpu.memref_squeeze %179 : memref<1x!tpu.dma_semaphore, #tpu.memory_space<semaphore_mem>> -> memref<!tpu.dma_semaphore, #tpu.memory_space<semaphore_mem>>
    tpu.wait_dma2 semaphore(%180 : memref<!tpu.dma_semaphore, #tpu.memory_space<semaphore_mem>>) src(%176 : memref<128xf32, #tpu.memory_space<any>>) dst(%178 : memref<128xf32, #tpu.memory_space<vmem>>)
    %c0_i32_145 = arith.constant 0 : i32
    %c0_i32_146 = arith.constant 0 : i32
    %c0_i32_147 = arith.constant 0 : i32
    %c0_i32_148 = arith.constant 0 : i32
    %181 = tpu.memref_slice %arg5[%c0_i32_145, %c0_i32_148] : memref<64x128xf32, #tpu.memory_space<any>> -> memref<1x128xf32, #tpu.memory_space<any>>
    %182 = tpu.memref_squeeze %181 : memref<1x128xf32, #tpu.memory_space<any>> -> memref<128xf32, #tpu.memory_space<any>>
    %c0_i32_149 = arith.constant 0 : i32
    %183 = tpu.memref_slice %arg7[%9, %c0_i32_146, %c0_i32_147, %c0_i32_149] : memref<2x8x8x128xf32, #tpu.memory_space<vmem>> -> memref<1x1x1x128xf32, #tpu.memory_space<vmem>>
    %184 = tpu.memref_squeeze %183 : memref<1x1x1x128xf32, #tpu.memory_space<vmem>> -> memref<128xf32, #tpu.memory_space<vmem>>
    %185 = tpu.memref_slice %arg8[%9] : memref<2x!tpu.dma_semaphore, #tpu.memory_space<semaphore_mem>> -> memref<1x!tpu.dma_semaphore, #tpu.memory_space<semaphore_mem>>
    %186 = tpu.memref_squeeze %185 : memref<1x!tpu.dma_semaphore, #tpu.memory_space<semaphore_mem>> -> memref<!tpu.dma_semaphore, #tpu.memory_space<semaphore_mem>>
    tpu.wait_dma2 semaphore(%186 : memref<!tpu.dma_semaphore, #tpu.memory_space<semaphore_mem>>) src(%182 : memref<128xf32, #tpu.memory_space<any>>) dst(%184 : memref<128xf32, #tpu.memory_space<vmem>>)
    %c0_i32_150 = arith.constant 0 : i32
    %c0_i32_151 = arith.constant 0 : i32
    %c0_i32_152 = arith.constant 0 : i32
    %c0_i32_153 = arith.constant 0 : i32
    %187 = tpu.memref_slice %arg5[%c0_i32_150, %c0_i32_153] : memref<64x128xf32, #tpu.memory_space<any>> -> memref<1x128xf32, #tpu.memory_space<any>>
    %188 = tpu.memref_squeeze %187 : memref<1x128xf32, #tpu.memory_space<any>> -> memref<128xf32, #tpu.memory_space<any>>
    %c0_i32_154 = arith.constant 0 : i32
    %189 = tpu.memref_slice %arg7[%9, %c0_i32_151, %c0_i32_152, %c0_i32_154] : memref<2x8x8x128xf32, #tpu.memory_space<vmem>> -> memref<1x1x1x128xf32, #tpu.memory_space<vmem>>
    %190 = tpu.memref_squeeze %189 : memref<1x1x1x128xf32, #tpu.memory_space<vmem>> -> memref<128xf32, #tpu.memory_space<vmem>>
    %191 = tpu.memref_slice %arg8[%9] : memref<2x!tpu.dma_semaphore, #tpu.memory_space<semaphore_mem>> -> memref<1x!tpu.dma_semaphore, #tpu.memory_space<semaphore_mem>>
    %192 = tpu.memref_squeeze %191 : memref<1x!tpu.dma_semaphore, #tpu.memory_space<semaphore_mem>> -> memref<!tpu.dma_semaphore, #tpu.memory_space<semaphore_mem>>
    tpu.wait_dma2 semaphore(%192 : memref<!tpu.dma_semaphore, #tpu.memory_space<semaphore_mem>>) src(%188 : memref<128xf32, #tpu.memory_space<any>>) dst(%190 : memref<128xf32, #tpu.memory_space<vmem>>)
    %c0_i32_155 = arith.constant 0 : i32
    %c0_i32_156 = arith.constant 0 : i32
    %c0_i32_157 = arith.constant 0 : i32
    %c0_i32_158 = arith.constant 0 : i32
    %193 = tpu.memref_slice %arg5[%c0_i32_155, %c0_i32_158] : memref<64x128xf32, #tpu.memory_space<any>> -> memref<1x128xf32, #tpu.memory_space<any>>
    %194 = tpu.memref_squeeze %193 : memref<1x128xf32, #tpu.memory_space<any>> -> memref<128xf32, #tpu.memory_space<any>>
    %c0_i32_159 = arith.constant 0 : i32
    %195 = tpu.memref_slice %arg7[%9, %c0_i32_156, %c0_i32_157, %c0_i32_159] : memref<2x8x8x128xf32, #tpu.memory_space<vmem>> -> memref<1x1x1x128xf32, #tpu.memory_space<vmem>>
    %196 = tpu.memref_squeeze %195 : memref<1x1x1x128xf32, #tpu.memory_space<vmem>> -> memref<128xf32, #tpu.memory_space<vmem>>
    %197 = tpu.memref_slice %arg8[%9] : memref<2x!tpu.dma_semaphore, #tpu.memory_space<semaphore_mem>> -> memref<1x!tpu.dma_semaphore, #tpu.memory_space<semaphore_mem>>
    %198 = tpu.memref_squeeze %197 : memref<1x!tpu.dma_semaphore, #tpu.memory_space<semaphore_mem>> -> memref<!tpu.dma_semaphore, #tpu.memory_space<semaphore_mem>>
    tpu.wait_dma2 semaphore(%198 : memref<!tpu.dma_semaphore, #tpu.memory_space<semaphore_mem>>) src(%194 : memref<128xf32, #tpu.memory_space<any>>) dst(%196 : memref<128xf32, #tpu.memory_space<vmem>>)
    %c0_i32_160 = arith.constant 0 : i32
    %c0_i32_161 = arith.constant 0 : i32
    %c0_i32_162 = arith.constant 0 : i32
    %c0_i32_163 = arith.constant 0 : i32
    %199 = tpu.memref_slice %arg5[%c0_i32_160, %c0_i32_163] : memref<64x128xf32, #tpu.memory_space<any>> -> memref<1x128xf32, #tpu.memory_space<any>>
    %200 = tpu.memref_squeeze %199 : memref<1x128xf32, #tpu.memory_space<any>> -> memref<128xf32, #tpu.memory_space<any>>
    %c0_i32_164 = arith.constant 0 : i32
    %201 = tpu.memref_slice %arg7[%9, %c0_i32_161, %c0_i32_162, %c0_i32_164] : memref<2x8x8x128xf32, #tpu.memory_space<vmem>> -> memref<1x1x1x128xf32, #tpu.memory_space<vmem>>
    %202 = tpu.memref_squeeze %201 : memref<1x1x1x128xf32, #tpu.memory_space<vmem>> -> memref<128xf32, #tpu.memory_space<vmem>>
    %203 = tpu.memref_slice %arg8[%9] : memref<2x!tpu.dma_semaphore, #tpu.memory_space<semaphore_mem>> -> memref<1x!tpu.dma_semaphore, #tpu.memory_space<semaphore_mem>>
    %204 = tpu.memref_squeeze %203 : memref<1x!tpu.dma_semaphore, #tpu.memory_space<semaphore_mem>> -> memref<!tpu.dma_semaphore, #tpu.memory_space<semaphore_mem>>
    tpu.wait_dma2 semaphore(%204 : memref<!tpu.dma_semaphore, #tpu.memory_space<semaphore_mem>>) src(%200 : memref<128xf32, #tpu.memory_space<any>>) dst(%202 : memref<128xf32, #tpu.memory_space<vmem>>)
    %c0_i32_165 = arith.constant 0 : i32
    %c0_i32_166 = arith.constant 0 : i32
    %c0_i32_167 = arith.constant 0 : i32
    %c0_i32_168 = arith.constant 0 : i32
    %205 = tpu.memref_slice %arg5[%c0_i32_165, %c0_i32_168] : memref<64x128xf32, #tpu.memory_space<any>> -> memref<1x128xf32, #tpu.memory_space<any>>
    %206 = tpu.memref_squeeze %205 : memref<1x128xf32, #tpu.memory_space<any>> -> memref<128xf32, #tpu.memory_space<any>>
    %c0_i32_169 = arith.constant 0 : i32
    %207 = tpu.memref_slice %arg7[%9, %c0_i32_166, %c0_i32_167, %c0_i32_169] : memref<2x8x8x128xf32, #tpu.memory_space<vmem>> -> memref<1x1x1x128xf32, #tpu.memory_space<vmem>>
    %208 = tpu.memref_squeeze %207 : memref<1x1x1x128xf32, #tpu.memory_space<vmem>> -> memref<128xf32, #tpu.memory_space<vmem>>
    %209 = tpu.memref_slice %arg8[%9] : memref<2x!tpu.dma_semaphore, #tpu.memory_space<semaphore_mem>> -> memref<1x!tpu.dma_semaphore, #tpu.memory_space<semaphore_mem>>
    %210 = tpu.memref_squeeze %209 : memref<1x!tpu.dma_semaphore, #tpu.memory_space<semaphore_mem>> -> memref<!tpu.dma_semaphore, #tpu.memory_space<semaphore_mem>>
    tpu.wait_dma2 semaphore(%210 : memref<!tpu.dma_semaphore, #tpu.memory_space<semaphore_mem>>) src(%206 : memref<128xf32, #tpu.memory_space<any>>) dst(%208 : memref<128xf32, #tpu.memory_space<vmem>>)
    %c0_i32_170 = arith.constant 0 : i32
    %c0_i32_171 = arith.constant 0 : i32
    %c0_i32_172 = arith.constant 0 : i32
    %c0_i32_173 = arith.constant 0 : i32
    %211 = tpu.memref_slice %arg5[%c0_i32_170, %c0_i32_173] : memref<64x128xf32, #tpu.memory_space<any>> -> memref<1x128xf32, #tpu.memory_space<any>>
    %212 = tpu.memref_squeeze %211 : memref<1x128xf32, #tpu.memory_space<any>> -> memref<128xf32, #tpu.memory_space<any>>
    %c0_i32_174 = arith.constant 0 : i32
    %213 = tpu.memref_slice %arg7[%9, %c0_i32_171, %c0_i32_172, %c0_i32_174] : memref<2x8x8x128xf32, #tpu.memory_space<vmem>> -> memref<1x1x1x128xf32, #tpu.memory_space<vmem>>
    %214 = tpu.memref_squeeze %213 : memref<1x1x1x128xf32, #tpu.memory_space<vmem>> -> memref<128xf32, #tpu.memory_space<vmem>>
    %215 = tpu.memref_slice %arg8[%9] : memref<2x!tpu.dma_semaphore, #tpu.memory_space<semaphore_mem>> -> memref<1x!tpu.dma_semaphore, #tpu.memory_space<semaphore_mem>>
    %216 = tpu.memref_squeeze %215 : memref<1x!tpu.dma_semaphore, #tpu.memory_space<semaphore_mem>> -> memref<!tpu.dma_semaphore, #tpu.memory_space<semaphore_mem>>
    tpu.wait_dma2 semaphore(%216 : memref<!tpu.dma_semaphore, #tpu.memory_space<semaphore_mem>>) src(%212 : memref<128xf32, #tpu.memory_space<any>>) dst(%214 : memref<128xf32, #tpu.memory_space<vmem>>)
    %c0_i32_175 = arith.constant 0 : i32
    %c0_i32_176 = arith.constant 0 : i32
    %c0_i32_177 = arith.constant 0 : i32
    %c0_i32_178 = arith.constant 0 : i32
    %217 = tpu.memref_slice %arg5[%c0_i32_175, %c0_i32_178] : memref<64x128xf32, #tpu.memory_space<any>> -> memref<1x128xf32, #tpu.memory_space<any>>
    %218 = tpu.memref_squeeze %217 : memref<1x128xf32, #tpu.memory_space<any>> -> memref<128xf32, #tpu.memory_space<any>>
    %c0_i32_179 = arith.constant 0 : i32
    %219 = tpu.memref_slice %arg7[%9, %c0_i32_176, %c0_i32_177, %c0_i32_179] : memref<2x8x8x128xf32, #tpu.memory_space<vmem>> -> memref<1x1x1x128xf32, #tpu.memory_space<vmem>>
    %220 = tpu.memref_squeeze %219 : memref<1x1x1x128xf32, #tpu.memory_space<vmem>> -> memref<128xf32, #tpu.memory_space<vmem>>
    %221 = tpu.memref_slice %arg8[%9] : memref<2x!tpu.dma_semaphore, #tpu.memory_space<semaphore_mem>> -> memref<1x!tpu.dma_semaphore, #tpu.memory_space<semaphore_mem>>
    %222 = tpu.memref_squeeze %221 : memref<1x!tpu.dma_semaphore, #tpu.memory_space<semaphore_mem>> -> memref<!tpu.dma_semaphore, #tpu.memory_space<semaphore_mem>>
    tpu.wait_dma2 semaphore(%222 : memref<!tpu.dma_semaphore, #tpu.memory_space<semaphore_mem>>) src(%218 : memref<128xf32, #tpu.memory_space<any>>) dst(%220 : memref<128xf32, #tpu.memory_space<vmem>>)
    %c0_i32_180 = arith.constant 0 : i32
    %c0_i32_181 = arith.constant 0 : i32
    %c0_i32_182 = arith.constant 0 : i32
    %c0_i32_183 = arith.constant 0 : i32
    %223 = tpu.memref_slice %arg5[%c0_i32_180, %c0_i32_183] : memref<64x128xf32, #tpu.memory_space<any>> -> memref<1x128xf32, #tpu.memory_space<any>>
    %224 = tpu.memref_squeeze %223 : memref<1x128xf32, #tpu.memory_space<any>> -> memref<128xf32, #tpu.memory_space<any>>
    %c0_i32_184 = arith.constant 0 : i32
    %225 = tpu.memref_slice %arg7[%9, %c0_i32_181, %c0_i32_182, %c0_i32_184] : memref<2x8x8x128xf32, #tpu.memory_space<vmem>> -> memref<1x1x1x128xf32, #tpu.memory_space<vmem>>
    %226 = tpu.memref_squeeze %225 : memref<1x1x1x128xf32, #tpu.memory_space<vmem>> -> memref<128xf32, #tpu.memory_space<vmem>>
    %227 = tpu.memref_slice %arg8[%9] : memref<2x!tpu.dma_semaphore, #tpu.memory_space<semaphore_mem>> -> memref<1x!tpu.dma_semaphore, #tpu.memory_space<semaphore_mem>>
    %228 = tpu.memref_squeeze %227 : memref<1x!tpu.dma_semaphore, #tpu.memory_space<semaphore_mem>> -> memref<!tpu.dma_semaphore, #tpu.memory_space<semaphore_mem>>
    tpu.wait_dma2 semaphore(%228 : memref<!tpu.dma_semaphore, #tpu.memory_space<semaphore_mem>>) src(%224 : memref<128xf32, #tpu.memory_space<any>>) dst(%226 : memref<128xf32, #tpu.memory_space<vmem>>)
    %c0_i32_185 = arith.constant 0 : i32
    %c0_i32_186 = arith.constant 0 : i32
    %c0_i32_187 = arith.constant 0 : i32
    %c0_i32_188 = arith.constant 0 : i32
    %229 = tpu.memref_slice %arg5[%c0_i32_185, %c0_i32_188] : memref<64x128xf32, #tpu.memory_space<any>> -> memref<1x128xf32, #tpu.memory_space<any>>
    %230 = tpu.memref_squeeze %229 : memref<1x128xf32, #tpu.memory_space<any>> -> memref<128xf32, #tpu.memory_space<any>>
    %c0_i32_189 = arith.constant 0 : i32
    %231 = tpu.memref_slice %arg7[%9, %c0_i32_186, %c0_i32_187, %c0_i32_189] : memref<2x8x8x128xf32, #tpu.memory_space<vmem>> -> memref<1x1x1x128xf32, #tpu.memory_space<vmem>>
    %232 = tpu.memref_squeeze %231 : memref<1x1x1x128xf32, #tpu.memory_space<vmem>> -> memref<128xf32, #tpu.memory_space<vmem>>
    %233 = tpu.memref_slice %arg8[%9] : memref<2x!tpu.dma_semaphore, #tpu.memory_space<semaphore_mem>> -> memref<1x!tpu.dma_semaphore, #tpu.memory_space<semaphore_mem>>
    %234 = tpu.memref_squeeze %233 : memref<1x!tpu.dma_semaphore, #tpu.memory_space<semaphore_mem>> -> memref<!tpu.dma_semaphore, #tpu.memory_space<semaphore_mem>>
    tpu.wait_dma2 semaphore(%234 : memref<!tpu.dma_semaphore, #tpu.memory_space<semaphore_mem>>) src(%230 : memref<128xf32, #tpu.memory_space<any>>) dst(%232 : memref<128xf32, #tpu.memory_space<vmem>>)
    %c0_i32_190 = arith.constant 0 : i32
    %c0_i32_191 = arith.constant 0 : i32
    %c0_i32_192 = arith.constant 0 : i32
    %c0_i32_193 = arith.constant 0 : i32
    %235 = tpu.memref_slice %arg5[%c0_i32_190, %c0_i32_193] : memref<64x128xf32, #tpu.memory_space<any>> -> memref<1x128xf32, #tpu.memory_space<any>>
    %236 = tpu.memref_squeeze %235 : memref<1x128xf32, #tpu.memory_space<any>> -> memref<128xf32, #tpu.memory_space<any>>
    %c0_i32_194 = arith.constant 0 : i32
    %237 = tpu.memref_slice %arg7[%9, %c0_i32_191, %c0_i32_192, %c0_i32_194] : memref<2x8x8x128xf32, #tpu.memory_space<vmem>> -> memref<1x1x1x128xf32, #tpu.memory_space<vmem>>
    %238 = tpu.memref_squeeze %237 : memref<1x1x1x128xf32, #tpu.memory_space<vmem>> -> memref<128xf32, #tpu.memory_space<vmem>>
    %239 = tpu.memref_slice %arg8[%9] : memref<2x!tpu.dma_semaphore, #tpu.memory_space<semaphore_mem>> -> memref<1x!tpu.dma_semaphore, #tpu.memory_space<semaphore_mem>>
    %240 = tpu.memref_squeeze %239 : memref<1x!tpu.dma_semaphore, #tpu.memory_space<semaphore_mem>> -> memref<!tpu.dma_semaphore, #tpu.memory_space<semaphore_mem>>
    tpu.wait_dma2 semaphore(%240 : memref<!tpu.dma_semaphore, #tpu.memory_space<semaphore_mem>>) src(%236 : memref<128xf32, #tpu.memory_space<any>>) dst(%238 : memref<128xf32, #tpu.memory_space<vmem>>)
    %c0_i32_195 = arith.constant 0 : i32
    %c0_i32_196 = arith.constant 0 : i32
    %c0_i32_197 = arith.constant 0 : i32
    %c0_i32_198 = arith.constant 0 : i32
    %241 = tpu.memref_slice %arg5[%c0_i32_195, %c0_i32_198] : memref<64x128xf32, #tpu.memory_space<any>> -> memref<1x128xf32, #tpu.memory_space<any>>
    %242 = tpu.memref_squeeze %241 : memref<1x128xf32, #tpu.memory_space<any>> -> memref<128xf32, #tpu.memory_space<any>>
    %c0_i32_199 = arith.constant 0 : i32
    %243 = tpu.memref_slice %arg7[%9, %c0_i32_196, %c0_i32_197, %c0_i32_199] : memref<2x8x8x128xf32, #tpu.memory_space<vmem>> -> memref<1x1x1x128xf32, #tpu.memory_space<vmem>>
    %244 = tpu.memref_squeeze %243 : memref<1x1x1x128xf32, #tpu.memory_space<vmem>> -> memref<128xf32, #tpu.memory_space<vmem>>
    %245 = tpu.memref_slice %arg8[%9] : memref<2x!tpu.dma_semaphore, #tpu.memory_space<semaphore_mem>> -> memref<1x!tpu.dma_semaphore, #tpu.memory_space<semaphore_mem>>
    %246 = tpu.memref_squeeze %245 : memref<1x!tpu.dma_semaphore, #tpu.memory_space<semaphore_mem>> -> memref<!tpu.dma_semaphore, #tpu.memory_space<semaphore_mem>>
    tpu.wait_dma2 semaphore(%246 : memref<!tpu.dma_semaphore, #tpu.memory_space<semaphore_mem>>) src(%242 : memref<128xf32, #tpu.memory_space<any>>) dst(%244 : memref<128xf32, #tpu.memory_space<vmem>>)
    %c0_i32_200 = arith.constant 0 : i32
    %c0_i32_201 = arith.constant 0 : i32
    %c0_i32_202 = arith.constant 0 : i32
    %c0_i32_203 = arith.constant 0 : i32
    %247 = tpu.memref_slice %arg5[%c0_i32_200, %c0_i32_203] : memref<64x128xf32, #tpu.memory_space<any>> -> memref<1x128xf32, #tpu.memory_space<any>>
    %248 = tpu.memref_squeeze %247 : memref<1x128xf32, #tpu.memory_space<any>> -> memref<128xf32, #tpu.memory_space<any>>
    %c0_i32_204 = arith.constant 0 : i32
    %249 = tpu.memref_slice %arg7[%9, %c0_i32_201, %c0_i32_202, %c0_i32_204] : memref<2x8x8x128xf32, #tpu.memory_space<vmem>> -> memref<1x1x1x128xf32, #tpu.memory_space<vmem>>
    %250 = tpu.memref_squeeze %249 : memref<1x1x1x128xf32, #tpu.memory_space<vmem>> -> memref<128xf32, #tpu.memory_space<vmem>>
    %251 = tpu.memref_slice %arg8[%9] : memref<2x!tpu.dma_semaphore, #tpu.memory_space<semaphore_mem>> -> memref<1x!tpu.dma_semaphore, #tpu.memory_space<semaphore_mem>>
    %252 = tpu.memref_squeeze %251 : memref<1x!tpu.dma_semaphore, #tpu.memory_space<semaphore_mem>> -> memref<!tpu.dma_semaphore, #tpu.memory_space<semaphore_mem>>
    tpu.wait_dma2 semaphore(%252 : memref<!tpu.dma_semaphore, #tpu.memory_space<semaphore_mem>>) src(%248 : memref<128xf32, #tpu.memory_space<any>>) dst(%250 : memref<128xf32, #tpu.memory_space<vmem>>)
    %c0_i32_205 = arith.constant 0 : i32
    %c0_i32_206 = arith.constant 0 : i32
    %c0_i32_207 = arith.constant 0 : i32
    %c0_i32_208 = arith.constant 0 : i32
    %253 = tpu.memref_slice %arg5[%c0_i32_205, %c0_i32_208] : memref<64x128xf32, #tpu.memory_space<any>> -> memref<1x128xf32, #tpu.memory_space<any>>
    %254 = tpu.memref_squeeze %253 : memref<1x128xf32, #tpu.memory_space<any>> -> memref<128xf32, #tpu.memory_space<any>>
    %c0_i32_209 = arith.constant 0 : i32
    %255 = tpu.memref_slice %arg7[%9, %c0_i32_206, %c0_i32_207, %c0_i32_209] : memref<2x8x8x128xf32, #tpu.memory_space<vmem>> -> memref<1x1x1x128xf32, #tpu.memory_space<vmem>>
    %256 = tpu.memref_squeeze %255 : memref<1x1x1x128xf32, #tpu.memory_space<vmem>> -> memref<128xf32, #tpu.memory_space<vmem>>
    %257 = tpu.memref_slice %arg8[%9] : memref<2x!tpu.dma_semaphore, #tpu.memory_space<semaphore_mem>> -> memref<1x!tpu.dma_semaphore, #tpu.memory_space<semaphore_mem>>
    %258 = tpu.memref_squeeze %257 : memref<1x!tpu.dma_semaphore, #tpu.memory_space<semaphore_mem>> -> memref<!tpu.dma_semaphore, #tpu.memory_space<semaphore_mem>>
    tpu.wait_dma2 semaphore(%258 : memref<!tpu.dma_semaphore, #tpu.memory_space<semaphore_mem>>) src(%254 : memref<128xf32, #tpu.memory_space<any>>) dst(%256 : memref<128xf32, #tpu.memory_space<vmem>>)
    %c0_i32_210 = arith.constant 0 : i32
    %c0_i32_211 = arith.constant 0 : i32
    %c0_i32_212 = arith.constant 0 : i32
    %c0_i32_213 = arith.constant 0 : i32
    %259 = tpu.memref_slice %arg5[%c0_i32_210, %c0_i32_213] : memref<64x128xf32, #tpu.memory_space<any>> -> memref<1x128xf32, #tpu.memory_space<any>>
    %260 = tpu.memref_squeeze %259 : memref<1x128xf32, #tpu.memory_space<any>> -> memref<128xf32, #tpu.memory_space<any>>
    %c0_i32_214 = arith.constant 0 : i32
    %261 = tpu.memref_slice %arg7[%9, %c0_i32_211, %c0_i32_212, %c0_i32_214] : memref<2x8x8x128xf32, #tpu.memory_space<vmem>> -> memref<1x1x1x128xf32, #tpu.memory_space<vmem>>
    %262 = tpu.memref_squeeze %261 : memref<1x1x1x128xf32, #tpu.memory_space<vmem>> -> memref<128xf32, #tpu.memory_space<vmem>>
    %263 = tpu.memref_slice %arg8[%9] : memref<2x!tpu.dma_semaphore, #tpu.memory_space<semaphore_mem>> -> memref<1x!tpu.dma_semaphore, #tpu.memory_space<semaphore_mem>>
    %264 = tpu.memref_squeeze %263 : memref<1x!tpu.dma_semaphore, #tpu.memory_space<semaphore_mem>> -> memref<!tpu.dma_semaphore, #tpu.memory_space<semaphore_mem>>
    tpu.wait_dma2 semaphore(%264 : memref<!tpu.dma_semaphore, #tpu.memory_space<semaphore_mem>>) src(%260 : memref<128xf32, #tpu.memory_space<any>>) dst(%262 : memref<128xf32, #tpu.memory_space<vmem>>)
    %c0_i32_215 = arith.constant 0 : i32
    %c0_i32_216 = arith.constant 0 : i32
    %c0_i32_217 = arith.constant 0 : i32
    %c0_i32_218 = arith.constant 0 : i32
    %265 = tpu.memref_slice %arg5[%c0_i32_215, %c0_i32_218] : memref<64x128xf32, #tpu.memory_space<any>> -> memref<1x128xf32, #tpu.memory_space<any>>
    %266 = tpu.memref_squeeze %265 : memref<1x128xf32, #tpu.memory_space<any>> -> memref<128xf32, #tpu.memory_space<any>>
    %c0_i32_219 = arith.constant 0 : i32
    %267 = tpu.memref_slice %arg7[%9, %c0_i32_216, %c0_i32_217, %c0_i32_219] : memref<2x8x8x128xf32, #tpu.memory_space<vmem>> -> memref<1x1x1x128xf32, #tpu.memory_space<vmem>>
    %268 = tpu.memref_squeeze %267 : memref<1x1x1x128xf32, #tpu.memory_space<vmem>> -> memref<128xf32, #tpu.memory_space<vmem>>
    %269 = tpu.memref_slice %arg8[%9] : memref<2x!tpu.dma_semaphore, #tpu.memory_space<semaphore_mem>> -> memref<1x!tpu.dma_semaphore, #tpu.memory_space<semaphore_mem>>
    %270 = tpu.memref_squeeze %269 : memref<1x!tpu.dma_semaphore, #tpu.memory_space<semaphore_mem>> -> memref<!tpu.dma_semaphore, #tpu.memory_space<semaphore_mem>>
    tpu.wait_dma2 semaphore(%270 : memref<!tpu.dma_semaphore, #tpu.memory_space<semaphore_mem>>) src(%266 : memref<128xf32, #tpu.memory_space<any>>) dst(%268 : memref<128xf32, #tpu.memory_space<vmem>>)
    %c0_i32_220 = arith.constant 0 : i32
    %c0_i32_221 = arith.constant 0 : i32
    %c0_i32_222 = arith.constant 0 : i32
    %c0_i32_223 = arith.constant 0 : i32
    %271 = tpu.memref_slice %arg5[%c0_i32_220, %c0_i32_223] : memref<64x128xf32, #tpu.memory_space<any>> -> memref<1x128xf32, #tpu.memory_space<any>>
    %272 = tpu.memref_squeeze %271 : memref<1x128xf32, #tpu.memory_space<any>> -> memref<128xf32, #tpu.memory_space<any>>
    %c0_i32_224 = arith.constant 0 : i32
    %273 = tpu.memref_slice %arg7[%9, %c0_i32_221, %c0_i32_222, %c0_i32_224] : memref<2x8x8x128xf32, #tpu.memory_space<vmem>> -> memref<1x1x1x128xf32, #tpu.memory_space<vmem>>
    %274 = tpu.memref_squeeze %273 : memref<1x1x1x128xf32, #tpu.memory_space<vmem>> -> memref<128xf32, #tpu.memory_space<vmem>>
    %275 = tpu.memref_slice %arg8[%9] : memref<2x!tpu.dma_semaphore, #tpu.memory_space<semaphore_mem>> -> memref<1x!tpu.dma_semaphore, #tpu.memory_space<semaphore_mem>>
    %276 = tpu.memref_squeeze %275 : memref<1x!tpu.dma_semaphore, #tpu.memory_space<semaphore_mem>> -> memref<!tpu.dma_semaphore, #tpu.memory_space<semaphore_mem>>
    tpu.wait_dma2 semaphore(%276 : memref<!tpu.dma_semaphore, #tpu.memory_space<semaphore_mem>>) src(%272 : memref<128xf32, #tpu.memory_space<any>>) dst(%274 : memref<128xf32, #tpu.memory_space<vmem>>)
    %c0_i32_225 = arith.constant 0 : i32
    %c0_i32_226 = arith.constant 0 : i32
    %c0_i32_227 = arith.constant 0 : i32
    %c0_i32_228 = arith.constant 0 : i32
    %277 = tpu.memref_slice %arg5[%c0_i32_225, %c0_i32_228] : memref<64x128xf32, #tpu.memory_space<any>> -> memref<1x128xf32, #tpu.memory_space<any>>
    %278 = tpu.memref_squeeze %277 : memref<1x128xf32, #tpu.memory_space<any>> -> memref<128xf32, #tpu.memory_space<any>>
    %c0_i32_229 = arith.constant 0 : i32
    %279 = tpu.memref_slice %arg7[%9, %c0_i32_226, %c0_i32_227, %c0_i32_229] : memref<2x8x8x128xf32, #tpu.memory_space<vmem>> -> memref<1x1x1x128xf32, #tpu.memory_space<vmem>>
    %280 = tpu.memref_squeeze %279 : memref<1x1x1x128xf32, #tpu.memory_space<vmem>> -> memref<128xf32, #tpu.memory_space<vmem>>
    %281 = tpu.memref_slice %arg8[%9] : memref<2x!tpu.dma_semaphore, #tpu.memory_space<semaphore_mem>> -> memref<1x!tpu.dma_semaphore, #tpu.memory_space<semaphore_mem>>
    %282 = tpu.memref_squeeze %281 : memref<1x!tpu.dma_semaphore, #tpu.memory_space<semaphore_mem>> -> memref<!tpu.dma_semaphore, #tpu.memory_space<semaphore_mem>>
    tpu.wait_dma2 semaphore(%282 : memref<!tpu.dma_semaphore, #tpu.memory_space<semaphore_mem>>) src(%278 : memref<128xf32, #tpu.memory_space<any>>) dst(%280 : memref<128xf32, #tpu.memory_space<vmem>>)
    %c0_i32_230 = arith.constant 0 : i32
    %c0_i32_231 = arith.constant 0 : i32
    %c0_i32_232 = arith.constant 0 : i32
    %c0_i32_233 = arith.constant 0 : i32
    %283 = tpu.memref_slice %arg5[%c0_i32_230, %c0_i32_233] : memref<64x128xf32, #tpu.memory_space<any>> -> memref<1x128xf32, #tpu.memory_space<any>>
    %284 = tpu.memref_squeeze %283 : memref<1x128xf32, #tpu.memory_space<any>> -> memref<128xf32, #tpu.memory_space<any>>
    %c0_i32_234 = arith.constant 0 : i32
    %285 = tpu.memref_slice %arg7[%9, %c0_i32_231, %c0_i32_232, %c0_i32_234] : memref<2x8x8x128xf32, #tpu.memory_space<vmem>> -> memref<1x1x1x128xf32, #tpu.memory_space<vmem>>
    %286 = tpu.memref_squeeze %285 : memref<1x1x1x128xf32, #tpu.memory_space<vmem>> -> memref<128xf32, #tpu.memory_space<vmem>>
    %287 = tpu.memref_slice %arg8[%9] : memref<2x!tpu.dma_semaphore, #tpu.memory_space<semaphore_mem>> -> memref<1x!tpu.dma_semaphore, #tpu.memory_space<semaphore_mem>>
    %288 = tpu.memref_squeeze %287 : memref<1x!tpu.dma_semaphore, #tpu.memory_space<semaphore_mem>> -> memref<!tpu.dma_semaphore, #tpu.memory_space<semaphore_mem>>
    tpu.wait_dma2 semaphore(%288 : memref<!tpu.dma_semaphore, #tpu.memory_space<semaphore_mem>>) src(%284 : memref<128xf32, #tpu.memory_space<any>>) dst(%286 : memref<128xf32, #tpu.memory_space<vmem>>)
    %c0_i32_235 = arith.constant 0 : i32
    %c0_i32_236 = arith.constant 0 : i32
    %c0_i32_237 = arith.constant 0 : i32
    %c0_i32_238 = arith.constant 0 : i32
    %289 = tpu.memref_slice %arg5[%c0_i32_235, %c0_i32_238] : memref<64x128xf32, #tpu.memory_space<any>> -> memref<1x128xf32, #tpu.memory_space<any>>
    %290 = tpu.memref_squeeze %289 : memref<1x128xf32, #tpu.memory_space<any>> -> memref<128xf32, #tpu.memory_space<any>>
    %c0_i32_239 = arith.constant 0 : i32
    %291 = tpu.memref_slice %arg7[%9, %c0_i32_236, %c0_i32_237, %c0_i32_239] : memref<2x8x8x128xf32, #tpu.memory_space<vmem>> -> memref<1x1x1x128xf32, #tpu.memory_space<vmem>>
    %292 = tpu.memref_squeeze %291 : memref<1x1x1x128xf32, #tpu.memory_space<vmem>> -> memref<128xf32, #tpu.memory_space<vmem>>
    %293 = tpu.memref_slice %arg8[%9] : memref<2x!tpu.dma_semaphore, #tpu.memory_space<semaphore_mem>> -> memref<1x!tpu.dma_semaphore, #tpu.memory_space<semaphore_mem>>
    %294 = tpu.memref_squeeze %293 : memref<1x!tpu.dma_semaphore, #tpu.memory_space<semaphore_mem>> -> memref<!tpu.dma_semaphore, #tpu.memory_space<semaphore_mem>>
    tpu.wait_dma2 semaphore(%294 : memref<!tpu.dma_semaphore, #tpu.memory_space<semaphore_mem>>) src(%290 : memref<128xf32, #tpu.memory_space<any>>) dst(%292 : memref<128xf32, #tpu.memory_space<vmem>>)
    %c0_i32_240 = arith.constant 0 : i32
    %c0_i32_241 = arith.constant 0 : i32
    %c0_i32_242 = arith.constant 0 : i32
    %c0_i32_243 = arith.constant 0 : i32
    %295 = tpu.memref_slice %arg5[%c0_i32_240, %c0_i32_243] : memref<64x128xf32, #tpu.memory_space<any>> -> memref<1x128xf32, #tpu.memory_space<any>>
    %296 = tpu.memref_squeeze %295 : memref<1x128xf32, #tpu.memory_space<any>> -> memref<128xf32, #tpu.memory_space<any>>
    %c0_i32_244 = arith.constant 0 : i32
    %297 = tpu.memref_slice %arg7[%9, %c0_i32_241, %c0_i32_242, %c0_i32_244] : memref<2x8x8x128xf32, #tpu.memory_space<vmem>> -> memref<1x1x1x128xf32, #tpu.memory_space<vmem>>
    %298 = tpu.memref_squeeze %297 : memref<1x1x1x128xf32, #tpu.memory_space<vmem>> -> memref<128xf32, #tpu.memory_space<vmem>>
    %299 = tpu.memref_slice %arg8[%9] : memref<2x!tpu.dma_semaphore, #tpu.memory_space<semaphore_mem>> -> memref<1x!tpu.dma_semaphore, #tpu.memory_space<semaphore_mem>>
    %300 = tpu.memref_squeeze %299 : memref<1x!tpu.dma_semaphore, #tpu.memory_space<semaphore_mem>> -> memref<!tpu.dma_semaphore, #tpu.memory_space<semaphore_mem>>
    tpu.wait_dma2 semaphore(%300 : memref<!tpu.dma_semaphore, #tpu.memory_space<semaphore_mem>>) src(%296 : memref<128xf32, #tpu.memory_space<any>>) dst(%298 : memref<128xf32, #tpu.memory_space<vmem>>)
    %c0_i32_245 = arith.constant 0 : i32
    %c0_i32_246 = arith.constant 0 : i32
    %c0_i32_247 = arith.constant 0 : i32
    %c0_i32_248 = arith.constant 0 : i32
    %301 = tpu.memref_slice %arg5[%c0_i32_245, %c0_i32_248] : memref<64x128xf32, #tpu.memory_space<any>> -> memref<1x128xf32, #tpu.memory_space<any>>
    %302 = tpu.memref_squeeze %301 : memref<1x128xf32, #tpu.memory_space<any>> -> memref<128xf32, #tpu.memory_space<any>>
    %c0_i32_249 = arith.constant 0 : i32
    %303 = tpu.memref_slice %arg7[%9, %c0_i32_246, %c0_i32_247, %c0_i32_249] : memref<2x8x8x128xf32, #tpu.memory_space<vmem>> -> memref<1x1x1x128xf32, #tpu.memory_space<vmem>>
    %304 = tpu.memref_squeeze %303 : memref<1x1x1x128xf32, #tpu.memory_space<vmem>> -> memref<128xf32, #tpu.memory_space<vmem>>
    %305 = tpu.memref_slice %arg8[%9] : memref<2x!tpu.dma_semaphore, #tpu.memory_space<semaphore_mem>> -> memref<1x!tpu.dma_semaphore, #tpu.memory_space<semaphore_mem>>
    %306 = tpu.memref_squeeze %305 : memref<1x!tpu.dma_semaphore, #tpu.memory_space<semaphore_mem>> -> memref<!tpu.dma_semaphore, #tpu.memory_space<semaphore_mem>>
    tpu.wait_dma2 semaphore(%306 : memref<!tpu.dma_semaphore, #tpu.memory_space<semaphore_mem>>) src(%302 : memref<128xf32, #tpu.memory_space<any>>) dst(%304 : memref<128xf32, #tpu.memory_space<vmem>>)
    %c0_i32_250 = arith.constant 0 : i32
    %c0_i32_251 = arith.constant 0 : i32
    %c0_i32_252 = arith.constant 0 : i32
    %c0_i32_253 = arith.constant 0 : i32
    %307 = tpu.memref_slice %arg5[%c0_i32_250, %c0_i32_253] : memref<64x128xf32, #tpu.memory_space<any>> -> memref<1x128xf32, #tpu.memory_space<any>>
    %308 = tpu.memref_squeeze %307 : memref<1x128xf32, #tpu.memory_space<any>> -> memref<128xf32, #tpu.memory_space<any>>
    %c0_i32_254 = arith.constant 0 : i32
    %309 = tpu.memref_slice %arg7[%9, %c0_i32_251, %c0_i32_252, %c0_i32_254] : memref<2x8x8x128xf32, #tpu.memory_space<vmem>> -> memref<1x1x1x128xf32, #tpu.memory_space<vmem>>
    %310 = tpu.memref_squeeze %309 : memref<1x1x1x128xf32, #tpu.memory_space<vmem>> -> memref<128xf32, #tpu.memory_space<vmem>>
    %311 = tpu.memref_slice %arg8[%9] : memref<2x!tpu.dma_semaphore, #tpu.memory_space<semaphore_mem>> -> memref<1x!tpu.dma_semaphore, #tpu.memory_space<semaphore_mem>>
    %312 = tpu.memref_squeeze %311 : memref<1x!tpu.dma_semaphore, #tpu.memory_space<semaphore_mem>> -> memref<!tpu.dma_semaphore, #tpu.memory_space<semaphore_mem>>
    tpu.wait_dma2 semaphore(%312 : memref<!tpu.dma_semaphore, #tpu.memory_space<semaphore_mem>>) src(%308 : memref<128xf32, #tpu.memory_space<any>>) dst(%310 : memref<128xf32, #tpu.memory_space<vmem>>)
    %c0_i32_255 = arith.constant 0 : i32
    %c0_i32_256 = arith.constant 0 : i32
    %c0_i32_257 = arith.constant 0 : i32
    %c0_i32_258 = arith.constant 0 : i32
    %313 = tpu.memref_slice %arg5[%c0_i32_255, %c0_i32_258] : memref<64x128xf32, #tpu.memory_space<any>> -> memref<1x128xf32, #tpu.memory_space<any>>
    %314 = tpu.memref_squeeze %313 : memref<1x128xf32, #tpu.memory_space<any>> -> memref<128xf32, #tpu.memory_space<any>>
    %c0_i32_259 = arith.constant 0 : i32
    %315 = tpu.memref_slice %arg7[%9, %c0_i32_256, %c0_i32_257, %c0_i32_259] : memref<2x8x8x128xf32, #tpu.memory_space<vmem>> -> memref<1x1x1x128xf32, #tpu.memory_space<vmem>>
    %316 = tpu.memref_squeeze %315 : memref<1x1x1x128xf32, #tpu.memory_space<vmem>> -> memref<128xf32, #tpu.memory_space<vmem>>
    %317 = tpu.memref_slice %arg8[%9] : memref<2x!tpu.dma_semaphore, #tpu.memory_space<semaphore_mem>> -> memref<1x!tpu.dma_semaphore, #tpu.memory_space<semaphore_mem>>
    %318 = tpu.memref_squeeze %317 : memref<1x!tpu.dma_semaphore, #tpu.memory_space<semaphore_mem>> -> memref<!tpu.dma_semaphore, #tpu.memory_space<semaphore_mem>>
    tpu.wait_dma2 semaphore(%318 : memref<!tpu.dma_semaphore, #tpu.memory_space<semaphore_mem>>) src(%314 : memref<128xf32, #tpu.memory_space<any>>) dst(%316 : memref<128xf32, #tpu.memory_space<vmem>>)
    %c0_i32_260 = arith.constant 0 : i32
    %c0_i32_261 = arith.constant 0 : i32
    %c0_i32_262 = arith.constant 0 : i32
    %c0_i32_263 = arith.constant 0 : i32
    %319 = tpu.memref_slice %arg5[%c0_i32_260, %c0_i32_263] : memref<64x128xf32, #tpu.memory_space<any>> -> memref<1x128xf32, #tpu.memory_space<any>>
    %320 = tpu.memref_squeeze %319 : memref<1x128xf32, #tpu.memory_space<any>> -> memref<128xf32, #tpu.memory_space<any>>
    %c0_i32_264 = arith.constant 0 : i32
    %321 = tpu.memref_slice %arg7[%9, %c0_i32_261, %c0_i32_262, %c0_i32_264] : memref<2x8x8x128xf32, #tpu.memory_space<vmem>> -> memref<1x1x1x128xf32, #tpu.memory_space<vmem>>
    %322 = tpu.memref_squeeze %321 : memref<1x1x1x128xf32, #tpu.memory_space<vmem>> -> memref<128xf32, #tpu.memory_space<vmem>>
    %323 = tpu.memref_slice %arg8[%9] : memref<2x!tpu.dma_semaphore, #tpu.memory_space<semaphore_mem>> -> memref<1x!tpu.dma_semaphore, #tpu.memory_space<semaphore_mem>>
    %324 = tpu.memref_squeeze %323 : memref<1x!tpu.dma_semaphore, #tpu.memory_space<semaphore_mem>> -> memref<!tpu.dma_semaphore, #tpu.memory_space<semaphore_mem>>
    tpu.wait_dma2 semaphore(%324 : memref<!tpu.dma_semaphore, #tpu.memory_space<semaphore_mem>>) src(%320 : memref<128xf32, #tpu.memory_space<any>>) dst(%322 : memref<128xf32, #tpu.memory_space<vmem>>)
    %c0_i32_265 = arith.constant 0 : i32
    %c0_i32_266 = arith.constant 0 : i32
    %c0_i32_267 = arith.constant 0 : i32
    %c0_i32_268 = arith.constant 0 : i32
    %325 = tpu.memref_slice %arg5[%c0_i32_265, %c0_i32_268] : memref<64x128xf32, #tpu.memory_space<any>> -> memref<1x128xf32, #tpu.memory_space<any>>
    %326 = tpu.memref_squeeze %325 : memref<1x128xf32, #tpu.memory_space<any>> -> memref<128xf32, #tpu.memory_space<any>>
    %c0_i32_269 = arith.constant 0 : i32
    %327 = tpu.memref_slice %arg7[%9, %c0_i32_266, %c0_i32_267, %c0_i32_269] : memref<2x8x8x128xf32, #tpu.memory_space<vmem>> -> memref<1x1x1x128xf32, #tpu.memory_space<vmem>>
    %328 = tpu.memref_squeeze %327 : memref<1x1x1x128xf32, #tpu.memory_space<vmem>> -> memref<128xf32, #tpu.memory_space<vmem>>
    %329 = tpu.memref_slice %arg8[%9] : memref<2x!tpu.dma_semaphore, #tpu.memory_space<semaphore_mem>> -> memref<1x!tpu.dma_semaphore, #tpu.memory_space<semaphore_mem>>
    %330 = tpu.memref_squeeze %329 : memref<1x!tpu.dma_semaphore, #tpu.memory_space<semaphore_mem>> -> memref<!tpu.dma_semaphore, #tpu.memory_space<semaphore_mem>>
    tpu.wait_dma2 semaphore(%330 : memref<!tpu.dma_semaphore, #tpu.memory_space<semaphore_mem>>) src(%326 : memref<128xf32, #tpu.memory_space<any>>) dst(%328 : memref<128xf32, #tpu.memory_space<vmem>>)
    %c0_i32_270 = arith.constant 0 : i32
    %c0_i32_271 = arith.constant 0 : i32
    %c0_i32_272 = arith.constant 0 : i32
    %c0_i32_273 = arith.constant 0 : i32
    %331 = tpu.memref_slice %arg5[%c0_i32_270, %c0_i32_273] : memref<64x128xf32, #tpu.memory_space<any>> -> memref<1x128xf32, #tpu.memory_space<any>>
    %332 = tpu.memref_squeeze %331 : memref<1x128xf32, #tpu.memory_space<any>> -> memref<128xf32, #tpu.memory_space<any>>
    %c0_i32_274 = arith.constant 0 : i32
    %333 = tpu.memref_slice %arg7[%9, %c0_i32_271, %c0_i32_272, %c0_i32_274] : memref<2x8x8x128xf32, #tpu.memory_space<vmem>> -> memref<1x1x1x128xf32, #tpu.memory_space<vmem>>
    %334 = tpu.memref_squeeze %333 : memref<1x1x1x128xf32, #tpu.memory_space<vmem>> -> memref<128xf32, #tpu.memory_space<vmem>>
    %335 = tpu.memref_slice %arg8[%9] : memref<2x!tpu.dma_semaphore, #tpu.memory_space<semaphore_mem>> -> memref<1x!tpu.dma_semaphore, #tpu.memory_space<semaphore_mem>>
    %336 = tpu.memref_squeeze %335 : memref<1x!tpu.dma_semaphore, #tpu.memory_space<semaphore_mem>> -> memref<!tpu.dma_semaphore, #tpu.memory_space<semaphore_mem>>
    tpu.wait_dma2 semaphore(%336 : memref<!tpu.dma_semaphore, #tpu.memory_space<semaphore_mem>>) src(%332 : memref<128xf32, #tpu.memory_space<any>>) dst(%334 : memref<128xf32, #tpu.memory_space<vmem>>)
    %c0_i32_275 = arith.constant 0 : i32
    %c0_i32_276 = arith.constant 0 : i32
    %c0_i32_277 = arith.constant 0 : i32
    %c0_i32_278 = arith.constant 0 : i32
    %337 = tpu.memref_slice %arg5[%c0_i32_275, %c0_i32_278] : memref<64x128xf32, #tpu.memory_space<any>> -> memref<1x128xf32, #tpu.memory_space<any>>
    %338 = tpu.memref_squeeze %337 : memref<1x128xf32, #tpu.memory_space<any>> -> memref<128xf32, #tpu.memory_space<any>>
    %c0_i32_279 = arith.constant 0 : i32
    %339 = tpu.memref_slice %arg7[%9, %c0_i32_276, %c0_i32_277, %c0_i32_279] : memref<2x8x8x128xf32, #tpu.memory_space<vmem>> -> memref<1x1x1x128xf32, #tpu.memory_space<vmem>>
    %340 = tpu.memref_squeeze %339 : memref<1x1x1x128xf32, #tpu.memory_space<vmem>> -> memref<128xf32, #tpu.memory_space<vmem>>
    %341 = tpu.memref_slice %arg8[%9] : memref<2x!tpu.dma_semaphore, #tpu.memory_space<semaphore_mem>> -> memref<1x!tpu.dma_semaphore, #tpu.memory_space<semaphore_mem>>
    %342 = tpu.memref_squeeze %341 : memref<1x!tpu.dma_semaphore, #tpu.memory_space<semaphore_mem>> -> memref<!tpu.dma_semaphore, #tpu.memory_space<semaphore_mem>>
    tpu.wait_dma2 semaphore(%342 : memref<!tpu.dma_semaphore, #tpu.memory_space<semaphore_mem>>) src(%338 : memref<128xf32, #tpu.memory_space<any>>) dst(%340 : memref<128xf32, #tpu.memory_space<vmem>>)
    %c0_i32_280 = arith.constant 0 : i32
    %c0_i32_281 = arith.constant 0 : i32
    %c0_i32_282 = arith.constant 0 : i32
    %c0_i32_283 = arith.constant 0 : i32
    %343 = tpu.memref_slice %arg5[%c0_i32_280, %c0_i32_283] : memref<64x128xf32, #tpu.memory_space<any>> -> memref<1x128xf32, #tpu.memory_space<any>>
    %344 = tpu.memref_squeeze %343 : memref<1x128xf32, #tpu.memory_space<any>> -> memref<128xf32, #tpu.memory_space<any>>
    %c0_i32_284 = arith.constant 0 : i32
    %345 = tpu.memref_slice %arg7[%9, %c0_i32_281, %c0_i32_282, %c0_i32_284] : memref<2x8x8x128xf32, #tpu.memory_space<vmem>> -> memref<1x1x1x128xf32, #tpu.memory_space<vmem>>
    %346 = tpu.memref_squeeze %345 : memref<1x1x1x128xf32, #tpu.memory_space<vmem>> -> memref<128xf32, #tpu.memory_space<vmem>>
    %347 = tpu.memref_slice %arg8[%9] : memref<2x!tpu.dma_semaphore, #tpu.memory_space<semaphore_mem>> -> memref<1x!tpu.dma_semaphore, #tpu.memory_space<semaphore_mem>>
    %348 = tpu.memref_squeeze %347 : memref<1x!tpu.dma_semaphore, #tpu.memory_space<semaphore_mem>> -> memref<!tpu.dma_semaphore, #tpu.memory_space<semaphore_mem>>
    tpu.wait_dma2 semaphore(%348 : memref<!tpu.dma_semaphore, #tpu.memory_space<semaphore_mem>>) src(%344 : memref<128xf32, #tpu.memory_space<any>>) dst(%346 : memref<128xf32, #tpu.memory_space<vmem>>)
    %c0_i32_285 = arith.constant 0 : i32
    %c0_i32_286 = arith.constant 0 : i32
    %c0_i32_287 = arith.constant 0 : i32
    %c0_i32_288 = arith.constant 0 : i32
    %349 = tpu.memref_slice %arg5[%c0_i32_285, %c0_i32_288] : memref<64x128xf32, #tpu.memory_space<any>> -> memref<1x128xf32, #tpu.memory_space<any>>
    %350 = tpu.memref_squeeze %349 : memref<1x128xf32, #tpu.memory_space<any>> -> memref<128xf32, #tpu.memory_space<any>>
    %c0_i32_289 = arith.constant 0 : i32
    %351 = tpu.memref_slice %arg7[%9, %c0_i32_286, %c0_i32_287, %c0_i32_289] : memref<2x8x8x128xf32, #tpu.memory_space<vmem>> -> memref<1x1x1x128xf32, #tpu.memory_space<vmem>>
    %352 = tpu.memref_squeeze %351 : memref<1x1x1x128xf32, #tpu.memory_space<vmem>> -> memref<128xf32, #tpu.memory_space<vmem>>
    %353 = tpu.memref_slice %arg8[%9] : memref<2x!tpu.dma_semaphore, #tpu.memory_space<semaphore_mem>> -> memref<1x!tpu.dma_semaphore, #tpu.memory_space<semaphore_mem>>
    %354 = tpu.memref_squeeze %353 : memref<1x!tpu.dma_semaphore, #tpu.memory_space<semaphore_mem>> -> memref<!tpu.dma_semaphore, #tpu.memory_space<semaphore_mem>>
    tpu.wait_dma2 semaphore(%354 : memref<!tpu.dma_semaphore, #tpu.memory_space<semaphore_mem>>) src(%350 : memref<128xf32, #tpu.memory_space<any>>) dst(%352 : memref<128xf32, #tpu.memory_space<vmem>>)
    %c0_i32_290 = arith.constant 0 : i32
    %c0_i32_291 = arith.constant 0 : i32
    %c0_i32_292 = arith.constant 0 : i32
    %c0_i32_293 = arith.constant 0 : i32
    %355 = tpu.memref_slice %arg5[%c0_i32_290, %c0_i32_293] : memref<64x128xf32, #tpu.memory_space<any>> -> memref<1x128xf32, #tpu.memory_space<any>>
    %356 = tpu.memref_squeeze %355 : memref<1x128xf32, #tpu.memory_space<any>> -> memref<128xf32, #tpu.memory_space<any>>
    %c0_i32_294 = arith.constant 0 : i32
    %357 = tpu.memref_slice %arg7[%9, %c0_i32_291, %c0_i32_292, %c0_i32_294] : memref<2x8x8x128xf32, #tpu.memory_space<vmem>> -> memref<1x1x1x128xf32, #tpu.memory_space<vmem>>
    %358 = tpu.memref_squeeze %357 : memref<1x1x1x128xf32, #tpu.memory_space<vmem>> -> memref<128xf32, #tpu.memory_space<vmem>>
    %359 = tpu.memref_slice %arg8[%9] : memref<2x!tpu.dma_semaphore, #tpu.memory_space<semaphore_mem>> -> memref<1x!tpu.dma_semaphore, #tpu.memory_space<semaphore_mem>>
    %360 = tpu.memref_squeeze %359 : memref<1x!tpu.dma_semaphore, #tpu.memory_space<semaphore_mem>> -> memref<!tpu.dma_semaphore, #tpu.memory_space<semaphore_mem>>
    tpu.wait_dma2 semaphore(%360 : memref<!tpu.dma_semaphore, #tpu.memory_space<semaphore_mem>>) src(%356 : memref<128xf32, #tpu.memory_space<any>>) dst(%358 : memref<128xf32, #tpu.memory_space<vmem>>)
    %c0_i32_295 = arith.constant 0 : i32
    %c0_i32_296 = arith.constant 0 : i32
    %c0_i32_297 = arith.constant 0 : i32
    %c0_i32_298 = arith.constant 0 : i32
    %361 = tpu.memref_slice %arg5[%c0_i32_295, %c0_i32_298] : memref<64x128xf32, #tpu.memory_space<any>> -> memref<1x128xf32, #tpu.memory_space<any>>
    %362 = tpu.memref_squeeze %361 : memref<1x128xf32, #tpu.memory_space<any>> -> memref<128xf32, #tpu.memory_space<any>>
    %c0_i32_299 = arith.constant 0 : i32
    %363 = tpu.memref_slice %arg7[%9, %c0_i32_296, %c0_i32_297, %c0_i32_299] : memref<2x8x8x128xf32, #tpu.memory_space<vmem>> -> memref<1x1x1x128xf32, #tpu.memory_space<vmem>>
    %364 = tpu.memref_squeeze %363 : memref<1x1x1x128xf32, #tpu.memory_space<vmem>> -> memref<128xf32, #tpu.memory_space<vmem>>
    %365 = tpu.memref_slice %arg8[%9] : memref<2x!tpu.dma_semaphore, #tpu.memory_space<semaphore_mem>> -> memref<1x!tpu.dma_semaphore, #tpu.memory_space<semaphore_mem>>
    %366 = tpu.memref_squeeze %365 : memref<1x!tpu.dma_semaphore, #tpu.memory_space<semaphore_mem>> -> memref<!tpu.dma_semaphore, #tpu.memory_space<semaphore_mem>>
    tpu.wait_dma2 semaphore(%366 : memref<!tpu.dma_semaphore, #tpu.memory_space<semaphore_mem>>) src(%362 : memref<128xf32, #tpu.memory_space<any>>) dst(%364 : memref<128xf32, #tpu.memory_space<vmem>>)
    %c0_i32_300 = arith.constant 0 : i32
    %c0_i32_301 = arith.constant 0 : i32
    %c0_i32_302 = arith.constant 0 : i32
    %c0_i32_303 = arith.constant 0 : i32
    %367 = tpu.memref_slice %arg5[%c0_i32_300, %c0_i32_303] : memref<64x128xf32, #tpu.memory_space<any>> -> memref<1x128xf32, #tpu.memory_space<any>>
    %368 = tpu.memref_squeeze %367 : memref<1x128xf32, #tpu.memory_space<any>> -> memref<128xf32, #tpu.memory_space<any>>
    %c0_i32_304 = arith.constant 0 : i32
    %369 = tpu.memref_slice %arg7[%9, %c0_i32_301, %c0_i32_302, %c0_i32_304] : memref<2x8x8x128xf32, #tpu.memory_space<vmem>> -> memref<1x1x1x128xf32, #tpu.memory_space<vmem>>
    %370 = tpu.memref_squeeze %369 : memref<1x1x1x128xf32, #tpu.memory_space<vmem>> -> memref<128xf32, #tpu.memory_space<vmem>>
    %371 = tpu.memref_slice %arg8[%9] : memref<2x!tpu.dma_semaphore, #tpu.memory_space<semaphore_mem>> -> memref<1x!tpu.dma_semaphore, #tpu.memory_space<semaphore_mem>>
    %372 = tpu.memref_squeeze %371 : memref<1x!tpu.dma_semaphore, #tpu.memory_space<semaphore_mem>> -> memref<!tpu.dma_semaphore, #tpu.memory_space<semaphore_mem>>
    tpu.wait_dma2 semaphore(%372 : memref<!tpu.dma_semaphore, #tpu.memory_space<semaphore_mem>>) src(%368 : memref<128xf32, #tpu.memory_space<any>>) dst(%370 : memref<128xf32, #tpu.memory_space<vmem>>)
    %c0_i32_305 = arith.constant 0 : i32
    %c0_i32_306 = arith.constant 0 : i32
    %c0_i32_307 = arith.constant 0 : i32
    %c0_i32_308 = arith.constant 0 : i32
    %373 = tpu.memref_slice %arg5[%c0_i32_305, %c0_i32_308] : memref<64x128xf32, #tpu.memory_space<any>> -> memref<1x128xf32, #tpu.memory_space<any>>
    %374 = tpu.memref_squeeze %373 : memref<1x128xf32, #tpu.memory_space<any>> -> memref<128xf32, #tpu.memory_space<any>>
    %c0_i32_309 = arith.constant 0 : i32
    %375 = tpu.memref_slice %arg7[%9, %c0_i32_306, %c0_i32_307, %c0_i32_309] : memref<2x8x8x128xf32, #tpu.memory_space<vmem>> -> memref<1x1x1x128xf32, #tpu.memory_space<vmem>>
    %376 = tpu.memref_squeeze %375 : memref<1x1x1x128xf32, #tpu.memory_space<vmem>> -> memref<128xf32, #tpu.memory_space<vmem>>
    %377 = tpu.memref_slice %arg8[%9] : memref<2x!tpu.dma_semaphore, #tpu.memory_space<semaphore_mem>> -> memref<1x!tpu.dma_semaphore, #tpu.memory_space<semaphore_mem>>
    %378 = tpu.memref_squeeze %377 : memref<1x!tpu.dma_semaphore, #tpu.memory_space<semaphore_mem>> -> memref<!tpu.dma_semaphore, #tpu.memory_space<semaphore_mem>>
    tpu.wait_dma2 semaphore(%378 : memref<!tpu.dma_semaphore, #tpu.memory_space<semaphore_mem>>) src(%374 : memref<128xf32, #tpu.memory_space<any>>) dst(%376 : memref<128xf32, #tpu.memory_space<vmem>>)
    %c0_i32_310 = arith.constant 0 : i32
    %c0_i32_311 = arith.constant 0 : i32
    %c0_i32_312 = arith.constant 0 : i32
    %c0_i32_313 = arith.constant 0 : i32
    %379 = tpu.memref_slice %arg5[%c0_i32_310, %c0_i32_313] : memref<64x128xf32, #tpu.memory_space<any>> -> memref<1x128xf32, #tpu.memory_space<any>>
    %380 = tpu.memref_squeeze %379 : memref<1x128xf32, #tpu.memory_space<any>> -> memref<128xf32, #tpu.memory_space<any>>
    %c0_i32_314 = arith.constant 0 : i32
    %381 = tpu.memref_slice %arg7[%9, %c0_i32_311, %c0_i32_312, %c0_i32_314] : memref<2x8x8x128xf32, #tpu.memory_space<vmem>> -> memref<1x1x1x128xf32, #tpu.memory_space<vmem>>
    %382 = tpu.memref_squeeze %381 : memref<1x1x1x128xf32, #tpu.memory_space<vmem>> -> memref<128xf32, #tpu.memory_space<vmem>>
    %383 = tpu.memref_slice %arg8[%9] : memref<2x!tpu.dma_semaphore, #tpu.memory_space<semaphore_mem>> -> memref<1x!tpu.dma_semaphore, #tpu.memory_space<semaphore_mem>>
    %384 = tpu.memref_squeeze %383 : memref<1x!tpu.dma_semaphore, #tpu.memory_space<semaphore_mem>> -> memref<!tpu.dma_semaphore, #tpu.memory_space<semaphore_mem>>
    tpu.wait_dma2 semaphore(%384 : memref<!tpu.dma_semaphore, #tpu.memory_space<semaphore_mem>>) src(%380 : memref<128xf32, #tpu.memory_space<any>>) dst(%382 : memref<128xf32, #tpu.memory_space<vmem>>)
    %c0_i32_315 = arith.constant 0 : i32
    %c0_i32_316 = arith.constant 0 : i32
    %c0_i32_317 = arith.constant 0 : i32
    %c0_i32_318 = arith.constant 0 : i32
    %385 = tpu.memref_slice %arg5[%c0_i32_315, %c0_i32_318] : memref<64x128xf32, #tpu.memory_space<any>> -> memref<1x128xf32, #tpu.memory_space<any>>
    %386 = tpu.memref_squeeze %385 : memref<1x128xf32, #tpu.memory_space<any>> -> memref<128xf32, #tpu.memory_space<any>>
    %c0_i32_319 = arith.constant 0 : i32
    %387 = tpu.memref_slice %arg7[%9, %c0_i32_316, %c0_i32_317, %c0_i32_319] : memref<2x8x8x128xf32, #tpu.memory_space<vmem>> -> memref<1x1x1x128xf32, #tpu.memory_space<vmem>>
    %388 = tpu.memref_squeeze %387 : memref<1x1x1x128xf32, #tpu.memory_space<vmem>> -> memref<128xf32, #tpu.memory_space<vmem>>
    %389 = tpu.memref_slice %arg8[%9] : memref<2x!tpu.dma_semaphore, #tpu.memory_space<semaphore_mem>> -> memref<1x!tpu.dma_semaphore, #tpu.memory_space<semaphore_mem>>
    %390 = tpu.memref_squeeze %389 : memref<1x!tpu.dma_semaphore, #tpu.memory_space<semaphore_mem>> -> memref<!tpu.dma_semaphore, #tpu.memory_space<semaphore_mem>>
    tpu.wait_dma2 semaphore(%390 : memref<!tpu.dma_semaphore, #tpu.memory_space<semaphore_mem>>) src(%386 : memref<128xf32, #tpu.memory_space<any>>) dst(%388 : memref<128xf32, #tpu.memory_space<vmem>>)
    %c0_i32_320 = arith.constant 0 : i32
    %c0_i32_321 = arith.constant 0 : i32
    %c0_i32_322 = arith.constant 0 : i32
    %c0_i32_323 = arith.constant 0 : i32
    %391 = tpu.memref_slice %arg5[%c0_i32_320, %c0_i32_323] : memref<64x128xf32, #tpu.memory_space<any>> -> memref<1x128xf32, #tpu.memory_space<any>>
    %392 = tpu.memref_squeeze %391 : memref<1x128xf32, #tpu.memory_space<any>> -> memref<128xf32, #tpu.memory_space<any>>
    %c0_i32_324 = arith.constant 0 : i32
    %393 = tpu.memref_slice %arg7[%9, %c0_i32_321, %c0_i32_322, %c0_i32_324] : memref<2x8x8x128xf32, #tpu.memory_space<vmem>> -> memref<1x1x1x128xf32, #tpu.memory_space<vmem>>
    %394 = tpu.memref_squeeze %393 : memref<1x1x1x128xf32, #tpu.memory_space<vmem>> -> memref<128xf32, #tpu.memory_space<vmem>>
    %395 = tpu.memref_slice %arg8[%9] : memref<2x!tpu.dma_semaphore, #tpu.memory_space<semaphore_mem>> -> memref<1x!tpu.dma_semaphore, #tpu.memory_space<semaphore_mem>>
    %396 = tpu.memref_squeeze %395 : memref<1x!tpu.dma_semaphore, #tpu.memory_space<semaphore_mem>> -> memref<!tpu.dma_semaphore, #tpu.memory_space<semaphore_mem>>
    tpu.wait_dma2 semaphore(%396 : memref<!tpu.dma_semaphore, #tpu.memory_space<semaphore_mem>>) src(%392 : memref<128xf32, #tpu.memory_space<any>>) dst(%394 : memref<128xf32, #tpu.memory_space<vmem>>)
    %c0 = arith.constant 0 : index
    %c0_325 = arith.constant 0 : index
    %c0_326 = arith.constant 0 : index
    %c0_327 = arith.constant 0 : index
    %397 = vector.load %arg3[%c0, %c0_325, %c0_326, %c0_327] : memref<1x1x8x8xf32, #tpu.memory_space<vmem>>, vector<1x1x8x8xf32>
    %398 = vector.shape_cast %397 : vector<1x1x8x8xf32> to vector<8x8xf32>
    %c0_328 = arith.constant 0 : index
    %c0_329 = arith.constant 0 : index
    %399 = vector.load %arg6[%c0_328, %c0_329] : memref<8x128xf32, #tpu.memory_space<vmem>>, vector<8x128xf32>
    %400 = vector.extract_strided_slice %398 {offsets = [0, 0], sizes = [8, 1], strides = [1, 1]} : vector<8x8xf32> to vector<8x1xf32>
    %401 = arith.index_cast %9 : i32 to index
    %c0_330 = arith.constant 0 : index
    %c0_331 = arith.constant 0 : index
    %c0_332 = arith.constant 0 : index
    %402 = vector.load %arg7[%401, %c0_330, %c0_331, %c0_332] : memref<2x8x8x128xf32, #tpu.memory_space<vmem>>, vector<1x1x8x128xf32>
    %403 = vector.shape_cast %402 : vector<1x1x8x128xf32> to vector<8x128xf32>
    %404 = vector.broadcast %400 : vector<8x1xf32> to vector<8x128xf32>
    %405 = arith.mulf %404, %403 : vector<8x128xf32>
    %406 = arith.addf %399, %405 : vector<8x128xf32>
    %407 = vector.extract_strided_slice %398 {offsets = [0, 1], sizes = [8, 1], strides = [1, 1]} : vector<8x8xf32> to vector<8x1xf32>
    %408 = arith.index_cast %9 : i32 to index
    %c1 = arith.constant 1 : index
    %c0_333 = arith.constant 0 : index
    %c0_334 = arith.constant 0 : index
    %409 = vector.load %arg7[%408, %c1, %c0_333, %c0_334] : memref<2x8x8x128xf32, #tpu.memory_space<vmem>>, vector<1x1x8x128xf32>
    %410 = vector.shape_cast %409 : vector<1x1x8x128xf32> to vector<8x128xf32>
    %411 = vector.broadcast %407 : vector<8x1xf32> to vector<8x128xf32>
    %412 = arith.mulf %411, %410 : vector<8x128xf32>
    %413 = arith.addf %406, %412 : vector<8x128xf32>
    %414 = vector.extract_strided_slice %398 {offsets = [0, 2], sizes = [8, 1], strides = [1, 1]} : vector<8x8xf32> to vector<8x1xf32>
    %415 = arith.index_cast %9 : i32 to index
    %c2 = arith.constant 2 : index
    %c0_335 = arith.constant 0 : index
    %c0_336 = arith.constant 0 : index
    %416 = vector.load %arg7[%415, %c2, %c0_335, %c0_336] : memref<2x8x8x128xf32, #tpu.memory_space<vmem>>, vector<1x1x8x128xf32>
    %417 = vector.shape_cast %416 : vector<1x1x8x128xf32> to vector<8x128xf32>
    %418 = vector.broadcast %414 : vector<8x1xf32> to vector<8x128xf32>
    %419 = arith.mulf %418, %417 : vector<8x128xf32>
    %420 = arith.addf %413, %419 : vector<8x128xf32>
    %421 = vector.extract_strided_slice %398 {offsets = [0, 3], sizes = [8, 1], strides = [1, 1]} : vector<8x8xf32> to vector<8x1xf32>
    %422 = arith.index_cast %9 : i32 to index
    %c3 = arith.constant 3 : index
    %c0_337 = arith.constant 0 : index
    %c0_338 = arith.constant 0 : index
    %423 = vector.load %arg7[%422, %c3, %c0_337, %c0_338] : memref<2x8x8x128xf32, #tpu.memory_space<vmem>>, vector<1x1x8x128xf32>
    %424 = vector.shape_cast %423 : vector<1x1x8x128xf32> to vector<8x128xf32>
    %425 = vector.broadcast %421 : vector<8x1xf32> to vector<8x128xf32>
    %426 = arith.mulf %425, %424 : vector<8x128xf32>
    %427 = arith.addf %420, %426 : vector<8x128xf32>
    %428 = vector.extract_strided_slice %398 {offsets = [0, 4], sizes = [8, 1], strides = [1, 1]} : vector<8x8xf32> to vector<8x1xf32>
    %429 = arith.index_cast %9 : i32 to index
    %c4 = arith.constant 4 : index
    %c0_339 = arith.constant 0 : index
    %c0_340 = arith.constant 0 : index
    %430 = vector.load %arg7[%429, %c4, %c0_339, %c0_340] : memref<2x8x8x128xf32, #tpu.memory_space<vmem>>, vector<1x1x8x128xf32>
    %431 = vector.shape_cast %430 : vector<1x1x8x128xf32> to vector<8x128xf32>
    %432 = vector.broadcast %428 : vector<8x1xf32> to vector<8x128xf32>
    %433 = arith.mulf %432, %431 : vector<8x128xf32>
    %434 = arith.addf %427, %433 : vector<8x128xf32>
    %435 = vector.extract_strided_slice %398 {offsets = [0, 5], sizes = [8, 1], strides = [1, 1]} : vector<8x8xf32> to vector<8x1xf32>
    %436 = arith.index_cast %9 : i32 to index
    %c5 = arith.constant 5 : index
    %c0_341 = arith.constant 0 : index
    %c0_342 = arith.constant 0 : index
    %437 = vector.load %arg7[%436, %c5, %c0_341, %c0_342] : memref<2x8x8x128xf32, #tpu.memory_space<vmem>>, vector<1x1x8x128xf32>
    %438 = vector.shape_cast %437 : vector<1x1x8x128xf32> to vector<8x128xf32>
    %439 = vector.broadcast %435 : vector<8x1xf32> to vector<8x128xf32>
    %440 = arith.mulf %439, %438 : vector<8x128xf32>
    %441 = arith.addf %434, %440 : vector<8x128xf32>
    %442 = vector.extract_strided_slice %398 {offsets = [0, 6], sizes = [8, 1], strides = [1, 1]} : vector<8x8xf32> to vector<8x1xf32>
    %443 = arith.index_cast %9 : i32 to index
    %c6 = arith.constant 6 : index
    %c0_343 = arith.constant 0 : index
    %c0_344 = arith.constant 0 : index
    %444 = vector.load %arg7[%443, %c6, %c0_343, %c0_344] : memref<2x8x8x128xf32, #tpu.memory_space<vmem>>, vector<1x1x8x128xf32>
    %445 = vector.shape_cast %444 : vector<1x1x8x128xf32> to vector<8x128xf32>
    %446 = vector.broadcast %442 : vector<8x1xf32> to vector<8x128xf32>
    %447 = arith.mulf %446, %445 : vector<8x128xf32>
    %448 = arith.addf %441, %447 : vector<8x128xf32>
    %449 = vector.extract_strided_slice %398 {offsets = [0, 7], sizes = [8, 1], strides = [1, 1]} : vector<8x8xf32> to vector<8x1xf32>
    %450 = arith.index_cast %9 : i32 to index
    %c7 = arith.constant 7 : index
    %c0_345 = arith.constant 0 : index
    %c0_346 = arith.constant 0 : index
    %451 = vector.load %arg7[%450, %c7, %c0_345, %c0_346] : memref<2x8x8x128xf32, #tpu.memory_space<vmem>>, vector<1x1x8x128xf32>
    %452 = vector.shape_cast %451 : vector<1x1x8x128xf32> to vector<8x128xf32>
    %453 = vector.broadcast %449 : vector<8x1xf32> to vector<8x128xf32>
    %454 = arith.mulf %453, %452 : vector<8x128xf32>
    %455 = arith.addf %448, %454 : vector<8x128xf32>
    %c0_347 = arith.constant 0 : index
    %c0_348 = arith.constant 0 : index
    %456 = vector.load %arg6[%c0_347, %c0_348] : memref<8x128xf32, #tpu.memory_space<vmem>>, vector<8x128xf32>
    tpu.vector_store %arg6[%c0_347, %c0_348], %455 {strides = array<i32>} : memref<8x128xf32, #tpu.memory_space<vmem>>, vector<8x128xf32>,
    return
  }
  func.func @transform_0(%arg0: i32, %arg1: i32, %arg2: memref<64xi32, #tpu.memory_space<smem>>) -> (i32, i32, i32, i32) {
    %c0_i32 = arith.constant 0 : i32
    %c0_i32_0 = arith.constant 0 : i32
    %c0_i32_1 = arith.constant 0 : i32
    return %arg0, %arg1, %c0_i32, %c0_i32_0 : i32, i32, i32, i32
  }
  func.func @transform_1(%arg0: i32, %arg1: i32, %arg2: memref<64xi32, #tpu.memory_space<smem>>) -> (i32, i32) {
    %c0_i32 = arith.constant 0 : i32
    %c0_i32_0 = arith.constant 0 : i32
    %c0_i32_1 = arith.constant 0 : i32
    return %c0_i32, %c0_i32_0 : i32, i32
  }
  func.func @transform_3(%arg0: i32, %arg1: i32, %arg2: memref<64xi32, #tpu.memory_space<smem>>) -> (i32, i32) {
    %c0_i32 = arith.constant 0 : i32
    %c0_i32_0 = arith.constant 0 : i32
    return %arg0, %c0_i32 : i32, i32
  }
}

</mosaic_0001>

<bundles_post_ra>
// kernel: tpu_custom_call.1
= control target key start
LH: loop header
LB: loop body
LE: loop exit
PB: predicated region body
PF: predicated region fallthrough
CT: control target
= control target key end

     0   :  { %s4436_s0 = inlined_call_operand.hbm [shape: s32[64], index: 0, kind: input, shape index: {}]   ;;  %s4437_s1 = inlined_call_operand.hbm [shape: f32[1,1,8,8], index: 1, kind: input, shape index: {}]   ;;  %s4438_s2 = inlined_call_operand.vmem [shape: f32[1,128], index: 2, kind: input, shape index: {}]   ;;  %s4439_s3 = inlined_call_operand.hbm [shape: f32[64,128], index: 3, kind: input, shape index: {}]   ;;  %s4440_s4 = inlined_call_operand.hbm [shape: f32[8,128], index: 4, kind: output, shape index: {}]  }
   0x1   :  { %s1680_s17 = scalar_lea.hbm %s4436_s0, 16 }
   0x2   :  { %p1681_p0 = scmp.ne.s32.totalorder %s4436_s0, %s1680_s17  ;;  %p1684_p1 = scmp.lt.u32.totalorder %s1680_s17, %s4436_s0 }
   0x4   :  { %p1686_p2 = pnand %p1684_p1, %p1681_p0 }
   0x6   :  { %1689 = shalt.err (!%p1686_p2)  }
   0x7   :  { %s3278_s22 = smov [#allocation5]  }
   0x8   :  { %10 = dma.hbm_to_smem %s4436_s0, 16, %s3278_s22, [#allocation4] }
   0x9   :  { %3270 = dma.done.wait [#allocation4], 16 }
   0xa   :  { %3271 = vsyncadd [#allocation4], 4294967280 }
   0xb   :  { %12 = sfence }
   0xc   :  { %13 = vsyncpa [#allocation7], 0 }
   0xd   :  { %14 = vsyncpa [#allocation8], 0  ;;  %s3279_s25 = smov [#allocation6]   ;;  %s1690_s29 = scalar_lea.hbm %s4437_s1, 128 }
   0xe   :  { %s21_s26 = sshll.u32 %s3279_s25, 4  ;;  %p1691_p3 = scmp.ne.s32.totalorder %s4437_s1, %s1690_s29  ;;  %s22_s26 = int_to_ptr.vmem [resolvable:$true] %s21_s26 }
   0xf   :  { %p1694_p4 = scmp.lt.u32.totalorder %s1690_s29, %s4437_s1 }
  0x11   :  { %p1696_p5 = pnand %p1694_p4, %p1691_p3 }
  0x13   :  { %1699 = shalt.err (!%p1696_p5)
}
  0x14   :  { %s1700_s0 = scalar_lea.vmem %s22_s26, 128  ;;  %p1705_p7 = scmp.lt.s32.totalorder %s22_s26, %s22_s26 }
  0x15   :  { %p1701_p6 = scmp.ne.s32.totalorder %s22_s26, %s1700_s0  ;;  %p1706_p8 = scmp.lt.s32.totalorder %s1700_s0, %s1700_s0 }
  0x17   :  { %p1707_p9 = por %p1706_p8, %p1705_p7 }
  0x19   :  { %p1708_p10 = pnand %p1707_p9, %p1701_p6 }
  0x1b   :  { %1711 = shalt.err (!%p1708_p10)
}
  0x1c   :  { %24 = dma.hbm_to_vmem [thread:$0]  %s4437_s1, 128, %s22_s26, [#allocation7]  }
  0x1d   :  { %3272 = dma.done.wait [#allocation7], 128  }
  0x1e   :  { %3273 = vsyncadd [#allocation7], 4294967168  ;;  %s44_s10 = sld [smem:[#allocation5]]  ;;  %s3280_s11 = smov [#allocation2]  }
  0x1f   :  { %s54_s12 = sshll.u32 %s3280_s11, 4  ;;  %s3404_s13 = sld [smem:[#allocation5 + $0x1]]  ;;  %s3402_s12 = int_to_ptr.vmem [resolvable:$true] %s54_s12 }
  0x20   :  { %s3281_s14 = smov [#allocation2 + $0x8]   ;;  %s3406_s16 = sld [smem:[#allocation5 + $0x2]] }
  0x21   :  { %s70_s15 = sshll.u32 %s3281_s14, 4  ;;  %s3282_s17 = smov [#allocation2 + $0x10]   ;;  %s3408_s15 = int_to_ptr.vmem [resolvable:$true] %s70_s15 }
  0x22   :  { %s86_s18 = sshll.u32 %s3282_s17, 4  ;;  %s3410_s19 = sld [smem:[#allocation5 + $0x3]]  ;;  %s3412_s18 = int_to_ptr.vmem [resolvable:$true] %s86_s18 }
  0x23   :  { %s3283_s20 = smov [#allocation2 + $0x18]   ;;  %s3423_s29 = scalar_lea.hbm %s4439_s3, 1024 }
  0x24   :  { %s1466_s1 = sshll.u32 %s44_s10, 4  ;;  %s3414_s21 = sshll.u32 %s3283_s20, 4  ;;  %s103_s21 = int_to_ptr.vmem [resolvable:$true] %s3414_s21 }
  0x25   :  { %s46_s24 = scalar_lea.hbm %s4439_s3, %s1466_s1  ;;  %s1468_s25 = sshll.u32 %s3404_s13, 4 }
  0x26   :  { %s1712_s26 = scalar_lea.hbm %s46_s24, 16  ;;  %p1715_p12 = scmp.lt.u32.totalorder %s46_s24, %s4439_s3 }
  0x27   :  { %p1713_p11 = scmp.ne.s32.totalorder %s46_s24, %s1712_s26  ;;  %p1716_p13 = scmp.lt.u32.totalorder %s3423_s29, %s1712_s26 }
  0x28   :  { %p1718_p1 = scmp.lt.u32.totalorder %s1712_s26, %s46_s24 }
  0x29   :  { %p1717_p0 = por %p1716_p13, %p1715_p12 }
  0x2b   :  { %p1719_p2 = por %p1718_p1, %p1717_p0 }
  0x2d   :  { %p1720_p3 = pnand %p1719_p2, %p1713_p11 }
  0x2f   :  { %1723 = shalt.err (!%p1720_p3)  }
  0x30   :  { %s1724_s6 = scalar_lea.vmem %s3402_s12, 16  ;;  %s3432_s7 = scalar_lea.vmem %s3402_s12, 2048 }
  0x31   :  { %p1725_p4 = scmp.ne.s32.totalorder %s3402_s12, %s1724_s6  ;;  %p1729_p5 = scmp.lt.s32.totalorder %s3402_s12, %s3402_s12 }
  0x32   :  { %p1730_p6 = scmp.lt.s32.totalorder %s3432_s7, %s1724_s6 }
  0x34   :  { %p1731_p7 = por %p1730_p6, %p1729_p5 }
  0x36   :  { %p1732_p8 = pnand %p1731_p7, %p1725_p4 }
  0x38   :  { %1735 = shalt.err (!%p1732_p8)  }
  0x39   :  { %57 = dma.hbm_to_vmem [thread:$0]  %s46_s24, 16, %s3402_s12, [#allocation3] }
  0x3a   :  { %s61_s9 = scalar_lea.hbm %s4439_s3, %s1468_s25  ;;  %s1470_s10 = sshll.u32 %s3406_s16, 4 }
  0x3b   :  { %s1736_s11 = scalar_lea.hbm %s61_s9, 16  ;;  %p1739_p10 = scmp.lt.u32.totalorder %s61_s9, %s4439_s3 }
  0x3c   :  { %p1737_p9 = scmp.ne.s32.totalorder %s61_s9, %s1736_s11  ;;  %p1740_p11 = scmp.lt.u32.totalorder %s3423_s29, %s1736_s11 }
  0x3d   :  { %p1742_p13 = scmp.lt.u32.totalorder %s1736_s11, %s61_s9 }
  0x3e   :  { %p1741_p12 = por %p1740_p11, %p1739_p10 }
  0x40   :  { %p1743_p0 = por %p1742_p13, %p1741_p12 }
  0x42   :  { %p1744_p1 = pnand %p1743_p0, %p1737_p9 }
  0x44   :  { %1747 = shalt.err (!%p1744_p1)  }
  0x45   :  { %s1748_s17 = scalar_lea.vmem %s3408_s15, 16  ;;  %p1753_p3 = scmp.lt.s32.totalorder %s3408_s15, %s3402_s12 }
  0x46   :  { %p1749_p2 = scmp.ne.s32.totalorder %s3408_s15, %s1748_s17  ;;  %p1754_p4 = scmp.lt.s32.totalorder %s3432_s7, %s1748_s17 }
  0x48   :  { %p1755_p5 = por %p1754_p4, %p1753_p3 }
  0x4a   :  { %p1756_p6 = pnand %p1755_p5, %p1749_p2 }
  0x4c   :  { %1759 = shalt.err (!%p1756_p6)  }
  0x4d   :  { %73 = dma.hbm_to_vmem [thread:$0]  %s61_s9, 16, %s3408_s15, [#allocation3] }
  0x4e   :  { %s77_s20 = scalar_lea.hbm %s4439_s3, %s1470_s10  ;;  %s1472_s22 = sshll.u32 %s3410_s19, 4 }
  0x4f   :  { %s1760_s23 = scalar_lea.hbm %s77_s20, 16  ;;  %p1763_p8 = scmp.lt.u32.totalorder %s77_s20, %s4439_s3 }
  0x50   :  { %p1761_p7 = scmp.ne.s32.totalorder %s77_s20, %s1760_s23  ;;  %p1764_p9 = scmp.lt.u32.totalorder %s3423_s29, %s1760_s23 }
  0x51   :  { %p1766_p11 = scmp.lt.u32.totalorder %s1760_s23, %s77_s20 }
  0x52   :  { %p1765_p10 = por %p1764_p9, %p1763_p8 }
  0x54   :  { %p1767_p12 = por %p1766_p11, %p1765_p10 }
  0x56   :  { %p1768_p13 = pnand %p1767_p12, %p1761_p7 }
  0x58   :  { %1771 = shalt.err (!%p1768_p13)  }
  0x59   :  { %s1772_s15 = scalar_lea.vmem %s3412_s18, 16  ;;  %p1777_p1 = scmp.lt.s32.totalorder %s3412_s18, %s3402_s12 }
  0x5a   :  { %p1773_p0 = scmp.ne.s32.totalorder %s3412_s18, %s1772_s15  ;;  %p1778_p2 = scmp.lt.s32.totalorder %s3432_s7, %s1772_s15 }
  0x5c   :  { %p1779_p3 = por %p1778_p2, %p1777_p1 }
  0x5e   :  { %p1780_p4 = pnand %p1779_p3, %p1773_p0 }
  0x60   :  { %1783 = shalt.err (!%p1780_p4)  }
  0x61   :  { %89 = dma.hbm_to_vmem [thread:$0]  %s77_s20, 16, %s3412_s18, [#allocation3] }
  0x62   :  { %s93_s27 = scalar_lea.hbm %s4439_s3, %s1472_s22 }
  0x63   :  { %s1784_s28 = scalar_lea.hbm %s93_s27, 16  ;;  %p1787_p6 = scmp.lt.u32.totalorder %s93_s27, %s4439_s3 }
  0x64   :  { %p1785_p5 = scmp.ne.s32.totalorder %s93_s27, %s1784_s28  ;;  %p1788_p7 = scmp.lt.u32.totalorder %s3423_s29, %s1784_s28 }
  0x65   :  { %p1790_p9 = scmp.lt.u32.totalorder %s1784_s28, %s93_s27 }
  0x66   :  { %p1789_p8 = por %p1788_p7, %p1787_p6 }
  0x68   :  { %p1791_p10 = por %p1790_p9, %p1789_p8 }
  0x6a   :  { %p1792_p11 = pnand %p1791_p10, %p1785_p5 }
  0x6c   :  { %1795 = shalt.err (!%p1792_p11)  }
  0x6d   :  { %s1796_s6 = scalar_lea.vmem %s103_s21, 16  ;;  %p1801_p13 = scmp.lt.s32.totalorder %s103_s21, %s3402_s12 }
  0x6e   :  { %p1797_p12 = scmp.ne.s32.totalorder %s103_s21, %s1796_s6  ;;  %p1802_p0 = scmp.lt.s32.totalorder %s3432_s7, %s1796_s6 }
  0x70   :  { %p1803_p1 = por %p1802_p0, %p1801_p13 }
  0x72   :  { %p1804_p2 = pnand %p1803_p1, %p1797_p12 }
  0x74   :  { %1807 = shalt.err (!%p1804_p2)  }
  0x75   :  { %105 = dma.hbm_to_vmem [thread:$0]  %s93_s27, 16, %s103_s21, [#allocation3] }
  0x76   :  { %s1473_s18 = sld [smem:[#allocation5 + $0x4]]  ;;  %s3284_s0 = smov [#allocation2 + $0x20]  }
  0x77   :  { %s118_s8 = sshll.u32 %s3284_s0, 4  ;;  %s3476_s9 = sld [smem:[#allocation5 + $0x5]]  ;;  %s119_s8 = int_to_ptr.vmem [resolvable:$true] %s118_s8 }
  0x78   :  { %s3285_s10 = smov [#allocation2 + $0x28]   ;;  %s3478_s13 = sld [smem:[#allocation5 + $0x6]] }
  0x79   :  { %s134_s11 = sshll.u32 %s3285_s10, 4  ;;  %s3286_s14 = smov [#allocation2 + $0x30]   ;;  %s3480_s11 = int_to_ptr.vmem [resolvable:$true] %s134_s11 }
  0x7a   :  { %s150_s17 = sshll.u32 %s3286_s14, 4  ;;  %s3482_s16 = sld [smem:[#allocation5 + $0x7]]  ;;  %s3484_s17 = int_to_ptr.vmem [resolvable:$true] %s150_s17 }
  0x7c   :  { %s1474_s1 = sshll.u32 %s1473_s18, 4 }
  0x7d   :  { %s109_s22 = scalar_lea.hbm %s4439_s3, %s1474_s1  ;;  %s1476_s23 = sshll.u32 %s3476_s9, 4 }
  0x7e   :  { %s1808_s24 = scalar_lea.hbm %s109_s22, 16  ;;  %p1811_p4 = scmp.lt.u32.totalorder %s109_s22, %s4439_s3 }
  0x7f   :  { %p1809_p3 = scmp.ne.s32.totalorder %s109_s22, %s1808_s24  ;;  %p1812_p5 = scmp.lt.u32.totalorder %s3423_s29, %s1808_s24 }
  0x80   :  { %p1814_p7 = scmp.lt.u32.totalorder %s1808_s24, %s109_s22 }
  0x81   :  { %p1813_p6 = por %p1812_p5, %p1811_p4 }
  0x83   :  { %p1815_p8 = por %p1814_p7, %p1813_p6 }
  0x85   :  { %p1816_p9 = pnand %p1815_p8, %p1809_p3 }
  0x87   :  { %1819 = shalt.err (!%p1816_p9)  }
  0x88   :  { %s1820_s19 = scalar_lea.vmem %s119_s8, 16  ;;  %p1825_p11 = scmp.lt.s32.totalorder %s119_s8, %s3402_s12 }
  0x89   :  { %p1821_p10 = scmp.ne.s32.totalorder %s119_s8, %s1820_s19  ;;  %p1826_p12 = scmp.lt.s32.totalorder %s3432_s7, %s1820_s19 }
  0x8b   :  { %p1827_p13 = por %p1826_p12, %p1825_p11 }
  0x8d   :  { %p1828_p0 = pnand %p1827_p13, %p1821_p10 }
  0x8f   :  { %1831 = shalt.err (!%p1828_p0)  }
  0x90   :  { %121 = dma.hbm_to_vmem [thread:$0]  %s109_s22, 16, %s119_s8, [#allocation3] }
  0x91   :  { %s125_s28 = scalar_lea.hbm %s4439_s3, %s1476_s23  ;;  %s1478_s30 = sshll.u32 %s3478_s13, 4 }
  0x92   :  { %s1832_s5 = scalar_lea.hbm %s125_s28, 16  ;;  %p1835_p2 = scmp.lt.u32.totalorder %s125_s28, %s4439_s3 }
  0x93   :  { %p1833_p1 = scmp.ne.s32.totalorder %s125_s28, %s1832_s5  ;;  %p1836_p3 = scmp.lt.u32.totalorder %s3423_s29, %s1832_s5 }
  0x94   :  { %p1838_p5 = scmp.lt.u32.totalorder %s1832_s5, %s125_s28 }
  0x95   :  { %p1837_p4 = por %p1836_p3, %p1835_p2 }
  0x97   :  { %p1839_p6 = por %p1838_p5, %p1837_p4 }
  0x99   :  { %p1840_p7 = pnand %p1839_p6, %p1833_p1 }
  0x9b   :  { %1843 = shalt.err (!%p1840_p7)  }
  0x9c   :  { %s1844_s0 = scalar_lea.vmem %s3480_s11, 16  ;;  %p1849_p9 = scmp.lt.s32.totalorder %s3480_s11, %s3402_s12 }
  0x9d   :  { %p1845_p8 = scmp.ne.s32.totalorder %s3480_s11, %s1844_s0  ;;  %p1850_p10 = scmp.lt.s32.totalorder %s3432_s7, %s1844_s0 }
  0x9f   :  { %p1851_p11 = por %p1850_p10, %p1849_p9 }
  0xa1   :  { %p1852_p12 = pnand %p1851_p11, %p1845_p8 }
  0xa3   :  { %1855 = shalt.err (!%p1852_p12)  }
  0xa4   :  { %137 = dma.hbm_to_vmem [thread:$0]  %s125_s28, 16, %s3480_s11, [#allocation3] }
  0xa5   :  { %s141_s10 = scalar_lea.hbm %s4439_s3, %s1478_s30  ;;  %s1480_s13 = sshll.u32 %s3482_s16, 4 }
  0xa6   :  { %s1856_s14 = scalar_lea.hbm %s141_s10, 16  ;;  %p1859_p0 = scmp.lt.u32.totalorder %s141_s10, %s4439_s3 }
  0xa7   :  { %p1857_p13 = scmp.ne.s32.totalorder %s141_s10, %s1856_s14  ;;  %p1860_p1 = scmp.lt.u32.totalorder %s3423_s29, %s1856_s14 }
  0xa8   :  { %p1862_p3 = scmp.lt.u32.totalorder %s1856_s14, %s141_s10 }
  0xa9   :  { %p1861_p2 = por %p1860_p1, %p1859_p0 }
  0xab   :  { %p1863_p4 = por %p1862_p3, %p1861_p2 }
  0xad   :  { %p1864_p5 = pnand %p1863_p4, %p1857_p13 }
  0xaf   :  { %1867 = shalt.err (!%p1864_p5)  }
  0xb0   :  { %s1868_s11 = scalar_lea.vmem %s3484_s17, 16  ;;  %p1873_p7 = scmp.lt.s32.totalorder %s3484_s17, %s3402_s12 }
  0xb1   :  { %p1869_p6 = scmp.ne.s32.totalorder %s3484_s17, %s1868_s11  ;;  %p1874_p8 = scmp.lt.s32.totalorder %s3432_s7, %s1868_s11 }
  0xb3   :  { %p1875_p9 = por %p1874_p8, %p1873_p7 }
  0xb5   :  { %p1876_p10 = pnand %p1875_p9, %p1869_p6 }
  0xb7   :  { %1879 = shalt.err (!%p1876_p10)  }
  0xb8   :  { %153 = dma.hbm_to_vmem [thread:$0]  %s141_s10, 16, %s3484_s17, [#allocation3] }
  0xb9   :  { %s157_s22 = scalar_lea.hbm %s4439_s3, %s1480_s13  ;;  %s3287_s23 = smov [#allocation2 + $0x38]  }
  0xba   :  { %s166_s24 = sshll.u32 %s3287_s23, 4  ;;  %s3527_s25 = sld [smem:[#allocation5 + $0x8]]  ;;  %s167_s24 = int_to_ptr.vmem [resolvable:$true] %s166_s24 }
  0xbb   :  { %s1880_s15 = scalar_lea.hbm %s157_s22, 16  ;;  %p1883_p12 = scmp.lt.u32.totalorder %s157_s22, %s4439_s3 }
  0xbc   :  { %p1881_p11 = scmp.ne.s32.totalorder %s157_s22, %s1880_s15  ;;  %p1884_p13 = scmp.lt.u32.totalorder %s3423_s29, %s1880_s15 }
  0xbd   :  { %p1886_p1 = scmp.lt.u32.totalorder %s1880_s15, %s157_s22 }
  0xbe   :  { %p1885_p0 = por %p1884_p13, %p1883_p12 }
  0xc0   :  { %p1887_p2 = por %p1886_p1, %p1885_p0 }
  0xc2   :  { %p1888_p3 = pnand %p1887_p2, %p1881_p11 }
  0xc4   :  { %1891 = shalt.err (!%p1888_p3)  }
  0xc5   :  { %s1892_s17 = scalar_lea.vmem %s167_s24, 16  ;;  %p1897_p5 = scmp.lt.s32.totalorder %s167_s24, %s3402_s12 }
  0xc6   :  { %p1893_p4 = scmp.ne.s32.totalorder %s167_s24, %s1892_s17  ;;  %p1898_p6 = scmp.lt.s32.totalorder %s3432_s7, %s1892_s17 }
  0xc8   :  { %p1899_p7 = por %p1898_p6, %p1897_p5 }
  0xca   :  { %p1900_p8 = pnand %p1899_p7, %p1893_p4 }
  0xcc   :  { %1903 = shalt.err (!%p1900_p8)  }
  0xcd   :  { %169 = dma.hbm_to_vmem [thread:$0]  %s157_s22, 16, %s167_s24, [#allocation3] }
  0xce   :  { %s3288_s27 = smov [#allocation2 + $0x1]   ;;  %s3535_s30 = sld [smem:[#allocation5 + $0x9]] }
  0xcf   :  { %s183_s28 = sshll.u32 %s3288_s27, 4  ;;  %s3289_s5 = smov [#allocation2 + $0x9]   ;;  %s184_s28 = int_to_ptr.vmem [resolvable:$true] %s183_s28 }
  0xd0   :  { %s199_s6 = sshll.u32 %s3289_s5, 4  ;;  %s3537_s18 = sld [smem:[#allocation5 + $0xa]]  ;;  %s3540_s6 = int_to_ptr.vmem [resolvable:$true] %s199_s6 }
  0xd1   :  { %s1482_s0 = sshll.u32 %s3527_s25, 4 }
  0xd2   :  { %s174_s10 = scalar_lea.hbm %s4439_s3, %s1482_s0 }
  0xd3   :  { %s1904_s13 = scalar_lea.hbm %s174_s10, 16  ;;  %p1907_p10 = scmp.lt.u32.totalorder %s174_s10, %s4439_s3 }
  0xd4   :  { %p1905_p9 = scmp.ne.s32.totalorder %s174_s10, %s1904_s13  ;;  %p1908_p11 = scmp.lt.u32.totalorder %s3423_s29, %s1904_s13 }
  0xd5   :  { %p1910_p13 = scmp.lt.u32.totalorder %s1904_s13, %s174_s10 }
  0xd6   :  { %p1909_p12 = por %p1908_p11, %p1907_p10 }
  0xd8   :  { %p1911_p0 = por %p1910_p13, %p1909_p12 }
  0xda   :  { %p1912_p1 = pnand %p1911_p0, %p1905_p9 }
  0xdc   :  { %1915 = shalt.err (!%p1912_p1)  }
  0xdd   :  { %s1916_s21 = scalar_lea.vmem %s184_s28, 16  ;;  %p1921_p3 = scmp.lt.s32.totalorder %s184_s28, %s3402_s12 }
  0xde   :  { %p1917_p2 = scmp.ne.s32.totalorder %s184_s28, %s1916_s21  ;;  %p1922_p4 = scmp.lt.s32.totalorder %s3432_s7, %s1916_s21 }
  0xe0   :  { %p1923_p5 = por %p1922_p4, %p1921_p3 }
  0xe2   :  { %p1924_p6 = pnand %p1923_p5, %p1917_p2 }
  0xe4   :  { %1927 = shalt.err (!%p1924_p6)  }
  0xe5   :  { %186 = dma.hbm_to_vmem [thread:$0]  %s174_s10, 16, %s184_s28, [#allocation3] }
  0xe6   :  { %s1484_s11 = sshll.u32 %s3535_s30, 4  ;;  %s3290_s16 = smov [#allocation2 + $0x11]  }
  0xe7   :  { %s215_s20 = sshll.u32 %s3290_s16, 4  ;;  %s190_s24 = scalar_lea.hbm %s4439_s3, %s1484_s11  ;;  %s3555_s20 = int_to_ptr.vmem [resolvable:$true] %s215_s20 }
  0xe8   :  { %s1928_s25 = scalar_lea.hbm %s190_s24, 16  ;;  %p1931_p8 = scmp.lt.u32.totalorder %s190_s24, %s4439_s3 }
  0xe9   :  { %p1929_p7 = scmp.ne.s32.totalorder %s190_s24, %s1928_s25  ;;  %p1932_p9 = scmp.lt.u32.totalorder %s3423_s29, %s1928_s25 }
  0xea   :  { %p1934_p11 = scmp.lt.u32.totalorder %s1928_s25, %s190_s24 }
  0xeb   :  { %p1933_p10 = por %p1932_p9, %p1931_p8 }
  0xed   :  { %p1935_p12 = por %p1934_p11, %p1933_p10 }
  0xef   :  { %p1936_p13 = pnand %p1935_p12, %p1929_p7 }
  0xf1   :  { %1939 = shalt.err (!%p1936_p13)  }
  0xf2   :  { %s1940_s26 = scalar_lea.vmem %s3540_s6, 16  ;;  %p1945_p1 = scmp.lt.s32.totalorder %s3540_s6, %s3402_s12 }
  0xf3   :  { %p1941_p0 = scmp.ne.s32.totalorder %s3540_s6, %s1940_s26  ;;  %p1946_p2 = scmp.lt.s32.totalorder %s3432_s7, %s1940_s26 }
  0xf5   :  { %p1947_p3 = por %p1946_p2, %p1945_p1 }
  0xf7   :  { %p1948_p4 = pnand %p1947_p3, %p1941_p0 }
  0xf9   :  { %1951 = shalt.err (!%p1948_p4)  }
  0xfa   :  { %202 = dma.hbm_to_vmem [thread:$0]  %s190_s24, 16, %s3540_s6, [#allocation3] }
  0xfb   :  { %s1486_s17 = sshll.u32 %s3537_s18, 4  ;;  %s3568_s27 = sld [smem:[#allocation5 + $0xb]] }
  0xfc   :  { %s206_s5 = scalar_lea.hbm %s4439_s3, %s1486_s17 }
  0xfd   :  { %s1952_s0 = scalar_lea.hbm %s206_s5, 16  ;;  %p1955_p6 = scmp.lt.u32.totalorder %s206_s5, %s4439_s3 }
  0xfe   :  { %p1953_p5 = scmp.ne.s32.totalorder %s206_s5, %s1952_s0  ;;  %p1956_p7 = scmp.lt.u32.totalorder %s3423_s29, %s1952_s0 }
  0xff   :  { %p1958_p9 = scmp.lt.u32.totalorder %s1952_s0, %s206_s5 }
 0x100   :  { %p1957_p8 = por %p1956_p7, %p1955_p6 }
 0x102   :  { %p1959_p10 = por %p1958_p9, %p1957_p8 }
 0x104   :  { %p1960_p11 = pnand %p1959_p10, %p1953_p5 }
 0x106   :  { %1963 = shalt.err (!%p1960_p11)  }
 0x107   :  { %s1964_s6 = scalar_lea.vmem %s3555_s20, 16  ;;  %p1969_p13 = scmp.lt.s32.totalorder %s3555_s20, %s3402_s12 }
 0x108   :  { %p1965_p12 = scmp.ne.s32.totalorder %s3555_s20, %s1964_s6  ;;  %p1970_p0 = scmp.lt.s32.totalorder %s3432_s7, %s1964_s6 }
 0x10a   :  { %p1971_p1 = por %p1970_p0, %p1969_p13 }
 0x10c   :  { %p1972_p2 = pnand %p1971_p1, %p1965_p12 }
 0x10e   :  { %1975 = shalt.err (!%p1972_p2)  }
 0x10f   :  { %218 = dma.hbm_to_vmem [thread:$0]  %s206_s5, 16, %s3555_s20, [#allocation3] }
 0x110   :  { %s3291_s18 = smov [#allocation2 + $0x19]   ;;  %s3583_s13 = sld [smem:[#allocation5 + $0xc]] }
 0x111   :  { %s231_s10 = sshll.u32 %s3291_s18, 4  ;;  %s3292_s14 = smov [#allocation2 + $0x21]   ;;  %s232_s10 = int_to_ptr.vmem [resolvable:$true] %s231_s10 }
 0x112   :  { %s247_s1 = sshll.u32 %s3292_s14, 4  ;;  %s3585_s21 = sld [smem:[#allocation5 + $0xd]]  ;;  %s3588_s1 = int_to_ptr.vmem [resolvable:$true] %s247_s1 }
 0x113   :  { %s1488_s11 = sshll.u32 %s3568_s27, 4 }
 0x114   :  { %s222_s23 = scalar_lea.hbm %s4439_s3, %s1488_s11 }
 0x115   :  { %s1976_s24 = scalar_lea.hbm %s222_s23, 16  ;;  %p1979_p4 = scmp.lt.u32.totalorder %s222_s23, %s4439_s3 }
 0x116   :  { %p1977_p3 = scmp.ne.s32.totalorder %s222_s23, %s1976_s24  ;;  %p1980_p5 = scmp.lt.u32.totalorder %s3423_s29, %s1976_s24 }
 0x117   :  { %p1982_p7 = scmp.lt.u32.totalorder %s1976_s24, %s222_s23 }
 0x118   :  { %p1981_p6 = por %p1980_p5, %p1979_p4 }
 0x11a   :  { %p1983_p8 = por %p1982_p7, %p1981_p6 }
 0x11c   :  { %p1984_p9 = pnand %p1983_p8, %p1977_p3 }
 0x11e   :  { %1987 = shalt.err (!%p1984_p9)  }
 0x11f   :  { %s1988_s15 = scalar_lea.vmem %s232_s10, 16  ;;  %p1993_p11 = scmp.lt.s32.totalorder %s232_s10, %s3402_s12 }
 0x120   :  { %p1989_p10 = scmp.ne.s32.totalorder %s232_s10, %s1988_s15  ;;  %p1994_p12 = scmp.lt.s32.totalorder %s3432_s7, %s1988_s15 }
 0x122   :  { %p1995_p13 = por %p1994_p12, %p1993_p11 }
 0x124   :  { %p1996_p0 = pnand %p1995_p13, %p1989_p10 }
 0x126   :  { %1999 = shalt.err (!%p1996_p0)  }
 0x127   :  { %234 = dma.hbm_to_vmem [thread:$0]  %s222_s23, 16, %s232_s10, [#allocation3] }
 0x128   :  { %s1490_s19 = sshll.u32 %s3583_s13, 4  ;;  %s3293_s26 = smov [#allocation2 + $0x29]  }
 0x129   :  { %s263_s17 = sshll.u32 %s3293_s26, 4  ;;  %s238_s30 = scalar_lea.hbm %s4439_s3, %s1490_s19  ;;  %s3603_s17 = int_to_ptr.vmem [resolvable:$true] %s263_s17 }
 0x12a   :  { %s2000_s5 = scalar_lea.hbm %s238_s30, 16  ;;  %p2003_p2 = scmp.lt.u32.totalorder %s238_s30, %s4439_s3 }
 0x12b   :  { %p2001_p1 = scmp.ne.s32.totalorder %s238_s30, %s2000_s5  ;;  %p2004_p3 = scmp.lt.u32.totalorder %s3423_s29, %s2000_s5 }
 0x12c   :  { %p2006_p5 = scmp.lt.u32.totalorder %s2000_s5, %s238_s30 }
 0x12d   :  { %p2005_p4 = por %p2004_p3, %p2003_p2 }
 0x12f   :  { %p2007_p6 = por %p2006_p5, %p2005_p4 }
 0x131   :  { %p2008_p7 = pnand %p2007_p6, %p2001_p1 }
 0x133   :  { %2011 = shalt.err (!%p2008_p7)  }
 0x134   :  { %s2012_s9 = scalar_lea.vmem %s3588_s1, 16  ;;  %p2017_p9 = scmp.lt.s32.totalorder %s3588_s1, %s3402_s12 }
 0x135   :  { %p2013_p8 = scmp.ne.s32.totalorder %s3588_s1, %s2012_s9  ;;  %p2018_p10 = scmp.lt.s32.totalorder %s3432_s7, %s2012_s9 }
 0x137   :  { %p2019_p11 = por %p2018_p10, %p2017_p9 }
 0x139   :  { %p2020_p12 = pnand %p2019_p11, %p2013_p8 }
 0x13b   :  { %2023 = shalt.err (!%p2020_p12)  }
 0x13c   :  { %250 = dma.hbm_to_vmem [thread:$0]  %s238_s30, 16, %s3588_s1, [#allocation3] }
 0x13d   :  { %s1492_s6 = sshll.u32 %s3585_s21, 4  ;;  %s3616_s18 = sld [smem:[#allocation5 + $0xe]] }
 0x13e   :  { %s254_s14 = scalar_lea.hbm %s4439_s3, %s1492_s6 }
 0x13f   :  { %s2024_s11 = scalar_lea.hbm %s254_s14, 16  ;;  %p2027_p0 = scmp.lt.u32.totalorder %s254_s14, %s4439_s3 }
 0x140   :  { %p2025_p13 = scmp.ne.s32.totalorder %s254_s14, %s2024_s11  ;;  %p2028_p1 = scmp.lt.u32.totalorder %s3423_s29, %s2024_s11 }
 0x141   :  { %p2030_p3 = scmp.lt.u32.totalorder %s2024_s11, %s254_s14 }
 0x142   :  { %p2029_p2 = por %p2028_p1, %p2027_p0 }
 0x144   :  { %p2031_p4 = por %p2030_p3, %p2029_p2 }
 0x146   :  { %p2032_p5 = pnand %p2031_p4, %p2025_p13 }
 0x148   :  { %2035 = shalt.err (!%p2032_p5)  }
 0x149   :  { %s2036_s1 = scalar_lea.vmem %s3603_s17, 16  ;;  %p2041_p7 = scmp.lt.s32.totalorder %s3603_s17, %s3402_s12 }
 0x14a   :  { %p2037_p6 = scmp.ne.s32.totalorder %s3603_s17, %s2036_s1  ;;  %p2042_p8 = scmp.lt.s32.totalorder %s3432_s7, %s2036_s1 }
 0x14c   :  { %p2043_p9 = por %p2042_p8, %p2041_p7 }
 0x14e   :  { %p2044_p10 = pnand %p2043_p9, %p2037_p6 }
 0x150   :  { %2047 = shalt.err (!%p2044_p10)  }
 0x151   :  { %266 = dma.hbm_to_vmem [thread:$0]  %s254_s14, 16, %s3603_s17, [#allocation3] }
 0x152   :  { %s3294_s21 = smov [#allocation2 + $0x31]   ;;  %s3631_s24 = sld [smem:[#allocation5 + $0xf]] }
 0x153   :  { %s279_s23 = sshll.u32 %s3294_s21, 4  ;;  %s3295_s25 = smov [#allocation2 + $0x39]   ;;  %s280_s23 = int_to_ptr.vmem [resolvable:$true] %s279_s23 }
 0x154   :  { %s295_s20 = sshll.u32 %s3295_s25, 4  ;;  %s3633_s15 = sld [smem:[#allocation5 + $0x10]]  ;;  %s3636_s20 = int_to_ptr.vmem [resolvable:$true] %s295_s20 }
 0x155   :  { %s1494_s19 = sshll.u32 %s3616_s18, 4 }
 0x156   :  { %s270_s28 = scalar_lea.hbm %s4439_s3, %s1494_s19 }
 0x157   :  { %s2048_s30 = scalar_lea.hbm %s270_s28, 16  ;;  %p2051_p12 = scmp.lt.u32.totalorder %s270_s28, %s4439_s3 }
 0x158   :  { %p2049_p11 = scmp.ne.s32.totalorder %s270_s28, %s2048_s30  ;;  %p2052_p13 = scmp.lt.u32.totalorder %s3423_s29, %s2048_s30 }
 0x159   :  { %p2054_p1 = scmp.lt.u32.totalorder %s2048_s30, %s270_s28 }
 0x15a   :  { %p2053_p0 = por %p2052_p13, %p2051_p12 }
 0x15c   :  { %p2055_p2 = por %p2054_p1, %p2053_p0 }
 0x15e   :  { %p2056_p3 = pnand %p2055_p2, %p2049_p11 }
 0x160   :  { %2059 = shalt.err (!%p2056_p3)  }
 0x161   :  { %s2060_s0 = scalar_lea.vmem %s280_s23, 16  ;;  %p2065_p5 = scmp.lt.s32.totalorder %s280_s23, %s3402_s12 }
 0x162   :  { %p2061_p4 = scmp.ne.s32.totalorder %s280_s23, %s2060_s0  ;;  %p2066_p6 = scmp.lt.s32.totalorder %s3432_s7, %s2060_s0 }
 0x164   :  { %p2067_p7 = por %p2066_p6, %p2065_p5 }
 0x166   :  { %p2068_p8 = pnand %p2067_p7, %p2061_p4 }
 0x168   :  { %2071 = shalt.err (!%p2068_p8)  }
 0x169   :  { %282 = dma.hbm_to_vmem [thread:$0]  %s270_s28, 16, %s280_s23, [#allocation3] }
 0x16a   :  { %s1496_s8 = sshll.u32 %s3631_s24, 4  ;;  %s3296_s9 = smov [#allocation2 + $0x2]  }
 0x16b   :  { %s312_s6 = sshll.u32 %s3296_s9, 4  ;;  %s286_s13 = scalar_lea.hbm %s4439_s3, %s1496_s8  ;;  %s3651_s6 = int_to_ptr.vmem [resolvable:$true] %s312_s6 }
 0x16c   :  { %s2072_s14 = scalar_lea.hbm %s286_s13, 16  ;;  %p2075_p10 = scmp.lt.u32.totalorder %s286_s13, %s4439_s3 }
 0x16d   :  { %p2073_p9 = scmp.ne.s32.totalorder %s286_s13, %s2072_s14  ;;  %p2076_p11 = scmp.lt.u32.totalorder %s3423_s29, %s2072_s14 }
 0x16e   :  { %p2078_p13 = scmp.lt.u32.totalorder %s2072_s14, %s286_s13 }
 0x16f   :  { %p2077_p12 = por %p2076_p11, %p2075_p10 }
 0x171   :  { %p2079_p0 = por %p2078_p13, %p2077_p12 }
 0x173   :  { %p2080_p1 = pnand %p2079_p0, %p2073_p9 }
 0x175   :  { %2083 = shalt.err (!%p2080_p1)  }
 0x176   :  { %s2084_s22 = scalar_lea.vmem %s3636_s20, 16  ;;  %p2089_p3 = scmp.lt.s32.totalorder %s3636_s20, %s3402_s12 }
 0x177   :  { %p2085_p2 = scmp.ne.s32.totalorder %s3636_s20, %s2084_s22  ;;  %p2090_p4 = scmp.lt.s32.totalorder %s3432_s7, %s2084_s22 }
 0x179   :  { %p2091_p5 = por %p2090_p4, %p2089_p3 }
 0x17b   :  { %p2092_p6 = pnand %p2091_p5, %p2085_p2 }
 0x17d   :  { %2095 = shalt.err (!%p2092_p6)  }
 0x17e   :  { %298 = dma.hbm_to_vmem [thread:$0]  %s286_s13, 16, %s3636_s20, [#allocation3] }
 0x17f   :  { %s1498_s1 = sshll.u32 %s3633_s15, 4  ;;  %s3664_s21 = sld [smem:[#allocation5 + $0x11]] }
 0x180   :  { %s303_s25 = scalar_lea.hbm %s4439_s3, %s1498_s1 }
 0x181   :  { %s2096_s19 = scalar_lea.hbm %s303_s25, 16  ;;  %p2099_p8 = scmp.lt.u32.totalorder %s303_s25, %s4439_s3 }
 0x182   :  { %p2097_p7 = scmp.ne.s32.totalorder %s303_s25, %s2096_s19  ;;  %p2100_p9 = scmp.lt.u32.totalorder %s3423_s29, %s2096_s19 }
 0x183   :  { %p2102_p11 = scmp.lt.u32.totalorder %s2096_s19, %s303_s25 }
 0x184   :  { %p2101_p10 = por %p2100_p9, %p2099_p8 }
 0x186   :  { %p2103_p12 = por %p2102_p11, %p2101_p10 }
 0x188   :  { %p2104_p13 = pnand %p2103_p12, %p2097_p7 }
 0x18a   :  { %2107 = shalt.err (!%p2104_p13)  }
 0x18b   :  { %s2108_s20 = scalar_lea.vmem %s3651_s6, 16  ;;  %p2113_p1 = scmp.lt.s32.totalorder %s3651_s6, %s3402_s12 }
 0x18c   :  { %p2109_p0 = scmp.ne.s32.totalorder %s3651_s6, %s2108_s20  ;;  %p2114_p2 = scmp.lt.s32.totalorder %s3432_s7, %s2108_s20 }
 0x18e   :  { %p2115_p3 = por %p2114_p2, %p2113_p1 }
 0x190   :  { %p2116_p4 = pnand %p2115_p3, %p2109_p0 }
 0x192   :  { %2119 = shalt.err (!%p2116_p4)  }
 0x193   :  { %315 = dma.hbm_to_vmem [thread:$0]  %s303_s25, 16, %s3651_s6, [#allocation3] }
 0x194   :  { %s3297_s15 = smov [#allocation2 + $0xa]   ;;  %s3679_s30 = sld [smem:[#allocation5 + $0x12]] }
 0x195   :  { %s328_s28 = sshll.u32 %s3297_s15, 4  ;;  %s3298_s5 = smov [#allocation2 + $0x12]   ;;  %s329_s28 = int_to_ptr.vmem [resolvable:$true] %s328_s28 }
 0x196   :  { %s344_s17 = sshll.u32 %s3298_s5, 4  ;;  %s3681_s0 = sld [smem:[#allocation5 + $0x13]]  ;;  %s3684_s17 = int_to_ptr.vmem [resolvable:$true] %s344_s17 }
 0x197   :  { %s1500_s8 = sshll.u32 %s3664_s21, 4 }
 0x198   :  { %s319_s10 = scalar_lea.hbm %s4439_s3, %s1500_s8 }
 0x199   :  { %s2120_s13 = scalar_lea.hbm %s319_s10, 16  ;;  %p2123_p6 = scmp.lt.u32.totalorder %s319_s10, %s4439_s3 }
 0x19a   :  { %p2121_p5 = scmp.ne.s32.totalorder %s319_s10, %s2120_s13  ;;  %p2124_p7 = scmp.lt.u32.totalorder %s3423_s29, %s2120_s13 }
 0x19b   :  { %p2126_p9 = scmp.lt.u32.totalorder %s2120_s13, %s319_s10 }
 0x19c   :  { %p2125_p8 = por %p2124_p7, %p2123_p6 }
 0x19e   :  { %p2127_p10 = por %p2126_p9, %p2125_p8 }
 0x1a0   :  { %p2128_p11 = pnand %p2127_p10, %p2121_p5 }
 0x1a2   :  { %2131 = shalt.err (!%p2128_p11)  }
 0x1a3   :  { %s2132_s11 = scalar_lea.vmem %s329_s28, 16  ;;  %p2137_p13 = scmp.lt.s32.totalorder %s329_s28, %s3402_s12 }
 0x1a4   :  { %p2133_p12 = scmp.ne.s32.totalorder %s329_s28, %s2132_s11  ;;  %p2138_p0 = scmp.lt.s32.totalorder %s3432_s7, %s2132_s11 }
 0x1a6   :  { %p2139_p1 = por %p2138_p0, %p2137_p13 }
 0x1a8   :  { %p2140_p2 = pnand %p2139_p1, %p2133_p12 }
 0x1aa   :  { %2143 = shalt.err (!%p2140_p2)  }
 0x1ab   :  { %331 = dma.hbm_to_vmem [thread:$0]  %s319_s10, 16, %s329_s28, [#allocation3] }
 0x1ac   :  { %s1502_s16 = sshll.u32 %s3679_s30, 4  ;;  %s3299_s22 = smov [#allocation2 + $0x1a]  }
 0x1ad   :  { %s360_s1 = sshll.u32 %s3299_s22, 4  ;;  %s335_s24 = scalar_lea.hbm %s4439_s3, %s1502_s16  ;;  %s3699_s1 = int_to_ptr.vmem [resolvable:$true] %s360_s1 }
 0x1ae   :  { %s2144_s25 = scalar_lea.hbm %s335_s24, 16  ;;  %p2147_p4 = scmp.lt.u32.totalorder %s335_s24, %s4439_s3 }
 0x1af   :  { %p2145_p3 = scmp.ne.s32.totalorder %s335_s24, %s2144_s25  ;;  %p2148_p5 = scmp.lt.u32.totalorder %s3423_s29, %s2144_s25 }
 0x1b0   :  { %p2150_p7 = scmp.lt.u32.totalorder %s2144_s25, %s335_s24 }
 0x1b1   :  { %p2149_p6 = por %p2148_p5, %p2147_p4 }
 0x1b3   :  { %p2151_p8 = por %p2150_p7, %p2149_p6 }
 0x1b5   :  { %p2152_p9 = pnand %p2151_p8, %p2145_p3 }
 0x1b7   :  { %2155 = shalt.err (!%p2152_p9)  }
 0x1b8   :  { %s2156_s27 = scalar_lea.vmem %s3684_s17, 16  ;;  %p2161_p11 = scmp.lt.s32.totalorder %s3684_s17, %s3402_s12 }
 0x1b9   :  { %p2157_p10 = scmp.ne.s32.totalorder %s3684_s17, %s2156_s27  ;;  %p2162_p12 = scmp.lt.s32.totalorder %s3432_s7, %s2156_s27 }
 0x1bb   :  { %p2163_p13 = por %p2162_p12, %p2161_p11 }
 0x1bd   :  { %p2164_p0 = pnand %p2163_p13, %p2157_p10 }
 0x1bf   :  { %2167 = shalt.err (!%p2164_p0)  }
 0x1c0   :  { %347 = dma.hbm_to_vmem [thread:$0]  %s335_s24, 16, %s3684_s17, [#allocation3] }
 0x1c1   :  { %s1504_s20 = sshll.u32 %s3681_s0, 4  ;;  %s3712_s15 = sld [smem:[#allocation5 + $0x14]] }
 0x1c2   :  { %s351_s5 = scalar_lea.hbm %s4439_s3, %s1504_s20 }
 0x1c3   :  { %s2168_s8 = scalar_lea.hbm %s351_s5, 16  ;;  %p2171_p2 = scmp.lt.u32.totalorder %s351_s5, %s4439_s3 }
 0x1c4   :  { %p2169_p1 = scmp.ne.s32.totalorder %s351_s5, %s2168_s8  ;;  %p2172_p3 = scmp.lt.u32.totalorder %s3423_s29, %s2168_s8 }
 0x1c5   :  { %p2174_p5 = scmp.lt.u32.totalorder %s2168_s8, %s351_s5 }
 0x1c6   :  { %p2173_p4 = por %p2172_p3, %p2171_p2 }
 0x1c8   :  { %p2175_p6 = por %p2174_p5, %p2173_p4 }
 0x1ca   :  { %p2176_p7 = pnand %p2175_p6, %p2169_p1 }
 0x1cc   :  { %2179 = shalt.err (!%p2176_p7)  }
 0x1cd   :  { %s2180_s17 = scalar_lea.vmem %s3699_s1, 16  ;;  %p2185_p9 = scmp.lt.s32.totalorder %s3699_s1, %s3402_s12 }
 0x1ce   :  { %p2181_p8 = scmp.ne.s32.totalorder %s3699_s1, %s2180_s17  ;;  %p2186_p10 = scmp.lt.s32.totalorder %s3432_s7, %s2180_s17 }
 0x1d0   :  { %p2187_p11 = por %p2186_p10, %p2185_p9 }
 0x1d2   :  { %p2188_p12 = pnand %p2187_p11, %p2181_p8 }
 0x1d4   :  { %2191 = shalt.err (!%p2188_p12)  }
 0x1d5   :  { %363 = dma.hbm_to_vmem [thread:$0]  %s351_s5, 16, %s3699_s1, [#allocation3] }
 0x1d6   :  { %s3300_s0 = smov [#allocation2 + $0x22]   ;;  %s3727_s13 = sld [smem:[#allocation5 + $0x15]] }
 0x1d7   :  { %s376_s10 = sshll.u32 %s3300_s0, 4  ;;  %s3301_s14 = smov [#allocation2 + $0x2a]   ;;  %s377_s10 = int_to_ptr.vmem [resolvable:$true] %s376_s10 }
 0x1d8   :  { %s392_s6 = sshll.u32 %s3301_s14, 4  ;;  %s3729_s11 = sld [smem:[#allocation5 + $0x16]]  ;;  %s3732_s6 = int_to_ptr.vmem [resolvable:$true] %s392_s6 }
 0x1d9   :  { %s1506_s16 = sshll.u32 %s3712_s15, 4 }
 0x1da   :  { %s367_s23 = scalar_lea.hbm %s4439_s3, %s1506_s16 }
 0x1db   :  { %s2192_s24 = scalar_lea.hbm %s367_s23, 16  ;;  %p2195_p0 = scmp.lt.u32.totalorder %s367_s23, %s4439_s3 }
 0x1dc   :  { %p2193_p13 = scmp.ne.s32.totalorder %s367_s23, %s2192_s24  ;;  %p2196_p1 = scmp.lt.u32.totalorder %s3423_s29, %s2192_s24 }
 0x1dd   :  { %p2198_p3 = scmp.lt.u32.totalorder %s2192_s24, %s367_s23 }
 0x1de   :  { %p2197_p2 = por %p2196_p1, %p2195_p0 }
 0x1e0   :  { %p2199_p4 = por %p2198_p3, %p2197_p2 }
 0x1e2   :  { %p2200_p5 = pnand %p2199_p4, %p2193_p13 }
 0x1e4   :  { %2203 = shalt.err (!%p2200_p5)  }
 0x1e5   :  { %s2204_s19 = scalar_lea.vmem %s377_s10, 16  ;;  %p2209_p7 = scmp.lt.s32.totalorder %s377_s10, %s3402_s12 }
 0x1e6   :  { %p2205_p6 = scmp.ne.s32.totalorder %s377_s10, %s2204_s19  ;;  %p2210_p8 = scmp.lt.s32.totalorder %s3432_s7, %s2204_s19 }
 0x1e8   :  { %p2211_p9 = por %p2210_p8, %p2209_p7 }
 0x1ea   :  { %p2212_p10 = pnand %p2211_p9, %p2205_p6 }
 0x1ec   :  { %2215 = shalt.err (!%p2212_p10)  }
 0x1ed   :  { %379 = dma.hbm_to_vmem [thread:$0]  %s367_s23, 16, %s377_s10, [#allocation3] }
 0x1ee   :  { %s1508_s26 = sshll.u32 %s3727_s13, 4  ;;  %s3302_s27 = smov [#allocation2 + $0x32]  }
 0x1ef   :  { %s408_s20 = sshll.u32 %s3302_s27, 4  ;;  %s383_s30 = scalar_lea.hbm %s4439_s3, %s1508_s26  ;;  %s3747_s20 = int_to_ptr.vmem [resolvable:$true] %s408_s20 }
 0x1f0   :  { %s2216_s5 = scalar_lea.hbm %s383_s30, 16  ;;  %p2219_p12 = scmp.lt.u32.totalorder %s383_s30, %s4439_s3 }
 0x1f1   :  { %p2217_p11 = scmp.ne.s32.totalorder %s383_s30, %s2216_s5  ;;  %p2220_p13 = scmp.lt.u32.totalorder %s3423_s29, %s2216_s5 }
 0x1f2   :  { %p2222_p1 = scmp.lt.u32.totalorder %s2216_s5, %s383_s30 }
 0x1f3   :  { %p2221_p0 = por %p2220_p13, %p2219_p12 }
 0x1f5   :  { %p2223_p2 = por %p2222_p1, %p2221_p0 }
 0x1f7   :  { %p2224_p3 = pnand %p2223_p2, %p2217_p11 }
 0x1f9   :  { %2227 = shalt.err (!%p2224_p3)  }
 0x1fa   :  { %s2228_s18 = scalar_lea.vmem %s3732_s6, 16  ;;  %p2233_p5 = scmp.lt.s32.totalorder %s3732_s6, %s3402_s12 }
 0x1fb   :  { %p2229_p4 = scmp.ne.s32.totalorder %s3732_s6, %s2228_s18  ;;  %p2234_p6 = scmp.lt.s32.totalorder %s3432_s7, %s2228_s18 }
 0x1fd   :  { %p2235_p7 = por %p2234_p6, %p2233_p5 }
 0x1ff   :  { %p2236_p8 = pnand %p2235_p7, %p2229_p4 }
 0x201   :  { %2239 = shalt.err (!%p2236_p8)  }
 0x202   :  { %395 = dma.hbm_to_vmem [thread:$0]  %s383_s30, 16, %s3732_s6, [#allocation3] }
 0x203   :  { %s1510_s17 = sshll.u32 %s3729_s11, 4  ;;  %s3760_s0 = sld [smem:[#allocation5 + $0x17]] }
 0x204   :  { %s399_s14 = scalar_lea.hbm %s4439_s3, %s1510_s17 }
 0x205   :  { %s2240_s16 = scalar_lea.hbm %s399_s14, 16  ;;  %p2243_p10 = scmp.lt.u32.totalorder %s399_s14, %s4439_s3 }
 0x206   :  { %p2241_p9 = scmp.ne.s32.totalorder %s399_s14, %s2240_s16  ;;  %p2244_p11 = scmp.lt.u32.totalorder %s3423_s29, %s2240_s16 }
 0x207   :  { %p2246_p13 = scmp.lt.u32.totalorder %s2240_s16, %s399_s14 }
 0x208   :  { %p2245_p12 = por %p2244_p11, %p2243_p10 }
 0x20a   :  { %p2247_p0 = por %p2246_p13, %p2245_p12 }
 0x20c   :  { %p2248_p1 = pnand %p2247_p0, %p2241_p9 }
 0x20e   :  { %2251 = shalt.err (!%p2248_p1)  }
 0x20f   :  { %s2252_s6 = scalar_lea.vmem %s3747_s20, 16  ;;  %p2257_p3 = scmp.lt.s32.totalorder %s3747_s20, %s3402_s12 }
 0x210   :  { %p2253_p2 = scmp.ne.s32.totalorder %s3747_s20, %s2252_s6  ;;  %p2258_p4 = scmp.lt.s32.totalorder %s3432_s7, %s2252_s6 }
 0x212   :  { %p2259_p5 = por %p2258_p4, %p2257_p3 }
 0x214   :  { %p2260_p6 = pnand %p2259_p5, %p2253_p2 }
 0x216   :  { %2263 = shalt.err (!%p2260_p6)  }
 0x217   :  { %411 = dma.hbm_to_vmem [thread:$0]  %s399_s14, 16, %s3747_s20, [#allocation3] }
 0x218   :  { %s3303_s11 = smov [#allocation2 + $0x3a]   ;;  %s3775_s24 = sld [smem:[#allocation5 + $0x18]] }
 0x219   :  { %s424_s23 = sshll.u32 %s3303_s11, 4  ;;  %s3304_s25 = smov [#allocation2 + $0x3]   ;;  %s425_s23 = int_to_ptr.vmem [resolvable:$true] %s424_s23 }
 0x21a   :  { %s441_s1 = sshll.u32 %s3304_s25, 4  ;;  %s3777_s19 = sld [smem:[#allocation5 + $0x19]]  ;;  %s3780_s1 = int_to_ptr.vmem [resolvable:$true] %s441_s1 }
 0x21b   :  { %s1512_s26 = sshll.u32 %s3760_s0, 4 }
 0x21c   :  { %s415_s28 = scalar_lea.hbm %s4439_s3, %s1512_s26 }
 0x21d   :  { %s2264_s30 = scalar_lea.hbm %s415_s28, 16  ;;  %p2267_p8 = scmp.lt.u32.totalorder %s415_s28, %s4439_s3 }
 0x21e   :  { %p2265_p7 = scmp.ne.s32.totalorder %s415_s28, %s2264_s30  ;;  %p2268_p9 = scmp.lt.u32.totalorder %s3423_s29, %s2264_s30 }
 0x21f   :  { %p2270_p11 = scmp.lt.u32.totalorder %s2264_s30, %s415_s28 }
 0x220   :  { %p2269_p10 = por %p2268_p9, %p2267_p8 }
 0x222   :  { %p2271_p12 = por %p2270_p11, %p2269_p10 }
 0x224   :  { %p2272_p13 = pnand %p2271_p12, %p2265_p7 }
 0x226   :  { %2275 = shalt.err (!%p2272_p13)  }
 0x227   :  { %s2276_s8 = scalar_lea.vmem %s425_s23, 16  ;;  %p2281_p1 = scmp.lt.s32.totalorder %s425_s23, %s3402_s12 }
 0x228   :  { %p2277_p0 = scmp.ne.s32.totalorder %s425_s23, %s2276_s8  ;;  %p2282_p2 = scmp.lt.s32.totalorder %s3432_s7, %s2276_s8 }
 0x22a   :  { %p2283_p3 = por %p2282_p2, %p2281_p1 }
 0x22c   :  { %p2284_p4 = pnand %p2283_p3, %p2277_p0 }
 0x22e   :  { %2287 = shalt.err (!%p2284_p4)  }
 0x22f   :  { %427 = dma.hbm_to_vmem [thread:$0]  %s415_s28, 16, %s425_s23, [#allocation3] }
 0x230   :  { %s1514_s9 = sshll.u32 %s3775_s24, 4  ;;  %s3305_s18 = smov [#allocation2 + $0xb]  }
 0x231   :  { %s457_s17 = sshll.u32 %s3305_s18, 4  ;;  %s432_s13 = scalar_lea.hbm %s4439_s3, %s1514_s9  ;;  %s3795_s17 = int_to_ptr.vmem [resolvable:$true] %s457_s17 }
 0x232   :  { %s2288_s14 = scalar_lea.hbm %s432_s13, 16  ;;  %p2291_p6 = scmp.lt.u32.totalorder %s432_s13, %s4439_s3 }
 0x233   :  { %p2289_p5 = scmp.ne.s32.totalorder %s432_s13, %s2288_s14  ;;  %p2292_p7 = scmp.lt.u32.totalorder %s3423_s29, %s2288_s14 }
 0x234   :  { %p2294_p9 = scmp.lt.u32.totalorder %s2288_s14, %s432_s13 }
 0x235   :  { %p2293_p8 = por %p2292_p7, %p2291_p6 }
 0x237   :  { %p2295_p10 = por %p2294_p9, %p2293_p8 }
 0x239   :  { %p2296_p11 = pnand %p2295_p10, %p2289_p5 }
 0x23b   :  { %2299 = shalt.err (!%p2296_p11)  }
 0x23c   :  { %s2300_s21 = scalar_lea.vmem %s3780_s1, 16  ;;  %p2305_p13 = scmp.lt.s32.totalorder %s3780_s1, %s3402_s12 }
 0x23d   :  { %p2301_p12 = scmp.ne.s32.totalorder %s3780_s1, %s2300_s21  ;;  %p2306_p0 = scmp.lt.s32.totalorder %s3432_s7, %s2300_s21 }
 0x23f   :  { %p2307_p1 = por %p2306_p0, %p2305_p13 }
 0x241   :  { %p2308_p2 = pnand %p2307_p1, %p2301_p12 }
 0x243   :  { %2311 = shalt.err (!%p2308_p2)  }
 0x244   :  { %444 = dma.hbm_to_vmem [thread:$0]  %s432_s13, 16, %s3780_s1, [#allocation3] }
 0x245   :  { %s1516_s6 = sshll.u32 %s3777_s19, 4  ;;  %s3808_s11 = sld [smem:[#allocation5 + $0x1a]] }
 0x246   :  { %s448_s25 = scalar_lea.hbm %s4439_s3, %s1516_s6 }
 0x247   :  { %s2312_s26 = scalar_lea.hbm %s448_s25, 16  ;;  %p2315_p4 = scmp.lt.u32.totalorder %s448_s25, %s4439_s3 }
 0x248   :  { %p2313_p3 = scmp.ne.s32.totalorder %s448_s25, %s2312_s26  ;;  %p2316_p5 = scmp.lt.u32.totalorder %s3423_s29, %s2312_s26 }
 0x249   :  { %p2318_p7 = scmp.lt.u32.totalorder %s2312_s26, %s448_s25 }
 0x24a   :  { %p2317_p6 = por %p2316_p5, %p2315_p4 }
 0x24c   :  { %p2319_p8 = por %p2318_p7, %p2317_p6 }
 0x24e   :  { %p2320_p9 = pnand %p2319_p8, %p2313_p3 }
 0x250   :  { %2323 = shalt.err (!%p2320_p9)  }
 0x251   :  { %s2324_s1 = scalar_lea.vmem %s3795_s17, 16  ;;  %p2329_p11 = scmp.lt.s32.totalorder %s3795_s17, %s3402_s12 }
 0x252   :  { %p2325_p10 = scmp.ne.s32.totalorder %s3795_s17, %s2324_s1  ;;  %p2330_p12 = scmp.lt.s32.totalorder %s3432_s7, %s2324_s1 }
 0x254   :  { %p2331_p13 = por %p2330_p12, %p2329_p11 }
 0x256   :  { %p2332_p0 = pnand %p2331_p13, %p2325_p10 }
 0x258   :  { %2335 = shalt.err (!%p2332_p0)  }
 0x259   :  { %460 = dma.hbm_to_vmem [thread:$0]  %s448_s25, 16, %s3795_s17, [#allocation3] }
 0x25a   :  { %s3306_s19 = smov [#allocation2 + $0x13]   ;;  %s3823_s30 = sld [smem:[#allocation5 + $0x1b]] }
 0x25b   :  { %s473_s28 = sshll.u32 %s3306_s19, 4  ;;  %s3307_s5 = smov [#allocation2 + $0x1b]   ;;  %s474_s28 = int_to_ptr.vmem [resolvable:$true] %s473_s28 }
 0x25c   :  { %s489_s20 = sshll.u32 %s3307_s5, 4  ;;  %s3825_s8 = sld [smem:[#allocation5 + $0x1c]]  ;;  %s3828_s20 = int_to_ptr.vmem [resolvable:$true] %s489_s20 }
 0x25d   :  { %s1518_s9 = sshll.u32 %s3808_s11, 4 }
 0x25e   :  { %s464_s10 = scalar_lea.hbm %s4439_s3, %s1518_s9 }
 0x25f   :  { %s2336_s13 = scalar_lea.hbm %s464_s10, 16  ;;  %p2339_p2 = scmp.lt.u32.totalorder %s464_s10, %s4439_s3 }
 0x260   :  { %p2337_p1 = scmp.ne.s32.totalorder %s464_s10, %s2336_s13  ;;  %p2340_p3 = scmp.lt.u32.totalorder %s3423_s29, %s2336_s13 }
 0x261   :  { %p2342_p5 = scmp.lt.u32.totalorder %s2336_s13, %s464_s10 }
 0x262   :  { %p2341_p4 = por %p2340_p3, %p2339_p2 }
 0x264   :  { %p2343_p6 = por %p2342_p5, %p2341_p4 }
 0x266   :  { %p2344_p7 = pnand %p2343_p6, %p2337_p1 }
 0x268   :  { %2347 = shalt.err (!%p2344_p7)  }
 0x269   :  { %s2348_s16 = scalar_lea.vmem %s474_s28, 16  ;;  %p2353_p9 = scmp.lt.s32.totalorder %s474_s28, %s3402_s12 }
 0x26a   :  { %p2349_p8 = scmp.ne.s32.totalorder %s474_s28, %s2348_s16  ;;  %p2354_p10 = scmp.lt.s32.totalorder %s3432_s7, %s2348_s16 }
 0x26c   :  { %p2355_p11 = por %p2354_p10, %p2353_p9 }
 0x26e   :  { %p2356_p12 = pnand %p2355_p11, %p2349_p8 }
 0x270   :  { %2359 = shalt.err (!%p2356_p12)  }
 0x271   :  { %476 = dma.hbm_to_vmem [thread:$0]  %s464_s10, 16, %s474_s28, [#allocation3] }
 0x272   :  { %s1520_s22 = sshll.u32 %s3823_s30, 4  ;;  %s3308_s21 = smov [#allocation2 + $0x23]  }
 0x273   :  { %s505_s6 = sshll.u32 %s3308_s21, 4  ;;  %s480_s24 = scalar_lea.hbm %s4439_s3, %s1520_s22  ;;  %s3843_s6 = int_to_ptr.vmem [resolvable:$true] %s505_s6 }
 0x274   :  { %s2360_s25 = scalar_lea.hbm %s480_s24, 16  ;;  %p2363_p0 = scmp.lt.u32.totalorder %s480_s24, %s4439_s3 }
 0x275   :  { %p2361_p13 = scmp.ne.s32.totalorder %s480_s24, %s2360_s25  ;;  %p2364_p1 = scmp.lt.u32.totalorder %s3423_s29, %s2360_s25 }
 0x276   :  { %p2366_p3 = scmp.lt.u32.totalorder %s2360_s25, %s480_s24 }
 0x277   :  { %p2365_p2 = por %p2364_p1, %p2363_p0 }
 0x279   :  { %p2367_p4 = por %p2366_p3, %p2365_p2 }
 0x27b   :  { %p2368_p5 = pnand %p2367_p4, %p2361_p13 }
 0x27d   :  { %2371 = shalt.err (!%p2368_p5)  }
 0x27e   :  { %s2372_s15 = scalar_lea.vmem %s3828_s20, 16  ;;  %p2377_p7 = scmp.lt.s32.totalorder %s3828_s20, %s3402_s12 }
 0x27f   :  { %p2373_p6 = scmp.ne.s32.totalorder %s3828_s20, %s2372_s15  ;;  %p2378_p8 = scmp.lt.s32.totalorder %s3432_s7, %s2372_s15 }
 0x281   :  { %p2379_p9 = por %p2378_p8, %p2377_p7 }
 0x283   :  { %p2380_p10 = pnand %p2379_p9, %p2373_p6 }
 0x285   :  { %2383 = shalt.err (!%p2380_p10)  }
 0x286   :  { %492 = dma.hbm_to_vmem [thread:$0]  %s480_s24, 16, %s3828_s20, [#allocation3] }
 0x287   :  { %s1522_s1 = sshll.u32 %s3825_s8, 4  ;;  %s3856_s19 = sld [smem:[#allocation5 + $0x1d]] }
 0x288   :  { %s496_s5 = scalar_lea.hbm %s4439_s3, %s1522_s1 }
 0x289   :  { %s2384_s9 = scalar_lea.hbm %s496_s5, 16  ;;  %p2387_p12 = scmp.lt.u32.totalorder %s496_s5, %s4439_s3 }
 0x28a   :  { %p2385_p11 = scmp.ne.s32.totalorder %s496_s5, %s2384_s9  ;;  %p2388_p13 = scmp.lt.u32.totalorder %s3423_s29, %s2384_s9 }
 0x28b   :  { %p2390_p1 = scmp.lt.u32.totalorder %s2384_s9, %s496_s5 }
 0x28c   :  { %p2389_p0 = por %p2388_p13, %p2387_p12 }
 0x28e   :  { %p2391_p2 = por %p2390_p1, %p2389_p0 }
 0x290   :  { %p2392_p3 = pnand %p2391_p2, %p2385_p11 }
 0x292   :  { %2395 = shalt.err (!%p2392_p3)  }
 0x293   :  { %s2396_s20 = scalar_lea.vmem %s3843_s6, 16  ;;  %p2401_p5 = scmp.lt.s32.totalorder %s3843_s6, %s3402_s12 }
 0x294   :  { %p2397_p4 = scmp.ne.s32.totalorder %s3843_s6, %s2396_s20  ;;  %p2402_p6 = scmp.lt.s32.totalorder %s3432_s7, %s2396_s20 }
 0x296   :  { %p2403_p7 = por %p2402_p6, %p2401_p5 }
 0x298   :  { %p2404_p8 = pnand %p2403_p7, %p2397_p4 }
 0x29a   :  { %2407 = shalt.err (!%p2404_p8)  }
 0x29b   :  { %508 = dma.hbm_to_vmem [thread:$0]  %s496_s5, 16, %s3843_s6, [#allocation3] }
 0x29c   :  { %s3309_s8 = smov [#allocation2 + $0x2b]   ;;  %s3871_s13 = sld [smem:[#allocation5 + $0x1e]] }
 0x29d   :  { %s521_s10 = sshll.u32 %s3309_s8, 4  ;;  %s3310_s14 = smov [#allocation2 + $0x33]   ;;  %s522_s10 = int_to_ptr.vmem [resolvable:$true] %s521_s10 }
 0x29e   :  { %s537_s17 = sshll.u32 %s3310_s14, 4  ;;  %s3873_s16 = sld [smem:[#allocation5 + $0x1f]]  ;;  %s3876_s17 = int_to_ptr.vmem [resolvable:$true] %s537_s17 }
 0x29f   :  { %s1524_s22 = sshll.u32 %s3856_s19, 4 }
 0x2a0   :  { %s512_s23 = scalar_lea.hbm %s4439_s3, %s1524_s22 }
 0x2a1   :  { %s2408_s24 = scalar_lea.hbm %s512_s23, 16  ;;  %p2411_p10 = scmp.lt.u32.totalorder %s512_s23, %s4439_s3 }
 0x2a2   :  { %p2409_p9 = scmp.ne.s32.totalorder %s512_s23, %s2408_s24  ;;  %p2412_p11 = scmp.lt.u32.totalorder %s3423_s29, %s2408_s24 }
 0x2a3   :  { %p2414_p13 = scmp.lt.u32.totalorder %s2408_s24, %s512_s23 }
 0x2a4   :  { %p2413_p12 = por %p2412_p11, %p2411_p10 }
 0x2a6   :  { %p2415_p0 = por %p2414_p13, %p2413_p12 }
 0x2a8   :  { %p2416_p1 = pnand %p2415_p0, %p2409_p9 }
 0x2aa   :  { %2419 = shalt.err (!%p2416_p1)  }
 0x2ab   :  { %s2420_s26 = scalar_lea.vmem %s522_s10, 16  ;;  %p2425_p3 = scmp.lt.s32.totalorder %s522_s10, %s3402_s12 }
 0x2ac   :  { %p2421_p2 = scmp.ne.s32.totalorder %s522_s10, %s2420_s26  ;;  %p2426_p4 = scmp.lt.s32.totalorder %s3432_s7, %s2420_s26 }
 0x2ae   :  { %p2427_p5 = por %p2426_p4, %p2425_p3 }
 0x2b0   :  { %p2428_p6 = pnand %p2427_p5, %p2421_p2 }
 0x2b2   :  { %2431 = shalt.err (!%p2428_p6)  }
 0x2b3   :  { %524 = dma.hbm_to_vmem [thread:$0]  %s512_s23, 16, %s522_s10, [#allocation3] }
 0x2b4   :  { %s1526_s27 = sshll.u32 %s3871_s13, 4  ;;  %s3311_s15 = smov [#allocation2 + $0x3b]  }
 0x2b5   :  { %s553_s1 = sshll.u32 %s3311_s15, 4  ;;  %s528_s30 = scalar_lea.hbm %s4439_s3, %s1526_s27  ;;  %s3891_s1 = int_to_ptr.vmem [resolvable:$true] %s553_s1 }
 0x2b6   :  { %s2432_s5 = scalar_lea.hbm %s528_s30, 16  ;;  %p2435_p8 = scmp.lt.u32.totalorder %s528_s30, %s4439_s3 }
 0x2b7   :  { %p2433_p7 = scmp.ne.s32.totalorder %s528_s30, %s2432_s5  ;;  %p2436_p9 = scmp.lt.u32.totalorder %s3423_s29, %s2432_s5 }
 0x2b8   :  { %p2438_p11 = scmp.lt.u32.totalorder %s2432_s5, %s528_s30 }
 0x2b9   :  { %p2437_p10 = por %p2436_p9, %p2435_p8 }
 0x2bb   :  { %p2439_p12 = por %p2438_p11, %p2437_p10 }
 0x2bd   :  { %p2440_p13 = pnand %p2439_p12, %p2433_p7 }
 0x2bf   :  { %2443 = shalt.err (!%p2440_p13)  }
 0x2c0   :  { %s2444_s0 = scalar_lea.vmem %s3876_s17, 16  ;;  %p2449_p1 = scmp.lt.s32.totalorder %s3876_s17, %s3402_s12 }
 0x2c1   :  { %p2445_p0 = scmp.ne.s32.totalorder %s3876_s17, %s2444_s0  ;;  %p2450_p2 = scmp.lt.s32.totalorder %s3432_s7, %s2444_s0 }
 0x2c3   :  { %p2451_p3 = por %p2450_p2, %p2449_p1 }
 0x2c5   :  { %p2452_p4 = pnand %p2451_p3, %p2445_p0 }
 0x2c7   :  { %2455 = shalt.err (!%p2452_p4)  }
 0x2c8   :  { %540 = dma.hbm_to_vmem [thread:$0]  %s528_s30, 16, %s3876_s17, [#allocation3] }
 0x2c9   :  { %s1528_s20 = sshll.u32 %s3873_s16, 4  ;;  %s3904_s8 = sld [smem:[#allocation5 + $0x20]] }
 0x2ca   :  { %s544_s14 = scalar_lea.hbm %s4439_s3, %s1528_s20 }
 0x2cb   :  { %s2456_s22 = scalar_lea.hbm %s544_s14, 16  ;;  %p2459_p6 = scmp.lt.u32.totalorder %s544_s14, %s4439_s3 }
 0x2cc   :  { %p2457_p5 = scmp.ne.s32.totalorder %s544_s14, %s2456_s22  ;;  %p2460_p7 = scmp.lt.u32.totalorder %s3423_s29, %s2456_s22 }
 0x2cd   :  { %p2462_p9 = scmp.lt.u32.totalorder %s2456_s22, %s544_s14 }
 0x2ce   :  { %p2461_p8 = por %p2460_p7, %p2459_p6 }
 0x2d0   :  { %p2463_p10 = por %p2462_p9, %p2461_p8 }
 0x2d2   :  { %p2464_p11 = pnand %p2463_p10, %p2457_p5 }
 0x2d4   :  { %2467 = shalt.err (!%p2464_p11)  }
 0x2d5   :  { %s2468_s17 = scalar_lea.vmem %s3891_s1, 16  ;;  %p2473_p13 = scmp.lt.s32.totalorder %s3891_s1, %s3402_s12 }
 0x2d6   :  { %p2469_p12 = scmp.ne.s32.totalorder %s3891_s1, %s2468_s17  ;;  %p2474_p0 = scmp.lt.s32.totalorder %s3432_s7, %s2468_s17 }
 0x2d8   :  { %p2475_p1 = por %p2474_p0, %p2473_p13 }
 0x2da   :  { %p2476_p2 = pnand %p2475_p1, %p2469_p12 }
 0x2dc   :  { %2479 = shalt.err (!%p2476_p2)  }
 0x2dd   :  { %556 = dma.hbm_to_vmem [thread:$0]  %s544_s14, 16, %s3891_s1, [#allocation3]  ;;  %v1593_v0 = vld [vmem:[%s4438_s2] ss:$0 sm:$0xff] }
 0x2de   :  { %s3312_s24 = smov [#allocation2 + $0x4]   ;;  %s3922_s6 = sld [smem:[#allocation5 + $0x21]]  ;;  %1080 = vst [vmem:[#allocation9] sm:$0xff] %v1593_v0 }
 0x2df   :  { %s570_s25 = sshll.u32 %s3312_s24, 4  ;;  %s3313_s26 = smov [#allocation2 + $0xc]   ;;  %s571_s25 = int_to_ptr.vmem [resolvable:$true] %s570_s25 }
 0x2e0   :  { %s586_s27 = sshll.u32 %s3313_s26, 4  ;;  %s3924_s15 = sld [smem:[#allocation5 + $0x22]]  ;;  %s3927_s27 = int_to_ptr.vmem [resolvable:$true] %s586_s27 }
 0x2e1   :  { %s1530_s19 = sshll.u32 %s3904_s8, 4 }
 0x2e2   :  { %s561_s30 = scalar_lea.hbm %s4439_s3, %s1530_s19 }
 0x2e3   :  { %s2480_s5 = scalar_lea.hbm %s561_s30, 16  ;;  %p2483_p4 = scmp.lt.u32.totalorder %s561_s30, %s4439_s3 }
 0x2e4   :  { %p2481_p3 = scmp.ne.s32.totalorder %s561_s30, %s2480_s5  ;;  %p2484_p5 = scmp.lt.u32.totalorder %s3423_s29, %s2480_s5 }
 0x2e5   :  { %p2486_p7 = scmp.lt.u32.totalorder %s2480_s5, %s561_s30 }
 0x2e6   :  { %p2485_p6 = por %p2484_p5, %p2483_p4 }
 0x2e8   :  { %p2487_p8 = por %p2486_p7, %p2485_p6 }
 0x2ea   :  { %p2488_p9 = pnand %p2487_p8, %p2481_p3 }
 0x2ec   :  { %2491 = shalt.err (!%p2488_p9)  }
 0x2ed   :  { %s2492_s18 = scalar_lea.vmem %s571_s25, 16  ;;  %p2497_p11 = scmp.lt.s32.totalorder %s571_s25, %s3402_s12 }
 0x2ee   :  { %p2493_p10 = scmp.ne.s32.totalorder %s571_s25, %s2492_s18  ;;  %p2498_p12 = scmp.lt.s32.totalorder %s3432_s7, %s2492_s18 }
 0x2f0   :  { %p2499_p13 = por %p2498_p12, %p2497_p11 }
 0x2f2   :  { %p2500_p0 = pnand %p2499_p13, %p2493_p10 }
 0x2f4   :  { %2503 = shalt.err (!%p2500_p0)  }
 0x2f5   :  { %573 = dma.hbm_to_vmem [thread:$0]  %s561_s30, 16, %s571_s25, [#allocation3] }
 0x2f6   :  { %s1532_s0 = sshll.u32 %s3922_s6, 4  ;;  %s3314_s20 = smov [#allocation2 + $0x14]  }
 0x2f7   :  { %s602_s8 = sshll.u32 %s3314_s20, 4  ;;  %s577_s14 = scalar_lea.hbm %s4439_s3, %s1532_s0  ;;  %s3942_s8 = int_to_ptr.vmem [resolvable:$true] %s602_s8 }
 0x2f8   :  { %s2504_s22 = scalar_lea.hbm %s577_s14, 16  ;;  %p2507_p2 = scmp.lt.u32.totalorder %s577_s14, %s4439_s3 }
 0x2f9   :  { %p2505_p1 = scmp.ne.s32.totalorder %s577_s14, %s2504_s22  ;;  %p2508_p3 = scmp.lt.u32.totalorder %s3423_s29, %s2504_s22 }
 0x2fa   :  { %p2510_p5 = scmp.lt.u32.totalorder %s2504_s22, %s577_s14 }
 0x2fb   :  { %p2509_p4 = por %p2508_p3, %p2507_p2 }
 0x2fd   :  { %p2511_p6 = por %p2510_p5, %p2509_p4 }
 0x2ff   :  { %p2512_p7 = pnand %p2511_p6, %p2505_p1 }
 0x301   :  { %2515 = shalt.err (!%p2512_p7)  }
 0x302   :  { %s2516_s17 = scalar_lea.vmem %s3927_s27, 16  ;;  %p2521_p9 = scmp.lt.s32.totalorder %s3927_s27, %s3402_s12 }
 0x303   :  { %p2517_p8 = scmp.ne.s32.totalorder %s3927_s27, %s2516_s17  ;;  %p2522_p10 = scmp.lt.s32.totalorder %s3432_s7, %s2516_s17 }
 0x305   :  { %p2523_p11 = por %p2522_p10, %p2521_p9 }
 0x307   :  { %p2524_p12 = pnand %p2523_p11, %p2517_p8 }
 0x309   :  { %2527 = shalt.err (!%p2524_p12)  }
 0x30a   :  { %589 = dma.hbm_to_vmem [thread:$0]  %s577_s14, 16, %s3927_s27, [#allocation3] }
 0x30b   :  { %s1534_s16 = sshll.u32 %s3924_s15, 4  ;;  %s3955_s23 = sld [smem:[#allocation5 + $0x23]] }
 0x30c   :  { %s593_s6 = scalar_lea.hbm %s4439_s3, %s1534_s16 }
 0x30d   :  { %s2528_s26 = scalar_lea.hbm %s593_s6, 16  ;;  %p2531_p0 = scmp.lt.u32.totalorder %s593_s6, %s4439_s3 }
 0x30e   :  { %p2529_p13 = scmp.ne.s32.totalorder %s593_s6, %s2528_s26  ;;  %p2532_p1 = scmp.lt.u32.totalorder %s3423_s29, %s2528_s26 }
 0x30f   :  { %p2534_p3 = scmp.lt.u32.totalorder %s2528_s26, %s593_s6 }
 0x310   :  { %p2533_p2 = por %p2532_p1, %p2531_p0 }
 0x312   :  { %p2535_p4 = por %p2534_p3, %p2533_p2 }
 0x314   :  { %p2536_p5 = pnand %p2535_p4, %p2529_p13 }
 0x316   :  { %2539 = shalt.err (!%p2536_p5)  }
 0x317   :  { %s2540_s27 = scalar_lea.vmem %s3942_s8, 16  ;;  %p2545_p7 = scmp.lt.s32.totalorder %s3942_s8, %s3402_s12 }
 0x318   :  { %p2541_p6 = scmp.ne.s32.totalorder %s3942_s8, %s2540_s27  ;;  %p2546_p8 = scmp.lt.s32.totalorder %s3432_s7, %s2540_s27 }
 0x31a   :  { %p2547_p9 = por %p2546_p8, %p2545_p7 }
 0x31c   :  { %p2548_p10 = pnand %p2547_p9, %p2541_p6 }
 0x31e   :  { %2551 = shalt.err (!%p2548_p10)  }
 0x31f   :  { %605 = dma.hbm_to_vmem [thread:$0]  %s593_s6, 16, %s3942_s8, [#allocation3] }
 0x320   :  { %s3315_s15 = smov [#allocation2 + $0x1c]   ;;  %s3970_s30 = sld [smem:[#allocation5 + $0x24]] }
 0x321   :  { %s618_s1 = sshll.u32 %s3315_s15, 4  ;;  %s3316_s5 = smov [#allocation2 + $0x24]   ;;  %s619_s1 = int_to_ptr.vmem [resolvable:$true] %s618_s1 }
 0x322   :  { %s634_s2 = sshll.u32 %s3316_s5, 4  ;;  %s3972_s9 = sld [smem:[#allocation5 + $0x25]]  ;;  %s3975_s2 = int_to_ptr.vmem [resolvable:$true] %s634_s2 }
 0x323   :  { %s1536_s18 = sshll.u32 %s3955_s23, 4 }
 0x324   :  { %s609_s10 = scalar_lea.hbm %s4439_s3, %s1536_s18 }
 0x325   :  { %s2552_s13 = scalar_lea.hbm %s609_s10, 16  ;;  %p2555_p12 = scmp.lt.u32.totalorder %s609_s10, %s4439_s3 }
 0x326   :  { %p2553_p11 = scmp.ne.s32.totalorder %s609_s10, %s2552_s13  ;;  %p2556_p13 = scmp.lt.u32.totalorder %s3423_s29, %s2552_s13 }
 0x327   :  { %p2558_p1 = scmp.lt.u32.totalorder %s2552_s13, %s609_s10 }
 0x328   :  { %p2557_p0 = por %p2556_p13, %p2555_p12 }
 0x32a   :  { %p2559_p2 = por %p2558_p1, %p2557_p0 }
 0x32c   :  { %p2560_p3 = pnand %p2559_p2, %p2553_p11 }
 0x32e   :  { %2563 = shalt.err (!%p2560_p3)  }
 0x32f   :  { %s2564_s22 = scalar_lea.vmem %s619_s1, 16  ;;  %p2569_p5 = scmp.lt.s32.totalorder %s619_s1, %s3402_s12 }
 0x330   :  { %p2565_p4 = scmp.ne.s32.totalorder %s619_s1, %s2564_s22  ;;  %p2570_p6 = scmp.lt.s32.totalorder %s3432_s7, %s2564_s22 }
 0x332   :  { %p2571_p7 = por %p2570_p6, %p2569_p5 }
 0x334   :  { %p2572_p8 = pnand %p2571_p7, %p2565_p4 }
 0x336   :  { %2575 = shalt.err (!%p2572_p8)  }
 0x337   :  { %621 = dma.hbm_to_vmem [thread:$0]  %s609_s10, 16, %s619_s1, [#allocation3] }
 0x338   :  { %s1538_s21 = sshll.u32 %s3970_s30, 4  ;;  %s3317_s11 = smov [#allocation2 + $0x2c]  }
 0x339   :  { %s650_s17 = sshll.u32 %s3317_s11, 4  ;;  %s625_s24 = scalar_lea.hbm %s4439_s3, %s1538_s21  ;;  %s3990_s17 = int_to_ptr.vmem [resolvable:$true] %s650_s17 }
 0x33a   :  { %s2576_s25 = scalar_lea.hbm %s625_s24, 16  ;;  %p2579_p10 = scmp.lt.u32.totalorder %s625_s24, %s4439_s3 }
 0x33b   :  { %p2577_p9 = scmp.ne.s32.totalorder %s625_s24, %s2576_s25  ;;  %p2580_p11 = scmp.lt.u32.totalorder %s3423_s29, %s2576_s25 }
 0x33c   :  { %p2582_p13 = scmp.lt.u32.totalorder %s2576_s25, %s625_s24 }
 0x33d   :  { %p2581_p12 = por %p2580_p11, %p2579_p10 }
 0x33f   :  { %p2583_p0 = por %p2582_p13, %p2581_p12 }
 0x341   :  { %p2584_p1 = pnand %p2583_p0, %p2577_p9 }
 0x343   :  { %2587 = shalt.err (!%p2584_p1)  }
 0x344   :  { %s2588_s19 = scalar_lea.vmem %s3975_s2, 16  ;;  %p2593_p3 = scmp.lt.s32.totalorder %s3975_s2, %s3402_s12 }
 0x345   :  { %p2589_p2 = scmp.ne.s32.totalorder %s3975_s2, %s2588_s19  ;;  %p2594_p4 = scmp.lt.s32.totalorder %s3432_s7, %s2588_s19 }
 0x347   :  { %p2595_p5 = por %p2594_p4, %p2593_p3 }
 0x349   :  { %p2596_p6 = pnand %p2595_p5, %p2589_p2 }
 0x34b   :  { %2599 = shalt.err (!%p2596_p6)  }
 0x34c   :  { %637 = dma.hbm_to_vmem [thread:$0]  %s625_s24, 16, %s3975_s2, [#allocation3] }
 0x34d   :  { %s1540_s28 = sshll.u32 %s3972_s9, 4  ;;  %s4003_s27 = sld [smem:[#allocation5 + $0x26]] }
 0x34e   :  { %s641_s30 = scalar_lea.hbm %s4439_s3, %s1540_s28 }
 0x34f   :  { %s2600_s5 = scalar_lea.hbm %s641_s30, 16  ;;  %p2603_p8 = scmp.lt.u32.totalorder %s641_s30, %s4439_s3 }
 0x350   :  { %p2601_p7 = scmp.ne.s32.totalorder %s641_s30, %s2600_s5  ;;  %p2604_p9 = scmp.lt.u32.totalorder %s3423_s29, %s2600_s5 }
 0x351   :  { %p2606_p11 = scmp.lt.u32.totalorder %s2600_s5, %s641_s30 }
 0x352   :  { %p2605_p10 = por %p2604_p9, %p2603_p8 }
 0x354   :  { %p2607_p12 = por %p2606_p11, %p2605_p10 }
 0x356   :  { %p2608_p13 = pnand %p2607_p12, %p2601_p7 }
 0x358   :  { %2611 = shalt.err (!%p2608_p13)  }
 0x359   :  { %s2612_s2 = scalar_lea.vmem %s3990_s17, 16  ;;  %p2617_p1 = scmp.lt.s32.totalorder %s3990_s17, %s3402_s12 }
 0x35a   :  { %p2613_p0 = scmp.ne.s32.totalorder %s3990_s17, %s2612_s2  ;;  %p2618_p2 = scmp.lt.s32.totalorder %s3432_s7, %s2612_s2 }
 0x35c   :  { %p2619_p3 = por %p2618_p2, %p2617_p1 }
 0x35e   :  { %p2620_p4 = pnand %p2619_p3, %p2613_p0 }
 0x360   :  { %2623 = shalt.err (!%p2620_p4)  }
 0x361   :  { %653 = dma.hbm_to_vmem [thread:$0]  %s641_s30, 16, %s3990_s17, [#allocation3] }
 0x362   :  { %s3318_s9 = smov [#allocation2 + $0x34]   ;;  %s4018_s10 = sld [smem:[#allocation5 + $0x27]] }
 0x363   :  { %s666_s20 = sshll.u32 %s3318_s9, 4  ;;  %s3319_s13 = smov [#allocation2 + $0x3c]   ;;  %s667_s20 = int_to_ptr.vmem [resolvable:$true] %s666_s20 }
 0x364   :  { %s682_s14 = sshll.u32 %s3319_s13, 4  ;;  %s4020_s8 = sld [smem:[#allocation5 + $0x28]]  ;;  %s4023_s14 = int_to_ptr.vmem [resolvable:$true] %s682_s14 }
 0x365   :  { %s1542_s22 = sshll.u32 %s4003_s27, 4 }
 0x366   :  { %s657_s16 = scalar_lea.hbm %s4439_s3, %s1542_s22 }
 0x367   :  { %s2624_s23 = scalar_lea.hbm %s657_s16, 16  ;;  %p2627_p6 = scmp.lt.u32.totalorder %s657_s16, %s4439_s3 }
 0x368   :  { %p2625_p5 = scmp.ne.s32.totalorder %s657_s16, %s2624_s23  ;;  %p2628_p7 = scmp.lt.u32.totalorder %s3423_s29, %s2624_s23 }
 0x369   :  { %p2630_p9 = scmp.lt.u32.totalorder %s2624_s23, %s657_s16 }
 0x36a   :  { %p2629_p8 = por %p2628_p7, %p2627_p6 }
 0x36c   :  { %p2631_p10 = por %p2630_p9, %p2629_p8 }
 0x36e   :  { %p2632_p11 = pnand %p2631_p10, %p2625_p5 }
 0x370   :  { %2635 = shalt.err (!%p2632_p11)  }
 0x371   :  { %s2636_s25 = scalar_lea.vmem %s667_s20, 16  ;;  %p2641_p13 = scmp.lt.s32.totalorder %s667_s20, %s3402_s12 }
 0x372   :  { %p2637_p12 = scmp.ne.s32.totalorder %s667_s20, %s2636_s25  ;;  %p2642_p0 = scmp.lt.s32.totalorder %s3432_s7, %s2636_s25 }
 0x374   :  { %p2643_p1 = por %p2642_p0, %p2641_p13 }
 0x376   :  { %p2644_p2 = pnand %p2643_p1, %p2637_p12 }
 0x378   :  { %2647 = shalt.err (!%p2644_p2)  }
 0x379   :  { %669 = dma.hbm_to_vmem [thread:$0]  %s657_s16, 16, %s667_s20, [#allocation3] }
 0x37a   :  { %s1544_s6 = sshll.u32 %s4018_s10, 4  ;;  %s3320_s26 = smov [#allocation2 + $0x5]  }
 0x37b   :  { %s699_s19 = sshll.u32 %s3320_s26, 4  ;;  %s673_s15 = scalar_lea.hbm %s4439_s3, %s1544_s6  ;;  %s4038_s19 = int_to_ptr.vmem [resolvable:$true] %s699_s19 }
 0x37c   :  { %s2648_s1 = scalar_lea.hbm %s673_s15, 16  ;;  %p2651_p4 = scmp.lt.u32.totalorder %s673_s15, %s4439_s3 }
 0x37d   :  { %p2649_p3 = scmp.ne.s32.totalorder %s673_s15, %s2648_s1  ;;  %p2652_p5 = scmp.lt.u32.totalorder %s3423_s29, %s2648_s1 }
 0x37e   :  { %p2654_p7 = scmp.lt.u32.totalorder %s2648_s1, %s673_s15 }
 0x37f   :  { %p2653_p6 = por %p2652_p5, %p2651_p4 }
 0x381   :  { %p2655_p8 = por %p2654_p7, %p2653_p6 }
 0x383   :  { %p2656_p9 = pnand %p2655_p8, %p2649_p3 }
 0x385   :  { %2659 = shalt.err (!%p2656_p9)  }
 0x386   :  { %s2660_s18 = scalar_lea.vmem %s4023_s14, 16  ;;  %p2665_p11 = scmp.lt.s32.totalorder %s4023_s14, %s3402_s12 }
 0x387   :  { %p2661_p10 = scmp.ne.s32.totalorder %s4023_s14, %s2660_s18  ;;  %p2666_p12 = scmp.lt.s32.totalorder %s3432_s7, %s2660_s18 }
 0x389   :  { %p2667_p13 = por %p2666_p12, %p2665_p11 }
 0x38b   :  { %p2668_p0 = pnand %p2667_p13, %p2661_p10 }
 0x38d   :  { %2671 = shalt.err (!%p2668_p0)  }
 0x38e   :  { %685 = dma.hbm_to_vmem [thread:$0]  %s673_s15, 16, %s4023_s14, [#allocation3] }
 0x38f   :  { %s1546_s0 = sshll.u32 %s4020_s8, 4  ;;  %s4051_s2 = sld [smem:[#allocation5 + $0x29]] }
 0x390   :  { %s690_s10 = scalar_lea.hbm %s4439_s3, %s1546_s0 }
 0x391   :  { %s2672_s13 = scalar_lea.hbm %s690_s10, 16  ;;  %p2675_p2 = scmp.lt.u32.totalorder %s690_s10, %s4439_s3 }
 0x392   :  { %p2673_p1 = scmp.ne.s32.totalorder %s690_s10, %s2672_s13  ;;  %p2676_p3 = scmp.lt.u32.totalorder %s3423_s29, %s2672_s13 }
 0x393   :  { %p2678_p5 = scmp.lt.u32.totalorder %s2672_s13, %s690_s10 }
 0x394   :  { %p2677_p4 = por %p2676_p3, %p2675_p2 }
 0x396   :  { %p2679_p6 = por %p2678_p5, %p2677_p4 }
 0x398   :  { %p2680_p7 = pnand %p2679_p6, %p2673_p1 }
 0x39a   :  { %2683 = shalt.err (!%p2680_p7)  }
 0x39b   :  { %s2684_s14 = scalar_lea.vmem %s4038_s19, 16  ;;  %p2689_p9 = scmp.lt.s32.totalorder %s4038_s19, %s3402_s12 }
 0x39c   :  { %p2685_p8 = scmp.ne.s32.totalorder %s4038_s19, %s2684_s14  ;;  %p2690_p10 = scmp.lt.s32.totalorder %s3432_s7, %s2684_s14 }
 0x39e   :  { %p2691_p11 = por %p2690_p10, %p2689_p9 }
 0x3a0   :  { %p2692_p12 = pnand %p2691_p11, %p2685_p8 }
 0x3a2   :  { %2695 = shalt.err (!%p2692_p12)  }
 0x3a3   :  { %702 = dma.hbm_to_vmem [thread:$0]  %s690_s10, 16, %s4038_s19, [#allocation3] }
 0x3a4   :  { %s3321_s8 = smov [#allocation2 + $0xd]   ;;  %s4066_s16 = sld [smem:[#allocation5 + $0x2a]] }
 0x3a5   :  { %s715_s11 = sshll.u32 %s3321_s8, 4  ;;  %s3322_s23 = smov [#allocation2 + $0x15]   ;;  %s716_s11 = int_to_ptr.vmem [resolvable:$true] %s715_s11 }
 0x3a6   :  { %s731_s24 = sshll.u32 %s3322_s23, 4  ;;  %s4068_s17 = sld [smem:[#allocation5 + $0x2b]]  ;;  %s4071_s24 = int_to_ptr.vmem [resolvable:$true] %s731_s24 }
 0x3a7   :  { %s1548_s25 = sshll.u32 %s4051_s2, 4 }
 0x3a8   :  { %s706_s28 = scalar_lea.hbm %s4439_s3, %s1548_s25 }
 0x3a9   :  { %s2696_s27 = scalar_lea.hbm %s706_s28, 16  ;;  %p2699_p0 = scmp.lt.u32.totalorder %s706_s28, %s4439_s3 }
 0x3aa   :  { %p2697_p13 = scmp.ne.s32.totalorder %s706_s28, %s2696_s27  ;;  %p2700_p1 = scmp.lt.u32.totalorder %s3423_s29, %s2696_s27 }
 0x3ab   :  { %p2702_p3 = scmp.lt.u32.totalorder %s2696_s27, %s706_s28 }
 0x3ac   :  { %p2701_p2 = por %p2700_p1, %p2699_p0 }
 0x3ae   :  { %p2703_p4 = por %p2702_p3, %p2701_p2 }
 0x3b0   :  { %p2704_p5 = pnand %p2703_p4, %p2697_p13 }
 0x3b2   :  { %2707 = shalt.err (!%p2704_p5)  }
 0x3b3   :  { %s2708_s1 = scalar_lea.vmem %s716_s11, 16  ;;  %p2713_p7 = scmp.lt.s32.totalorder %s716_s11, %s3402_s12 }
 0x3b4   :  { %p2709_p6 = scmp.ne.s32.totalorder %s716_s11, %s2708_s1  ;;  %p2714_p8 = scmp.lt.s32.totalorder %s3432_s7, %s2708_s1 }
 0x3b6   :  { %p2715_p9 = por %p2714_p8, %p2713_p7 }
 0x3b8   :  { %p2716_p10 = pnand %p2715_p9, %p2709_p6 }
 0x3ba   :  { %2719 = shalt.err (!%p2716_p10)  }
 0x3bb   :  { %718 = dma.hbm_to_vmem [thread:$0]  %s706_s28, 16, %s716_s11, [#allocation3] }
 0x3bc   :  { %s1550_s30 = sshll.u32 %s4066_s16, 4  ;;  %s3323_s5 = smov [#allocation2 + $0x1d]  }
 0x3bd   :  { %s747_s18 = sshll.u32 %s3323_s5, 4  ;;  %s722_s9 = scalar_lea.hbm %s4439_s3, %s1550_s30  ;;  %s4086_s18 = int_to_ptr.vmem [resolvable:$true] %s747_s18 }
 0x3be   :  { %s2720_s20 = scalar_lea.hbm %s722_s9, 16  ;;  %p2723_p12 = scmp.lt.u32.totalorder %s722_s9, %s4439_s3 }
 0x3bf   :  { %p2721_p11 = scmp.ne.s32.totalorder %s722_s9, %s2720_s20  ;;  %p2724_p13 = scmp.lt.u32.totalorder %s3423_s29, %s2720_s20 }
 0x3c0   :  { %p2726_p1 = scmp.lt.u32.totalorder %s2720_s20, %s722_s9 }
 0x3c1   :  { %p2725_p0 = por %p2724_p13, %p2723_p12 }
 0x3c3   :  { %p2727_p2 = por %p2726_p1, %p2725_p0 }
 0x3c5   :  { %p2728_p3 = pnand %p2727_p2, %p2721_p11 }
 0x3c7   :  { %2731 = shalt.err (!%p2728_p3)  }
 0x3c8   :  { %s2732_s22 = scalar_lea.vmem %s4071_s24, 16  ;;  %p2737_p5 = scmp.lt.s32.totalorder %s4071_s24, %s3402_s12 }
 0x3c9   :  { %p2733_p4 = scmp.ne.s32.totalorder %s4071_s24, %s2732_s22  ;;  %p2738_p6 = scmp.lt.s32.totalorder %s3432_s7, %s2732_s22 }
 0x3cb   :  { %p2739_p7 = por %p2738_p6, %p2737_p5 }
 0x3cd   :  { %p2740_p8 = pnand %p2739_p7, %p2733_p4 }
 0x3cf   :  { %2743 = shalt.err (!%p2740_p8)  }
 0x3d0   :  { %734 = dma.hbm_to_vmem [thread:$0]  %s722_s9, 16, %s4071_s24, [#allocation3] }
 0x3d1   :  { %s1552_s21 = sshll.u32 %s4068_s17, 4  ;;  %s4099_s14 = sld [smem:[#allocation5 + $0x2c]] }
 0x3d2   :  { %s738_s16 = scalar_lea.hbm %s4439_s3, %s1552_s21 }
 0x3d3   :  { %s2744_s23 = scalar_lea.hbm %s738_s16, 16  ;;  %p2747_p10 = scmp.lt.u32.totalorder %s738_s16, %s4439_s3 }
 0x3d4   :  { %p2745_p9 = scmp.ne.s32.totalorder %s738_s16, %s2744_s23  ;;  %p2748_p11 = scmp.lt.u32.totalorder %s3423_s29, %s2744_s23 }
 0x3d5   :  { %p2750_p13 = scmp.lt.u32.totalorder %s2744_s23, %s738_s16 }
 0x3d6   :  { %p2749_p12 = por %p2748_p11, %p2747_p10 }
 0x3d8   :  { %p2751_p0 = por %p2750_p13, %p2749_p12 }
 0x3da   :  { %p2752_p1 = pnand %p2751_p0, %p2745_p9 }
 0x3dc   :  { %2755 = shalt.err (!%p2752_p1)  }
 0x3dd   :  { %s2756_s24 = scalar_lea.vmem %s4086_s18, 16  ;;  %p2761_p3 = scmp.lt.s32.totalorder %s4086_s18, %s3402_s12 }
 0x3de   :  { %p2757_p2 = scmp.ne.s32.totalorder %s4086_s18, %s2756_s24  ;;  %p2762_p4 = scmp.lt.s32.totalorder %s3432_s7, %s2756_s24 }
 0x3e0   :  { %p2763_p5 = por %p2762_p4, %p2761_p3 }
 0x3e2   :  { %p2764_p6 = pnand %p2763_p5, %p2757_p2 }
 0x3e4   :  { %2767 = shalt.err (!%p2764_p6)  }
 0x3e5   :  { %750 = dma.hbm_to_vmem [thread:$0]  %s738_s16, 16, %s4086_s18, [#allocation3] }
 0x3e6   :  { %s3324_s17 = smov [#allocation2 + $0x25]   ;;  %s4114_s28 = sld [smem:[#allocation5 + $0x2d]] }
 0x3e7   :  { %s763_s26 = sshll.u32 %s3324_s17, 4  ;;  %s3325_s27 = smov [#allocation2 + $0x2d]   ;;  %s764_s26 = int_to_ptr.vmem [resolvable:$true] %s763_s26 }
 0x3e8   :  { %s779_s15 = sshll.u32 %s3325_s27, 4  ;;  %s4116_s19 = sld [smem:[#allocation5 + $0x2e]]  ;;  %s4119_s15 = int_to_ptr.vmem [resolvable:$true] %s779_s15 }
 0x3e9   :  { %s1554_s1 = sshll.u32 %s4099_s14, 4 }
 0x3ea   :  { %s754_s0 = scalar_lea.hbm %s4439_s3, %s1554_s1 }
 0x3eb   :  { %s2768_s2 = scalar_lea.hbm %s754_s0, 16  ;;  %p2771_p8 = scmp.lt.u32.totalorder %s754_s0, %s4439_s3 }
 0x3ec   :  { %p2769_p7 = scmp.ne.s32.totalorder %s754_s0, %s2768_s2  ;;  %p2772_p9 = scmp.lt.u32.totalorder %s3423_s29, %s2768_s2 }
 0x3ed   :  { %p2774_p11 = scmp.lt.u32.totalorder %s2768_s2, %s754_s0 }
 0x3ee   :  { %p2773_p10 = por %p2772_p9, %p2771_p8 }
 0x3f0   :  { %p2775_p12 = por %p2774_p11, %p2773_p10 }
 0x3f2   :  { %p2776_p13 = pnand %p2775_p12, %p2769_p7 }
 0x3f4   :  { %2779 = shalt.err (!%p2776_p13)  }
 0x3f5   :  { %s2780_s20 = scalar_lea.vmem %s764_s26, 16  ;;  %p2785_p1 = scmp.lt.s32.totalorder %s764_s26, %s3402_s12 }
 0x3f6   :  { %p2781_p0 = scmp.ne.s32.totalorder %s764_s26, %s2780_s20  ;;  %p2786_p2 = scmp.lt.s32.totalorder %s3432_s7, %s2780_s20 }
 0x3f8   :  { %p2787_p3 = por %p2786_p2, %p2785_p1 }
 0x3fa   :  { %p2788_p4 = pnand %p2787_p3, %p2781_p0 }
 0x3fc   :  { %2791 = shalt.err (!%p2788_p4)  }
 0x3fd   :  { %766 = dma.hbm_to_vmem [thread:$0]  %s754_s0, 16, %s764_s26, [#allocation3] }
 0x3fe   :  { %s1556_s10 = sshll.u32 %s4114_s28, 4  ;;  %s3326_s13 = smov [#allocation2 + $0x35]  }
 0x3ff   :  { %s795_s22 = sshll.u32 %s3326_s13, 4  ;;  %s770_s8 = scalar_lea.hbm %s4439_s3, %s1556_s10  ;;  %s4134_s22 = int_to_ptr.vmem [resolvable:$true] %s795_s22 }
 0x400   :  { %s2792_s11 = scalar_lea.hbm %s770_s8, 16  ;;  %p2795_p6 = scmp.lt.u32.totalorder %s770_s8, %s4439_s3 }
 0x401   :  { %p2793_p5 = scmp.ne.s32.totalorder %s770_s8, %s2792_s11  ;;  %p2796_p7 = scmp.lt.u32.totalorder %s3423_s29, %s2792_s11 }
 0x402   :  { %p2798_p9 = scmp.lt.u32.totalorder %s2792_s11, %s770_s8 }
 0x403   :  { %p2797_p8 = por %p2796_p7, %p2795_p6 }
 0x405   :  { %p2799_p10 = por %p2798_p9, %p2797_p8 }
 0x407   :  { %p2800_p11 = pnand %p2799_p10, %p2793_p5 }
 0x409   :  { %2803 = shalt.err (!%p2800_p11)  }
 0x40a   :  { %s2804_s25 = scalar_lea.vmem %s4119_s15, 16  ;;  %p2809_p13 = scmp.lt.s32.totalorder %s4119_s15, %s3402_s12 }
 0x40b   :  { %p2805_p12 = scmp.ne.s32.totalorder %s4119_s15, %s2804_s25  ;;  %p2810_p0 = scmp.lt.s32.totalorder %s3432_s7, %s2804_s25 }
 0x40d   :  { %p2811_p1 = por %p2810_p0, %p2809_p13 }
 0x40f   :  { %p2812_p2 = pnand %p2811_p1, %p2805_p12 }
 0x411   :  { %2815 = shalt.err (!%p2812_p2)  }
 0x412   :  { %782 = dma.hbm_to_vmem [thread:$0]  %s770_s8, 16, %s4119_s15, [#allocation3] }
 0x413   :  { %s1558_s6 = sshll.u32 %s4116_s19, 4  ;;  %s4147_s24 = sld [smem:[#allocation5 + $0x2f]] }
 0x414   :  { %s786_s28 = scalar_lea.hbm %s4439_s3, %s1558_s6 }
 0x415   :  { %s2816_s27 = scalar_lea.hbm %s786_s28, 16  ;;  %p2819_p4 = scmp.lt.u32.totalorder %s786_s28, %s4439_s3 }
 0x416   :  { %p2817_p3 = scmp.ne.s32.totalorder %s786_s28, %s2816_s27  ;;  %p2820_p5 = scmp.lt.u32.totalorder %s3423_s29, %s2816_s27 }
 0x417   :  { %p2822_p7 = scmp.lt.u32.totalorder %s2816_s27, %s786_s28 }
 0x418   :  { %p2821_p6 = por %p2820_p5, %p2819_p4 }
 0x41a   :  { %p2823_p8 = por %p2822_p7, %p2821_p6 }
 0x41c   :  { %p2824_p9 = pnand %p2823_p8, %p2817_p3 }
 0x41e   :  { %2827 = shalt.err (!%p2824_p9)  }
 0x41f   :  { %s2828_s15 = scalar_lea.vmem %s4134_s22, 16  ;;  %p2833_p11 = scmp.lt.s32.totalorder %s4134_s22, %s3402_s12 }
 0x420   :  { %p2829_p10 = scmp.ne.s32.totalorder %s4134_s22, %s2828_s15  ;;  %p2834_p12 = scmp.lt.s32.totalorder %s3432_s7, %s2828_s15 }
 0x422   :  { %p2835_p13 = por %p2834_p12, %p2833_p11 }
 0x424   :  { %p2836_p0 = pnand %p2835_p13, %p2829_p10 }
 0x426   :  { %2839 = shalt.err (!%p2836_p0)  }
 0x427   :  { %798 = dma.hbm_to_vmem [thread:$0]  %s786_s28, 16, %s4134_s22, [#allocation3] }
 0x428   :  { %s3327_s19 = smov [#allocation2 + $0x3d]   ;;  %s4162_s0 = sld [smem:[#allocation5 + $0x30]] }
 0x429   :  { %s811_s5 = sshll.u32 %s3327_s19, 4  ;;  %s3328_s2 = smov [#allocation2 + $0x6]   ;;  %s812_s5 = int_to_ptr.vmem [resolvable:$true] %s811_s5 }
 0x42a   :  { %s828_s9 = sshll.u32 %s3328_s2, 4  ;;  %s4164_s18 = sld [smem:[#allocation5 + $0x31]]  ;;  %s4167_s9 = int_to_ptr.vmem [resolvable:$true] %s828_s9 }
 0x42b   :  { %s1560_s20 = sshll.u32 %s4147_s24, 4 }
 0x42c   :  { %s802_s21 = scalar_lea.hbm %s4439_s3, %s1560_s20 }
 0x42d   :  { %s2840_s14 = scalar_lea.hbm %s802_s21, 16  ;;  %p2843_p2 = scmp.lt.u32.totalorder %s802_s21, %s4439_s3 }
 0x42e   :  { %p2841_p1 = scmp.ne.s32.totalorder %s802_s21, %s2840_s14  ;;  %p2844_p3 = scmp.lt.u32.totalorder %s3423_s29, %s2840_s14 }
 0x42f   :  { %p2846_p5 = scmp.lt.u32.totalorder %s2840_s14, %s802_s21 }
 0x430   :  { %p2845_p4 = por %p2844_p3, %p2843_p2 }
 0x432   :  { %p2847_p6 = por %p2846_p5, %p2845_p4 }
 0x434   :  { %p2848_p7 = pnand %p2847_p6, %p2841_p1 }
 0x436   :  { %2851 = shalt.err (!%p2848_p7)  }
 0x437   :  { %s2852_s11 = scalar_lea.vmem %s812_s5, 16  ;;  %p2857_p9 = scmp.lt.s32.totalorder %s812_s5, %s3402_s12 }
 0x438   :  { %p2853_p8 = scmp.ne.s32.totalorder %s812_s5, %s2852_s11  ;;  %p2858_p10 = scmp.lt.s32.totalorder %s3432_s7, %s2852_s11 }
 0x43a   :  { %p2859_p11 = por %p2858_p10, %p2857_p9 }
 0x43c   :  { %p2860_p12 = pnand %p2859_p11, %p2853_p8 }
 0x43e   :  { %2863 = shalt.err (!%p2860_p12)  }
 0x43f   :  { %814 = dma.hbm_to_vmem [thread:$0]  %s802_s21, 16, %s812_s5, [#allocation3] }
 0x440   :  { %s1562_s16 = sshll.u32 %s4162_s0, 4  ;;  %s3329_s23 = smov [#allocation2 + $0xe]  }
 0x441   :  { %s844_s25 = sshll.u32 %s3329_s23, 4  ;;  %s819_s17 = scalar_lea.hbm %s4439_s3, %s1562_s16  ;;  %s4182_s25 = int_to_ptr.vmem [resolvable:$true] %s844_s25 }
 0x442   :  { %s2864_s26 = scalar_lea.hbm %s819_s17, 16  ;;  %p2867_p0 = scmp.lt.u32.totalorder %s819_s17, %s4439_s3 }
 0x443   :  { %p2865_p13 = scmp.ne.s32.totalorder %s819_s17, %s2864_s26  ;;  %p2868_p1 = scmp.lt.u32.totalorder %s3423_s29, %s2864_s26 }
 0x444   :  { %p2870_p3 = scmp.lt.u32.totalorder %s2864_s26, %s819_s17 }
 0x445   :  { %p2869_p2 = por %p2868_p1, %p2867_p0 }
 0x447   :  { %p2871_p4 = por %p2870_p3, %p2869_p2 }
 0x449   :  { %p2872_p5 = pnand %p2871_p4, %p2865_p13 }
 0x44b   :  { %2875 = shalt.err (!%p2872_p5)  }
 0x44c   :  { %s2876_s1 = scalar_lea.vmem %s4167_s9, 16  ;;  %p2881_p7 = scmp.lt.s32.totalorder %s4167_s9, %s3402_s12 }
 0x44d   :  { %p2877_p6 = scmp.ne.s32.totalorder %s4167_s9, %s2876_s1  ;;  %p2882_p8 = scmp.lt.s32.totalorder %s3432_s7, %s2876_s1 }
 0x44f   :  { %p2883_p9 = por %p2882_p8, %p2881_p7 }
 0x451   :  { %p2884_p10 = pnand %p2883_p9, %p2877_p6 }
 0x453   :  { %2887 = shalt.err (!%p2884_p10)  }
 0x454   :  { %831 = dma.hbm_to_vmem [thread:$0]  %s819_s17, 16, %s4167_s9, [#allocation3] }
 0x455   :  { %s1564_s30 = sshll.u32 %s4164_s18, 4  ;;  %s4195_s15 = sld [smem:[#allocation5 + $0x32]] }
 0x456   :  { %s835_s0 = scalar_lea.hbm %s4439_s3, %s1564_s30 }
 0x457   :  { %s2888_s2 = scalar_lea.hbm %s835_s0, 16  ;;  %p2891_p12 = scmp.lt.u32.totalorder %s835_s0, %s4439_s3 }
 0x458   :  { %p2889_p11 = scmp.ne.s32.totalorder %s835_s0, %s2888_s2  ;;  %p2892_p13 = scmp.lt.u32.totalorder %s3423_s29, %s2888_s2 }
 0x459   :  { %p2894_p1 = scmp.lt.u32.totalorder %s2888_s2, %s835_s0 }
 0x45a   :  { %p2893_p0 = por %p2892_p13, %p2891_p12 }
 0x45c   :  { %p2895_p2 = por %p2894_p1, %p2893_p0 }
 0x45e   :  { %p2896_p3 = pnand %p2895_p2, %p2889_p11 }
 0x460   :  { %2899 = shalt.err (!%p2896_p3)  }
 0x461   :  { %s2900_s9 = scalar_lea.vmem %s4182_s25, 16  ;;  %p2905_p5 = scmp.lt.s32.totalorder %s4182_s25, %s3402_s12 }
 0x462   :  { %p2901_p4 = scmp.ne.s32.totalorder %s4182_s25, %s2900_s9  ;;  %p2906_p6 = scmp.lt.s32.totalorder %s3432_s7, %s2900_s9 }
 0x464   :  { %p2907_p7 = por %p2906_p6, %p2905_p5 }
 0x466   :  { %p2908_p8 = pnand %p2907_p7, %p2901_p4 }
 0x468   :  { %2911 = shalt.err (!%p2908_p8)  }
 0x469   :  { %847 = dma.hbm_to_vmem [thread:$0]  %s835_s0, 16, %s4182_s25, [#allocation3] }
 0x46a   :  { %s3330_s18 = smov [#allocation2 + $0x16]   ;;  %s4210_s21 = sld [smem:[#allocation5 + $0x33]] }
 0x46b   :  { %s860_s13 = sshll.u32 %s3330_s18, 4  ;;  %s3331_s14 = smov [#allocation2 + $0x1e]   ;;  %s861_s13 = int_to_ptr.vmem [resolvable:$true] %s860_s13 }
 0x46c   :  { %s876_s8 = sshll.u32 %s3331_s14, 4  ;;  %s4212_s22 = sld [smem:[#allocation5 + $0x34]]  ;;  %s4215_s8 = int_to_ptr.vmem [resolvable:$true] %s876_s8 }
 0x46d   :  { %s1566_s11 = sshll.u32 %s4195_s15, 4 }
 0x46e   :  { %s851_s6 = scalar_lea.hbm %s4439_s3, %s1566_s11 }
 0x46f   :  { %s2912_s24 = scalar_lea.hbm %s851_s6, 16  ;;  %p2915_p10 = scmp.lt.u32.totalorder %s851_s6, %s4439_s3 }
 0x470   :  { %p2913_p9 = scmp.ne.s32.totalorder %s851_s6, %s2912_s24  ;;  %p2916_p11 = scmp.lt.u32.totalorder %s3423_s29, %s2912_s24 }
 0x471   :  { %p2918_p13 = scmp.lt.u32.totalorder %s2912_s24, %s851_s6 }
 0x472   :  { %p2917_p12 = por %p2916_p11, %p2915_p10 }
 0x474   :  { %p2919_p0 = por %p2918_p13, %p2917_p12 }
 0x476   :  { %p2920_p1 = pnand %p2919_p0, %p2913_p9 }
 0x478   :  { %2923 = shalt.err (!%p2920_p1)  }
 0x479   :  { %s2924_s26 = scalar_lea.vmem %s861_s13, 16  ;;  %p2929_p3 = scmp.lt.s32.totalorder %s861_s13, %s3402_s12 }
 0x47a   :  { %p2925_p2 = scmp.ne.s32.totalorder %s861_s13, %s2924_s26  ;;  %p2930_p4 = scmp.lt.s32.totalorder %s3432_s7, %s2924_s26 }
 0x47c   :  { %p2931_p5 = por %p2930_p4, %p2929_p3 }
 0x47e   :  { %p2932_p6 = pnand %p2931_p5, %p2925_p2 }
 0x480   :  { %2935 = shalt.err (!%p2932_p6)  }
 0x481   :  { %863 = dma.hbm_to_vmem [thread:$0]  %s851_s6, 16, %s861_s13, [#allocation3] }
 0x482   :  { %s1568_s28 = sshll.u32 %s4210_s21, 4  ;;  %s3332_s27 = smov [#allocation2 + $0x26]  }
 0x483   :  { %s892_s1 = sshll.u32 %s3332_s27, 4  ;;  %s867_s19 = scalar_lea.hbm %s4439_s3, %s1568_s28  ;;  %s4230_s1 = int_to_ptr.vmem [resolvable:$true] %s892_s1 }
 0x484   :  { %s2936_s5 = scalar_lea.hbm %s867_s19, 16  ;;  %p2939_p8 = scmp.lt.u32.totalorder %s867_s19, %s4439_s3 }
 0x485   :  { %p2937_p7 = scmp.ne.s32.totalorder %s867_s19, %s2936_s5  ;;  %p2940_p9 = scmp.lt.u32.totalorder %s3423_s29, %s2936_s5 }
 0x486   :  { %p2942_p11 = scmp.lt.u32.totalorder %s2936_s5, %s867_s19 }
 0x487   :  { %p2941_p10 = por %p2940_p9, %p2939_p8 }
 0x489   :  { %p2943_p12 = por %p2942_p11, %p2941_p10 }
 0x48b   :  { %p2944_p13 = pnand %p2943_p12, %p2937_p7 }
 0x48d   :  { %2947 = shalt.err (!%p2944_p13)  }
 0x48e   :  { %s2948_s20 = scalar_lea.vmem %s4215_s8, 16  ;;  %p2953_p1 = scmp.lt.s32.totalorder %s4215_s8, %s3402_s12 }
 0x48f   :  { %p2949_p0 = scmp.ne.s32.totalorder %s4215_s8, %s2948_s20  ;;  %p2954_p2 = scmp.lt.s32.totalorder %s3432_s7, %s2948_s20 }
 0x491   :  { %p2955_p3 = por %p2954_p2, %p2953_p1 }
 0x493   :  { %p2956_p4 = pnand %p2955_p3, %p2949_p0 }
 0x495   :  { %2959 = shalt.err (!%p2956_p4)  }
 0x496   :  { %879 = dma.hbm_to_vmem [thread:$0]  %s867_s19, 16, %s4215_s8, [#allocation3] }
 0x497   :  { %s1570_s10 = sshll.u32 %s4212_s22, 4  ;;  %s4243_s9 = sld [smem:[#allocation5 + $0x35]] }
 0x498   :  { %s883_s21 = scalar_lea.hbm %s4439_s3, %s1570_s10 }
 0x499   :  { %s2960_s14 = scalar_lea.hbm %s883_s21, 16  ;;  %p2963_p6 = scmp.lt.u32.totalorder %s883_s21, %s4439_s3 }
 0x49a   :  { %p2961_p5 = scmp.ne.s32.totalorder %s883_s21, %s2960_s14  ;;  %p2964_p7 = scmp.lt.u32.totalorder %s3423_s29, %s2960_s14 }
 0x49b   :  { %p2966_p9 = scmp.lt.u32.totalorder %s2960_s14, %s883_s21 }
 0x49c   :  { %p2965_p8 = por %p2964_p7, %p2963_p6 }
 0x49e   :  { %p2967_p10 = por %p2966_p9, %p2965_p8 }
 0x4a0   :  { %p2968_p11 = pnand %p2967_p10, %p2961_p5 }
 0x4a2   :  { %2971 = shalt.err (!%p2968_p11)  }
 0x4a3   :  { %s2972_s8 = scalar_lea.vmem %s4230_s1, 16  ;;  %p2977_p13 = scmp.lt.s32.totalorder %s4230_s1, %s3402_s12 }
 0x4a4   :  { %p2973_p12 = scmp.ne.s32.totalorder %s4230_s1, %s2972_s8  ;;  %p2978_p0 = scmp.lt.s32.totalorder %s3432_s7, %s2972_s8 }
 0x4a6   :  { %p2979_p1 = por %p2978_p0, %p2977_p13 }
 0x4a8   :  { %p2980_p2 = pnand %p2979_p1, %p2973_p12 }
 0x4aa   :  { %2983 = shalt.err (!%p2980_p2)  }
 0x4ab   :  { %895 = dma.hbm_to_vmem [thread:$0]  %s883_s21, 16, %s4230_s1, [#allocation3] }
 0x4ac   :  { %s3333_s22 = smov [#allocation2 + $0x2e]   ;;  %s4258_s6 = sld [smem:[#allocation5 + $0x36]] }
 0x4ad   :  { %s908_s23 = sshll.u32 %s3333_s22, 4  ;;  %s3334_s24 = smov [#allocation2 + $0x36]   ;;  %s909_s23 = int_to_ptr.vmem [resolvable:$true] %s908_s23 }
 0x4ae   :  { %s924_s17 = sshll.u32 %s3334_s24, 4  ;;  %s4260_s25 = sld [smem:[#allocation5 + $0x37]]  ;;  %s4263_s17 = int_to_ptr.vmem [resolvable:$true] %s924_s17 }
 0x4af   :  { %s1572_s26 = sshll.u32 %s4243_s9, 4 }
 0x4b0   :  { %s899_s30 = scalar_lea.hbm %s4439_s3, %s1572_s26 }
 0x4b1   :  { %s2984_s15 = scalar_lea.hbm %s899_s30, 16  ;;  %p2987_p4 = scmp.lt.u32.totalorder %s899_s30, %s4439_s3 }
 0x4b2   :  { %p2985_p3 = scmp.ne.s32.totalorder %s899_s30, %s2984_s15  ;;  %p2988_p5 = scmp.lt.u32.totalorder %s3423_s29, %s2984_s15 }
 0x4b3   :  { %p2990_p7 = scmp.lt.u32.totalorder %s2984_s15, %s899_s30 }
 0x4b4   :  { %p2989_p6 = por %p2988_p5, %p2987_p4 }
 0x4b6   :  { %p2991_p8 = por %p2990_p7, %p2989_p6 }
 0x4b8   :  { %p2992_p9 = pnand %p2991_p8, %p2985_p3 }
 0x4ba   :  { %2995 = shalt.err (!%p2992_p9)  }
 0x4bb   :  { %s2996_s5 = scalar_lea.vmem %s909_s23, 16  ;;  %p3001_p11 = scmp.lt.s32.totalorder %s909_s23, %s3402_s12 }
 0x4bc   :  { %p2997_p10 = scmp.ne.s32.totalorder %s909_s23, %s2996_s5  ;;  %p3002_p12 = scmp.lt.s32.totalorder %s3432_s7, %s2996_s5 }
 0x4be   :  { %p3003_p13 = por %p3002_p12, %p3001_p11 }
 0x4c0   :  { %p3004_p0 = pnand %p3003_p13, %p2997_p10 }
 0x4c2   :  { %3007 = shalt.err (!%p3004_p0)  }
 0x4c3   :  { %911 = dma.hbm_to_vmem [thread:$0]  %s899_s30, 16, %s909_s23, [#allocation3] }
 0x4c4   :  { %s1574_s0 = sshll.u32 %s4258_s6, 4  ;;  %s3335_s2 = smov [#allocation2 + $0x3e]  }
 0x4c5   :  { %s940_s20 = sshll.u32 %s3335_s2, 4  ;;  %s915_s18 = scalar_lea.hbm %s4439_s3, %s1574_s0  ;;  %s4278_s20 = int_to_ptr.vmem [resolvable:$true] %s940_s20 }
 0x4c6   :  { %s3008_s13 = scalar_lea.hbm %s915_s18, 16  ;;  %p3011_p2 = scmp.lt.u32.totalorder %s915_s18, %s4439_s3 }
 0x4c7   :  { %p3009_p1 = scmp.ne.s32.totalorder %s915_s18, %s3008_s13  ;;  %p3012_p3 = scmp.lt.u32.totalorder %s3423_s29, %s3008_s13 }
 0x4c8   :  { %p3014_p5 = scmp.lt.u32.totalorder %s3008_s13, %s915_s18 }
 0x4c9   :  { %p3013_p4 = por %p3012_p3, %p3011_p2 }
 0x4cb   :  { %p3015_p6 = por %p3014_p5, %p3013_p4 }
 0x4cd   :  { %p3016_p7 = pnand %p3015_p6, %p3009_p1 }
 0x4cf   :  { %3019 = shalt.err (!%p3016_p7)  }
 0x4d0   :  { %s3020_s11 = scalar_lea.vmem %s4263_s17, 16  ;;  %p3025_p9 = scmp.lt.s32.totalorder %s4263_s17, %s3402_s12 }
 0x4d1   :  { %p3021_p8 = scmp.ne.s32.totalorder %s4263_s17, %s3020_s11  ;;  %p3026_p10 = scmp.lt.s32.totalorder %s3432_s7, %s3020_s11 }
 0x4d3   :  { %p3027_p11 = por %p3026_p10, %p3025_p9 }
 0x4d5   :  { %p3028_p12 = pnand %p3027_p11, %p3021_p8 }
 0x4d7   :  { %3031 = shalt.err (!%p3028_p12)  }
 0x4d8   :  { %927 = dma.hbm_to_vmem [thread:$0]  %s915_s18, 16, %s4263_s17, [#allocation3] }
 0x4d9   :  { %s1576_s16 = sshll.u32 %s4260_s25, 4  ;;  %s4291_s8 = sld [smem:[#allocation5 + $0x38]] }
 0x4da   :  { %s931_s6 = scalar_lea.hbm %s4439_s3, %s1576_s16 }
 0x4db   :  { %s3032_s24 = scalar_lea.hbm %s931_s6, 16  ;;  %p3035_p0 = scmp.lt.u32.totalorder %s931_s6, %s4439_s3 }
 0x4dc   :  { %p3033_p13 = scmp.ne.s32.totalorder %s931_s6, %s3032_s24  ;;  %p3036_p1 = scmp.lt.u32.totalorder %s3423_s29, %s3032_s24 }
 0x4dd   :  { %p3038_p3 = scmp.lt.u32.totalorder %s3032_s24, %s931_s6 }
 0x4de   :  { %p3037_p2 = por %p3036_p1, %p3035_p0 }
 0x4e0   :  { %p3039_p4 = por %p3038_p3, %p3037_p2 }
 0x4e2   :  { %p3040_p5 = pnand %p3039_p4, %p3033_p13 }
 0x4e4   :  { %3043 = shalt.err (!%p3040_p5)  }
 0x4e5   :  { %s3044_s17 = scalar_lea.vmem %s4278_s20, 16  ;;  %p3049_p7 = scmp.lt.s32.totalorder %s4278_s20, %s3402_s12 }
 0x4e6   :  { %p3045_p6 = scmp.ne.s32.totalorder %s4278_s20, %s3044_s17  ;;  %p3050_p8 = scmp.lt.s32.totalorder %s3432_s7, %s3044_s17 }
 0x4e8   :  { %p3051_p9 = por %p3050_p8, %p3049_p7 }
 0x4ea   :  { %p3052_p10 = pnand %p3051_p9, %p3045_p6 }
 0x4ec   :  { %3055 = shalt.err (!%p3052_p10)  }
 0x4ed   :  { %943 = dma.hbm_to_vmem [thread:$0]  %s931_s6, 16, %s4278_s20, [#allocation3] }
 0x4ee   :  { %s3336_s25 = smov [#allocation2 + $0x7]   ;;  %s4306_s30 = sld [smem:[#allocation5 + $0x39]] }
 0x4ef   :  { %s957_s27 = sshll.u32 %s3336_s25, 4  ;;  %s3337_s15 = smov [#allocation2 + $0xf]   ;;  %s958_s27 = int_to_ptr.vmem [resolvable:$true] %s957_s27 }
 0x4f0   :  { %s973_s19 = sshll.u32 %s3337_s15, 4  ;;  %s4308_s1 = sld [smem:[#allocation5 + $0x3a]]  ;;  %s4311_s19 = int_to_ptr.vmem [resolvable:$true] %s973_s19 }
 0x4f1   :  { %s1578_s5 = sshll.u32 %s4291_s8, 4 }
 0x4f2   :  { %s948_s10 = scalar_lea.hbm %s4439_s3, %s1578_s5 }
 0x4f3   :  { %s3056_s9 = scalar_lea.hbm %s948_s10, 16  ;;  %p3059_p12 = scmp.lt.u32.totalorder %s948_s10, %s4439_s3 }
 0x4f4   :  { %p3057_p11 = scmp.ne.s32.totalorder %s948_s10, %s3056_s9  ;;  %p3060_p13 = scmp.lt.u32.totalorder %s3423_s29, %s3056_s9 }
 0x4f5   :  { %p3062_p1 = scmp.lt.u32.totalorder %s3056_s9, %s948_s10 }
 0x4f6   :  { %p3061_p0 = por %p3060_p13, %p3059_p12 }
 0x4f8   :  { %p3063_p2 = por %p3062_p1, %p3061_p0 }
 0x4fa   :  { %p3064_p3 = pnand %p3063_p2, %p3057_p11 }
 0x4fc   :  { %3067 = shalt.err (!%p3064_p3)  }
 0x4fd   :  { %s3068_s13 = scalar_lea.vmem %s958_s27, 16  ;;  %p3073_p5 = scmp.lt.s32.totalorder %s958_s27, %s3402_s12 }
 0x4fe   :  { %p3069_p4 = scmp.ne.s32.totalorder %s958_s27, %s3068_s13  ;;  %p3074_p6 = scmp.lt.s32.totalorder %s3432_s7, %s3068_s13 }
 0x500   :  { %p3075_p7 = por %p3074_p6, %p3073_p5 }
 0x502   :  { %p3076_p8 = pnand %p3075_p7, %p3069_p4 }
 0x504   :  { %3079 = shalt.err (!%p3076_p8)  }
 0x505   :  { %960 = dma.hbm_to_vmem [thread:$0]  %s948_s10, 16, %s958_s27, [#allocation3] }
 0x506   :  { %s1580_s21 = sshll.u32 %s4306_s30, 4  ;;  %s3338_s14 = smov [#allocation2 + $0x17]  }
 0x507   :  { %s989_s11 = sshll.u32 %s3338_s14, 4  ;;  %s964_s22 = scalar_lea.hbm %s4439_s3, %s1580_s21  ;;  %s4326_s11 = int_to_ptr.vmem [resolvable:$true] %s989_s11 }
 0x508   :  { %s3080_s23 = scalar_lea.hbm %s964_s22, 16  ;;  %p3083_p10 = scmp.lt.u32.totalorder %s964_s22, %s4439_s3 }
 0x509   :  { %p3081_p9 = scmp.ne.s32.totalorder %s964_s22, %s3080_s23  ;;  %p3084_p11 = scmp.lt.u32.totalorder %s3423_s29, %s3080_s23 }
 0x50a   :  { %p3086_p13 = scmp.lt.u32.totalorder %s3080_s23, %s964_s22 }
 0x50b   :  { %p3085_p12 = por %p3084_p11, %p3083_p10 }
 0x50d   :  { %p3087_p0 = por %p3086_p13, %p3085_p12 }
 0x50f   :  { %p3088_p1 = pnand %p3087_p0, %p3081_p9 }
 0x511   :  { %3091 = shalt.err (!%p3088_p1)  }
 0x512   :  { %s3092_s26 = scalar_lea.vmem %s4311_s19, 16  ;;  %p3097_p3 = scmp.lt.s32.totalorder %s4311_s19, %s3402_s12 }
 0x513   :  { %p3093_p2 = scmp.ne.s32.totalorder %s4311_s19, %s3092_s26  ;;  %p3098_p4 = scmp.lt.s32.totalorder %s3432_s7, %s3092_s26 }
 0x515   :  { %p3099_p5 = por %p3098_p4, %p3097_p3 }
 0x517   :  { %p3100_p6 = pnand %p3099_p5, %p3093_p2 }
 0x519   :  { %3103 = shalt.err (!%p3100_p6)  }
 0x51a   :  { %976 = dma.hbm_to_vmem [thread:$0]  %s964_s22, 16, %s4311_s19, [#allocation3] }
 0x51b   :  { %s1582_s28 = sshll.u32 %s4308_s1, 4  ;;  %s4339_s17 = sld [smem:[#allocation5 + $0x3b]] }
 0x51c   :  { %s980_s30 = scalar_lea.hbm %s4439_s3, %s1582_s28 }
 0x51d   :  { %s3104_s15 = scalar_lea.hbm %s980_s30, 16  ;;  %p3107_p8 = scmp.lt.u32.totalorder %s980_s30, %s4439_s3 }
 0x51e   :  { %p3105_p7 = scmp.ne.s32.totalorder %s980_s30, %s3104_s15  ;;  %p3108_p9 = scmp.lt.u32.totalorder %s3423_s29, %s3104_s15 }
 0x51f   :  { %p3110_p11 = scmp.lt.u32.totalorder %s3104_s15, %s980_s30 }
 0x520   :  { %p3109_p10 = por %p3108_p9, %p3107_p8 }
 0x522   :  { %p3111_p12 = por %p3110_p11, %p3109_p10 }
 0x524   :  { %p3112_p13 = pnand %p3111_p12, %p3105_p7 }
 0x526   :  { %3115 = shalt.err (!%p3112_p13)  }
 0x527   :  { %s3116_s19 = scalar_lea.vmem %s4326_s11, 16  ;;  %p3121_p1 = scmp.lt.s32.totalorder %s4326_s11, %s3402_s12 }
 0x528   :  { %p3117_p0 = scmp.ne.s32.totalorder %s4326_s11, %s3116_s19  ;;  %p3122_p2 = scmp.lt.s32.totalorder %s3432_s7, %s3116_s19 }
 0x52a   :  { %p3123_p3 = por %p3122_p2, %p3121_p1 }
 0x52c   :  { %p3124_p4 = pnand %p3123_p3, %p3117_p0 }
 0x52e   :  { %3127 = shalt.err (!%p3124_p4)  }
 0x52f   :  { %992 = dma.hbm_to_vmem [thread:$0]  %s980_s30, 16, %s4326_s11, [#allocation3] }
 0x530   :  { %s3339_s1 = smov [#allocation2 + $0x1f]   ;;  %s4354_s10 = sld [smem:[#allocation5 + $0x3c]] }
 0x531   :  { %s1005_s2 = sshll.u32 %s3339_s1, 4  ;;  %s3340_s9 = smov [#allocation2 + $0x27]   ;;  %s1006_s2 = int_to_ptr.vmem [resolvable:$true] %s1005_s2 }
 0x532   :  { %s1021_s18 = sshll.u32 %s3340_s9, 4  ;;  %s4356_s20 = sld [smem:[#allocation5 + $0x3d]]  ;;  %s4359_s18 = int_to_ptr.vmem [resolvable:$true] %s1021_s18 }
 0x533   :  { %s1584_s13 = sshll.u32 %s4339_s17, 4 }
 0x534   :  { %s996_s16 = scalar_lea.hbm %s4439_s3, %s1584_s13 }
 0x535   :  { %s3128_s8 = scalar_lea.hbm %s996_s16, 16  ;;  %p3131_p6 = scmp.lt.u32.totalorder %s996_s16, %s4439_s3 }
 0x536   :  { %p3129_p5 = scmp.ne.s32.totalorder %s996_s16, %s3128_s8  ;;  %p3132_p7 = scmp.lt.u32.totalorder %s3423_s29, %s3128_s8 }
 0x537   :  { %p3134_p9 = scmp.lt.u32.totalorder %s3128_s8, %s996_s16 }
 0x538   :  { %p3133_p8 = por %p3132_p7, %p3131_p6 }
 0x53a   :  { %p3135_p10 = por %p3134_p9, %p3133_p8 }
 0x53c   :  { %p3136_p11 = pnand %p3135_p10, %p3129_p5 }
 0x53e   :  { %3139 = shalt.err (!%p3136_p11)  }
 0x53f   :  { %s3140_s23 = scalar_lea.vmem %s1006_s2, 16  ;;  %p3145_p13 = scmp.lt.s32.totalorder %s1006_s2, %s3402_s12 }
 0x540   :  { %p3141_p12 = scmp.ne.s32.totalorder %s1006_s2, %s3140_s23  ;;  %p3146_p0 = scmp.lt.s32.totalorder %s3432_s7, %s3140_s23 }
 0x542   :  { %p3147_p1 = por %p3146_p0, %p3145_p13 }
 0x544   :  { %p3148_p2 = pnand %p3147_p1, %p3141_p12 }
 0x546   :  { %3151 = shalt.err (!%p3148_p2)  }
 0x547   :  { %1008 = dma.hbm_to_vmem [thread:$0]  %s996_s16, 16, %s1006_s2, [#allocation3] }
 0x548   :  { %s1586_s6 = sshll.u32 %s4354_s10, 4  ;;  %s3341_s24 = smov [#allocation2 + $0x2f]  }
 0x549   :  { %s1037_s26 = sshll.u32 %s3341_s24, 4  ;;  %s1012_s25 = scalar_lea.hbm %s4439_s3, %s1586_s6  ;;  %s4374_s26 = int_to_ptr.vmem [resolvable:$true] %s1037_s26 }
 0x54a   :  { %s3152_s27 = scalar_lea.hbm %s1012_s25, 16  ;;  %p3155_p4 = scmp.lt.u32.totalorder %s1012_s25, %s4439_s3 }
 0x54b   :  { %p3153_p3 = scmp.ne.s32.totalorder %s1012_s25, %s3152_s27  ;;  %p3156_p5 = scmp.lt.u32.totalorder %s3423_s29, %s3152_s27 }
 0x54c   :  { %p3158_p7 = scmp.lt.u32.totalorder %s3152_s27, %s1012_s25 }
 0x54d   :  { %p3157_p6 = por %p3156_p5, %p3155_p4 }
 0x54f   :  { %p3159_p8 = por %p3158_p7, %p3157_p6 }
 0x551   :  { %p3160_p9 = pnand %p3159_p8, %p3153_p3 }
 0x553   :  { %3163 = shalt.err (!%p3160_p9)  }
 0x554   :  { %s3164_s5 = scalar_lea.vmem %s4359_s18, 16  ;;  %p3169_p11 = scmp.lt.s32.totalorder %s4359_s18, %s3402_s12 }
 0x555   :  { %p3165_p10 = scmp.ne.s32.totalorder %s4359_s18, %s3164_s5  ;;  %p3170_p12 = scmp.lt.s32.totalorder %s3432_s7, %s3164_s5 }
 0x557   :  { %p3171_p13 = por %p3170_p12, %p3169_p11 }
 0x559   :  { %p3172_p0 = pnand %p3171_p13, %p3165_p10 }
 0x55b   :  { %3175 = shalt.err (!%p3172_p0)  }
 0x55c   :  { %1024 = dma.hbm_to_vmem [thread:$0]  %s1012_s25, 16, %s4359_s18, [#allocation3] }
 0x55d   :  { %s1588_s0 = sshll.u32 %s4356_s20, 4  ;;  %s1589_s19 = sld [smem:[#allocation5 + $0x3e]] }
 0x55e   :  { %s1028_s10 = scalar_lea.hbm %s4439_s3, %s1588_s0 }
 0x55f   :  { %s3176_s9 = scalar_lea.hbm %s1028_s10, 16  ;;  %p3179_p2 = scmp.lt.u32.totalorder %s1028_s10, %s4439_s3 }
 0x560   :  { %p3177_p1 = scmp.ne.s32.totalorder %s1028_s10, %s3176_s9  ;;  %p3180_p3 = scmp.lt.u32.totalorder %s3423_s29, %s3176_s9 }
 0x561   :  { %p3182_p5 = scmp.lt.u32.totalorder %s3176_s9, %s1028_s10 }
 0x562   :  { %p3181_p4 = por %p3180_p3, %p3179_p2 }
 0x564   :  { %p3183_p6 = por %p3182_p5, %p3181_p4 }
 0x566   :  { %p3184_p7 = pnand %p3183_p6, %p3177_p1 }
 0x568   :  { %3187 = shalt.err (!%p3184_p7)  }
 0x569   :  { %s3188_s18 = scalar_lea.vmem %s4374_s26, 16  ;;  %p3193_p9 = scmp.lt.s32.totalorder %s4374_s26, %s3402_s12 }
 0x56a   :  { %p3189_p8 = scmp.ne.s32.totalorder %s4374_s26, %s3188_s18  ;;  %p3194_p10 = scmp.lt.s32.totalorder %s3432_s7, %s3188_s18 }
 0x56c   :  { %p3195_p11 = por %p3194_p10, %p3193_p9 }
 0x56e   :  { %p3196_p12 = pnand %p3195_p11, %p3189_p8 }
 0x570   :  { %3199 = shalt.err (!%p3196_p12)  }
 0x571   :  { %1040 = dma.hbm_to_vmem [thread:$0]  %s1028_s10, 16, %s4374_s26, [#allocation3] }
 0x572   :  { %s3342_s20 = smov [#allocation2 + $0x37]   ;;  %s1591_s16 = sld [smem:[#allocation5 + $0x3f]] }
 0x573   :  { %s1053_s14 = sshll.u32 %s3342_s20, 4  ;;  %s3343_s8 = smov [#allocation2 + $0x3f]   ;;  %s1054_s14 = int_to_ptr.vmem [resolvable:$true] %s1053_s14 }
 0x574   :  { %s1069_s22 = sshll.u32 %s3343_s8, 4  ;;  %s1590_s11 = sshll.u32 %s1589_s19, 4  ;;  %s4403_s22 = int_to_ptr.vmem [resolvable:$true] %s1069_s22 }
 0x575   :  { %s1044_s24 = scalar_lea.hbm %s4439_s3, %s1590_s11 }
 0x576   :  { %s3200_s28 = scalar_lea.hbm %s1044_s24, 16  ;;  %p3203_p0 = scmp.lt.u32.totalorder %s1044_s24, %s4439_s3 }
 0x577   :  { %p3201_p13 = scmp.ne.s32.totalorder %s1044_s24, %s3200_s28  ;;  %p3204_p1 = scmp.lt.u32.totalorder %s3423_s29, %s3200_s28 }
 0x578   :  { %p3206_p3 = scmp.lt.u32.totalorder %s3200_s28, %s1044_s24 }
 0x579   :  { %p3205_p2 = por %p3204_p1, %p3203_p0 }
 0x57b   :  { %p3207_p4 = por %p3206_p3, %p3205_p2 }
 0x57d   :  { %p3208_p5 = pnand %p3207_p4, %p3201_p13 }
 0x57f   :  { %3211 = shalt.err (!%p3208_p5)  }
 0x580   :  { %s3212_s26 = scalar_lea.vmem %s1054_s14, 16  ;;  %p3217_p7 = scmp.lt.s32.totalorder %s1054_s14, %s3402_s12 }
 0x581   :  { %p3213_p6 = scmp.ne.s32.totalorder %s1054_s14, %s3212_s26  ;;  %p3218_p8 = scmp.lt.s32.totalorder %s3432_s7, %s3212_s26 }
 0x583   :  { %p3219_p9 = por %p3218_p8, %p3217_p7 }
 0x585   :  { %p3220_p10 = pnand %p3219_p9, %p3213_p6 }
 0x587   :  { %3223 = shalt.err (!%p3220_p10)  }
 0x588   :  { %1056 = dma.hbm_to_vmem [thread:$0]  %s1044_s24, 16, %s1054_s14, [#allocation3] }
 0x589   :  { %s1592_s27 = sshll.u32 %s1591_s16, 4 }
 0x58a   :  { %s1060_s5 = scalar_lea.hbm %s4439_s3, %s1592_s27 }
 0x58b   :  { %s3224_s0 = scalar_lea.hbm %s1060_s5, 16  ;;  %p3227_p12 = scmp.lt.u32.totalorder %s1060_s5, %s4439_s3 }
 0x58c   :  { %p3225_p11 = scmp.ne.s32.totalorder %s1060_s5, %s3224_s0  ;;  %p3228_p13 = scmp.lt.u32.totalorder %s3423_s29, %s3224_s0 }
 0x58d   :  { %p3230_p1 = scmp.lt.u32.totalorder %s3224_s0, %s1060_s5 }
 0x58e   :  { %p3229_p0 = por %p3228_p13, %p3227_p12 }
 0x590   :  { %p3231_p2 = por %p3230_p1, %p3229_p0 }
 0x592   :  { %p3232_p3 = pnand %p3231_p2, %p3225_p11 }
 0x594   :  { %3235 = shalt.err (!%p3232_p3)  }
 0x595   :  { %s3236_s2 = scalar_lea.vmem %s4403_s22, 16  ;;  %p3241_p5 = scmp.lt.s32.totalorder %s4403_s22, %s3402_s12 }
 0x596   :  { %p3237_p4 = scmp.ne.s32.totalorder %s4403_s22, %s3236_s2  ;;  %p3242_p6 = scmp.lt.s32.totalorder %s3432_s7, %s3236_s2 }
 0x598   :  { %p3243_p7 = por %p3242_p6, %p3241_p5 }
 0x59a   :  { %p3244_p8 = pnand %p3243_p7, %p3237_p4 }
 0x59c   :  { %3247 = shalt.err (!%p3244_p8)  }
 0x59d   :  { %1072 = dma.hbm_to_vmem [thread:$0]  %s1060_s5, 16, %s4403_s22, [#allocation3] }
 0x59e   :  { %3274 = dma.done.wait [#allocation3], 1024 }
 0x59f   :  { %3275 = vsyncadd [#allocation3], 4294966272  ;;  %v3344_v1 = vmov 2   ;;  %v3345_v2 = vmov 0   ;;  %v1210_v3 = vld [vmem:[#allocation6] sm:$0xff]  ;;  %v3346_v4 = vmov 3  }
 0x5a0   :  { %1673 = vset.pattern.permute.xlu1 %v3344_v1  ;;  %1671 = vset.pattern.permute.xlu0 %v3345_v2  ;;  %v3347_v5 = vmov 1   ;;  %v3348_v6 = vmov 4   ;;  %v3349_v7 = vmov 5   ;;  %v3350_v8 = vmov 6   ;;  %v1214_v10 = vld [vmem:[#allocation2] sm:$0xff]  ;;  %v1211_v13 = vld [vmem:[#allocation9] sm:$0xff] }
 0x5a1   :  { %1235 = vperm.xlu1 %1673, %v1210_v3   ;;  %1217 = vperm.xlu0 %1671, %v1210_v3   ;;  %v3351_v9 = vmov 7   ;;  %v1224_v15 = vld [vmem:[#allocation2 + $0x8] sm:$0xff]  ;;  %v1233_v17 = vld [vmem:[#allocation2 + $0x10] sm:$0xff]  ;;  %v1242_v21 = vld [vmem:[#allocation2 + $0x18] sm:$0xff]  ;;  %s3352_s3 = smov [#allocation9]  }
 0x5a2   :  { %v1251_v24 = vld [vmem:[#allocation2 + $0x20] sm:$0xff]  ;;  %v1260_v28 = vld [vmem:[#allocation2 + $0x28] sm:$0xff]  ;;  %v1269_v34 = vld [vmem:[#allocation2 + $0x30] sm:$0xff]  ;;  %s1292_s12 = sshll.u32 %s3352_s3, 4  ;;  %s1293_s12 = int_to_ptr.vmem [resolvable:$true] %s1292_s12 }
 0x5a3   :  { %v1278_v38 = vld [vmem:[#allocation2 + $0x38] sm:$0xff]  ;;  %s3248_s29 = scalar_lea.vmem %s1293_s12, 128  ;;  %p3253_p10 = scmp.lt.s32.totalorder %s1293_s12, %s1293_s12 }
 0x5a4   :  { %p3249_p9 = scmp.ne.s32.totalorder %s1293_s12, %s3248_s29  ;;  %p3254_p11 = scmp.lt.s32.totalorder %s3248_s29, %s3248_s29 }
 0x5a5   :  { %1674 = vset.pattern.permute.xlu1 %v3346_v4  ;;  %1672 = vset.pattern.permute.xlu0 %v3347_v5 }
 0x5a6   :  { %1244 = vperm.xlu1 %1674, %v1210_v3   ;;  %1226 = vperm.xlu0 %1672, %v1210_v3   ;;  %p3255_p12 = por %p3254_p11, %p3253_p10 }
 0x5a8   :  { %p3256_p13 = pnand %p3255_p12, %p3249_p9 }
 0x5aa   :  { %1675 = vset.pattern.permute.xlu1 %v3348_v6  ;;  %1676 = vset.pattern.permute.xlu0 %v3349_v7 }
 0x5ab   :  { %1253 = vperm.xlu1 %1675, %v1210_v3   ;;  %1262 = vperm.xlu0 %1676, %v1210_v3  }
 0x5af   :  { %1677 = vset.pattern.permute.xlu1 %v3350_v8  ;;  %1679 = vset.pattern.permute.xlu0 %v3351_v9 }
 0x5b0   :  { %1271 = vperm.xlu1 %1677, %v1210_v3  }
 0x5b4   :  { %1678 = vset.pattern.permute.xlu1 %v3351_v9 }
 0x5b5   :  { %1280 = vperm.xlu1 %1678, %v1210_v3  }
 0x620   :  { %v1236_v11 = vpop.permute.xlu1 %1235  ;;  %v1218_v12 = vpop.permute.xlu0 %1217 }
 0x621   :  { %v1220_v14 = vmul.f32 %v1218_v12, %v1214_v10  ;;  %v1238_v22 = vmul.f32 %v1236_v11, %v1233_v17 }
 0x623   :  { %v1221_v16 = vadd.f32 %v1220_v14, %v1211_v13 }
 0x625   :  { %v1245_v18 = vpop.permute.xlu1 %1244  ;;  %v1227_v19 = vpop.permute.xlu0 %1226 }
 0x626   :  { %v1229_v20 = vmul.f32 %v1227_v19, %v1224_v15  ;;  %v1247_v25 = vmul.f32 %v1245_v18, %v1242_v21 }
 0x628   :  { %v1230_v23 = vadd.f32 %v1229_v20, %v1221_v16 }
 0x62a   :  { %v1239_v26 = vadd.f32 %v1238_v22, %v1230_v23  ;;  %v1254_v27 = vpop.permute.xlu1 %1253  ;;  %v1263_v29 = vpop.permute.xlu0 %1262 }
 0x62b   :  { %v1256_v30 = vmul.f32 %v1254_v27, %v1251_v24  ;;  %v1265_v32 = vmul.f32 %v1263_v29, %v1260_v28 }
 0x62c   :  { %v1248_v31 = vadd.f32 %v1247_v25, %v1239_v26 }
 0x62e   :  { %v1257_v33 = vadd.f32 %v1256_v30, %v1248_v31 }
 0x62f   :  { %v1272_v35 = vpop.permute.xlu1 %1271 }
 0x630   :  { %v1266_v36 = vadd.f32 %v1265_v32, %v1257_v33  ;;  %v1274_v37 = vmul.f32 %v1272_v35, %v1269_v34 }
 0x632   :  { %v1275_v40 = vadd.f32 %v1274_v37, %v1266_v36 }
 0x634   :  { %v1281_v39 = vpop.permute.xlu1 %1280 }
 0x635   :  { %v1283_v41 = vmul.f32 %v1281_v39, %v1278_v38 }
 0x637   :  { %v1284_v42 = vadd.f32 %v1283_v41, %v1275_v40 }
 0x639   :  { %1285 = vst [vmem:[#allocation9] sm:$0xff] %v1284_v42 }
 0x63a   :  { %3259 = shalt.err (!%p3256_p13)
}
 0x63b   :  { %s3260_s9 = scalar_lea.hbm %s4440_s4, 128 }
 0x63c   :  { %p3261_p0 = scmp.ne.s32.totalorder %s4440_s4, %s3260_s9  ;;  %p3264_p1 = scmp.lt.u32.totalorder %s3260_s9, %s4440_s4 }
 0x63e   :  { %p3266_p2 = pnand %p3264_p1, %p3261_p0 }
 0x640   :  { %3269 = shalt.err (!%p3266_p2)
}
 0x641   :  { %1295 = dma.vmem_to_hbm [thread:$0]  %s1293_s12, 128, %s4440_s4, [#allocation8]  }
 0x642   :  { %3276 = dma.done.wait [#allocation8], 128  }
 0x643   :  { %3277 = vsyncadd [#allocation8], 4294967168 }
 0x644   :  { %1299 = vsyncpa [#allocation7], 1 }
 0x645   :  { %1300 = vsyncpa [#allocation8], 1 }
 0x646   :  { %1301 = vsyncmov [#allocation3] }
 0x649   :  { %s1302_s8 = vpop.sfrf %1301 }
 0x64a   :  { %p1594_p3 = scmp.ne.s32.totalorder %s1302_s8, 0 }
 0x64c   :  { %1306 = shalt.err (%p1594_p3)  }
 0x64d   :  { %1308 = vsyncmov [#allocation3 + $0x1] }
 0x650   :  { %s1309_s22 = vpop.sfrf %1308 }
 0x651   :  { %p1595_p4 = scmp.ne.s32.totalorder %s1309_s22, 0 }
 0x653   :  { %1313 = shalt.err (%p1595_p4)  }

</bundles_post_ra>
